<compile_context>
chip_gen: v7x
topology: tpu7x:2x2x1
jax: 0.10.0
libtpu: 0.0.40
codegen_flags: <defaults>
</compile_context>

<pallas_src>
import functools
import math

import jax
import jax.numpy as jnp
from jax.experimental import pallas as pl
from jax.experimental.pallas import tpu as pltpu


_CompilerParams = getattr(pltpu, "CompilerParams", None)
if _CompilerParams is None:                      # older-jax fallback
    _CompilerParams = getattr(pltpu, "TPUCompilerParams")


def _round_up(x, m):
    return ((x + m - 1) // m) * m


def _ceil_div(a, b):
    return -(-a // b)


# ---------------------------------------------------------------------------
# Pallas kernels
# ---------------------------------------------------------------------------
def _mm_kernel(x_ref, w_ref, s_ref, t_ref, o_ref, *, act):
    """out = act((x @ w) * scale + shift)  -- conv(im2col) fused with BN/bias."""
    y = jnp.dot(x_ref[...], w_ref[...], preferred_element_type=jnp.float32)
    y = y * s_ref[...] + t_ref[...]
    if act == "relu":
        y = jnp.maximum(y, 0.0)
    o_ref[...] = y.astype(o_ref.dtype)


def _mm_maskrelu_kernel(x_ref, w_ref, s_ref, t_ref, m_ref, o_ref):
    """out = (x@w)*scale + shift, ReLU only where mask>0 (fused q/k/v conv)."""
    y = jnp.dot(x_ref[...], w_ref[...], preferred_element_type=jnp.float32)
    y = y * s_ref[...] + t_ref[...]
    o_ref[...] = jnp.where(m_ref[...] > 0.5, jnp.maximum(y, 0.0), y).astype(o_ref.dtype)


def _mm_res_relu_kernel(x_ref, w_ref, s_ref, t_ref, r_ref, o_ref, *, res_scale):
    """out = relu(((x@w)*scale + shift) * res_scale + residual)  (final ConvLinear)."""
    y = jnp.dot(x_ref[...], w_ref[...], preferred_element_type=jnp.float32)
    y = (y * s_ref[...] + t_ref[...]) * res_scale + r_ref[...]
    o_ref[...] = jnp.maximum(y, 0.0).astype(o_ref.dtype)


def _affinity_attn_kernel(qkv_ref, x_ref, xt_ref, gs_ref, gc_ref, o_ref, *, cq):
    """Fused SpatialAttentionBlock + ChannelAttentionBlock for one (branch,batch) slice.

    qkv : (HW, 2*cq + C)  fused q/k/v conv output (q,k already BN+ReLU'd, v has bias)
    x   : (HW, C)         block input (hs_bn affine already applied)
    xt  : (C, HW)         same, channels-major (keeps all matmuls in A@B / A@B^T form)
    gs,gc: (1, 1)         gamma parameters
    out : (HW, C)         sab + cab
    """
    qkv = qkv_ref[...]
    qf = qkv[:, :cq]
    kf = qkv[:, cq:2 * cq]
    vf = qkv[:, 2 * cq:]
    xf = x_ref[...]
    xt = xt_ref[...]
    gs = gs_ref[...]
    gc = gc_ref[...]

    # ---- spatial attention: pixel-pixel affinity -------------------------------
    aff_s = jax.lax.dot_general(qf, kf, (((1,), (1,)), ((), ())),
                                preferred_element_type=jnp.float32)        # (HW, HW)
    aff_s = aff_s - jnp.max(aff_s, axis=-1, keepdims=True)
    es = jnp.exp(aff_s)
    ps = es * pl.reciprocal(jnp.sum(es, axis=-1, keepdims=True), approx=True)
    sab = gs * jnp.dot(ps, vf, preferred_element_type=jnp.float32) + xf    # (HW, C)

    # ---- channel attention: channel-channel affinity ---------------------------
    # softmax(max - aff) with internal stabilisation == exp(min - aff) / sum:
    # a single reduction pass replaces the max-subtract-max chain.
    aff_c = jax.lax.dot_general(xt, xt, (((1,), (1,)), ((), ())),
                                preferred_element_type=jnp.float32)        # (C, C)
    aff_c = jnp.min(aff_c, axis=-1, keepdims=True) - aff_c
    ec = jnp.exp(aff_c)
    pc = ec * pl.reciprocal(jnp.sum(ec, axis=-1, keepdims=True), approx=True)
    wc = jax.lax.dot_general(xf, pc, (((1,), (1,)), ((), ())),
                             preferred_element_type=jnp.float32)           # (HW, C)
    cab = gc * wc + xf

    o_ref[...] = (sab + cab).astype(o_ref.dtype)


# ---------------------------------------------------------------------------
# Pallas-call wrappers
# ---------------------------------------------------------------------------
def _gmm(x, w, scale, shift, *, act="none", relu_mask=None, residual=None,
         res_scale=1.0, tm=512):
    """Grouped fused matmul: (G,M,K)@(G,K,N) * scale + shift (+mask-ReLU / +residual)."""
    g, m, k = x.shape
    n = w.shape[-1]
    tm = min(tm, _round_up(m, 8))
    if g * _ceil_div(m, tm) < 2 and m > 8:
        tm = _round_up(_ceil_div(m, 2), 8)      # keep >= 2 grid steps (v7x megacore)
    mp = _round_up(m, tm)
    if mp != m:
        x = jnp.pad(x, ((0, 0), (0, mp - m), (0, 0)))
        if residual is not None:
            residual = jnp.pad(residual, ((0, 0), (0, mp - m), (0, 0)))

    in_specs = [
        pl.BlockSpec((None, tm, k), lambda gi, mi: (gi, mi, 0)),
        pl.BlockSpec((None, k, n), lambda gi, mi: (gi, 0, 0)),
        pl.BlockSpec((None, 1, n), lambda gi, mi: (gi, 0, 0)),
        pl.BlockSpec((None, 1, n), lambda gi, mi: (gi, 0, 0)),
    ]
    args = [x, w, scale, shift]
    if residual is not None:
        kernel = functools.partial(_mm_res_relu_kernel, res_scale=res_scale)
        in_specs.append(pl.BlockSpec((None, tm, n), lambda gi, mi: (gi, mi, 0)))
        args.append(residual)
    elif relu_mask is not None:
        kernel = _mm_maskrelu_kernel
        in_specs.append(pl.BlockSpec((1, n), lambda gi, mi: (0, 0)))
        args.append(relu_mask)
    else:
        kernel = functools.partial(_mm_kernel, act=act)

    out = pl.pallas_call(
        kernel,
        out_shape=jax.ShapeDtypeStruct((g, mp, n), jnp.float32),
        grid=(g, mp // tm),
        in_specs=in_specs,
        out_specs=pl.BlockSpec((None, tm, n), lambda gi, mi: (gi, mi, 0)),
        compiler_params=_CompilerParams(dimension_semantics=("parallel", "parallel")),
    )(*args)
    return out[:, :m]


def _im2col(x_nhwc, kh, kw, stride, padding, dilation):
    """Patch extraction (wrapper-side XLA layout plumbing), channels-last."""
    b, h, w, c = x_nhwc.shape
    ph, pw = padding
    xp = jnp.pad(x_nhwc, ((0, 0), (ph, ph), (pw, pw), (0, 0)))
    ho = (h + 2 * ph - dilation * (kh - 1) - 1) // stride + 1
    wo = (w + 2 * pw - dilation * (kw - 1) - 1) // stride + 1
    cols = []
    for i in range(kh):
        for j in range(kw):
            r0 = i * dilation
            c0 = j * dilation
            cols.append(xp[:, r0:r0 + stride * (ho - 1) + 1:stride,
                              c0:c0 + stride * (wo - 1) + 1:stride, :])
    return jnp.concatenate(cols, axis=-1), ho, wo


def _conv_bn_act(x_nhwc, p, *, stride=1, padding=(0, 0), dilation=1, act="relu"):
    """Single Conv2d (+ folded BN / bias) (+ ReLU) via im2col + Pallas matmul."""
    w = p["w"]
    kh, kw, cin, cout = w.shape
    b = x_nhwc.shape[0]
    if (kh, kw) == (1, 1) and padding == (0, 0) and stride == 1:
        cols, ho, wo = x_nhwc, x_nhwc.shape[1], x_nhwc.shape[2]
    else:
        cols, ho, wo = _im2col(x_nhwc, kh, kw, stride, padding, dilation)
    xm = cols.reshape(1, b * ho * wo, kh * kw * cin)
    y = _gmm(xm, w.reshape(1, kh * kw * cin, cout),
             p["scale"][None], p["shift"][None], act=act)
    return y[0].reshape(b, ho, wo, cout)


def _hs_block_grouped(ys, hs_params, dils):
    """HSBlock_rfb (s=4) for the four branches; one grouped matmul per HS step."""
    s = 4
    nb = len(ys)
    b, h, w, c = ys[0].shape
    csize = _ceil_div(c, s)
    chunks = []
    for y in ys:
        ch, start = [], 0
        for _ in range(s):
            end = min(start + csize, c)
            ch.append(y[..., start:end])
            start = end
        chunks.append(ch)
    for i in range(1, s):
        cols = []
        for bi in range(nb):
            d = dils[bi]
            col, _, _ = _im2col(chunks[bi][i], 3, 3, 1, (d, d), d)
            cols.append(col.reshape(1, b * h * w, -1))
        xg = jnp.concatenate(cols, axis=0)                          # (4, M, 9*ch_i)
        wg = jnp.stack([hs_params[bi][i - 1]["w"].reshape(
            -1, hs_params[bi][i - 1]["w"].shape[-1]) for bi in range(nb)], axis=0)
        sg = jnp.stack([hs_params[bi][i - 1]["scale"] for bi in range(nb)], axis=0)
        tg = jnp.stack([hs_params[bi][i - 1]["shift"] for bi in range(nb)], axis=0)
        zg = _gmm(xg, wg, sg, tg, act="relu")                       # (4, M, ch_i)
        for bi in range(nb):
            z = zg[bi].reshape(b, h, w, -1)
            if i == s - 1:
                chunks[bi][0] = jnp.concatenate([chunks[bi][0], z], axis=-1)
            else:
                half = _ceil_div(z.shape[-1], 2)                    # torch .chunk(2)
                chunks[bi][0] = jnp.concatenate([chunks[bi][0], z[..., :half]], axis=-1)
                chunks[bi][i + 1] = jnp.concatenate(
                    [chunks[bi][i + 1], z[..., half:]], axis=-1)
    return [chunks[bi][0] for bi in range(nb)]


def _fused_qkv(att_p, c):
    """Build one (9c, 2cq+c) weight for q/(1,3), k/(3,1), v/1x1 on a shared 3x3 im2col."""
    wq, wk, wv = att_p["q"]["w"], att_p["k"]["w"], att_p["v"]["w"]
    cq = wq.shape[-1]
    wf = jnp.zeros((3, 3, c, 2 * cq + c), jnp.float32)
    wf = wf.at[1, :, :, :cq].set(wq[0])            # (1,3) kernel -> centre row taps
    wf = wf.at[:, 1, :, cq:2 * cq].set(wk[:, 0])   # (3,1) kernel -> centre col taps
    wf = wf.at[1, 1, :, 2 * cq:].set(wv[0, 0])     # 1x1 kernel  -> centre tap
    sf = jnp.concatenate([att_p["q"]["scale"], att_p["k"]["scale"],
                          att_p["v"]["scale"]], axis=-1)
    tf = jnp.concatenate([att_p["q"]["shift"], att_p["k"]["shift"],
                          att_p["v"]["shift"]], axis=-1)
    return wf.reshape(9 * c, 2 * cq + c), sf, tf, cq


def _affinity_attention_call(qkv, xf, xt, gs, gc, cq):
    g, hw, c = xf.shape
    nqkv = qkv.shape[-1]
    return pl.pallas_call(
        functools.partial(_affinity_attn_kernel, cq=cq),
        out_shape=jax.ShapeDtypeStruct((g, hw, c), jnp.float32),
        grid=(g,),
        in_specs=[
            pl.BlockSpec((None, hw, nqkv), lambda i: (i, 0, 0)),
            pl.BlockSpec((None, hw, c), lambda i: (i, 0, 0)),
            pl.BlockSpec((None, c, hw), lambda i: (i, 0, 0)),
            pl.BlockSpec((None, 1, 1), lambda i: (i, 0, 0)),
            pl.BlockSpec((None, 1, 1), lambda i: (i, 0, 0)),
        ],
        out_specs=pl.BlockSpec((None, hw, c), lambda i: (i, 0, 0)),
        compiler_params=_CompilerParams(dimension_semantics=("parallel",)),
    )(qkv, xf, xt, gs, gc)


# ---------------------------------------------------------------------------
# Pallas model forward
# ---------------------------------------------------------------------------
_BRANCHES = ("b0", "b1", "b2", "b3")


def rfb7a_hs_att_forward(x_nchw, params, *, stride=1, visual=1, scale=0.1):
    x = jnp.transpose(x_nchw, (0, 2, 3, 1)).astype(jnp.float32)      # NHWC layout
    b, h, w, cin = x.shape
    m0 = b * h * w

    # ---- stage 1: all stride-1 1x1 convs on x fused into one matmul ------------
    first_ps = [params[bn]["pre"][0] for bn in _BRANCHES] + [params["short"]]
    widths = [p["w"].shape[-1] for p in first_ps]
    if stride == 1:
        wcat = jnp.concatenate([p["w"].reshape(cin, -1) for p in first_ps], axis=-1)
        scat = jnp.concatenate([p["scale"] for p in first_ps], axis=-1)
        tcat = jnp.concatenate([p["shift"] for p in first_ps], axis=-1)
        y_all = _gmm(x.reshape(1, m0, cin), wcat[None], scat[None], tcat[None],
                     act="relu")[0]                                  # (M, sum widths)
        offs = [0]
        for wd in widths:
            offs.append(offs[-1] + wd)
        slabs = [y_all[:, offs[i]:offs[i + 1]].reshape(b, h, w, widths[i])
                 for i in range(len(widths))]
        pre0 = dict(zip(_BRANCHES, slabs[:4]))
        short = slabs[4]
    else:
        pre0 = {"b0": _conv_bn_act(x, params["b0"]["pre"][0], stride=stride)}
        for bn in _BRANCHES[1:]:
            pre0[bn] = _conv_bn_act(x, params[bn]["pre"][0])
        short = _conv_bn_act(x, params["short"], stride=stride)

    # ---- stage 2: remaining per-branch 3x3 pre-convs ----------------------------
    rest_cfgs = {"b0": (), "b1": ((1, stride),),
                 "b2": ((1, 1), (1, stride)),
                 "b3": ((1, 1), (1, 1), (1, stride))}
    ys = []
    for bn in _BRANCHES:
        y = pre0[bn]
        for cp, (pad, st) in zip(params[bn]["pre"][1:], rest_cfgs[bn]):
            y = _conv_bn_act(y, cp, stride=st, padding=(pad, pad), act="relu")
        ys.append(y)

    # ---- stage 3: HSBlock_rfb, grouped across the four branches -----------------
    hs_dils = (visual, visual + 1, 2 * visual + 2, 3 * visual + 3)
    ys = _hs_block_grouped(ys, [params[bn]["hs"] for bn in _BRANCHES], hs_dils)

    # ---- stage 4: hs_bn affine (plain XLA elementwise; no extra pallas_call) ----
    ys = [ys[i] * params[bn]["hs_bn"]["scale"].reshape(1, 1, 1, -1)
          + params[bn]["hs_bn"]["shift"].reshape(1, 1, 1, -1)
          for i, bn in enumerate(_BRANCHES)]

    bb, ho, wo, c2 = ys[0].shape
    hw = ho * wo
    m = bb * hw
    y_stack = jnp.stack(ys, axis=0)                                  # (4, B, Ho, Wo, c2)

    # ---- stage 5: fused q/k/v conv: one grouped matmul over a shared im2col -----
    fused = [_fused_qkv(params[bn]["att"], c2) for bn in _BRANCHES]
    cq = fused[0][3]
    cols, _, _ = _im2col(y_stack.reshape(4 * bb, ho, wo, c2), 3, 3, 1, (1, 1), 1)
    xg = cols.reshape(4, m, 9 * c2)
    wg = jnp.stack([f[0] for f in fused], axis=0)
    sg = jnp.stack([f[1] for f in fused], axis=0)
    tg = jnp.stack([f[2] for f in fused], axis=0)
    relu_mask = jnp.concatenate([jnp.ones((1, 2 * cq), jnp.float32),
                                 jnp.zeros((1, c2), jnp.float32)], axis=-1)
    qkv = _gmm(xg, wg, sg, tg, relu_mask=relu_mask)                  # (4, M, 2cq+c2)
    qkv = qkv.reshape(4 * bb, hw, 2 * cq + c2)

    # ---- stage 6: AffinityAttention for all branches: one call, grid=(4B,) ------
    xf = y_stack.reshape(4 * bb, hw, c2)
    xt = jnp.swapaxes(xf, 1, 2)
    gs = jnp.repeat(jnp.stack([params[bn]["att"]["gamma_s"] for bn in _BRANCHES], 0),
                    bb, axis=0)
    gc = jnp.repeat(jnp.stack([params[bn]["att"]["gamma_c"] for bn in _BRANCHES], 0),
                    bb, axis=0)
    att = _affinity_attention_call(qkv, xf, xt, gs, gc, cq)          # (4B, HW, c2)

    # ---- stage 7: concat + ConvLinear*scale + shortcut + ReLU (one matmul) ------
    cat = jnp.transpose(att.reshape(4, bb, hw, c2), (1, 2, 0, 3)).reshape(m, 4 * c2)
    lin = params["lin"]
    out = _gmm(cat[None], lin["w"].reshape(4 * c2, -1)[None],
               lin["scale"][None], lin["shift"][None],
               residual=short.reshape(1, m, -1), res_scale=scale)[0]
    out = out.reshape(bb, ho, wo, -1)
    return jnp.transpose(out, (0, 3, 1, 2))                          # back to NCHW


# ---------------------------------------------------------------------------
# Pure-JAX (XLA) reference for correctness checking
# ---------------------------------------------------------------------------
def _ref_conv(x, p, *, stride=1, padding=(0, 0), dilation=1, act="relu"):
    y = jax.lax.conv_general_dilated(
        x, p["w"], window_strides=(stride, stride),
        padding=((padding[0], padding[0]), (padding[1], padding[1])),
        rhs_dilation=(dilation, dilation),
        dimension_numbers=("NHWC", "HWIO", "NHWC"),
        precision=jax.lax.Precision.HIGHEST)
    y = y * p["scale"].reshape(1, 1, 1, -1) + p["shift"].reshape(1, 1, 1, -1)
    if act == "relu":
        y = jnp.maximum(y, 0.0)
    return y


def _ref_hs_block(y, convs, d):
    c = y.shape[-1]
    csize = _ceil_div(c, 4)
    chunks, start = [], 0
    for _ in range(4):
        end = min(start + csize, c)
        chunks.append(y[..., start:end])
        start = end
    for i in range(1, 4):
        z = _ref_conv(chunks[i], convs[i - 1], padding=(d, d), dilation=d, act="relu")
        if i == 3:
            chunks[0] = jnp.concatenate([chunks[0], z], axis=-1)
        else:
            half = _ceil_div(z.shape[-1], 2)
            chunks[0] = jnp.concatenate([chunks[0], z[..., :half]], axis=-1)
            chunks[i + 1] = jnp.concatenate([chunks[i + 1], z[..., half:]], axis=-1)
    return chunks[0]


def _ref_attention(x, p):
    b, h, w, c = x.shape
    hw = h * w
    hi = jax.lax.Precision.HIGHEST
    q = _ref_conv(x, p["q"], padding=(0, 1), act="relu").reshape(b, hw, -1)
    k = _ref_conv(x, p["k"], padding=(1, 0), act="relu").reshape(b, hw, -1)
    v = _ref_conv(x, p["v"], padding=(0, 0), act="none").reshape(b, hw, c)
    xf = x.reshape(b, hw, c)

    aff = jax.nn.softmax(jnp.einsum("bic,bjc->bij", q, k, precision=hi), axis=-1)
    sab = p["gamma_s"][0, 0] * jnp.einsum("bij,bjc->bic", aff, v, precision=hi) + xf

    affc = jnp.einsum("bic,bid->bcd", xf, xf, precision=hi)
    affc = jax.nn.softmax(jnp.max(affc, axis=-1, keepdims=True) - affc, axis=-1)
    cab = p["gamma_c"][0, 0] * jnp.einsum("bcd,bid->bic", affc, xf, precision=hi) + xf
    return (sab + cab).reshape(b, h, w, c)


def rfb7a_hs_att_reference(x_nchw, params, *, stride=1, visual=1, scale=0.1):
    x = jnp.transpose(x_nchw, (0, 2, 3, 1)).astype(jnp.float32)
    hs_dils = (visual, visual + 1, 2 * visual + 2, 3 * visual + 3)
    rest_cfgs = ((), ((1, stride),), ((1, 1), (1, stride)),
                 ((1, 1), (1, 1), (1, stride)))
    outs = []
    for bi, bn in enumerate(_BRANCHES):
        bp = params[bn]
        y = _ref_conv(x, bp["pre"][0], stride=(stride if bi == 0 else 1), act="relu")
        for cp, (pad, st) in zip(bp["pre"][1:], rest_cfgs[bi]):
            y = _ref_conv(y, cp, stride=st, padding=(pad, pad), act="relu")
        y = _ref_hs_block(y, bp["hs"], hs_dils[bi])
        y = (y * bp["hs_bn"]["scale"].reshape(1, 1, 1, -1)
             + bp["hs_bn"]["shift"].reshape(1, 1, 1, -1))
        y = _ref_attention(y, bp["att"])
        outs.append(y)
    cat = jnp.concatenate(outs, axis=-1)
    lin = _ref_conv(cat, params["lin"], act="none")
    short = _ref_conv(x, params["short"], stride=stride, act="relu")
    out = jnp.maximum(lin * scale + short, 0.0)
    return jnp.transpose(out, (0, 3, 1, 2))


# ---------------------------------------------------------------------------
# Parameter construction (folded eval-mode BatchNorm)
# ---------------------------------------------------------------------------
class _KeyGen:
    def __init__(self, key):
        self._key = key

    def __call__(self):
        self._key, sub = jax.random.split(self._key)
        return sub


def _make_conv_params(key, kh, kw, cin, cout, *, bias=False, bn=True, eps=1e-5):
    k1, k2, k3, k4, k5, k6 = jax.random.split(key, 6)
    w = jax.random.normal(k1, (kh, kw, cin, cout), jnp.float32) / math.sqrt(kh * kw * cin)
    b = (0.1 * jax.random.normal(k2, (cout,), jnp.float32)
         if bias else jnp.zeros((cout,), jnp.float32))
    if bn:
        g = 1.0 + 0.1 * jax.random.normal(k3, (cout,), jnp.float32)
        beta = 0.1 * jax.random.normal(k4, (cout,), jnp.float32)
        mean = 0.1 * jax.random.normal(k5, (cout,), jnp.float32)
        var = 0.5 + jnp.abs(jax.random.normal(k6, (cout,), jnp.float32))
        scale = g * jax.lax.rsqrt(var + eps)
        shift = beta + scale * (b - mean)
    else:
        scale = jnp.ones((cout,), jnp.float32)
        shift = b
    return {"w": w, "scale": scale.reshape(1, cout), "shift": shift.reshape(1, cout)}


def _make_bn_params(key, c, eps=1e-5):
    k3, k4, k5, k6 = jax.random.split(key, 4)
    g = 1.0 + 0.1 * jax.random.normal(k3, (c,), jnp.float32)
    beta = 0.1 * jax.random.normal(k4, (c,), jnp.float32)
    mean = 0.1 * jax.random.normal(k5, (c,), jnp.float32)
    var = 0.5 + jnp.abs(jax.random.normal(k6, (c,), jnp.float32))
    scale = g * jax.lax.rsqrt(var + eps)
    shift = beta - scale * mean
    return {"scale": scale.reshape(1, c), "shift": shift.reshape(1, c)}


def _hs_channels(in_ch, s):
    ch, ch_last = ((in_ch // s, in_ch // s) if in_ch % s == 0
                   else (in_ch // s + 1, in_ch % s))
    chans, acc = [], 0
    for i in range(1, s):
        if i == 1:
            c = ch
            acc = c // 2
        elif i == s - 1:
            c = ch_last + acc
        else:
            c = ch + acc
            acc = c // 2
        chans.append(c)
    return chans


def init_rfb7a_params(key, in_planes, out_planes):
    kg = _KeyGen(key)
    inter = in_planes // 8
    c2 = 2 * inter

    def conv(kh, kw, cin, cout, bias=False, bn=True):
        return _make_conv_params(kg(), kh, kw, cin, cout, bias=bias, bn=bn)

    def hs(in_ch, s=4):
        return [conv(3, 3, ch, ch) for ch in _hs_channels(in_ch, s)]

    def att(c):
        cq = max(c // 8, 1)
        return {
            "q": conv(1, 3, c, cq),
            "k": conv(3, 1, c, cq),
            "v": conv(1, 1, c, c, bias=True, bn=False),
            # PyTorch initialises gamma to 0; small non-zero values are used here so
            # the attention path actually contributes numerically to the output.
            "gamma_s": 0.1 * jax.random.normal(kg(), (1, 1), jnp.float32),
            "gamma_c": 0.1 * jax.random.normal(kg(), (1, 1), jnp.float32),
        }

    def branch(pre_shapes):
        return {"pre": [conv(kh, kw, ci, co) for (kh, kw, ci, co) in pre_shapes],
                "hs": hs(c2), "hs_bn": _make_bn_params(kg(), c2), "att": att(c2)}

    return {
        "b0": branch([(1, 1, in_planes, c2)]),
        "b1": branch([(1, 1, in_planes, inter), (3, 3, inter, c2)]),
        "b2": branch([(1, 1, in_planes, inter),
                      (3, 3, inter, inter // 2 * 3),
                      (3, 3, inter // 2 * 3, c2)]),
        "b3": branch([(1, 1, in_planes, inter),
                      (3, 3, inter, inter // 2 * 3),
                      (3, 3, inter // 2 * 3, inter // 2 * 3),
                      (3, 3, inter // 2 * 3, c2)]),
        "lin": conv(1, 1, 8 * inter, out_planes),
        "short": conv(1, 1, in_planes, out_planes),
    }


if __name__ == "__main__":
    in_planes, out_planes = 32, 32            # inter_planes = 4, branch width = 8
    B, H, W = 2, 16, 16

    root = jax.random.PRNGKey(0)
    kp, kx = jax.random.split(root)
    params = init_rfb7a_params(kp, in_planes, out_planes)
    x = jax.random.normal(kx, (B, in_planes, H, W), dtype=jnp.float32)

    out = jax.block_until_ready(jax.jit(rfb7a_hs_att_forward)(x, params))
    ref = jax.block_until_ready(jax.jit(rfb7a_hs_att_reference)(x, params))

    assert out.shape == (B, out_planes, H, W), out.shape
    assert bool(jnp.all(jnp.isfinite(out))), "non-finite values in output"
    max_err = float(jnp.max(jnp.abs(out - ref)))
    assert max_err < 1e-2, f"mismatch vs reference (max abs err {max_err})"
    print("KERNEL_OK")
</pallas_src>

<mosaic_0001>
module attributes {stable_mosaic.version = 11 : i64} {
  func.func @_mm_kernel(%arg0: i32, %arg1: i32, %arg2: memref<1x256x32xf32, #tpu.memory_space<vmem>>, %arg3: memref<1x32x52xf32, #tpu.memory_space<vmem>>, %arg4: memref<1x1x52xf32, #tpu.memory_space<vmem>>, %arg5: memref<1x1x52xf32, #tpu.memory_space<vmem>>, %arg6: memref<1x256x52xf32, #tpu.memory_space<vmem>>) attributes {dimension_semantics = [#tpu.dimension_semantics<parallel>, #tpu.dimension_semantics<parallel>], iteration_bounds = array<i64: 1, 2>, scalar_prefetch = 0 : i64, scratch_operands = 0 : i64, tpu.core_type = #tpu.core_type<tc>, window_params = [{transform_indices = @transform_0, window_bounds = array<i64: 1, 256, 32>}, {transform_indices = @transform_1, window_bounds = array<i64: 1, 32, 52>}, {transform_indices = @transform_2, window_bounds = array<i64: 1, 1, 52>}, {transform_indices = @transform_3, window_bounds = array<i64: 1, 1, 52>}, {transform_indices = @transform_4, window_bounds = array<i64: 1, 256, 52>}]} {
    %c0 = arith.constant 0 : index
    %c0_0 = arith.constant 0 : index
    %c0_1 = arith.constant 0 : index
    %0 = vector.load %arg2[%c0, %c0_0, %c0_1] : memref<1x256x32xf32, #tpu.memory_space<vmem>>, vector<1x256x32xf32>
    %1 = vector.shape_cast %0 : vector<1x256x32xf32> to vector<256x32xf32>
    %c0_2 = arith.constant 0 : index
    %c0_3 = arith.constant 0 : index
    %c0_4 = arith.constant 0 : index
    %2 = vector.load %arg3[%c0_2, %c0_3, %c0_4] : memref<1x32x52xf32, #tpu.memory_space<vmem>>, vector<1x32x52xf32>
    %3 = vector.shape_cast %2 : vector<1x32x52xf32> to vector<32x52xf32>
    %cst = arith.constant dense<0.000000e+00> : vector<256x52xf32>
    %4 = tpu.matmul %1, %3, %cst {dimension_numbers = #tpu.dot_dimension_numbers<[1], [0], [0], [1], [0, 0, 1, 1], [], []>} : vector<256x32xf32>, vector<32x52xf32>, vector<256x52xf32> -> vector<256x52xf32>
    %c0_5 = arith.constant 0 : index
    %c0_6 = arith.constant 0 : index
    %c0_7 = arith.constant 0 : index
    %5 = vector.load %arg4[%c0_5, %c0_6, %c0_7] : memref<1x1x52xf32, #tpu.memory_space<vmem>>, vector<1x1x52xf32>
    %6 = vector.shape_cast %5 : vector<1x1x52xf32> to vector<1x52xf32>
    %7 = vector.broadcast %6 : vector<1x52xf32> to vector<256x52xf32>
    %8 = arith.mulf %4, %7 : vector<256x52xf32>
    %c0_8 = arith.constant 0 : index
    %c0_9 = arith.constant 0 : index
    %c0_10 = arith.constant 0 : index
    %9 = vector.load %arg5[%c0_8, %c0_9, %c0_10] : memref<1x1x52xf32, #tpu.memory_space<vmem>>, vector<1x1x52xf32>
    %10 = vector.shape_cast %9 : vector<1x1x52xf32> to vector<1x52xf32>
    %11 = vector.broadcast %10 : vector<1x52xf32> to vector<256x52xf32>
    %12 = arith.addf %8, %11 : vector<256x52xf32>
    %cst_11 = arith.constant 0.000000e+00 : f32
    %13 = vector.broadcast %cst_11 : f32 to vector<256x52xf32>
    %14 = arith.maximumf %12, %13 : vector<256x52xf32>
    %c0_12 = arith.constant 0 : index
    %c0_13 = arith.constant 0 : index
    %c0_14 = arith.constant 0 : index
    %15 = vector.load %arg6[%c0_12, %c0_13, %c0_14] : memref<1x256x52xf32, #tpu.memory_space<vmem>>, vector<1x256x52xf32>
    %16 = vector.shape_cast %15 : vector<1x256x52xf32> to vector<256x52xf32>
    %17 = vector.shape_cast %14 : vector<256x52xf32> to vector<1x256x52xf32>
    tpu.vector_store %arg6[%c0_12, %c0_13, %c0_14], %17 {strides = array<i32>} : memref<1x256x52xf32, #tpu.memory_space<vmem>>, vector<1x256x52xf32>,
    return
  }
  func.func @transform_0(%arg0: i32, %arg1: i32) -> (i32, i32, i32) {
    %c0_i32 = arith.constant 0 : i32
    %c0_i32_0 = arith.constant 0 : i32
    return %arg0, %arg1, %c0_i32 : i32, i32, i32
  }
  func.func @transform_1(%arg0: i32, %arg1: i32) -> (i32, i32, i32) {
    %c0_i32 = arith.constant 0 : i32
    %c0_i32_0 = arith.constant 0 : i32
    %c0_i32_1 = arith.constant 0 : i32
    return %arg0, %c0_i32, %c0_i32_0 : i32, i32, i32
  }
  func.func @transform_2(%arg0: i32, %arg1: i32) -> (i32, i32, i32) {
    %c0_i32 = arith.constant 0 : i32
    %c0_i32_0 = arith.constant 0 : i32
    %c0_i32_1 = arith.constant 0 : i32
    return %arg0, %c0_i32, %c0_i32_0 : i32, i32, i32
  }
  func.func @transform_3(%arg0: i32, %arg1: i32) -> (i32, i32, i32) {
    %c0_i32 = arith.constant 0 : i32
    %c0_i32_0 = arith.constant 0 : i32
    %c0_i32_1 = arith.constant 0 : i32
    return %arg0, %c0_i32, %c0_i32_0 : i32, i32, i32
  }
  func.func @transform_4(%arg0: i32, %arg1: i32) -> (i32, i32, i32) {
    %c0_i32 = arith.constant 0 : i32
    %c0_i32_0 = arith.constant 0 : i32
    return %arg0, %arg1, %c0_i32 : i32, i32, i32
  }
}

module attributes {stable_mosaic.version = 11 : i64} {
  func.func @_mm_kernel(%arg0: i32, %arg1: i32, %arg2: memref<1x256x36xf32, #tpu.memory_space<vmem>>, %arg3: memref<1x36x8xf32, #tpu.memory_space<vmem>>, %arg4: memref<1x1x8xf32, #tpu.memory_space<vmem>>, %arg5: memref<1x1x8xf32, #tpu.memory_space<vmem>>, %arg6: memref<1x256x8xf32, #tpu.memory_space<vmem>>) attributes {dimension_semantics = [#tpu.dimension_semantics<parallel>, #tpu.dimension_semantics<parallel>], iteration_bounds = array<i64: 1, 2>, scalar_prefetch = 0 : i64, scratch_operands = 0 : i64, tpu.core_type = #tpu.core_type<tc>, window_params = [{transform_indices = @transform_0, window_bounds = array<i64: 1, 256, 36>}, {transform_indices = @transform_1, window_bounds = array<i64: 1, 36, 8>}, {transform_indices = @transform_2, window_bounds = array<i64: 1, 1, 8>}, {transform_indices = @transform_3, window_bounds = array<i64: 1, 1, 8>}, {transform_indices = @transform_4, window_bounds = array<i64: 1, 256, 8>}]} {
    %c0 = arith.constant 0 : index
    %c0_0 = arith.constant 0 : index
    %c0_1 = arith.constant 0 : index
    %0 = vector.load %arg2[%c0, %c0_0, %c0_1] : memref<1x256x36xf32, #tpu.memory_space<vmem>>, vector<1x256x36xf32>
    %1 = vector.shape_cast %0 : vector<1x256x36xf32> to vector<256x36xf32>
    %c0_2 = arith.constant 0 : index
    %c0_3 = arith.constant 0 : index
    %c0_4 = arith.constant 0 : index
    %2 = vector.load %arg3[%c0_2, %c0_3, %c0_4] : memref<1x36x8xf32, #tpu.memory_space<vmem>>, vector<1x36x8xf32>
    %3 = vector.shape_cast %2 : vector<1x36x8xf32> to vector<36x8xf32>
    %cst = arith.constant dense<0.000000e+00> : vector<256x8xf32>
    %4 = tpu.matmul %1, %3, %cst {dimension_numbers = #tpu.dot_dimension_numbers<[1], [0], [0], [1], [0, 0, 1, 1], [], []>} : vector<256x36xf32>, vector<36x8xf32>, vector<256x8xf32> -> vector<256x8xf32>
    %c0_5 = arith.constant 0 : index
    %c0_6 = arith.constant 0 : index
    %c0_7 = arith.constant 0 : index
    %5 = vector.load %arg4[%c0_5, %c0_6, %c0_7] : memref<1x1x8xf32, #tpu.memory_space<vmem>>, vector<1x1x8xf32>
    %6 = vector.shape_cast %5 : vector<1x1x8xf32> to vector<1x8xf32>
    %7 = vector.broadcast %6 : vector<1x8xf32> to vector<256x8xf32>
    %8 = arith.mulf %4, %7 : vector<256x8xf32>
    %c0_8 = arith.constant 0 : index
    %c0_9 = arith.constant 0 : index
    %c0_10 = arith.constant 0 : index
    %9 = vector.load %arg5[%c0_8, %c0_9, %c0_10] : memref<1x1x8xf32, #tpu.memory_space<vmem>>, vector<1x1x8xf32>
    %10 = vector.shape_cast %9 : vector<1x1x8xf32> to vector<1x8xf32>
    %11 = vector.broadcast %10 : vector<1x8xf32> to vector<256x8xf32>
    %12 = arith.addf %8, %11 : vector<256x8xf32>
    %cst_11 = arith.constant 0.000000e+00 : f32
    %13 = vector.broadcast %cst_11 : f32 to vector<256x8xf32>
    %14 = arith.maximumf %12, %13 : vector<256x8xf32>
    %c0_12 = arith.constant 0 : index
    %c0_13 = arith.constant 0 : index
    %c0_14 = arith.constant 0 : index
    %15 = vector.load %arg6[%c0_12, %c0_13, %c0_14] : memref<1x256x8xf32, #tpu.memory_space<vmem>>, vector<1x256x8xf32>
    %16 = vector.shape_cast %15 : vector<1x256x8xf32> to vector<256x8xf32>
    %17 = vector.shape_cast %14 : vector<256x8xf32> to vector<1x256x8xf32>
    tpu.vector_store %arg6[%c0_12, %c0_13, %c0_14], %17 {strides = array<i32>} : memref<1x256x8xf32, #tpu.memory_space<vmem>>, vector<1x256x8xf32>,
    return
  }
  func.func @transform_0(%arg0: i32, %arg1: i32) -> (i32, i32, i32) {
    %c0_i32 = arith.constant 0 : i32
    %c0_i32_0 = arith.constant 0 : i32
    return %arg0, %arg1, %c0_i32 : i32, i32, i32
  }
  func.func @transform_1(%arg0: i32, %arg1: i32) -> (i32, i32, i32) {
    %c0_i32 = arith.constant 0 : i32
    %c0_i32_0 = arith.constant 0 : i32
    %c0_i32_1 = arith.constant 0 : i32
    return %arg0, %c0_i32, %c0_i32_0 : i32, i32, i32
  }
  func.func @transform_2(%arg0: i32, %arg1: i32) -> (i32, i32, i32) {
    %c0_i32 = arith.constant 0 : i32
    %c0_i32_0 = arith.constant 0 : i32
    %c0_i32_1 = arith.constant 0 : i32
    return %arg0, %c0_i32, %c0_i32_0 : i32, i32, i32
  }
  func.func @transform_3(%arg0: i32, %arg1: i32) -> (i32, i32, i32) {
    %c0_i32 = arith.constant 0 : i32
    %c0_i32_0 = arith.constant 0 : i32
    %c0_i32_1 = arith.constant 0 : i32
    return %arg0, %c0_i32, %c0_i32_0 : i32, i32, i32
  }
  func.func @transform_4(%arg0: i32, %arg1: i32) -> (i32, i32, i32) {
    %c0_i32 = arith.constant 0 : i32
    %c0_i32_0 = arith.constant 0 : i32
    return %arg0, %arg1, %c0_i32 : i32, i32, i32
  }
}

module attributes {stable_mosaic.version = 11 : i64} {
  func.func @_mm_kernel(%arg0: i32, %arg1: i32, %arg2: memref<1x256x36xf32, #tpu.memory_space<vmem>>, %arg3: memref<1x36x6xf32, #tpu.memory_space<vmem>>, %arg4: memref<1x1x6xf32, #tpu.memory_space<vmem>>, %arg5: memref<1x1x6xf32, #tpu.memory_space<vmem>>, %arg6: memref<1x256x6xf32, #tpu.memory_space<vmem>>) attributes {dimension_semantics = [#tpu.dimension_semantics<parallel>, #tpu.dimension_semantics<parallel>], iteration_bounds = array<i64: 1, 2>, scalar_prefetch = 0 : i64, scratch_operands = 0 : i64, tpu.core_type = #tpu.core_type<tc>, window_params = [{transform_indices = @transform_0, window_bounds = array<i64: 1, 256, 36>}, {transform_indices = @transform_1, window_bounds = array<i64: 1, 36, 6>}, {transform_indices = @transform_2, window_bounds = array<i64: 1, 1, 6>}, {transform_indices = @transform_3, window_bounds = array<i64: 1, 1, 6>}, {transform_indices = @transform_4, window_bounds = array<i64: 1, 256, 6>}]} {
    %c0 = arith.constant 0 : index
    %c0_0 = arith.constant 0 : index
    %c0_1 = arith.constant 0 : index
    %0 = vector.load %arg2[%c0, %c0_0, %c0_1] : memref<1x256x36xf32, #tpu.memory_space<vmem>>, vector<1x256x36xf32>
    %1 = vector.shape_cast %0 : vector<1x256x36xf32> to vector<256x36xf32>
    %c0_2 = arith.constant 0 : index
    %c0_3 = arith.constant 0 : index
    %c0_4 = arith.constant 0 : index
    %2 = vector.load %arg3[%c0_2, %c0_3, %c0_4] : memref<1x36x6xf32, #tpu.memory_space<vmem>>, vector<1x36x6xf32>
    %3 = vector.shape_cast %2 : vector<1x36x6xf32> to vector<36x6xf32>
    %cst = arith.constant dense<0.000000e+00> : vector<256x6xf32>
    %4 = tpu.matmul %1, %3, %cst {dimension_numbers = #tpu.dot_dimension_numbers<[1], [0], [0], [1], [0, 0, 1, 1], [], []>} : vector<256x36xf32>, vector<36x6xf32>, vector<256x6xf32> -> vector<256x6xf32>
    %c0_5 = arith.constant 0 : index
    %c0_6 = arith.constant 0 : index
    %c0_7 = arith.constant 0 : index
    %5 = vector.load %arg4[%c0_5, %c0_6, %c0_7] : memref<1x1x6xf32, #tpu.memory_space<vmem>>, vector<1x1x6xf32>
    %6 = vector.shape_cast %5 : vector<1x1x6xf32> to vector<1x6xf32>
    %7 = vector.broadcast %6 : vector<1x6xf32> to vector<256x6xf32>
    %8 = arith.mulf %4, %7 : vector<256x6xf32>
    %c0_8 = arith.constant 0 : index
    %c0_9 = arith.constant 0 : index
    %c0_10 = arith.constant 0 : index
    %9 = vector.load %arg5[%c0_8, %c0_9, %c0_10] : memref<1x1x6xf32, #tpu.memory_space<vmem>>, vector<1x1x6xf32>
    %10 = vector.shape_cast %9 : vector<1x1x6xf32> to vector<1x6xf32>
    %11 = vector.broadcast %10 : vector<1x6xf32> to vector<256x6xf32>
    %12 = arith.addf %8, %11 : vector<256x6xf32>
    %cst_11 = arith.constant 0.000000e+00 : f32
    %13 = vector.broadcast %cst_11 : f32 to vector<256x6xf32>
    %14 = arith.maximumf %12, %13 : vector<256x6xf32>
    %c0_12 = arith.constant 0 : index
    %c0_13 = arith.constant 0 : index
    %c0_14 = arith.constant 0 : index
    %15 = vector.load %arg6[%c0_12, %c0_13, %c0_14] : memref<1x256x6xf32, #tpu.memory_space<vmem>>, vector<1x256x6xf32>
    %16 = vector.shape_cast %15 : vector<1x256x6xf32> to vector<256x6xf32>
    %17 = vector.shape_cast %14 : vector<256x6xf32> to vector<1x256x6xf32>
    tpu.vector_store %arg6[%c0_12, %c0_13, %c0_14], %17 {strides = array<i32>} : memref<1x256x6xf32, #tpu.memory_space<vmem>>, vector<1x256x6xf32>,
    return
  }
  func.func @transform_0(%arg0: i32, %arg1: i32) -> (i32, i32, i32) {
    %c0_i32 = arith.constant 0 : i32
    %c0_i32_0 = arith.constant 0 : i32
    return %arg0, %arg1, %c0_i32 : i32, i32, i32
  }
  func.func @transform_1(%arg0: i32, %arg1: i32) -> (i32, i32, i32) {
    %c0_i32 = arith.constant 0 : i32
    %c0_i32_0 = arith.constant 0 : i32
    %c0_i32_1 = arith.constant 0 : i32
    return %arg0, %c0_i32, %c0_i32_0 : i32, i32, i32
  }
  func.func @transform_2(%arg0: i32, %arg1: i32) -> (i32, i32, i32) {
    %c0_i32 = arith.constant 0 : i32
    %c0_i32_0 = arith.constant 0 : i32
    %c0_i32_1 = arith.constant 0 : i32
    return %arg0, %c0_i32, %c0_i32_0 : i32, i32, i32
  }
  func.func @transform_3(%arg0: i32, %arg1: i32) -> (i32, i32, i32) {
    %c0_i32 = arith.constant 0 : i32
    %c0_i32_0 = arith.constant 0 : i32
    %c0_i32_1 = arith.constant 0 : i32
    return %arg0, %c0_i32, %c0_i32_0 : i32, i32, i32
  }
  func.func @transform_4(%arg0: i32, %arg1: i32) -> (i32, i32, i32) {
    %c0_i32 = arith.constant 0 : i32
    %c0_i32_0 = arith.constant 0 : i32
    return %arg0, %arg1, %c0_i32 : i32, i32, i32
  }
}

module attributes {stable_mosaic.version = 11 : i64} {
  func.func @_mm_kernel(%arg0: i32, %arg1: i32, %arg2: memref<1x256x54xf32, #tpu.memory_space<vmem>>, %arg3: memref<1x54x8xf32, #tpu.memory_space<vmem>>, %arg4: memref<1x1x8xf32, #tpu.memory_space<vmem>>, %arg5: memref<1x1x8xf32, #tpu.memory_space<vmem>>, %arg6: memref<1x256x8xf32, #tpu.memory_space<vmem>>) attributes {dimension_semantics = [#tpu.dimension_semantics<parallel>, #tpu.dimension_semantics<parallel>], iteration_bounds = array<i64: 1, 2>, scalar_prefetch = 0 : i64, scratch_operands = 0 : i64, tpu.core_type = #tpu.core_type<tc>, window_params = [{transform_indices = @transform_0, window_bounds = array<i64: 1, 256, 54>}, {transform_indices = @transform_1, window_bounds = array<i64: 1, 54, 8>}, {transform_indices = @transform_2, window_bounds = array<i64: 1, 1, 8>}, {transform_indices = @transform_3, window_bounds = array<i64: 1, 1, 8>}, {transform_indices = @transform_4, window_bounds = array<i64: 1, 256, 8>}]} {
    %c0 = arith.constant 0 : index
    %c0_0 = arith.constant 0 : index
    %c0_1 = arith.constant 0 : index
    %0 = vector.load %arg2[%c0, %c0_0, %c0_1] : memref<1x256x54xf32, #tpu.memory_space<vmem>>, vector<1x256x54xf32>
    %1 = vector.shape_cast %0 : vector<1x256x54xf32> to vector<256x54xf32>
    %c0_2 = arith.constant 0 : index
    %c0_3 = arith.constant 0 : index
    %c0_4 = arith.constant 0 : index
    %2 = vector.load %arg3[%c0_2, %c0_3, %c0_4] : memref<1x54x8xf32, #tpu.memory_space<vmem>>, vector<1x54x8xf32>
    %3 = vector.shape_cast %2 : vector<1x54x8xf32> to vector<54x8xf32>
    %cst = arith.constant dense<0.000000e+00> : vector<256x8xf32>
    %4 = tpu.matmul %1, %3, %cst {dimension_numbers = #tpu.dot_dimension_numbers<[1], [0], [0], [1], [0, 0, 1, 1], [], []>} : vector<256x54xf32>, vector<54x8xf32>, vector<256x8xf32> -> vector<256x8xf32>
    %c0_5 = arith.constant 0 : index
    %c0_6 = arith.constant 0 : index
    %c0_7 = arith.constant 0 : index
    %5 = vector.load %arg4[%c0_5, %c0_6, %c0_7] : memref<1x1x8xf32, #tpu.memory_space<vmem>>, vector<1x1x8xf32>
    %6 = vector.shape_cast %5 : vector<1x1x8xf32> to vector<1x8xf32>
    %7 = vector.broadcast %6 : vector<1x8xf32> to vector<256x8xf32>
    %8 = arith.mulf %4, %7 : vector<256x8xf32>
    %c0_8 = arith.constant 0 : index
    %c0_9 = arith.constant 0 : index
    %c0_10 = arith.constant 0 : index
    %9 = vector.load %arg5[%c0_8, %c0_9, %c0_10] : memref<1x1x8xf32, #tpu.memory_space<vmem>>, vector<1x1x8xf32>
    %10 = vector.shape_cast %9 : vector<1x1x8xf32> to vector<1x8xf32>
    %11 = vector.broadcast %10 : vector<1x8xf32> to vector<256x8xf32>
    %12 = arith.addf %8, %11 : vector<256x8xf32>
    %cst_11 = arith.constant 0.000000e+00 : f32
    %13 = vector.broadcast %cst_11 : f32 to vector<256x8xf32>
    %14 = arith.maximumf %12, %13 : vector<256x8xf32>
    %c0_12 = arith.constant 0 : index
    %c0_13 = arith.constant 0 : index
    %c0_14 = arith.constant 0 : index
    %15 = vector.load %arg6[%c0_12, %c0_13, %c0_14] : memref<1x256x8xf32, #tpu.memory_space<vmem>>, vector<1x256x8xf32>
    %16 = vector.shape_cast %15 : vector<1x256x8xf32> to vector<256x8xf32>
    %17 = vector.shape_cast %14 : vector<256x8xf32> to vector<1x256x8xf32>
    tpu.vector_store %arg6[%c0_12, %c0_13, %c0_14], %17 {strides = array<i32>} : memref<1x256x8xf32, #tpu.memory_space<vmem>>, vector<1x256x8xf32>,
    return
  }
  func.func @transform_0(%arg0: i32, %arg1: i32) -> (i32, i32, i32) {
    %c0_i32 = arith.constant 0 : i32
    %c0_i32_0 = arith.constant 0 : i32
    return %arg0, %arg1, %c0_i32 : i32, i32, i32
  }
  func.func @transform_1(%arg0: i32, %arg1: i32) -> (i32, i32, i32) {
    %c0_i32 = arith.constant 0 : i32
    %c0_i32_0 = arith.constant 0 : i32
    %c0_i32_1 = arith.constant 0 : i32
    return %arg0, %c0_i32, %c0_i32_0 : i32, i32, i32
  }
  func.func @transform_2(%arg0: i32, %arg1: i32) -> (i32, i32, i32) {
    %c0_i32 = arith.constant 0 : i32
    %c0_i32_0 = arith.constant 0 : i32
    %c0_i32_1 = arith.constant 0 : i32
    return %arg0, %c0_i32, %c0_i32_0 : i32, i32, i32
  }
  func.func @transform_3(%arg0: i32, %arg1: i32) -> (i32, i32, i32) {
    %c0_i32 = arith.constant 0 : i32
    %c0_i32_0 = arith.constant 0 : i32
    %c0_i32_1 = arith.constant 0 : i32
    return %arg0, %c0_i32, %c0_i32_0 : i32, i32, i32
  }
  func.func @transform_4(%arg0: i32, %arg1: i32) -> (i32, i32, i32) {
    %c0_i32 = arith.constant 0 : i32
    %c0_i32_0 = arith.constant 0 : i32
    return %arg0, %arg1, %c0_i32 : i32, i32, i32
  }
}

module attributes {stable_mosaic.version = 11 : i64} {
  func.func @_mm_kernel(%arg0: i32, %arg1: i32, %arg2: memref<1x256x54xf32, #tpu.memory_space<vmem>>, %arg3: memref<1x54x6xf32, #tpu.memory_space<vmem>>, %arg4: memref<1x1x6xf32, #tpu.memory_space<vmem>>, %arg5: memref<1x1x6xf32, #tpu.memory_space<vmem>>, %arg6: memref<1x256x6xf32, #tpu.memory_space<vmem>>) attributes {dimension_semantics = [#tpu.dimension_semantics<parallel>, #tpu.dimension_semantics<parallel>], iteration_bounds = array<i64: 1, 2>, scalar_prefetch = 0 : i64, scratch_operands = 0 : i64, tpu.core_type = #tpu.core_type<tc>, window_params = [{transform_indices = @transform_0, window_bounds = array<i64: 1, 256, 54>}, {transform_indices = @transform_1, window_bounds = array<i64: 1, 54, 6>}, {transform_indices = @transform_2, window_bounds = array<i64: 1, 1, 6>}, {transform_indices = @transform_3, window_bounds = array<i64: 1, 1, 6>}, {transform_indices = @transform_4, window_bounds = array<i64: 1, 256, 6>}]} {
    %c0 = arith.constant 0 : index
    %c0_0 = arith.constant 0 : index
    %c0_1 = arith.constant 0 : index
    %0 = vector.load %arg2[%c0, %c0_0, %c0_1] : memref<1x256x54xf32, #tpu.memory_space<vmem>>, vector<1x256x54xf32>
    %1 = vector.shape_cast %0 : vector<1x256x54xf32> to vector<256x54xf32>
    %c0_2 = arith.constant 0 : index
    %c0_3 = arith.constant 0 : index
    %c0_4 = arith.constant 0 : index
    %2 = vector.load %arg3[%c0_2, %c0_3, %c0_4] : memref<1x54x6xf32, #tpu.memory_space<vmem>>, vector<1x54x6xf32>
    %3 = vector.shape_cast %2 : vector<1x54x6xf32> to vector<54x6xf32>
    %cst = arith.constant dense<0.000000e+00> : vector<256x6xf32>
    %4 = tpu.matmul %1, %3, %cst {dimension_numbers = #tpu.dot_dimension_numbers<[1], [0], [0], [1], [0, 0, 1, 1], [], []>} : vector<256x54xf32>, vector<54x6xf32>, vector<256x6xf32> -> vector<256x6xf32>
    %c0_5 = arith.constant 0 : index
    %c0_6 = arith.constant 0 : index
    %c0_7 = arith.constant 0 : index
    %5 = vector.load %arg4[%c0_5, %c0_6, %c0_7] : memref<1x1x6xf32, #tpu.memory_space<vmem>>, vector<1x1x6xf32>
    %6 = vector.shape_cast %5 : vector<1x1x6xf32> to vector<1x6xf32>
    %7 = vector.broadcast %6 : vector<1x6xf32> to vector<256x6xf32>
    %8 = arith.mulf %4, %7 : vector<256x6xf32>
    %c0_8 = arith.constant 0 : index
    %c0_9 = arith.constant 0 : index
    %c0_10 = arith.constant 0 : index
    %9 = vector.load %arg5[%c0_8, %c0_9, %c0_10] : memref<1x1x6xf32, #tpu.memory_space<vmem>>, vector<1x1x6xf32>
    %10 = vector.shape_cast %9 : vector<1x1x6xf32> to vector<1x6xf32>
    %11 = vector.broadcast %10 : vector<1x6xf32> to vector<256x6xf32>
    %12 = arith.addf %8, %11 : vector<256x6xf32>
    %cst_11 = arith.constant 0.000000e+00 : f32
    %13 = vector.broadcast %cst_11 : f32 to vector<256x6xf32>
    %14 = arith.maximumf %12, %13 : vector<256x6xf32>
    %c0_12 = arith.constant 0 : index
    %c0_13 = arith.constant 0 : index
    %c0_14 = arith.constant 0 : index
    %15 = vector.load %arg6[%c0_12, %c0_13, %c0_14] : memref<1x256x6xf32, #tpu.memory_space<vmem>>, vector<1x256x6xf32>
    %16 = vector.shape_cast %15 : vector<1x256x6xf32> to vector<256x6xf32>
    %17 = vector.shape_cast %14 : vector<256x6xf32> to vector<1x256x6xf32>
    tpu.vector_store %arg6[%c0_12, %c0_13, %c0_14], %17 {strides = array<i32>} : memref<1x256x6xf32, #tpu.memory_space<vmem>>, vector<1x256x6xf32>,
    return
  }
  func.func @transform_0(%arg0: i32, %arg1: i32) -> (i32, i32, i32) {
    %c0_i32 = arith.constant 0 : i32
    %c0_i32_0 = arith.constant 0 : i32
    return %arg0, %arg1, %c0_i32 : i32, i32, i32
  }
  func.func @transform_1(%arg0: i32, %arg1: i32) -> (i32, i32, i32) {
    %c0_i32 = arith.constant 0 : i32
    %c0_i32_0 = arith.constant 0 : i32
    %c0_i32_1 = arith.constant 0 : i32
    return %arg0, %c0_i32, %c0_i32_0 : i32, i32, i32
  }
  func.func @transform_2(%arg0: i32, %arg1: i32) -> (i32, i32, i32) {
    %c0_i32 = arith.constant 0 : i32
    %c0_i32_0 = arith.constant 0 : i32
    %c0_i32_1 = arith.constant 0 : i32
    return %arg0, %c0_i32, %c0_i32_0 : i32, i32, i32
  }
  func.func @transform_3(%arg0: i32, %arg1: i32) -> (i32, i32, i32) {
    %c0_i32 = arith.constant 0 : i32
    %c0_i32_0 = arith.constant 0 : i32
    %c0_i32_1 = arith.constant 0 : i32
    return %arg0, %c0_i32, %c0_i32_0 : i32, i32, i32
  }
  func.func @transform_4(%arg0: i32, %arg1: i32) -> (i32, i32, i32) {
    %c0_i32 = arith.constant 0 : i32
    %c0_i32_0 = arith.constant 0 : i32
    return %arg0, %arg1, %c0_i32 : i32, i32, i32
  }
}

module attributes {stable_mosaic.version = 11 : i64} {
  func.func @_mm_kernel(%arg0: i32, %arg1: i32, %arg2: memref<1x512x18xf32, #tpu.memory_space<vmem>>, %arg3: memref<1x18x2xf32, #tpu.memory_space<vmem>>, %arg4: memref<1x1x2xf32, #tpu.memory_space<vmem>>, %arg5: memref<1x1x2xf32, #tpu.memory_space<vmem>>, %arg6: memref<1x512x2xf32, #tpu.memory_space<vmem>>) attributes {dimension_semantics = [#tpu.dimension_semantics<parallel>, #tpu.dimension_semantics<parallel>], iteration_bounds = array<i64: 4, 1>, scalar_prefetch = 0 : i64, scratch_operands = 0 : i64, tpu.core_type = #tpu.core_type<tc>, window_params = [{transform_indices = @transform_0, window_bounds = array<i64: 1, 512, 18>}, {transform_indices = @transform_1, window_bounds = array<i64: 1, 18, 2>}, {transform_indices = @transform_2, window_bounds = array<i64: 1, 1, 2>}, {transform_indices = @transform_3, window_bounds = array<i64: 1, 1, 2>}, {transform_indices = @transform_4, window_bounds = array<i64: 1, 512, 2>}]} {
    %c0 = arith.constant 0 : index
    %c0_0 = arith.constant 0 : index
    %c0_1 = arith.constant 0 : index
    %0 = vector.load %arg2[%c0, %c0_0, %c0_1] : memref<1x512x18xf32, #tpu.memory_space<vmem>>, vector<1x512x18xf32>
    %1 = vector.shape_cast %0 : vector<1x512x18xf32> to vector<512x18xf32>
    %c0_2 = arith.constant 0 : index
    %c0_3 = arith.constant 0 : index
    %c0_4 = arith.constant 0 : index
    %2 = vector.load %arg3[%c0_2, %c0_3, %c0_4] : memref<1x18x2xf32, #tpu.memory_space<vmem>>, vector<1x18x2xf32>
    %3 = vector.shape_cast %2 : vector<1x18x2xf32> to vector<18x2xf32>
    %cst = arith.constant dense<0.000000e+00> : vector<512x2xf32>
    %4 = tpu.matmul %1, %3, %cst {dimension_numbers = #tpu.dot_dimension_numbers<[1], [0], [0], [1], [0, 0, 1, 1], [], []>} : vector<512x18xf32>, vector<18x2xf32>, vector<512x2xf32> -> vector<512x2xf32>
    %c0_5 = arith.constant 0 : index
    %c0_6 = arith.constant 0 : index
    %c0_7 = arith.constant 0 : index
    %5 = vector.load %arg4[%c0_5, %c0_6, %c0_7] : memref<1x1x2xf32, #tpu.memory_space<vmem>>, vector<1x1x2xf32>
    %6 = vector.shape_cast %5 : vector<1x1x2xf32> to vector<1x2xf32>
    %7 = vector.broadcast %6 : vector<1x2xf32> to vector<512x2xf32>
    %8 = arith.mulf %4, %7 : vector<512x2xf32>
    %c0_8 = arith.constant 0 : index
    %c0_9 = arith.constant 0 : index
    %c0_10 = arith.constant 0 : index
    %9 = vector.load %arg5[%c0_8, %c0_9, %c0_10] : memref<1x1x2xf32, #tpu.memory_space<vmem>>, vector<1x1x2xf32>
    %10 = vector.shape_cast %9 : vector<1x1x2xf32> to vector<1x2xf32>
    %11 = vector.broadcast %10 : vector<1x2xf32> to vector<512x2xf32>
    %12 = arith.addf %8, %11 : vector<512x2xf32>
    %cst_11 = arith.constant 0.000000e+00 : f32
    %13 = vector.broadcast %cst_11 : f32 to vector<512x2xf32>
    %14 = arith.maximumf %12, %13 : vector<512x2xf32>
    %c0_12 = arith.constant 0 : index
    %c0_13 = arith.constant 0 : index
    %c0_14 = arith.constant 0 : index
    %15 = vector.load %arg6[%c0_12, %c0_13, %c0_14] : memref<1x512x2xf32, #tpu.memory_space<vmem>>, vector<1x512x2xf32>
    %16 = vector.shape_cast %15 : vector<1x512x2xf32> to vector<512x2xf32>
    %17 = vector.shape_cast %14 : vector<512x2xf32> to vector<1x512x2xf32>
    tpu.vector_store %arg6[%c0_12, %c0_13, %c0_14], %17 {strides = array<i32>} : memref<1x512x2xf32, #tpu.memory_space<vmem>>, vector<1x512x2xf32>,
    return
  }
  func.func @transform_0(%arg0: i32, %arg1: i32) -> (i32, i32, i32) {
    %c0_i32 = arith.constant 0 : i32
    %c0_i32_0 = arith.constant 0 : i32
    return %arg0, %arg1, %c0_i32 : i32, i32, i32
  }
  func.func @transform_1(%arg0: i32, %arg1: i32) -> (i32, i32, i32) {
    %c0_i32 = arith.constant 0 : i32
    %c0_i32_0 = arith.constant 0 : i32
    %c0_i32_1 = arith.constant 0 : i32
    return %arg0, %c0_i32, %c0_i32_0 : i32, i32, i32
  }
  func.func @transform_2(%arg0: i32, %arg1: i32) -> (i32, i32, i32) {
    %c0_i32 = arith.constant 0 : i32
    %c0_i32_0 = arith.constant 0 : i32
    %c0_i32_1 = arith.constant 0 : i32
    return %arg0, %c0_i32, %c0_i32_0 : i32, i32, i32
  }
  func.func @transform_3(%arg0: i32, %arg1: i32) -> (i32, i32, i32) {
    %c0_i32 = arith.constant 0 : i32
    %c0_i32_0 = arith.constant 0 : i32
    %c0_i32_1 = arith.constant 0 : i32
    return %arg0, %c0_i32, %c0_i32_0 : i32, i32, i32
  }
  func.func @transform_4(%arg0: i32, %arg1: i32) -> (i32, i32, i32) {
    %c0_i32 = arith.constant 0 : i32
    %c0_i32_0 = arith.constant 0 : i32
    return %arg0, %arg1, %c0_i32 : i32, i32, i32
  }
}

module attributes {stable_mosaic.version = 11 : i64} {
  func.func @_mm_kernel(%arg0: i32, %arg1: i32, %arg2: memref<1x512x27xf32, #tpu.memory_space<vmem>>, %arg3: memref<1x27x3xf32, #tpu.memory_space<vmem>>, %arg4: memref<1x1x3xf32, #tpu.memory_space<vmem>>, %arg5: memref<1x1x3xf32, #tpu.memory_space<vmem>>, %arg6: memref<1x512x3xf32, #tpu.memory_space<vmem>>) attributes {dimension_semantics = [#tpu.dimension_semantics<parallel>, #tpu.dimension_semantics<parallel>], iteration_bounds = array<i64: 4, 1>, scalar_prefetch = 0 : i64, scratch_operands = 0 : i64, tpu.core_type = #tpu.core_type<tc>, window_params = [{transform_indices = @transform_0, window_bounds = array<i64: 1, 512, 27>}, {transform_indices = @transform_1, window_bounds = array<i64: 1, 27, 3>}, {transform_indices = @transform_2, window_bounds = array<i64: 1, 1, 3>}, {transform_indices = @transform_3, window_bounds = array<i64: 1, 1, 3>}, {transform_indices = @transform_4, window_bounds = array<i64: 1, 512, 3>}]} {
    %c0 = arith.constant 0 : index
    %c0_0 = arith.constant 0 : index
    %c0_1 = arith.constant 0 : index
    %0 = vector.load %arg2[%c0, %c0_0, %c0_1] : memref<1x512x27xf32, #tpu.memory_space<vmem>>, vector<1x512x27xf32>
    %1 = vector.shape_cast %0 : vector<1x512x27xf32> to vector<512x27xf32>
    %c0_2 = arith.constant 0 : index
    %c0_3 = arith.constant 0 : index
    %c0_4 = arith.constant 0 : index
    %2 = vector.load %arg3[%c0_2, %c0_3, %c0_4] : memref<1x27x3xf32, #tpu.memory_space<vmem>>, vector<1x27x3xf32>
    %3 = vector.shape_cast %2 : vector<1x27x3xf32> to vector<27x3xf32>
    %cst = arith.constant dense<0.000000e+00> : vector<512x3xf32>
    %4 = tpu.matmul %1, %3, %cst {dimension_numbers = #tpu.dot_dimension_numbers<[1], [0], [0], [1], [0, 0, 1, 1], [], []>} : vector<512x27xf32>, vector<27x3xf32>, vector<512x3xf32> -> vector<512x3xf32>
    %c0_5 = arith.constant 0 : index
    %c0_6 = arith.constant 0 : index
    %c0_7 = arith.constant 0 : index
    %5 = vector.load %arg4[%c0_5, %c0_6, %c0_7] : memref<1x1x3xf32, #tpu.memory_space<vmem>>, vector<1x1x3xf32>
    %6 = vector.shape_cast %5 : vector<1x1x3xf32> to vector<1x3xf32>
    %7 = vector.broadcast %6 : vector<1x3xf32> to vector<512x3xf32>
    %8 = arith.mulf %4, %7 : vector<512x3xf32>
    %c0_8 = arith.constant 0 : index
    %c0_9 = arith.constant 0 : index
    %c0_10 = arith.constant 0 : index
    %9 = vector.load %arg5[%c0_8, %c0_9, %c0_10] : memref<1x1x3xf32, #tpu.memory_space<vmem>>, vector<1x1x3xf32>
    %10 = vector.shape_cast %9 : vector<1x1x3xf32> to vector<1x3xf32>
    %11 = vector.broadcast %10 : vector<1x3xf32> to vector<512x3xf32>
    %12 = arith.addf %8, %11 : vector<512x3xf32>
    %cst_11 = arith.constant 0.000000e+00 : f32
    %13 = vector.broadcast %cst_11 : f32 to vector<512x3xf32>
    %14 = arith.maximumf %12, %13 : vector<512x3xf32>
    %c0_12 = arith.constant 0 : index
    %c0_13 = arith.constant 0 : index
    %c0_14 = arith.constant 0 : index
    %15 = vector.load %arg6[%c0_12, %c0_13, %c0_14] : memref<1x512x3xf32, #tpu.memory_space<vmem>>, vector<1x512x3xf32>
    %16 = vector.shape_cast %15 : vector<1x512x3xf32> to vector<512x3xf32>
    %17 = vector.shape_cast %14 : vector<512x3xf32> to vector<1x512x3xf32>
    tpu.vector_store %arg6[%c0_12, %c0_13, %c0_14], %17 {strides = array<i32>} : memref<1x512x3xf32, #tpu.memory_space<vmem>>, vector<1x512x3xf32>,
    return
  }
  func.func @transform_0(%arg0: i32, %arg1: i32) -> (i32, i32, i32) {
    %c0_i32 = arith.constant 0 : i32
    %c0_i32_0 = arith.constant 0 : i32
    return %arg0, %arg1, %c0_i32 : i32, i32, i32
  }
  func.func @transform_1(%arg0: i32, %arg1: i32) -> (i32, i32, i32) {
    %c0_i32 = arith.constant 0 : i32
    %c0_i32_0 = arith.constant 0 : i32
    %c0_i32_1 = arith.constant 0 : i32
    return %arg0, %c0_i32, %c0_i32_0 : i32, i32, i32
  }
  func.func @transform_2(%arg0: i32, %arg1: i32) -> (i32, i32, i32) {
    %c0_i32 = arith.constant 0 : i32
    %c0_i32_0 = arith.constant 0 : i32
    %c0_i32_1 = arith.constant 0 : i32
    return %arg0, %c0_i32, %c0_i32_0 : i32, i32, i32
  }
  func.func @transform_3(%arg0: i32, %arg1: i32) -> (i32, i32, i32) {
    %c0_i32 = arith.constant 0 : i32
    %c0_i32_0 = arith.constant 0 : i32
    %c0_i32_1 = arith.constant 0 : i32
    return %arg0, %c0_i32, %c0_i32_0 : i32, i32, i32
  }
  func.func @transform_4(%arg0: i32, %arg1: i32) -> (i32, i32, i32) {
    %c0_i32 = arith.constant 0 : i32
    %c0_i32_0 = arith.constant 0 : i32
    return %arg0, %arg1, %c0_i32 : i32, i32, i32
  }
}

module attributes {stable_mosaic.version = 11 : i64} {
  func.func @_mm_maskrelu_kernel(%arg0: i32, %arg1: i32, %arg2: memref<1x512x72xf32, #tpu.memory_space<vmem>>, %arg3: memref<1x72x10xf32, #tpu.memory_space<vmem>>, %arg4: memref<1x1x10xf32, #tpu.memory_space<vmem>>, %arg5: memref<1x1x10xf32, #tpu.memory_space<vmem>>, %arg6: memref<1x10xf32, #tpu.memory_space<vmem>>, %arg7: memref<1x512x10xf32, #tpu.memory_space<vmem>>) attributes {dimension_semantics = [#tpu.dimension_semantics<parallel>, #tpu.dimension_semantics<parallel>], iteration_bounds = array<i64: 4, 1>, scalar_prefetch = 0 : i64, scratch_operands = 0 : i64, tpu.core_type = #tpu.core_type<tc>, window_params = [{transform_indices = @transform_0, window_bounds = array<i64: 1, 512, 72>}, {transform_indices = @transform_1, window_bounds = array<i64: 1, 72, 10>}, {transform_indices = @transform_2, window_bounds = array<i64: 1, 1, 10>}, {transform_indices = @transform_3, window_bounds = array<i64: 1, 1, 10>}, {pipeline_mode = #tpu.pipeline_mode<synchronous>, transform_indices = @transform_4, window_bounds = array<i64: 1, 10>}, {transform_indices = @transform_5, window_bounds = array<i64: 1, 512, 10>}]} {
    %c0 = arith.constant 0 : index
    %c0_0 = arith.constant 0 : index
    %c0_1 = arith.constant 0 : index
    %0 = vector.load %arg2[%c0, %c0_0, %c0_1] : memref<1x512x72xf32, #tpu.memory_space<vmem>>, vector<1x512x72xf32>
    %1 = vector.shape_cast %0 : vector<1x512x72xf32> to vector<512x72xf32>
    %c0_2 = arith.constant 0 : index
    %c0_3 = arith.constant 0 : index
    %c0_4 = arith.constant 0 : index
    %2 = vector.load %arg3[%c0_2, %c0_3, %c0_4] : memref<1x72x10xf32, #tpu.memory_space<vmem>>, vector<1x72x10xf32>
    %3 = vector.shape_cast %2 : vector<1x72x10xf32> to vector<72x10xf32>
    %cst = arith.constant dense<0.000000e+00> : vector<512x10xf32>
    %4 = tpu.matmul %1, %3, %cst {dimension_numbers = #tpu.dot_dimension_numbers<[1], [0], [0], [1], [0, 0, 1, 1], [], []>} : vector<512x72xf32>, vector<72x10xf32>, vector<512x10xf32> -> vector<512x10xf32>
    %c0_5 = arith.constant 0 : index
    %c0_6 = arith.constant 0 : index
    %c0_7 = arith.constant 0 : index
    %5 = vector.load %arg4[%c0_5, %c0_6, %c0_7] : memref<1x1x10xf32, #tpu.memory_space<vmem>>, vector<1x1x10xf32>
    %6 = vector.shape_cast %5 : vector<1x1x10xf32> to vector<1x10xf32>
    %7 = vector.broadcast %6 : vector<1x10xf32> to vector<512x10xf32>
    %8 = arith.mulf %4, %7 : vector<512x10xf32>
    %c0_8 = arith.constant 0 : index
    %c0_9 = arith.constant 0 : index
    %c0_10 = arith.constant 0 : index
    %9 = vector.load %arg5[%c0_8, %c0_9, %c0_10] : memref<1x1x10xf32, #tpu.memory_space<vmem>>, vector<1x1x10xf32>
    %10 = vector.shape_cast %9 : vector<1x1x10xf32> to vector<1x10xf32>
    %11 = vector.broadcast %10 : vector<1x10xf32> to vector<512x10xf32>
    %12 = arith.addf %8, %11 : vector<512x10xf32>
    %c0_11 = arith.constant 0 : index
    %c0_12 = arith.constant 0 : index
    %13 = vector.load %arg6[%c0_11, %c0_12] : memref<1x10xf32, #tpu.memory_space<vmem>>, vector<1x10xf32>
    %cst_13 = arith.constant 5.000000e-01 : f32
    %14 = vector.broadcast %cst_13 : f32 to vector<1x10xf32>
    %15 = arith.cmpf ogt, %13, %14 : vector<1x10xf32>
    %cst_14 = arith.constant 0.000000e+00 : f32
    %16 = vector.broadcast %cst_14 : f32 to vector<512x10xf32>
    %17 = arith.maximumf %12, %16 : vector<512x10xf32>
    %18 = vector.shape_cast %15 : vector<1x10xi1> to vector<1x10xi1>
    %19 = vector.broadcast %18 : vector<1x10xi1> to vector<512x10xi1>
    %20 = arith.select %19, %17, %12 : vector<512x10xi1>, vector<512x10xf32>
    %c0_15 = arith.constant 0 : index
    %c0_16 = arith.constant 0 : index
    %c0_17 = arith.constant 0 : index
    %21 = vector.load %arg7[%c0_15, %c0_16, %c0_17] : memref<1x512x10xf32, #tpu.memory_space<vmem>>, vector<1x512x10xf32>
    %22 = vector.shape_cast %21 : vector<1x512x10xf32> to vector<512x10xf32>
    %23 = vector.shape_cast %20 : vector<512x10xf32> to vector<1x512x10xf32>
    tpu.vector_store %arg7[%c0_15, %c0_16, %c0_17], %23 {strides = array<i32>} : memref<1x512x10xf32, #tpu.memory_space<vmem>>, vector<1x512x10xf32>,
    return
  }
  func.func @transform_0(%arg0: i32, %arg1: i32) -> (i32, i32, i32) {
    %c0_i32 = arith.constant 0 : i32
    %c0_i32_0 = arith.constant 0 : i32
    return %arg0, %arg1, %c0_i32 : i32, i32, i32
  }
  func.func @transform_1(%arg0: i32, %arg1: i32) -> (i32, i32, i32) {
    %c0_i32 = arith.constant 0 : i32
    %c0_i32_0 = arith.constant 0 : i32
    %c0_i32_1 = arith.constant 0 : i32
    return %arg0, %c0_i32, %c0_i32_0 : i32, i32, i32
  }
  func.func @transform_2(%arg0: i32, %arg1: i32) -> (i32, i32, i32) {
    %c0_i32 = arith.constant 0 : i32
    %c0_i32_0 = arith.constant 0 : i32
    %c0_i32_1 = arith.constant 0 : i32
    return %arg0, %c0_i32, %c0_i32_0 : i32, i32, i32
  }
  func.func @transform_3(%arg0: i32, %arg1: i32) -> (i32, i32, i32) {
    %c0_i32 = arith.constant 0 : i32
    %c0_i32_0 = arith.constant 0 : i32
    %c0_i32_1 = arith.constant 0 : i32
    return %arg0, %c0_i32, %c0_i32_0 : i32, i32, i32
  }
  func.func @transform_4(%arg0: i32, %arg1: i32) -> (i32, i32) {
    %c0_i32 = arith.constant 0 : i32
    %c0_i32_0 = arith.constant 0 : i32
    %c0_i32_1 = arith.constant 0 : i32
    return %c0_i32, %c0_i32_0 : i32, i32
  }
  func.func @transform_5(%arg0: i32, %arg1: i32) -> (i32, i32, i32) {
    %c0_i32 = arith.constant 0 : i32
    %c0_i32_0 = arith.constant 0 : i32
    return %arg0, %arg1, %c0_i32 : i32, i32, i32
  }
}

module attributes {stable_mosaic.version = 11 : i64} {
  func.func @_affinity_attn_kernel(%arg0: i32, %arg1: memref<1x256x10xf32, #tpu.memory_space<vmem>>, %arg2: memref<1x256x8xf32, #tpu.memory_space<vmem>>, %arg3: memref<1x8x256xf32, #tpu.memory_space<vmem>>, %arg4: memref<1x1x1xf32, #tpu.memory_space<vmem>>, %arg5: memref<1x1x1xf32, #tpu.memory_space<vmem>>, %arg6: memref<1x256x8xf32, #tpu.memory_space<vmem>>) attributes {dimension_semantics = [#tpu.dimension_semantics<parallel>], iteration_bounds = array<i64: 8>, scalar_prefetch = 0 : i64, scratch_operands = 0 : i64, tpu.core_type = #tpu.core_type<tc>, window_params = [{transform_indices = @transform_0, window_bounds = array<i64: 1, 256, 10>}, {transform_indices = @transform_1, window_bounds = array<i64: 1, 256, 8>}, {transform_indices = @transform_2, window_bounds = array<i64: 1, 8, 256>}, {transform_indices = @transform_3, window_bounds = array<i64: 1, 1, 1>}, {transform_indices = @transform_4, window_bounds = array<i64: 1, 1, 1>}, {transform_indices = @transform_5, window_bounds = array<i64: 1, 256, 8>}]} {
    %c0 = arith.constant 0 : index
    %c0_0 = arith.constant 0 : index
    %c0_1 = arith.constant 0 : index
    %0 = vector.load %arg1[%c0, %c0_0, %c0_1] : memref<1x256x10xf32, #tpu.memory_space<vmem>>, vector<1x256x10xf32>
    %1 = vector.shape_cast %0 : vector<1x256x10xf32> to vector<256x10xf32>
    %2 = vector.extract_strided_slice %1 {offsets = [0, 0], sizes = [256, 1], strides = [1, 1]} : vector<256x10xf32> to vector<256x1xf32>
    %3 = vector.extract_strided_slice %1 {offsets = [0, 1], sizes = [256, 1], strides = [1, 1]} : vector<256x10xf32> to vector<256x1xf32>
    %4 = vector.extract_strided_slice %1 {offsets = [0, 2], sizes = [256, 8], strides = [1, 1]} : vector<256x10xf32> to vector<256x8xf32>
    %c0_2 = arith.constant 0 : index
    %c0_3 = arith.constant 0 : index
    %c0_4 = arith.constant 0 : index
    %5 = vector.load %arg2[%c0_2, %c0_3, %c0_4] : memref<1x256x8xf32, #tpu.memory_space<vmem>>, vector<1x256x8xf32>
    %6 = vector.shape_cast %5 : vector<1x256x8xf32> to vector<256x8xf32>
    %c0_5 = arith.constant 0 : index
    %c0_6 = arith.constant 0 : index
    %c0_7 = arith.constant 0 : index
    %7 = vector.load %arg3[%c0_5, %c0_6, %c0_7] : memref<1x8x256xf32, #tpu.memory_space<vmem>>, vector<1x8x256xf32>
    %8 = vector.shape_cast %7 : vector<1x8x256xf32> to vector<8x256xf32>
    %c0_8 = arith.constant 0 : index
    %c0_9 = arith.constant 0 : index
    %c0_10 = arith.constant 0 : index
    %9 = vector.load %arg4[%c0_8, %c0_9, %c0_10] : memref<1x1x1xf32, #tpu.memory_space<vmem>>, vector<1x1x1xf32>
    %10 = vector.shape_cast %9 : vector<1x1x1xf32> to vector<1x1xf32>
    %c0_11 = arith.constant 0 : index
    %c0_12 = arith.constant 0 : index
    %c0_13 = arith.constant 0 : index
    %11 = vector.load %arg5[%c0_11, %c0_12, %c0_13] : memref<1x1x1xf32, #tpu.memory_space<vmem>>, vector<1x1x1xf32>
    %12 = vector.shape_cast %11 : vector<1x1x1xf32> to vector<1x1xf32>
    %cst = arith.constant dense<0.000000e+00> : vector<256x256xf32>
    %13 = tpu.matmul %2, %3, %cst {dimension_numbers = #tpu.dot_dimension_numbers<[1], [1], [0], [0], [0, 0, 1, 0], [], []>} : vector<256x1xf32>, vector<256x1xf32>, vector<256x256xf32> -> vector<256x256xf32>
    %cst_14 = arith.constant dense<0xFF800000> : vector<256xf32>
    %14 = vector.multi_reduction <maximumf>, %13, %cst_14 [1] : vector<256x256xf32> to vector<256xf32>
    %15 = vector.shape_cast %14 : vector<256xf32> to vector<256x1xf32>
    %16 = vector.broadcast %15 : vector<256x1xf32> to vector<256x256xf32>
    %17 = arith.subf %13, %16 : vector<256x256xf32>
    %18 = math.exp %17 : vector<256x256xf32>
    %cst_15 = arith.constant dense<0.000000e+00> : vector<256xf32>
    %19 = vector.multi_reduction <add>, %18, %cst_15 [1] : vector<256x256xf32> to vector<256xf32>
    %20 = vector.shape_cast %19 : vector<256xf32> to vector<256x1xf32>
    %21 = tpu.reciprocal %20 {approx = true} : vector<256x1xf32> -> vector<256x1xf32>
    %22 = vector.broadcast %21 : vector<256x1xf32> to vector<256x256xf32>
    %23 = arith.mulf %18, %22 : vector<256x256xf32>
    %cst_16 = arith.constant dense<0.000000e+00> : vector<256x8xf32>
    %24 = tpu.matmul %23, %4, %cst_16 {dimension_numbers = #tpu.dot_dimension_numbers<[1], [0], [0], [1], [0, 0, 1, 1], [], []>} : vector<256x256xf32>, vector<256x8xf32>, vector<256x8xf32> -> vector<256x8xf32>
    %25 = vector.broadcast %10 : vector<1x1xf32> to vector<256x8xf32>
    %26 = arith.mulf %25, %24 : vector<256x8xf32>
    %27 = arith.addf %26, %6 : vector<256x8xf32>
    %cst_17 = arith.constant dense<0.000000e+00> : vector<8x8xf32>
    %28 = tpu.matmul %8, %8, %cst_17 {dimension_numbers = #tpu.dot_dimension_numbers<[1], [1], [0], [0], [0, 0, 1, 0], [], []>} : vector<8x256xf32>, vector<8x256xf32>, vector<8x8xf32> -> vector<8x8xf32>
    %cst_18 = arith.constant dense<0x7F800000> : vector<8xf32>
    %29 = vector.multi_reduction <minimumf>, %28, %cst_18 [1] : vector<8x8xf32> to vector<8xf32>
    %30 = vector.shape_cast %29 : vector<8xf32> to vector<8x1xf32>
    %31 = vector.broadcast %30 : vector<8x1xf32> to vector<8x8xf32>
    %32 = arith.subf %31, %28 : vector<8x8xf32>
    %33 = math.exp %32 : vector<8x8xf32>
    %cst_19 = arith.constant dense<0.000000e+00> : vector<8xf32>
    %34 = vector.multi_reduction <add>, %33, %cst_19 [1] : vector<8x8xf32> to vector<8xf32>
    %35 = vector.shape_cast %34 : vector<8xf32> to vector<8x1xf32>
    %36 = tpu.reciprocal %35 {approx = true} : vector<8x1xf32> -> vector<8x1xf32>
    %37 = vector.broadcast %36 : vector<8x1xf32> to vector<8x8xf32>
    %38 = arith.mulf %33, %37 : vector<8x8xf32>
    %cst_20 = arith.constant dense<0.000000e+00> : vector<256x8xf32>
    %39 = tpu.matmul %6, %38, %cst_20 {dimension_numbers = #tpu.dot_dimension_numbers<[1], [1], [0], [0], [0, 0, 1, 0], [], []>} : vector<256x8xf32>, vector<8x8xf32>, vector<256x8xf32> -> vector<256x8xf32>
    %40 = vector.broadcast %12 : vector<1x1xf32> to vector<256x8xf32>
    %41 = arith.mulf %40, %39 : vector<256x8xf32>
    %42 = arith.addf %41, %6 : vector<256x8xf32>
    %43 = arith.addf %27, %42 : vector<256x8xf32>
    %c0_21 = arith.constant 0 : index
    %c0_22 = arith.constant 0 : index
    %c0_23 = arith.constant 0 : index
    %44 = vector.load %arg6[%c0_21, %c0_22, %c0_23] : memref<1x256x8xf32, #tpu.memory_space<vmem>>, vector<1x256x8xf32>
    %45 = vector.shape_cast %44 : vector<1x256x8xf32> to vector<256x8xf32>
    %46 = vector.shape_cast %43 : vector<256x8xf32> to vector<1x256x8xf32>
    tpu.vector_store %arg6[%c0_21, %c0_22, %c0_23], %46 {strides = array<i32>} : memref<1x256x8xf32, #tpu.memory_space<vmem>>, vector<1x256x8xf32>,
    return
  }
  func.func @transform_0(%arg0: i32) -> (i32, i32, i32) {
    %c0_i32 = arith.constant 0 : i32
    %c0_i32_0 = arith.constant 0 : i32
    %c0_i32_1 = arith.constant 0 : i32
    return %arg0, %c0_i32, %c0_i32_0 : i32, i32, i32
  }
  func.func @transform_1(%arg0: i32) -> (i32, i32, i32) {
    %c0_i32 = arith.constant 0 : i32
    %c0_i32_0 = arith.constant 0 : i32
    %c0_i32_1 = arith.constant 0 : i32
    return %arg0, %c0_i32, %c0_i32_0 : i32, i32, i32
  }
  func.func @transform_2(%arg0: i32) -> (i32, i32, i32) {
    %c0_i32 = arith.constant 0 : i32
    %c0_i32_0 = arith.constant 0 : i32
    %c0_i32_1 = arith.constant 0 : i32
    return %arg0, %c0_i32, %c0_i32_0 : i32, i32, i32
  }
  func.func @transform_3(%arg0: i32) -> (i32, i32, i32) {
    %c0_i32 = arith.constant 0 : i32
    %c0_i32_0 = arith.constant 0 : i32
    %c0_i32_1 = arith.constant 0 : i32
    return %arg0, %c0_i32, %c0_i32_0 : i32, i32, i32
  }
  func.func @transform_4(%arg0: i32) -> (i32, i32, i32) {
    %c0_i32 = arith.constant 0 : i32
    %c0_i32_0 = arith.constant 0 : i32
    %c0_i32_1 = arith.constant 0 : i32
    return %arg0, %c0_i32, %c0_i32_0 : i32, i32, i32
  }
  func.func @transform_5(%arg0: i32) -> (i32, i32, i32) {
    %c0_i32 = arith.constant 0 : i32
    %c0_i32_0 = arith.constant 0 : i32
    %c0_i32_1 = arith.constant 0 : i32
    return %arg0, %c0_i32, %c0_i32_0 : i32, i32, i32
  }
}

module attributes {stable_mosaic.version = 11 : i64} {
  func.func @_mm_res_relu_kernel(%arg0: i32, %arg1: i32, %arg2: memref<1x256x32xf32, #tpu.memory_space<vmem>>, %arg3: memref<1x32x32xf32, #tpu.memory_space<vmem>>, %arg4: memref<1x1x32xf32, #tpu.memory_space<vmem>>, %arg5: memref<1x1x32xf32, #tpu.memory_space<vmem>>, %arg6: memref<1x256x32xf32, #tpu.memory_space<vmem>>, %arg7: memref<1x256x32xf32, #tpu.memory_space<vmem>>) attributes {dimension_semantics = [#tpu.dimension_semantics<parallel>, #tpu.dimension_semantics<parallel>], iteration_bounds = array<i64: 1, 2>, scalar_prefetch = 0 : i64, scratch_operands = 0 : i64, tpu.core_type = #tpu.core_type<tc>, window_params = [{transform_indices = @transform_0, window_bounds = array<i64: 1, 256, 32>}, {transform_indices = @transform_1, window_bounds = array<i64: 1, 32, 32>}, {transform_indices = @transform_2, window_bounds = array<i64: 1, 1, 32>}, {transform_indices = @transform_3, window_bounds = array<i64: 1, 1, 32>}, {transform_indices = @transform_4, window_bounds = array<i64: 1, 256, 32>}, {transform_indices = @transform_5, window_bounds = array<i64: 1, 256, 32>}]} {
    %c0 = arith.constant 0 : index
    %c0_0 = arith.constant 0 : index
    %c0_1 = arith.constant 0 : index
    %0 = vector.load %arg2[%c0, %c0_0, %c0_1] : memref<1x256x32xf32, #tpu.memory_space<vmem>>, vector<1x256x32xf32>
    %1 = vector.shape_cast %0 : vector<1x256x32xf32> to vector<256x32xf32>
    %c0_2 = arith.constant 0 : index
    %c0_3 = arith.constant 0 : index
    %c0_4 = arith.constant 0 : index
    %2 = vector.load %arg3[%c0_2, %c0_3, %c0_4] : memref<1x32x32xf32, #tpu.memory_space<vmem>>, vector<1x32x32xf32>
    %3 = vector.shape_cast %2 : vector<1x32x32xf32> to vector<32x32xf32>
    %cst = arith.constant dense<0.000000e+00> : vector<256x32xf32>
    %4 = tpu.matmul %1, %3, %cst {dimension_numbers = #tpu.dot_dimension_numbers<[1], [0], [0], [1], [0, 0, 1, 1], [], []>} : vector<256x32xf32>, vector<32x32xf32>, vector<256x32xf32> -> vector<256x32xf32>
    %c0_5 = arith.constant 0 : index
    %c0_6 = arith.constant 0 : index
    %c0_7 = arith.constant 0 : index
    %5 = vector.load %arg4[%c0_5, %c0_6, %c0_7] : memref<1x1x32xf32, #tpu.memory_space<vmem>>, vector<1x1x32xf32>
    %6 = vector.shape_cast %5 : vector<1x1x32xf32> to vector<1x32xf32>
    %7 = vector.broadcast %6 : vector<1x32xf32> to vector<256x32xf32>
    %8 = arith.mulf %4, %7 : vector<256x32xf32>
    %c0_8 = arith.constant 0 : index
    %c0_9 = arith.constant 0 : index
    %c0_10 = arith.constant 0 : index
    %9 = vector.load %arg5[%c0_8, %c0_9, %c0_10] : memref<1x1x32xf32, #tpu.memory_space<vmem>>, vector<1x1x32xf32>
    %10 = vector.shape_cast %9 : vector<1x1x32xf32> to vector<1x32xf32>
    %11 = vector.broadcast %10 : vector<1x32xf32> to vector<256x32xf32>
    %12 = arith.addf %8, %11 : vector<256x32xf32>
    %cst_11 = arith.constant 1.000000e-01 : f32
    %13 = vector.broadcast %cst_11 : f32 to vector<256x32xf32>
    %14 = arith.mulf %12, %13 : vector<256x32xf32>
    %c0_12 = arith.constant 0 : index
    %c0_13 = arith.constant 0 : index
    %c0_14 = arith.constant 0 : index
    %15 = vector.load %arg6[%c0_12, %c0_13, %c0_14] : memref<1x256x32xf32, #tpu.memory_space<vmem>>, vector<1x256x32xf32>
    %16 = vector.shape_cast %15 : vector<1x256x32xf32> to vector<256x32xf32>
    %17 = arith.addf %14, %16 : vector<256x32xf32>
    %cst_15 = arith.constant 0.000000e+00 : f32
    %18 = vector.broadcast %cst_15 : f32 to vector<256x32xf32>
    %19 = arith.maximumf %17, %18 : vector<256x32xf32>
    %c0_16 = arith.constant 0 : index
    %c0_17 = arith.constant 0 : index
    %c0_18 = arith.constant 0 : index
    %20 = vector.load %arg7[%c0_16, %c0_17, %c0_18] : memref<1x256x32xf32, #tpu.memory_space<vmem>>, vector<1x256x32xf32>
    %21 = vector.shape_cast %20 : vector<1x256x32xf32> to vector<256x32xf32>
    %22 = vector.shape_cast %19 : vector<256x32xf32> to vector<1x256x32xf32>
    tpu.vector_store %arg7[%c0_16, %c0_17, %c0_18], %22 {strides = array<i32>} : memref<1x256x32xf32, #tpu.memory_space<vmem>>, vector<1x256x32xf32>,
    return
  }
  func.func @transform_0(%arg0: i32, %arg1: i32) -> (i32, i32, i32) {
    %c0_i32 = arith.constant 0 : i32
    %c0_i32_0 = arith.constant 0 : i32
    return %arg0, %arg1, %c0_i32 : i32, i32, i32
  }
  func.func @transform_1(%arg0: i32, %arg1: i32) -> (i32, i32, i32) {
    %c0_i32 = arith.constant 0 : i32
    %c0_i32_0 = arith.constant 0 : i32
    %c0_i32_1 = arith.constant 0 : i32
    return %arg0, %c0_i32, %c0_i32_0 : i32, i32, i32
  }
  func.func @transform_2(%arg0: i32, %arg1: i32) -> (i32, i32, i32) {
    %c0_i32 = arith.constant 0 : i32
    %c0_i32_0 = arith.constant 0 : i32
    %c0_i32_1 = arith.constant 0 : i32
    return %arg0, %c0_i32, %c0_i32_0 : i32, i32, i32
  }
  func.func @transform_3(%arg0: i32, %arg1: i32) -> (i32, i32, i32) {
    %c0_i32 = arith.constant 0 : i32
    %c0_i32_0 = arith.constant 0 : i32
    %c0_i32_1 = arith.constant 0 : i32
    return %arg0, %c0_i32, %c0_i32_0 : i32, i32, i32
  }
  func.func @transform_4(%arg0: i32, %arg1: i32) -> (i32, i32, i32) {
    %c0_i32 = arith.constant 0 : i32
    %c0_i32_0 = arith.constant 0 : i32
    return %arg0, %arg1, %c0_i32 : i32, i32, i32
  }
  func.func @transform_5(%arg0: i32, %arg1: i32) -> (i32, i32, i32) {
    %c0_i32 = arith.constant 0 : i32
    %c0_i32_0 = arith.constant 0 : i32
    return %arg0, %arg1, %c0_i32 : i32, i32, i32
  }
}

</mosaic_0001>

<bundles_post_ra>
// kernel: rfb7a_hs_att_forward.13
= control target key start
LH: loop header
LB: loop body
LE: loop exit
PB: predicated region body
PF: predicated region fallthrough
CT: control target
= control target key end

     0   :  { %9 = vsyncpa [#allocation3], 0  ;;  %s1592_s0 = inlined_call_operand.hbm [shape: f32[1,512,32], index: 0, kind: input, shape index: {}]   ;;  %s1593_s1 = inlined_call_operand.vmem [shape: f32[1,32,52], index: 1, kind: input, shape index: {}]   ;;  %s1594_s2 = inlined_call_operand.vmem [shape: f32[1,1,52], index: 2, kind: input, shape index: {}]   ;;  %s1595_s3 = inlined_call_operand.vmem [shape: f32[1,1,52], index: 3, kind: input, shape index: {}]   ;;  %s1596_s4 = inlined_call_operand.vmem [shape: f32[1,512,52], index: 4, kind: output, shape index: {}]  }
   0x1   :  { %11 = vsyncpa [#allocation3 + $0x1], 0  ;;  %s1251_s15 = smov 0   ;;  %s1253_s16 = smov 0  }
   0x2   :  { %s1255_s17 = smov 0   ;;  %s1257_s18 = smov 0  }
   0x3   :  { %s1259_s19 = smov 0   ;;  %s1261_s20 = smov 0  }
   0x4 LB: > { %s929_s21 = sadd.s32 4294967295, %s1221_s20   ;;  %s26_s22 = sadd.s32 1, %s1217_s19  ;;  %s1221_s20 = sphi %s1261_s20, %s17_s20   ;;  %s1217_s19 = sphi %s1259_s19, %s1604_s19   ;;  %s1213_s18 = sphi %s1257_s18, %s1603_s18   ;;  %s1209_s17 = sphi %s1255_s17, %s1602_s17   ;;  %s1205_s16 = sphi %s1253_s16, %s1601_s16   ;;  %s1201_s15 = sphi %s1251_s15, %s1600_s15  }
   0x5   : > { %p27_p0 = scmp.ge.s32.totalorder %s26_s22, 2  ;;  %s38_s23 = sadd.s32 1, %s1209_s17 }
   0x6   : > { %p45_p1 = scmp.ne.s32.totalorder %s1209_s17, %s1205_s16  ;;  %p46_p2 = scmp.eq.s32.totalorder %s1221_s20, 0 }
   0x7   : > { %s1606_s22 = smov (%p27_p0, %s26_s22), 0  ;;  %p51_p4 = scmp.ne.s32.totalorder %s1205_s16, %s1201_s15 }
   0x8   : > { %p1287_p3 = por %p46_p2, %p45_p1  ;;  %s34_s25 = ssub.s32 %s1217_s19, %s1606_s22 }
   0x9   : > { %p52_p5 = scmp.eq.s32.totalorder %s929_s21, 0  ;;  %p36_p6 = scmp.eq.s32.totalorder %s34_s25, 0 }
   0xa   : > { %p1090_p8 = scmp.lt.s32.totalorder %s1221_s20, 2  ;;  %s201_s28 = sand.u32 1, %s1209_s17  }
   0xb   : > { %p1294_p7 = por %p52_p5, %p51_p4  ;;  %s979_s29 = sshll.u32 %s1217_s19, 12 }
   0xc   : > { %s1300_s27 = scalar_select %p36_p6, %s1209_s17, %s38_s23  }
   0xd   : > { %s936_s30 = sshll.u32 %s201_s28, 8  ;;  %s1307_s7 = scalar_lea.hbm %s1592_s0, %s979_s29 }
   0xe   : > { %s205_s8 = scalar_lea.vmem [#allocation2], %s936_s30  ;;  %p1311_p9 = pnand %p1090_p8, %p1287_p3 }
   0xf   : > { %s214_s9 = sshll.u32 %s205_s8, 4  ;;  %s1317_s11 = scalar_lea.sflag [#allocation3], %s201_s28  ;;  %s1315_s9 = int_to_ptr.vmem [resolvable:$true] %s214_s9 }
  0x10   : > { %s1141_s12 = scalar_lea.hbm %s1307_s7, 4096  ;;  %p1143_p11 = pneg %p1311_p9 }
  0x11   : > { %p1142_p10 = scmp.ne.s32.totalorder %s1307_s7, %s1141_s12  ;;  %s1146_s15 = scalar_lea.hbm %s1592_s0, 8192 }
  0x12   : > { %p1147_p0 = scmp.lt.u32.totalorder %s1307_s7, %s1592_s0  ;;  %p1148_p1 = scmp.lt.u32.totalorder %s1146_s15, %s1141_s12 }
  0x13   : > { %p1144_p12 = pnand %p1143_p11, %p1142_p10  ;;  %p1150_p3 = scmp.lt.u32.totalorder %s1141_s12, %s1307_s7 }
  0x14   : > { %p1149_p2 = por %p1148_p1, %p1147_p0 }
  0x15   : > { %p1145_p13 = pneg %p1144_p12 }
  0x16   : > { %p1151_p4 = por %p1150_p3, %p1149_p2 }
  0x18   : > { %p1152_p5 = pnand %p1151_p4, %p1145_p13 }
  0x1a   : > { %1155 = shalt.err (!%p1152_p5)
}
  0x1b   : > { %s1156_s24 = scalar_lea.vmem %s1315_s9, 4096  ;;  %s1223_s25 = smov [#allocation2]  }
  0x1c   : > { %p1157_p6 = scmp.ne.s32.totalorder %s1315_s9, %s1156_s24  ;;  %s1161_s28 = sshll.u32 %s1223_s25, 4  ;;  %s1162_s28 = int_to_ptr.vmem [resolvable:$false] %s1161_s28 }
  0x1d   : > { %s1163_s29 = scalar_lea.vmem %s1162_s28, 8192  ;;  %p1164_p12 = scmp.lt.s32.totalorder %s1315_s9, %s1162_s28 }
  0x1e   : > { %p1159_p8 = pnand %p1157_p6, %p1143_p11  ;;  %p1165_p0 = scmp.lt.s32.totalorder %s1163_s29, %s1156_s24 }
  0x20   : > { %p1160_p10 = pneg %p1159_p8  ;;  %p1166_p1 = por %p1165_p0, %p1164_p12 }
  0x22   : > { %p1167_p2 = pnand %p1166_p1, %p1160_p10 }
  0x24   : > { %1170 = shalt.err (!%p1167_p2)
}
  0x25   : > { %s1224_s30 = smov 128   ;;  %s1225_s5 = smov 8  }
  0x26   : > { %1089 = dma.hbm_to_vmem [thread:$0]  (!%p1311_p9), %s1307_s7, 4096, %s1315_s9, %s1317_s11, %s1224_s30, %s1224_s30, %s1225_s5  }
  0x27   : > { %p939_p11 = scmp.ge.s32.totalorder %s1221_s20, 1  ;;  %p222_p13 = scmp.lt.s32.totalorder %s1221_s20, 3 }
  0x29   : > { %p223_p3 = pnand %p939_p11, %p222_p13 }
  0x2a   : > { %s228_s6 = sand.u32 (!%p223_p3), 1, %s1205_s16  }
  0x2b   : > { %226 = sbr.rel (%p223_p3) target bundleno = 311 (0x137), region = 36  ;;  %s940_s8 = sshll.u32 (!%p223_p3), %s228_s6, 8 }
  0x2c   : > { %s229_s12 = scalar_lea.sflag (!%p223_p3), [#allocation3], %s228_s6  ;;  %s1348_s13 = scalar_lea.vmem (!%p223_p3), [#allocation2], %s940_s8 }
  0x32   : > { %1196 = dma.done.wait (%p1294_p7), %s229_s12, 4096  }
  0x33   : > { %1198 = vsyncadd (%p1294_p7), %s229_s12, 4294963200  ;;  %vm330_vm0 = vcmask 261120   ;;  %v326_v0 = vld [vmem:[%s1593_s1] sm:$0xff]  ;;  %v327_v1 = vld [vmem:[%s1593_s1 + $0x8] sm:$0xff]  ;;  %s941_s23 = sshll.u32 %s1213_s18, 5  ;;  %vm762_vm1 = vcmask 424960  }
  0x34   : > { %v328_v2 = vld [vmem:[%s1593_s1 + $0x10] sm:$0xff]  ;;  %v1072_v3 = vpack.c.bf16 %v327_v1, %v326_v0  ;;  %v329_v4 = vld [vmem:[%s1593_s1 + $0x18] sm:$0xff]  ;;  %v294_v5 = vld [vmem:[%s1348_s13] sm:$0xff]  ;;  %p287_p7 = scmp.lt.s32.totalorder %s941_s23, 63 }
  0x35   : > { %v310_v6 = vld [vmem:[%s1348_s13 + $0x80] sm:$0xff]  ;;  %v1076_v7 = vpack.c.bf16 %v329_v4, %v328_v2  ;;  %1024 = vmatprep.mubr.msk.f32.mxu0 %vm330_vm0, %v294_v5  ;;  %v295_v8 = vld [vmem:[%s1348_s13 + $0x8] sm:$0xff]  ;;  %v296_v10 = vld [vmem:[%s1348_s13 + $0x10] sm:$0xff] }
  0x36   : > { %1048 = vmatprep.mubr.msk.f32.mxu1 %vm330_vm0, %v310_v6  ;;  %1073 = vmatprep.subr.bf16.mxu0 %v1072_v3  ;;  %v311_v9 = vld [vmem:[%s1348_s13 + $0x88] sm:$0xff]  ;;  %v312_v11 = vld [vmem:[%s1348_s13 + $0x90] sm:$0xff]  ;;  %v297_v12 = vld [vmem:[%s1348_s13 + $0x18] sm:$0xff]  ;;  %s1608_s23 = smov (!%p287_p7, %s941_s23), 63 }
  0x37   : > { %1080 = vmatprep.subr.bf16.mxu1 %v1072_v3  ;;  %1075 = vmatpush3.bf16.msra.mxu0 %v1072_v3  ;;  %v313_v13 = vld [vmem:[%s1348_s13 + $0x98] sm:$0xff]  ;;  %v298_v14 = vld [vmem:[%s1348_s13 + $0x20] sm:$0xff]  ;;  %v299_v16 = vld [vmem:[%s1348_s13 + $0x28] sm:$0xff]  ;;  %s942_s30 = sshll.u32 %s1608_s23, 3 }
  0x38   : > { %1082 = vmatpush3.bf16.msra.mxu1 %v1072_v3  ;;  %1077 = vmatprep.subr.bf16.mxu0 %v1076_v7  ;;  %v314_v15 = vld [vmem:[%s1348_s13 + $0xa0] sm:$0xff]  ;;  %v315_v17 = vld [vmem:[%s1348_s13 + $0xa8] sm:$0xff]  ;;  %v300_v18 = vld [vmem:[%s1348_s13 + $0x30] sm:$0xff]  ;;  %s1450_s6 = scalar_lea.vmem %s1596_s4, %s942_s30 }
  0x39   : > { %1081 = vmatprep.subr.bf16.mxu1 %v1076_v7  ;;  %v316_v19 = vld [vmem:[%s1348_s13 + $0xb0] sm:$0xff]  ;;  %v301_v20 = vld [vmem:[%s1348_s13 + $0x38] sm:$0xff]  ;;  %v302_v22 = vld [vmem:[%s1348_s13 + $0x40] sm:$0xff] }
  0x3a   : > { %v317_v21 = vld [vmem:[%s1348_s13 + $0xb8] sm:$0xff]  ;;  %v318_v23 = vld [vmem:[%s1348_s13 + $0xc0] sm:$0xff]  ;;  %v303_v24 = vld [vmem:[%s1348_s13 + $0x48] sm:$0xff] }
  0x3b   : > { %1079 = vmatpush3.bf16.msra.mxu0 %v1076_v7  ;;  %v319_v25 = vld [vmem:[%s1348_s13 + $0xc8] sm:$0xff]  ;;  %v304_v26 = vld [vmem:[%s1348_s13 + $0x50] sm:$0xff]  ;;  %v305_v28 = vld [vmem:[%s1348_s13 + $0x58] sm:$0xff] }
  0x3c   : > { %1083 = vmatpush3.bf16.msra.mxu1 %v1076_v7  ;;  %v320_v27 = vld [vmem:[%s1348_s13 + $0xd0] sm:$0xff]  ;;  %v321_v29 = vld [vmem:[%s1348_s13 + $0xd8] sm:$0xff]  ;;  %v306_v30 = vld [vmem:[%s1348_s13 + $0x60] sm:$0xff] }
  0x3d   : > { %v322_v31 = vld [vmem:[%s1348_s13 + $0xe0] sm:$0xff]  ;;  %v307_v32 = vld [vmem:[%s1348_s13 + $0x68] sm:$0xff]  ;;  %v308_v34 = vld [vmem:[%s1348_s13 + $0x70] sm:$0xff] }
  0x3e   : > { %1025 = vmatmul.mubr.msk.f32.vlgmr.msra.gmra.mrb[0].mxu0 %vm330_vm0, %v295_v8  ;;  %v323_v33 = vld [vmem:[%s1348_s13 + $0xe8] sm:$0xff]  ;;  %v324_v35 = vld [vmem:[%s1348_s13 + $0xf0] sm:$0xff]  ;;  %v309_v36 = vld [vmem:[%s1348_s13 + $0x78] sm:$0xff] }
  0x3f   : > { %1049 = vmatmul.mubr.msk.f32.vlgmr.msra.gmra.mrb[0].mxu1 %vm330_vm0, %v311_v9  ;;  %1027 = vmatprep.mubr.msk.f32.mxu0 %vm330_vm0, %v296_v10  ;;  %v325_v37 = vld [vmem:[%s1348_s13 + $0xf8] sm:$0xff]  ;;  %v1434_v38 = vld [vmem:[%s1594_s2] ss:$0 sm:$0xff] }
  0x40   : > { %1051 = vmatprep.mubr.msk.f32.mxu1 %vm330_vm0, %v312_v11  ;;  %v1439_v40 = vld [vmem:[%s1595_s3] ss:$0 sm:$0xff] }
  0x42   : > { %1028 = vmatmul.mubr.msk.f32.gmra.mrb[2].mxu0 %vm330_vm0, %v297_v12 }
  0x43   : > { %1052 = vmatmul.mubr.msk.f32.gmra.mrb[2].mxu1 %vm330_vm0, %v313_v13  ;;  %1030 = vmatprep.mubr.msk.f32.mxu0 %vm330_vm0, %v298_v14 }
  0x44   : > { %1054 = vmatprep.mubr.msk.f32.mxu1 %vm330_vm0, %v314_v15 }
  0x46   : > { %1031 = vmatmul.mubr.msk.f32.gmra.mrb[4].mxu0 %vm330_vm0, %v299_v16 }
  0x47   : > { %1055 = vmatmul.mubr.msk.f32.gmra.mrb[4].mxu1 %vm330_vm0, %v315_v17  ;;  %1033 = vmatprep.mubr.msk.f32.mxu0 %vm330_vm0, %v300_v18 }
  0x48   : > { %1057 = vmatprep.mubr.msk.f32.mxu1 %vm330_vm0, %v316_v19 }
  0x4a   : > { %1034 = vmatmul.mubr.msk.f32.gmra.mrb[6].mxu0 %vm330_vm0, %v301_v20 }
  0x4b   : > { %1058 = vmatmul.mubr.msk.f32.gmra.mrb[6].mxu1 %vm330_vm0, %v317_v21  ;;  %1036 = vmatprep.mubr.msk.f32.mxu0 %vm330_vm0, %v302_v22 }
  0x4c   : > { %1060 = vmatprep.mubr.msk.f32.mxu1 %vm330_vm0, %v318_v23 }
  0x4e   : > { %1037 = vmatmul.mubr.msk.f32.gmra.mrb[8].mxu0 %vm330_vm0, %v303_v24 }
  0x4f   : > { %1061 = vmatmul.mubr.msk.f32.gmra.mrb[8].mxu1 %vm330_vm0, %v319_v25  ;;  %1039 = vmatprep.mubr.msk.f32.mxu0 %vm330_vm0, %v304_v26 }
  0x50   : > { %1063 = vmatprep.mubr.msk.f32.mxu1 %vm330_vm0, %v320_v27 }
  0x52   : > { %1040 = vmatmul.mubr.msk.f32.gmra.mrb[10].mxu0 %vm330_vm0, %v305_v28 }
  0x53   : > { %1064 = vmatmul.mubr.msk.f32.gmra.mrb[10].mxu1 %vm330_vm0, %v321_v29  ;;  %1042 = vmatprep.mubr.msk.f32.mxu0 %vm330_vm0, %v306_v30 }
  0x54   : > { %1066 = vmatprep.mubr.msk.f32.mxu1 %vm330_vm0, %v322_v31 }
  0x56   : > { %1043 = vmatmul.mubr.msk.f32.gmra.mrb[12].mxu0 %vm330_vm0, %v307_v32 }
  0x57   : > { %1067 = vmatmul.mubr.msk.f32.gmra.mrb[12].mxu1 %vm330_vm0, %v323_v33  ;;  %1045 = vmatprep.mubr.msk.f32.mxu0 %vm330_vm0, %v308_v34 }
  0x58   : > { %1069 = vmatprep.mubr.msk.f32.mxu1 %vm330_vm0, %v324_v35 }
  0x5a   : > { %1046 = vmatmul.mubr.msk.f32.gmra.mrb[14].mxu0 %vm330_vm0, %v309_v36 }
  0x5b   : > { %1070 = vmatmul.mubr.msk.f32.gmra.mrb[14].mxu1 %vm330_vm0, %v325_v37 }
 0x111   : > { %v1026_v39 = vpop.f32.mrb[0].mxu0 }
 0x112   : > { %v1050_v41 = vpop.f32.mrb[0].mxu1  ;;  %v660_v42 = vmul.f32 %v1026_v39, %v1434_v38  ;;  %v493_v44 = vpop.f32.mrb[1].mxu0 }
 0x113   : > { %v676_v43 = vmul.f32 %v1050_v41, %v1434_v38  ;;  %v573_v45 = vpop.f32.mrb[1].mxu1  ;;  %v659_v46 = vmul.f32 %v1434_v38, %v493_v44 }
 0x114   : > { %v675_v47 = vmul.f32 %v1434_v38, %v573_v45  ;;  %v699_v48 = vadd.f32 %v1439_v40, %v660_v42 }
 0x115   : > { %v715_v49 = vadd.f32 %v1439_v40, %v676_v43  ;;  %v698_v50 = vadd.f32 %v1439_v40, %v659_v46  ;;  %v1029_v52 = vpop.f32.mrb[2].mxu0 }
 0x116   : > { %v714_v51 = vadd.f32 %v1439_v40, %v675_v47  ;;  %v1053_v53 = vpop.f32.mrb[2].mxu1  ;;  %v731_v54 = vmax.f32 %v699_v48, 0.0  ;;  %v662_v56 = vmul.f32 %v1029_v52, %v1434_v38  ;;  %v503_v58 = vpop.f32.mrb[3].mxu0 }
 0x117   : > { %v747_v55 = vmax.f32 %v715_v49, 0.0  ;;  %v678_v57 = vmul.f32 %v1053_v53, %v1434_v38  ;;  %v583_v59 = vpop.f32.mrb[3].mxu1  ;;  %v730_v60 = vmax.f32 %v698_v50, 0.0  ;;  %v661_v62 = vmul.f32 %v1434_v38, %v503_v58 }
 0x118   : > { %v746_v61 = vmax.f32 %v714_v51, 0.0  ;;  %v677_v63 = vmul.f32 %v1434_v38, %v583_v59  ;;  %764 = vst.msk [vmem:[%s1450_s6 + $0x8] sm:$0xff] %vm762_vm1, %v731_v54  ;;  %v701_v0 = vadd.f32 %v1439_v40, %v662_v56 }
 0x119   : > { %780 = vst.msk [vmem:[%s1450_s6 + $0x88] sm:$0xff] %vm762_vm1, %v747_v55  ;;  %v717_v1 = vadd.f32 %v1439_v40, %v678_v57  ;;  %763 = vst.msk [vmem:[%s1450_s6] sm:$0xff] %vm762_vm1, %v730_v60  ;;  %v700_v2 = vadd.f32 %v1439_v40, %v661_v62  ;;  %v1032_v4 = vpop.f32.mrb[4].mxu0 }
 0x11a   : > { %779 = vst.msk [vmem:[%s1450_s6 + $0x80] sm:$0xff] %vm762_vm1, %v746_v61  ;;  %v716_v3 = vadd.f32 %v1439_v40, %v677_v63  ;;  %v1056_v5 = vpop.f32.mrb[4].mxu1  ;;  %v733_v6 = vmax.f32 %v701_v0, 0.0  ;;  %v664_v8 = vmul.f32 %v1032_v4, %v1434_v38  ;;  %v513_v10 = vpop.f32.mrb[5].mxu0 }
 0x11b   : > { %v749_v7 = vmax.f32 %v717_v1, 0.0  ;;  %v680_v9 = vmul.f32 %v1056_v5, %v1434_v38  ;;  %v593_v11 = vpop.f32.mrb[5].mxu1  ;;  %v732_v12 = vmax.f32 %v700_v2, 0.0  ;;  %v663_v14 = vmul.f32 %v1434_v38, %v513_v10 }
 0x11c   : > { %v748_v13 = vmax.f32 %v716_v3, 0.0  ;;  %v679_v15 = vmul.f32 %v1434_v38, %v593_v11  ;;  %766 = vst.msk [vmem:[%s1450_s6 + $0x18] sm:$0xff] %vm762_vm1, %v733_v6  ;;  %v703_v16 = vadd.f32 %v1439_v40, %v664_v8 }
 0x11d   : > { %782 = vst.msk [vmem:[%s1450_s6 + $0x98] sm:$0xff] %vm762_vm1, %v749_v7  ;;  %v719_v17 = vadd.f32 %v1439_v40, %v680_v9  ;;  %765 = vst.msk [vmem:[%s1450_s6 + $0x10] sm:$0xff] %vm762_vm1, %v732_v12  ;;  %v702_v18 = vadd.f32 %v1439_v40, %v663_v14  ;;  %v1035_v20 = vpop.f32.mrb[6].mxu0 }
 0x11e   : > { %781 = vst.msk [vmem:[%s1450_s6 + $0x90] sm:$0xff] %vm762_vm1, %v748_v13  ;;  %v718_v19 = vadd.f32 %v1439_v40, %v679_v15  ;;  %v1059_v21 = vpop.f32.mrb[6].mxu1  ;;  %v735_v22 = vmax.f32 %v703_v16, 0.0  ;;  %v666_v24 = vmul.f32 %v1035_v20, %v1434_v38  ;;  %v523_v26 = vpop.f32.mrb[7].mxu0 }
 0x11f   : > { %v751_v23 = vmax.f32 %v719_v17, 0.0  ;;  %v682_v25 = vmul.f32 %v1059_v21, %v1434_v38  ;;  %v603_v27 = vpop.f32.mrb[7].mxu1  ;;  %v734_v28 = vmax.f32 %v702_v18, 0.0  ;;  %v665_v30 = vmul.f32 %v1434_v38, %v523_v26 }
 0x120   : > { %v750_v29 = vmax.f32 %v718_v19, 0.0  ;;  %v681_v31 = vmul.f32 %v1434_v38, %v603_v27  ;;  %768 = vst.msk [vmem:[%s1450_s6 + $0x28] sm:$0xff] %vm762_vm1, %v735_v22  ;;  %v705_v32 = vadd.f32 %v1439_v40, %v666_v24 }
 0x121   : > { %784 = vst.msk [vmem:[%s1450_s6 + $0xa8] sm:$0xff] %vm762_vm1, %v751_v23  ;;  %v721_v33 = vadd.f32 %v1439_v40, %v682_v25  ;;  %767 = vst.msk [vmem:[%s1450_s6 + $0x20] sm:$0xff] %vm762_vm1, %v734_v28  ;;  %v704_v34 = vadd.f32 %v1439_v40, %v665_v30  ;;  %v1038_v36 = vpop.f32.mrb[8].mxu0 }
 0x122   : > { %783 = vst.msk [vmem:[%s1450_s6 + $0xa0] sm:$0xff] %vm762_vm1, %v750_v29  ;;  %v720_v35 = vadd.f32 %v1439_v40, %v681_v31  ;;  %v1062_v37 = vpop.f32.mrb[8].mxu1  ;;  %v737_v39 = vmax.f32 %v705_v32, 0.0  ;;  %v668_v42 = vmul.f32 %v1038_v36, %v1434_v38  ;;  %v533_v44 = vpop.f32.mrb[9].mxu0 }
 0x123   : > { %v753_v41 = vmax.f32 %v721_v33, 0.0  ;;  %v684_v43 = vmul.f32 %v1062_v37, %v1434_v38  ;;  %v613_v45 = vpop.f32.mrb[9].mxu1  ;;  %v736_v46 = vmax.f32 %v704_v34, 0.0  ;;  %v667_v48 = vmul.f32 %v1434_v38, %v533_v44 }
 0x124   : > { %v752_v47 = vmax.f32 %v720_v35, 0.0  ;;  %v683_v49 = vmul.f32 %v1434_v38, %v613_v45  ;;  %770 = vst.msk [vmem:[%s1450_s6 + $0x38] sm:$0xff] %vm762_vm1, %v737_v39  ;;  %v707_v50 = vadd.f32 %v1439_v40, %v668_v42 }
 0x125   : > { %786 = vst.msk [vmem:[%s1450_s6 + $0xb8] sm:$0xff] %vm762_vm1, %v753_v41  ;;  %v723_v51 = vadd.f32 %v1439_v40, %v684_v43  ;;  %769 = vst.msk [vmem:[%s1450_s6 + $0x30] sm:$0xff] %vm762_vm1, %v736_v46  ;;  %v706_v52 = vadd.f32 %v1439_v40, %v667_v48  ;;  %v1041_v54 = vpop.f32.mrb[10].mxu0 }
 0x126   : > { %785 = vst.msk [vmem:[%s1450_s6 + $0xb0] sm:$0xff] %vm762_vm1, %v752_v47  ;;  %v722_v53 = vadd.f32 %v1439_v40, %v683_v49  ;;  %v1065_v55 = vpop.f32.mrb[10].mxu1  ;;  %v739_v56 = vmax.f32 %v707_v50, 0.0  ;;  %v670_v58 = vmul.f32 %v1041_v54, %v1434_v38  ;;  %v543_v60 = vpop.f32.mrb[11].mxu0 }
 0x127   : > { %v755_v57 = vmax.f32 %v723_v51, 0.0  ;;  %v686_v59 = vmul.f32 %v1065_v55, %v1434_v38  ;;  %v623_v61 = vpop.f32.mrb[11].mxu1  ;;  %v738_v62 = vmax.f32 %v706_v52, 0.0  ;;  %v669_v0 = vmul.f32 %v1434_v38, %v543_v60 }
 0x128   : > { %v754_v63 = vmax.f32 %v722_v53, 0.0  ;;  %v685_v1 = vmul.f32 %v1434_v38, %v623_v61  ;;  %772 = vst.msk [vmem:[%s1450_s6 + $0x48] sm:$0xff] %vm762_vm1, %v739_v56  ;;  %v709_v2 = vadd.f32 %v1439_v40, %v670_v58 }
 0x129   : > { %788 = vst.msk [vmem:[%s1450_s6 + $0xc8] sm:$0xff] %vm762_vm1, %v755_v57  ;;  %v725_v3 = vadd.f32 %v1439_v40, %v686_v59  ;;  %771 = vst.msk [vmem:[%s1450_s6 + $0x40] sm:$0xff] %vm762_vm1, %v738_v62  ;;  %v708_v4 = vadd.f32 %v1439_v40, %v669_v0  ;;  %v1044_v6 = vpop.f32.mrb[12].mxu0 }
 0x12a   : > { %787 = vst.msk [vmem:[%s1450_s6 + $0xc0] sm:$0xff] %vm762_vm1, %v754_v63  ;;  %v724_v5 = vadd.f32 %v1439_v40, %v685_v1  ;;  %v1068_v7 = vpop.f32.mrb[12].mxu1  ;;  %v741_v8 = vmax.f32 %v709_v2, 0.0  ;;  %v672_v10 = vmul.f32 %v1044_v6, %v1434_v38  ;;  %v553_v12 = vpop.f32.mrb[13].mxu0 }
 0x12b   : > { %v757_v9 = vmax.f32 %v725_v3, 0.0  ;;  %v688_v11 = vmul.f32 %v1068_v7, %v1434_v38  ;;  %v633_v13 = vpop.f32.mrb[13].mxu1  ;;  %v740_v14 = vmax.f32 %v708_v4, 0.0  ;;  %v671_v16 = vmul.f32 %v1434_v38, %v553_v12 }
 0x12c   : > { %v756_v15 = vmax.f32 %v724_v5, 0.0  ;;  %v687_v17 = vmul.f32 %v1434_v38, %v633_v13  ;;  %774 = vst.msk [vmem:[%s1450_s6 + $0x58] sm:$0xff] %vm762_vm1, %v741_v8  ;;  %v711_v18 = vadd.f32 %v1439_v40, %v672_v10 }
 0x12d   : > { %790 = vst.msk [vmem:[%s1450_s6 + $0xd8] sm:$0xff] %vm762_vm1, %v757_v9  ;;  %v727_v19 = vadd.f32 %v1439_v40, %v688_v11  ;;  %773 = vst.msk [vmem:[%s1450_s6 + $0x50] sm:$0xff] %vm762_vm1, %v740_v14  ;;  %v710_v20 = vadd.f32 %v1439_v40, %v671_v16  ;;  %v1047_v22 = vpop.f32.mrb[14].mxu0 }
 0x12e   : > { %789 = vst.msk [vmem:[%s1450_s6 + $0xd0] sm:$0xff] %vm762_vm1, %v756_v15  ;;  %v726_v21 = vadd.f32 %v1439_v40, %v687_v17  ;;  %v1071_v23 = vpop.f32.mrb[14].mxu1  ;;  %v743_v24 = vmax.f32 %v711_v18, 0.0  ;;  %v674_v26 = vmul.f32 %v1047_v22, %v1434_v38  ;;  %v563_v28 = vpop.f32.mrb[15].mxu0 }
 0x12f   : > { %v759_v25 = vmax.f32 %v727_v19, 0.0  ;;  %v690_v27 = vmul.f32 %v1071_v23, %v1434_v38  ;;  %v643_v29 = vpop.f32.mrb[15].mxu1  ;;  %v742_v30 = vmax.f32 %v710_v20, 0.0  ;;  %v673_v32 = vmul.f32 %v1434_v38, %v563_v28 }
 0x130   : > { %v758_v31 = vmax.f32 %v726_v21, 0.0  ;;  %v689_v33 = vmul.f32 %v1434_v38, %v643_v29  ;;  %776 = vst.msk [vmem:[%s1450_s6 + $0x68] sm:$0xff] %vm762_vm1, %v743_v24  ;;  %v713_v34 = vadd.f32 %v1439_v40, %v674_v26 }
 0x131   : > { %792 = vst.msk [vmem:[%s1450_s6 + $0xe8] sm:$0xff] %vm762_vm1, %v759_v25  ;;  %v729_v35 = vadd.f32 %v1439_v40, %v690_v27  ;;  %775 = vst.msk [vmem:[%s1450_s6 + $0x60] sm:$0xff] %vm762_vm1, %v742_v30  ;;  %v712_v36 = vadd.f32 %v1439_v40, %v673_v32 }
 0x132   : > { %791 = vst.msk [vmem:[%s1450_s6 + $0xe0] sm:$0xff] %vm762_vm1, %v758_v31  ;;  %v728_v37 = vadd.f32 %v1439_v40, %v689_v33  ;;  %v745_v39 = vmax.f32 %v713_v34, 0.0 }
 0x133   : > { %v761_v41 = vmax.f32 %v729_v35, 0.0  ;;  %v744_v38 = vmax.f32 %v712_v36, 0.0 }
 0x134   : > { %v760_v42 = vmax.f32 %v728_v37, 0.0  ;;  %778 = vst.msk [vmem:[%s1450_s6 + $0x78] sm:$0xff] %vm762_vm1, %v745_v39 }
 0x135   : > { %794 = vst.msk [vmem:[%s1450_s6 + $0xf8] sm:$0xff] %vm762_vm1, %v761_v41  ;;  %777 = vst.msk [vmem:[%s1450_s6 + $0x70] sm:$0xff] %vm762_vm1, %v744_v38 }
 0x136   : > { %793 = vst.msk [vmem:[%s1450_s6 + $0xf0] sm:$0xff] %vm762_vm1, %v760_v42 }
 0x137 PF: > { %s17_s20 = sadd.s32 1, %s1221_s20   ;;  %s1600_s15 = smov %s1205_s16 }
 0x138   : > { %p14_p9 = scmp.ge.s32.totalorder %s17_s20, 4   ;;  %s1601_s16 = smov %s1209_s17 }
 0x139   : > { %s1602_s17 = smov %s1300_s27  ;;  %s1603_s18 = smov %s1217_s19 }
 0x13a   : > { %s1604_s19 = smov %s1606_s22  ;;  %16 = sbr.rel (!%p14_p9) target bundleno = 4 (0x4), region = 85 }
 0x141   :  { %825 = vsyncpa [#allocation3], 1 }
 0x142   :  { %827 = vsyncpa [#allocation3 + $0x1], 1 }

// kernel: rfb7a_hs_att_forward.14
= control target key start
LH: loop header
LB: loop body
LE: loop exit
PB: predicated region body
PF: predicated region fallthrough
CT: control target
= control target key end

     0   :  { %s1148_s15 = smov 0   ;;  %s1150_s16 = smov 0   ;;  %s1413_s0 = inlined_call_operand.vmem [shape: f32[1,512,36], index: 0, kind: input, shape index: {}]   ;;  %s1414_s1 = inlined_call_operand.vmem [shape: f32[1,36,8], index: 1, kind: input, shape index: {}]   ;;  %s1415_s2 = inlined_call_operand.vmem [shape: f32[1,1,8], index: 2, kind: input, shape index: {}]   ;;  %s1416_s3 = inlined_call_operand.vmem [shape: f32[1,1,8], index: 3, kind: input, shape index: {}]   ;;  %s1417_s4 = inlined_call_operand.vmem [shape: f32[1,512,8], index: 4, kind: output, shape index: {}]  }
   0x1   :  { %s1152_s17 = smov 0  }
   0x2 LB: > { %s23_s18 = sadd.s32 1, %s1117_s16  ;;  %p924_p0 = scmp.ge.s32.totalorder %s1121_s17, 1  ;;  %s1121_s17 = sphi %s1152_s17, %s14_s17   ;;  %s1117_s16 = sphi %s1150_s16, %s1419_s16   ;;  %s1113_s15 = sphi %s1148_s15, %s1418_s15  }
   0x3   : > { %p24_p1 = scmp.ge.s32.totalorder %s23_s18, 2  ;;  %p209_p2 = scmp.lt.s32.totalorder %s1121_s17, 3 }
   0x5   : > { %s1421_s18 = smov (%p24_p1, %s23_s18), 0  ;;  %p210_p3 = pnand %p924_p0, %p209_p2 }
   0x6   : > { %v317_v0 = vld [vmem:[%s1414_s1] sm:$0xff] (!%p210_p3)  ;;  %v318_v1 = vld [vmem:[%s1414_s1 + $0x8] sm:$0xff] (!%p210_p3)  ;;  %v319_v2 = vld [vmem:[%s1414_s1 + $0x10] sm:$0xff] (!%p210_p3)  ;;  %s925_s25 = sshll.u32 (!%p210_p3), %s1113_s15, 5  ;;  %vm419_vm0 = vcmask (!%p210_p3), 1043456   ;;  %vm322_vm1 = vcmask (!%p210_p3), 293888  }
   0x7   : > { %213 = sbr.rel (%p210_p3) target bundleno = 268 (0x10c), region = 36  ;;  %v1061_v3 = vpack.c.bf16 (!%p210_p3), %v318_v1, %v317_v0  ;;  %v320_v4 = vld [vmem:[%s1414_s1 + $0x18] sm:$0xff] (!%p210_p3)  ;;  %p257_p4 = scmp.lt.s32.totalorder (!%p210_p3), %s925_s25, 63  ;;  %v321_v6 = vld [vmem:[%s1414_s1 + $0x20] sm:$0xf] (!%p210_p3)  ;;  %vm758_vm2 = vcmask (!%p210_p3), 64512  }
   0x8   : > { %v1065_v5 = vpack.c.bf16 (!%p210_p3), %v320_v4, %v319_v2  ;;  %v1262_v39 = vld [vmem:[%s1415_s2] ss:$0 sm:$0xff] (!%p210_p3) }
   0x9   : > { %1062 = vmatprep.subr.bf16.mxu0 (!%p210_p3), %v1061_v3  ;;  %1069 = vmatprep.subr.bf16.mxu1 (!%p210_p3), %v1061_v3  ;;  %v1267_v41 = vld [vmem:[%s1416_s3] ss:$0 sm:$0xff] (!%p210_p3) }
   0xa   : > { %1064 = vmatpush3.bf16.msra.mxu0 (!%p210_p3), %v1061_v3  ;;  %1072 = vmatpush3.bf16.msra.mxu1 (!%p210_p3), %v1061_v3 }
   0xb   : > { %1066 = vmatprep.subr.bf16.mxu0 (!%p210_p3), %v1065_v5  ;;  %1070 = vmatprep.subr.bf16.mxu1 (!%p210_p3), %v1065_v5 }
   0xe   : > { %s1423_s25 = smov (!%p257_p4, %s925_s25), 63  ;;  %1068 = vmatpush3.bf16.msra.mxu0 %v1065_v5  ;;  %1073 = vmatpush3.bf16.msra.mxu1 %v1065_v5 }
   0xf   : > { %s926_s28 = sshll.u32 %s1423_s25, 3  ;;  %1011 = vmatprep.subr.msk.mxu0 %vm419_vm0, %v321_v6  ;;  %1071 = vmatprep.subr.msk.mxu1 %vm419_vm0, %v321_v6 }
  0x10   : > { %s1189_s7 = scalar_lea.vmem %s1413_s0, %s926_s28  ;;  %s1280_s14 = scalar_lea.vmem %s1417_s4, %s926_s28 }
  0x11   : > { %v285_v7 = vld [vmem:[%s1189_s7] sm:$0xff]  ;;  %v286_v9 = vld [vmem:[%s1189_s7 + $0x8] sm:$0xff]  ;;  %v287_v11 = vld [vmem:[%s1189_s7 + $0x10] sm:$0xff] }
  0x12   : > { %v301_v8 = vld [vmem:[%s1189_s7 + $0x80] sm:$0xff]  ;;  %1013 = vmatprep.mubr.msk.f32.mxu0 %vm322_vm1, %v285_v7  ;;  %v302_v10 = vld [vmem:[%s1189_s7 + $0x88] sm:$0xff]  ;;  %v303_v12 = vld [vmem:[%s1189_s7 + $0x90] sm:$0xff]  ;;  %1012 = vmatpush3.msk.msra.mxu0 %vm419_vm0, %v321_v6 }
  0x13   : > { %1037 = vmatprep.mubr.msk.f32.mxu1 %vm322_vm1, %v301_v8  ;;  %1074 = vmatpush3.msk.msra.mxu1 %vm419_vm0, %v321_v6  ;;  %v288_v13 = vld [vmem:[%s1189_s7 + $0x18] sm:$0xff]  ;;  %v289_v15 = vld [vmem:[%s1189_s7 + $0x20] sm:$0xff]  ;;  %v290_v17 = vld [vmem:[%s1189_s7 + $0x28] sm:$0xff] }
  0x14   : > { %1014 = vmatmul.mubr.msk.f32.vlgmr.msra.gmra.mrb[0].mxu0 %vm322_vm1, %v286_v9  ;;  %1038 = vmatmul.mubr.msk.f32.vlgmr.msra.gmra.mrb[0].mxu1 %vm322_vm1, %v302_v10  ;;  %v304_v14 = vld [vmem:[%s1189_s7 + $0x98] sm:$0xff]  ;;  %v305_v16 = vld [vmem:[%s1189_s7 + $0xa0] sm:$0xff]  ;;  %v306_v18 = vld [vmem:[%s1189_s7 + $0xa8] sm:$0xff] }
  0x15   : > { %1016 = vmatprep.mubr.msk.f32.mxu0 %vm322_vm1, %v287_v11  ;;  %1040 = vmatprep.mubr.msk.f32.mxu1 %vm322_vm1, %v303_v12  ;;  %v291_v19 = vld [vmem:[%s1189_s7 + $0x30] sm:$0xff]  ;;  %v292_v21 = vld [vmem:[%s1189_s7 + $0x38] sm:$0xff]  ;;  %v293_v23 = vld [vmem:[%s1189_s7 + $0x40] sm:$0xff] }
  0x16   : > { %v307_v20 = vld [vmem:[%s1189_s7 + $0xb0] sm:$0xff]  ;;  %v308_v22 = vld [vmem:[%s1189_s7 + $0xb8] sm:$0xff]  ;;  %v309_v24 = vld [vmem:[%s1189_s7 + $0xc0] sm:$0xff] }
  0x17   : > { %v294_v25 = vld [vmem:[%s1189_s7 + $0x48] sm:$0xff]  ;;  %v295_v27 = vld [vmem:[%s1189_s7 + $0x50] sm:$0xff]  ;;  %v296_v29 = vld [vmem:[%s1189_s7 + $0x58] sm:$0xff] }
  0x18   : > { %1017 = vmatmul.mubr.msk.f32.gmra.mrb[2].mxu0 %vm322_vm1, %v288_v13  ;;  %1041 = vmatmul.mubr.msk.f32.gmra.mrb[2].mxu1 %vm322_vm1, %v304_v14  ;;  %v310_v26 = vld [vmem:[%s1189_s7 + $0xc8] sm:$0xff]  ;;  %v311_v28 = vld [vmem:[%s1189_s7 + $0xd0] sm:$0xff]  ;;  %v312_v30 = vld [vmem:[%s1189_s7 + $0xd8] sm:$0xff] }
  0x19   : > { %1019 = vmatprep.mubr.msk.f32.mxu0 %vm322_vm1, %v289_v15  ;;  %1043 = vmatprep.mubr.msk.f32.mxu1 %vm322_vm1, %v305_v16  ;;  %v297_v31 = vld [vmem:[%s1189_s7 + $0x60] sm:$0xff]  ;;  %v298_v33 = vld [vmem:[%s1189_s7 + $0x68] sm:$0xff]  ;;  %v299_v35 = vld [vmem:[%s1189_s7 + $0x70] sm:$0xff] }
  0x1a   : > { %v313_v32 = vld [vmem:[%s1189_s7 + $0xe0] sm:$0xff]  ;;  %v314_v34 = vld [vmem:[%s1189_s7 + $0xe8] sm:$0xff]  ;;  %v315_v36 = vld [vmem:[%s1189_s7 + $0xf0] sm:$0xff] }
  0x1b   : > { %v300_v37 = vld [vmem:[%s1189_s7 + $0x78] sm:$0xff] }
  0x1c   : > { %1020 = vmatmul.mubr.msk.f32.gmra.mrb[4].mxu0 %vm322_vm1, %v290_v17  ;;  %1044 = vmatmul.mubr.msk.f32.gmra.mrb[4].mxu1 %vm322_vm1, %v306_v18  ;;  %v316_v38 = vld [vmem:[%s1189_s7 + $0xf8] sm:$0xff] }
  0x1d   : > { %1022 = vmatprep.mubr.msk.f32.mxu0 %vm322_vm1, %v291_v19  ;;  %1046 = vmatprep.mubr.msk.f32.mxu1 %vm322_vm1, %v307_v20 }
  0x20   : > { %1023 = vmatmul.mubr.msk.f32.gmra.mrb[6].mxu0 %vm322_vm1, %v292_v21  ;;  %1047 = vmatmul.mubr.msk.f32.gmra.mrb[6].mxu1 %vm322_vm1, %v308_v22 }
  0x21   : > { %1025 = vmatprep.mubr.msk.f32.mxu0 %vm322_vm1, %v293_v23  ;;  %1049 = vmatprep.mubr.msk.f32.mxu1 %vm322_vm1, %v309_v24 }
  0x24   : > { %1026 = vmatmul.mubr.msk.f32.gmra.mrb[8].mxu0 %vm322_vm1, %v294_v25  ;;  %1050 = vmatmul.mubr.msk.f32.gmra.mrb[8].mxu1 %vm322_vm1, %v310_v26 }
  0x25   : > { %1028 = vmatprep.mubr.msk.f32.mxu0 %vm322_vm1, %v295_v27  ;;  %1052 = vmatprep.mubr.msk.f32.mxu1 %vm322_vm1, %v311_v28 }
  0x28   : > { %1029 = vmatmul.mubr.msk.f32.gmra.mrb[10].mxu0 %vm322_vm1, %v296_v29  ;;  %1053 = vmatmul.mubr.msk.f32.gmra.mrb[10].mxu1 %vm322_vm1, %v312_v30 }
  0x29   : > { %1031 = vmatprep.mubr.msk.f32.mxu0 %vm322_vm1, %v297_v31  ;;  %1055 = vmatprep.mubr.msk.f32.mxu1 %vm322_vm1, %v313_v32 }
  0x2c   : > { %1032 = vmatmul.mubr.msk.f32.gmra.mrb[12].mxu0 %vm322_vm1, %v298_v33  ;;  %1056 = vmatmul.mubr.msk.f32.gmra.mrb[12].mxu1 %vm322_vm1, %v314_v34 }
  0x2d   : > { %1034 = vmatprep.mubr.msk.f32.mxu0 %vm322_vm1, %v299_v35  ;;  %1058 = vmatprep.mubr.msk.f32.mxu1 %vm322_vm1, %v315_v36 }
  0x30   : > { %1035 = vmatmul.mubr.msk.f32.gmra.mrb[14].mxu0 %vm322_vm1, %v300_v37  ;;  %1059 = vmatmul.mubr.msk.f32.gmra.mrb[14].mxu1 %vm322_vm1, %v316_v38 }
  0xe7   : > { %v1015_v40 = vpop.f32.mrb[0].mxu0  ;;  %v1039_v42 = vpop.f32.mrb[0].mxu1 }
  0xe8   : > { %v656_v43 = vmul.f32 %v1015_v40, %v1262_v39  ;;  %v672_v44 = vmul.f32 %v1039_v42, %v1262_v39  ;;  %v489_v45 = vpop.f32.mrb[1].mxu0  ;;  %v569_v46 = vpop.f32.mrb[1].mxu1 }
  0xe9   : > { %v655_v47 = vmul.f32 %v1262_v39, %v489_v45  ;;  %v671_v48 = vmul.f32 %v1262_v39, %v569_v46 }
  0xea   : > { %v695_v49 = vadd.f32 %v1267_v41, %v656_v43  ;;  %v711_v50 = vadd.f32 %v1267_v41, %v672_v44 }
  0xeb   : > { %v694_v51 = vadd.f32 %v1267_v41, %v655_v47  ;;  %v710_v52 = vadd.f32 %v1267_v41, %v671_v48  ;;  %v1018_v53 = vpop.f32.mrb[2].mxu0  ;;  %v1042_v54 = vpop.f32.mrb[2].mxu1 }
  0xec   : > { %v727_v55 = vmax.f32 %v695_v49, 0.0  ;;  %v743_v56 = vmax.f32 %v711_v50, 0.0  ;;  %v658_v57 = vmul.f32 %v1018_v53, %v1262_v39  ;;  %v674_v58 = vmul.f32 %v1042_v54, %v1262_v39  ;;  %v499_v59 = vpop.f32.mrb[3].mxu0  ;;  %v579_v60 = vpop.f32.mrb[3].mxu1 }
  0xed   : > { %v726_v61 = vmax.f32 %v694_v51, 0.0  ;;  %v742_v62 = vmax.f32 %v710_v52, 0.0  ;;  %v657_v63 = vmul.f32 %v1262_v39, %v499_v59  ;;  %v673_v0 = vmul.f32 %v1262_v39, %v579_v60 }
  0xee   : > { %760 = vst.msk [vmem:[%s1280_s14 + $0x8] sm:$0xff] %vm758_vm2, %v727_v55  ;;  %776 = vst.msk [vmem:[%s1280_s14 + $0x88] sm:$0xff] %vm758_vm2, %v743_v56  ;;  %v697_v1 = vadd.f32 %v1267_v41, %v658_v57  ;;  %v713_v2 = vadd.f32 %v1267_v41, %v674_v58 }
  0xef   : > { %759 = vst.msk [vmem:[%s1280_s14] sm:$0xff] %vm758_vm2, %v726_v61  ;;  %775 = vst.msk [vmem:[%s1280_s14 + $0x80] sm:$0xff] %vm758_vm2, %v742_v62  ;;  %v696_v3 = vadd.f32 %v1267_v41, %v657_v63  ;;  %v712_v4 = vadd.f32 %v1267_v41, %v673_v0  ;;  %v1021_v5 = vpop.f32.mrb[4].mxu0  ;;  %v1045_v6 = vpop.f32.mrb[4].mxu1 }
  0xf0   : > { %v729_v7 = vmax.f32 %v697_v1, 0.0  ;;  %v745_v8 = vmax.f32 %v713_v2, 0.0  ;;  %v660_v9 = vmul.f32 %v1021_v5, %v1262_v39  ;;  %v676_v10 = vmul.f32 %v1045_v6, %v1262_v39  ;;  %v509_v11 = vpop.f32.mrb[5].mxu0  ;;  %v589_v12 = vpop.f32.mrb[5].mxu1 }
  0xf1   : > { %v728_v13 = vmax.f32 %v696_v3, 0.0  ;;  %v744_v14 = vmax.f32 %v712_v4, 0.0  ;;  %v659_v15 = vmul.f32 %v1262_v39, %v509_v11  ;;  %v675_v16 = vmul.f32 %v1262_v39, %v589_v12 }
  0xf2   : > { %762 = vst.msk [vmem:[%s1280_s14 + $0x18] sm:$0xff] %vm758_vm2, %v729_v7  ;;  %778 = vst.msk [vmem:[%s1280_s14 + $0x98] sm:$0xff] %vm758_vm2, %v745_v8  ;;  %v699_v17 = vadd.f32 %v1267_v41, %v660_v9  ;;  %v715_v18 = vadd.f32 %v1267_v41, %v676_v10 }
  0xf3   : > { %761 = vst.msk [vmem:[%s1280_s14 + $0x10] sm:$0xff] %vm758_vm2, %v728_v13  ;;  %777 = vst.msk [vmem:[%s1280_s14 + $0x90] sm:$0xff] %vm758_vm2, %v744_v14  ;;  %v698_v19 = vadd.f32 %v1267_v41, %v659_v15  ;;  %v714_v20 = vadd.f32 %v1267_v41, %v675_v16  ;;  %v1024_v21 = vpop.f32.mrb[6].mxu0  ;;  %v1048_v22 = vpop.f32.mrb[6].mxu1 }
  0xf4   : > { %v731_v23 = vmax.f32 %v699_v17, 0.0  ;;  %v747_v24 = vmax.f32 %v715_v18, 0.0  ;;  %v662_v25 = vmul.f32 %v1024_v21, %v1262_v39  ;;  %v678_v26 = vmul.f32 %v1048_v22, %v1262_v39  ;;  %v519_v27 = vpop.f32.mrb[7].mxu0  ;;  %v599_v28 = vpop.f32.mrb[7].mxu1 }
  0xf5   : > { %v730_v29 = vmax.f32 %v698_v19, 0.0  ;;  %v746_v30 = vmax.f32 %v714_v20, 0.0  ;;  %v661_v31 = vmul.f32 %v1262_v39, %v519_v27  ;;  %v677_v32 = vmul.f32 %v1262_v39, %v599_v28 }
  0xf6   : > { %764 = vst.msk [vmem:[%s1280_s14 + $0x28] sm:$0xff] %vm758_vm2, %v731_v23  ;;  %780 = vst.msk [vmem:[%s1280_s14 + $0xa8] sm:$0xff] %vm758_vm2, %v747_v24  ;;  %v701_v33 = vadd.f32 %v1267_v41, %v662_v25  ;;  %v717_v34 = vadd.f32 %v1267_v41, %v678_v26 }
  0xf7   : > { %763 = vst.msk [vmem:[%s1280_s14 + $0x20] sm:$0xff] %vm758_vm2, %v730_v29  ;;  %779 = vst.msk [vmem:[%s1280_s14 + $0xa0] sm:$0xff] %vm758_vm2, %v746_v30  ;;  %v700_v35 = vadd.f32 %v1267_v41, %v661_v31  ;;  %v716_v36 = vadd.f32 %v1267_v41, %v677_v32  ;;  %v1027_v37 = vpop.f32.mrb[8].mxu0  ;;  %v1051_v38 = vpop.f32.mrb[8].mxu1 }
  0xf8   : > { %v733_v40 = vmax.f32 %v701_v33, 0.0  ;;  %v749_v42 = vmax.f32 %v717_v34, 0.0  ;;  %v664_v43 = vmul.f32 %v1027_v37, %v1262_v39  ;;  %v680_v44 = vmul.f32 %v1051_v38, %v1262_v39  ;;  %v529_v45 = vpop.f32.mrb[9].mxu0  ;;  %v609_v46 = vpop.f32.mrb[9].mxu1 }
  0xf9   : > { %v732_v47 = vmax.f32 %v700_v35, 0.0  ;;  %v748_v48 = vmax.f32 %v716_v36, 0.0  ;;  %v663_v49 = vmul.f32 %v1262_v39, %v529_v45  ;;  %v679_v50 = vmul.f32 %v1262_v39, %v609_v46 }
  0xfa   : > { %766 = vst.msk [vmem:[%s1280_s14 + $0x38] sm:$0xff] %vm758_vm2, %v733_v40  ;;  %782 = vst.msk [vmem:[%s1280_s14 + $0xb8] sm:$0xff] %vm758_vm2, %v749_v42  ;;  %v703_v51 = vadd.f32 %v1267_v41, %v664_v43  ;;  %v719_v52 = vadd.f32 %v1267_v41, %v680_v44 }
  0xfb   : > { %765 = vst.msk [vmem:[%s1280_s14 + $0x30] sm:$0xff] %vm758_vm2, %v732_v47  ;;  %781 = vst.msk [vmem:[%s1280_s14 + $0xb0] sm:$0xff] %vm758_vm2, %v748_v48  ;;  %v702_v53 = vadd.f32 %v1267_v41, %v663_v49  ;;  %v718_v54 = vadd.f32 %v1267_v41, %v679_v50  ;;  %v1030_v55 = vpop.f32.mrb[10].mxu0  ;;  %v1054_v56 = vpop.f32.mrb[10].mxu1 }
  0xfc   : > { %v735_v57 = vmax.f32 %v703_v51, 0.0  ;;  %v751_v58 = vmax.f32 %v719_v52, 0.0  ;;  %v666_v59 = vmul.f32 %v1030_v55, %v1262_v39  ;;  %v682_v60 = vmul.f32 %v1054_v56, %v1262_v39  ;;  %v539_v61 = vpop.f32.mrb[11].mxu0  ;;  %v619_v62 = vpop.f32.mrb[11].mxu1 }
  0xfd   : > { %v734_v63 = vmax.f32 %v702_v53, 0.0  ;;  %v750_v0 = vmax.f32 %v718_v54, 0.0  ;;  %v665_v1 = vmul.f32 %v1262_v39, %v539_v61  ;;  %v681_v2 = vmul.f32 %v1262_v39, %v619_v62 }
  0xfe   : > { %768 = vst.msk [vmem:[%s1280_s14 + $0x48] sm:$0xff] %vm758_vm2, %v735_v57  ;;  %784 = vst.msk [vmem:[%s1280_s14 + $0xc8] sm:$0xff] %vm758_vm2, %v751_v58  ;;  %v705_v3 = vadd.f32 %v1267_v41, %v666_v59  ;;  %v721_v4 = vadd.f32 %v1267_v41, %v682_v60 }
  0xff   : > { %767 = vst.msk [vmem:[%s1280_s14 + $0x40] sm:$0xff] %vm758_vm2, %v734_v63  ;;  %783 = vst.msk [vmem:[%s1280_s14 + $0xc0] sm:$0xff] %vm758_vm2, %v750_v0  ;;  %v704_v5 = vadd.f32 %v1267_v41, %v665_v1  ;;  %v720_v6 = vadd.f32 %v1267_v41, %v681_v2  ;;  %v1033_v7 = vpop.f32.mrb[12].mxu0  ;;  %v1057_v8 = vpop.f32.mrb[12].mxu1 }
 0x100   : > { %v737_v9 = vmax.f32 %v705_v3, 0.0  ;;  %v753_v10 = vmax.f32 %v721_v4, 0.0  ;;  %v668_v11 = vmul.f32 %v1033_v7, %v1262_v39  ;;  %v684_v12 = vmul.f32 %v1057_v8, %v1262_v39  ;;  %v549_v13 = vpop.f32.mrb[13].mxu0  ;;  %v629_v14 = vpop.f32.mrb[13].mxu1 }
 0x101   : > { %v736_v15 = vmax.f32 %v704_v5, 0.0  ;;  %v752_v16 = vmax.f32 %v720_v6, 0.0  ;;  %v667_v17 = vmul.f32 %v1262_v39, %v549_v13  ;;  %v683_v18 = vmul.f32 %v1262_v39, %v629_v14 }
 0x102   : > { %770 = vst.msk [vmem:[%s1280_s14 + $0x58] sm:$0xff] %vm758_vm2, %v737_v9  ;;  %786 = vst.msk [vmem:[%s1280_s14 + $0xd8] sm:$0xff] %vm758_vm2, %v753_v10  ;;  %v707_v19 = vadd.f32 %v1267_v41, %v668_v11  ;;  %v723_v20 = vadd.f32 %v1267_v41, %v684_v12 }
 0x103   : > { %769 = vst.msk [vmem:[%s1280_s14 + $0x50] sm:$0xff] %vm758_vm2, %v736_v15  ;;  %785 = vst.msk [vmem:[%s1280_s14 + $0xd0] sm:$0xff] %vm758_vm2, %v752_v16  ;;  %v706_v21 = vadd.f32 %v1267_v41, %v667_v17  ;;  %v722_v22 = vadd.f32 %v1267_v41, %v683_v18  ;;  %v1036_v23 = vpop.f32.mrb[14].mxu0  ;;  %v1060_v24 = vpop.f32.mrb[14].mxu1 }
 0x104   : > { %v739_v25 = vmax.f32 %v707_v19, 0.0  ;;  %v755_v26 = vmax.f32 %v723_v20, 0.0  ;;  %v670_v27 = vmul.f32 %v1036_v23, %v1262_v39  ;;  %v686_v28 = vmul.f32 %v1060_v24, %v1262_v39  ;;  %v559_v29 = vpop.f32.mrb[15].mxu0  ;;  %v639_v30 = vpop.f32.mrb[15].mxu1 }
 0x105   : > { %v738_v31 = vmax.f32 %v706_v21, 0.0  ;;  %v754_v32 = vmax.f32 %v722_v22, 0.0  ;;  %v669_v33 = vmul.f32 %v1262_v39, %v559_v29  ;;  %v685_v34 = vmul.f32 %v1262_v39, %v639_v30 }
 0x106   : > { %772 = vst.msk [vmem:[%s1280_s14 + $0x68] sm:$0xff] %vm758_vm2, %v739_v25  ;;  %788 = vst.msk [vmem:[%s1280_s14 + $0xe8] sm:$0xff] %vm758_vm2, %v755_v26  ;;  %v709_v35 = vadd.f32 %v1267_v41, %v670_v27  ;;  %v725_v36 = vadd.f32 %v1267_v41, %v686_v28 }
 0x107   : > { %771 = vst.msk [vmem:[%s1280_s14 + $0x60] sm:$0xff] %vm758_vm2, %v738_v31  ;;  %787 = vst.msk [vmem:[%s1280_s14 + $0xe0] sm:$0xff] %vm758_vm2, %v754_v32  ;;  %v708_v37 = vadd.f32 %v1267_v41, %v669_v33  ;;  %v724_v38 = vadd.f32 %v1267_v41, %v685_v34 }
 0x108   : > { %v741_v40 = vmax.f32 %v709_v35, 0.0  ;;  %v757_v42 = vmax.f32 %v725_v36, 0.0 }
 0x109   : > { %v740_v39 = vmax.f32 %v708_v37, 0.0  ;;  %v756_v43 = vmax.f32 %v724_v38, 0.0 }
 0x10a   : > { %774 = vst.msk [vmem:[%s1280_s14 + $0x78] sm:$0xff] %vm758_vm2, %v741_v40  ;;  %790 = vst.msk [vmem:[%s1280_s14 + $0xf8] sm:$0xff] %vm758_vm2, %v757_v42 }
 0x10b   : > { %773 = vst.msk [vmem:[%s1280_s14 + $0x70] sm:$0xff] %vm758_vm2, %v740_v39  ;;  %789 = vst.msk [vmem:[%s1280_s14 + $0xf0] sm:$0xff] %vm758_vm2, %v756_v43 }
 0x10c PF: > { %s14_s17 = sadd.s32 1, %s1121_s17   ;;  %s1418_s15 = smov %s1117_s16 }
 0x10d   : > { %p11_p5 = scmp.ge.s32.totalorder %s14_s17, 4   ;;  %s1419_s16 = smov %s1421_s18 }
 0x10f   :  { %13 = sbr.rel (!%p11_p5) target bundleno = 2 (0x2), region = 75 }

// kernel: rfb7a_hs_att_forward.15
= control target key start
LH: loop header
LB: loop body
LE: loop exit
PB: predicated region body
PF: predicated region fallthrough
CT: control target
= control target key end

     0   :  { %s1148_s15 = smov 0   ;;  %s1150_s16 = smov 0   ;;  %s1413_s0 = inlined_call_operand.vmem [shape: f32[1,512,36], index: 0, kind: input, shape index: {}]   ;;  %s1414_s1 = inlined_call_operand.vmem [shape: f32[1,36,6], index: 1, kind: input, shape index: {}]   ;;  %s1415_s2 = inlined_call_operand.vmem [shape: f32[1,1,6], index: 2, kind: input, shape index: {}]   ;;  %s1416_s3 = inlined_call_operand.vmem [shape: f32[1,1,6], index: 3, kind: input, shape index: {}]   ;;  %s1417_s4 = inlined_call_operand.vmem [shape: f32[1,512,6], index: 4, kind: output, shape index: {}]  }
   0x1   :  { %s1152_s17 = smov 0  }
   0x2 LB: > { %s23_s18 = sadd.s32 1, %s1117_s16  ;;  %p924_p0 = scmp.ge.s32.totalorder %s1121_s17, 1  ;;  %s1121_s17 = sphi %s1152_s17, %s14_s17   ;;  %s1117_s16 = sphi %s1150_s16, %s1419_s16   ;;  %s1113_s15 = sphi %s1148_s15, %s1418_s15  }
   0x3   : > { %p24_p1 = scmp.ge.s32.totalorder %s23_s18, 2  ;;  %p209_p2 = scmp.lt.s32.totalorder %s1121_s17, 3 }
   0x5   : > { %s1421_s18 = smov (%p24_p1, %s23_s18), 0  ;;  %p210_p3 = pnand %p924_p0, %p209_p2 }
   0x6   : > { %v317_v0 = vld [vmem:[%s1414_s1] sm:$0xff] (!%p210_p3)  ;;  %v318_v1 = vld [vmem:[%s1414_s1 + $0x8] sm:$0xff] (!%p210_p3)  ;;  %v319_v2 = vld [vmem:[%s1414_s1 + $0x10] sm:$0xff] (!%p210_p3)  ;;  %s925_s25 = sshll.u32 (!%p210_p3), %s1113_s15, 5  ;;  %vm419_vm0 = vcmask (!%p210_p3), 1043456   ;;  %vm322_vm1 = vcmask (!%p210_p3), 293888  }
   0x7   : > { %213 = sbr.rel (%p210_p3) target bundleno = 268 (0x10c), region = 36  ;;  %v1061_v3 = vpack.c.bf16 (!%p210_p3), %v318_v1, %v317_v0  ;;  %v320_v4 = vld [vmem:[%s1414_s1 + $0x18] sm:$0xff] (!%p210_p3)  ;;  %p257_p4 = scmp.lt.s32.totalorder (!%p210_p3), %s925_s25, 63  ;;  %v321_v6 = vld [vmem:[%s1414_s1 + $0x20] sm:$0xf] (!%p210_p3)  ;;  %vm758_vm2 = vcmask (!%p210_p3), 48128  }
   0x8   : > { %v1065_v5 = vpack.c.bf16 (!%p210_p3), %v320_v4, %v319_v2  ;;  %v1262_v39 = vld [vmem:[%s1415_s2] ss:$0 sm:$0xff] (!%p210_p3) }
   0x9   : > { %1062 = vmatprep.subr.bf16.mxu0 (!%p210_p3), %v1061_v3  ;;  %1069 = vmatprep.subr.bf16.mxu1 (!%p210_p3), %v1061_v3  ;;  %v1267_v41 = vld [vmem:[%s1416_s3] ss:$0 sm:$0xff] (!%p210_p3) }
   0xa   : > { %1064 = vmatpush3.bf16.msra.mxu0 (!%p210_p3), %v1061_v3  ;;  %1072 = vmatpush3.bf16.msra.mxu1 (!%p210_p3), %v1061_v3 }
   0xb   : > { %1066 = vmatprep.subr.bf16.mxu0 (!%p210_p3), %v1065_v5  ;;  %1070 = vmatprep.subr.bf16.mxu1 (!%p210_p3), %v1065_v5 }
   0xe   : > { %s1423_s25 = smov (!%p257_p4, %s925_s25), 63  ;;  %1068 = vmatpush3.bf16.msra.mxu0 %v1065_v5  ;;  %1073 = vmatpush3.bf16.msra.mxu1 %v1065_v5 }
   0xf   : > { %s926_s28 = sshll.u32 %s1423_s25, 3  ;;  %1011 = vmatprep.subr.msk.mxu0 %vm419_vm0, %v321_v6  ;;  %1071 = vmatprep.subr.msk.mxu1 %vm419_vm0, %v321_v6 }
  0x10   : > { %s1189_s7 = scalar_lea.vmem %s1413_s0, %s926_s28  ;;  %s1280_s14 = scalar_lea.vmem %s1417_s4, %s926_s28 }
  0x11   : > { %v285_v7 = vld [vmem:[%s1189_s7] sm:$0xff]  ;;  %v286_v9 = vld [vmem:[%s1189_s7 + $0x8] sm:$0xff]  ;;  %v287_v11 = vld [vmem:[%s1189_s7 + $0x10] sm:$0xff] }
  0x12   : > { %v301_v8 = vld [vmem:[%s1189_s7 + $0x80] sm:$0xff]  ;;  %1013 = vmatprep.mubr.msk.f32.mxu0 %vm322_vm1, %v285_v7  ;;  %v302_v10 = vld [vmem:[%s1189_s7 + $0x88] sm:$0xff]  ;;  %v303_v12 = vld [vmem:[%s1189_s7 + $0x90] sm:$0xff]  ;;  %1012 = vmatpush3.msk.msra.mxu0 %vm419_vm0, %v321_v6 }
  0x13   : > { %1037 = vmatprep.mubr.msk.f32.mxu1 %vm322_vm1, %v301_v8  ;;  %1074 = vmatpush3.msk.msra.mxu1 %vm419_vm0, %v321_v6  ;;  %v288_v13 = vld [vmem:[%s1189_s7 + $0x18] sm:$0xff]  ;;  %v289_v15 = vld [vmem:[%s1189_s7 + $0x20] sm:$0xff]  ;;  %v290_v17 = vld [vmem:[%s1189_s7 + $0x28] sm:$0xff] }
  0x14   : > { %1014 = vmatmul.mubr.msk.f32.vlgmr.msra.gmra.mrb[0].mxu0 %vm322_vm1, %v286_v9  ;;  %1038 = vmatmul.mubr.msk.f32.vlgmr.msra.gmra.mrb[0].mxu1 %vm322_vm1, %v302_v10  ;;  %v304_v14 = vld [vmem:[%s1189_s7 + $0x98] sm:$0xff]  ;;  %v305_v16 = vld [vmem:[%s1189_s7 + $0xa0] sm:$0xff]  ;;  %v306_v18 = vld [vmem:[%s1189_s7 + $0xa8] sm:$0xff] }
  0x15   : > { %1016 = vmatprep.mubr.msk.f32.mxu0 %vm322_vm1, %v287_v11  ;;  %1040 = vmatprep.mubr.msk.f32.mxu1 %vm322_vm1, %v303_v12  ;;  %v291_v19 = vld [vmem:[%s1189_s7 + $0x30] sm:$0xff]  ;;  %v292_v21 = vld [vmem:[%s1189_s7 + $0x38] sm:$0xff]  ;;  %v293_v23 = vld [vmem:[%s1189_s7 + $0x40] sm:$0xff] }
  0x16   : > { %v307_v20 = vld [vmem:[%s1189_s7 + $0xb0] sm:$0xff]  ;;  %v308_v22 = vld [vmem:[%s1189_s7 + $0xb8] sm:$0xff]  ;;  %v309_v24 = vld [vmem:[%s1189_s7 + $0xc0] sm:$0xff] }
  0x17   : > { %v294_v25 = vld [vmem:[%s1189_s7 + $0x48] sm:$0xff]  ;;  %v295_v27 = vld [vmem:[%s1189_s7 + $0x50] sm:$0xff]  ;;  %v296_v29 = vld [vmem:[%s1189_s7 + $0x58] sm:$0xff] }
  0x18   : > { %1017 = vmatmul.mubr.msk.f32.gmra.mrb[2].mxu0 %vm322_vm1, %v288_v13  ;;  %1041 = vmatmul.mubr.msk.f32.gmra.mrb[2].mxu1 %vm322_vm1, %v304_v14  ;;  %v310_v26 = vld [vmem:[%s1189_s7 + $0xc8] sm:$0xff]  ;;  %v311_v28 = vld [vmem:[%s1189_s7 + $0xd0] sm:$0xff]  ;;  %v312_v30 = vld [vmem:[%s1189_s7 + $0xd8] sm:$0xff] }
  0x19   : > { %1019 = vmatprep.mubr.msk.f32.mxu0 %vm322_vm1, %v289_v15  ;;  %1043 = vmatprep.mubr.msk.f32.mxu1 %vm322_vm1, %v305_v16  ;;  %v297_v31 = vld [vmem:[%s1189_s7 + $0x60] sm:$0xff]  ;;  %v298_v33 = vld [vmem:[%s1189_s7 + $0x68] sm:$0xff]  ;;  %v299_v35 = vld [vmem:[%s1189_s7 + $0x70] sm:$0xff] }
  0x1a   : > { %v313_v32 = vld [vmem:[%s1189_s7 + $0xe0] sm:$0xff]  ;;  %v314_v34 = vld [vmem:[%s1189_s7 + $0xe8] sm:$0xff]  ;;  %v315_v36 = vld [vmem:[%s1189_s7 + $0xf0] sm:$0xff] }
  0x1b   : > { %v300_v37 = vld [vmem:[%s1189_s7 + $0x78] sm:$0xff] }
  0x1c   : > { %1020 = vmatmul.mubr.msk.f32.gmra.mrb[4].mxu0 %vm322_vm1, %v290_v17  ;;  %1044 = vmatmul.mubr.msk.f32.gmra.mrb[4].mxu1 %vm322_vm1, %v306_v18  ;;  %v316_v38 = vld [vmem:[%s1189_s7 + $0xf8] sm:$0xff] }
  0x1d   : > { %1022 = vmatprep.mubr.msk.f32.mxu0 %vm322_vm1, %v291_v19  ;;  %1046 = vmatprep.mubr.msk.f32.mxu1 %vm322_vm1, %v307_v20 }
  0x20   : > { %1023 = vmatmul.mubr.msk.f32.gmra.mrb[6].mxu0 %vm322_vm1, %v292_v21  ;;  %1047 = vmatmul.mubr.msk.f32.gmra.mrb[6].mxu1 %vm322_vm1, %v308_v22 }
  0x21   : > { %1025 = vmatprep.mubr.msk.f32.mxu0 %vm322_vm1, %v293_v23  ;;  %1049 = vmatprep.mubr.msk.f32.mxu1 %vm322_vm1, %v309_v24 }
  0x24   : > { %1026 = vmatmul.mubr.msk.f32.gmra.mrb[8].mxu0 %vm322_vm1, %v294_v25  ;;  %1050 = vmatmul.mubr.msk.f32.gmra.mrb[8].mxu1 %vm322_vm1, %v310_v26 }
  0x25   : > { %1028 = vmatprep.mubr.msk.f32.mxu0 %vm322_vm1, %v295_v27  ;;  %1052 = vmatprep.mubr.msk.f32.mxu1 %vm322_vm1, %v311_v28 }
  0x28   : > { %1029 = vmatmul.mubr.msk.f32.gmra.mrb[10].mxu0 %vm322_vm1, %v296_v29  ;;  %1053 = vmatmul.mubr.msk.f32.gmra.mrb[10].mxu1 %vm322_vm1, %v312_v30 }
  0x29   : > { %1031 = vmatprep.mubr.msk.f32.mxu0 %vm322_vm1, %v297_v31  ;;  %1055 = vmatprep.mubr.msk.f32.mxu1 %vm322_vm1, %v313_v32 }
  0x2c   : > { %1032 = vmatmul.mubr.msk.f32.gmra.mrb[12].mxu0 %vm322_vm1, %v298_v33  ;;  %1056 = vmatmul.mubr.msk.f32.gmra.mrb[12].mxu1 %vm322_vm1, %v314_v34 }
  0x2d   : > { %1034 = vmatprep.mubr.msk.f32.mxu0 %vm322_vm1, %v299_v35  ;;  %1058 = vmatprep.mubr.msk.f32.mxu1 %vm322_vm1, %v315_v36 }
  0x30   : > { %1035 = vmatmul.mubr.msk.f32.gmra.mrb[14].mxu0 %vm322_vm1, %v300_v37  ;;  %1059 = vmatmul.mubr.msk.f32.gmra.mrb[14].mxu1 %vm322_vm1, %v316_v38 }
  0xe7   : > { %v1015_v40 = vpop.f32.mrb[0].mxu0  ;;  %v1039_v42 = vpop.f32.mrb[0].mxu1 }
  0xe8   : > { %v656_v43 = vmul.f32 %v1015_v40, %v1262_v39  ;;  %v672_v44 = vmul.f32 %v1039_v42, %v1262_v39  ;;  %v489_v45 = vpop.f32.mrb[1].mxu0  ;;  %v569_v46 = vpop.f32.mrb[1].mxu1 }
  0xe9   : > { %v655_v47 = vmul.f32 %v1262_v39, %v489_v45  ;;  %v671_v48 = vmul.f32 %v1262_v39, %v569_v46 }
  0xea   : > { %v695_v49 = vadd.f32 %v1267_v41, %v656_v43  ;;  %v711_v50 = vadd.f32 %v1267_v41, %v672_v44 }
  0xeb   : > { %v694_v51 = vadd.f32 %v1267_v41, %v655_v47  ;;  %v710_v52 = vadd.f32 %v1267_v41, %v671_v48  ;;  %v1018_v53 = vpop.f32.mrb[2].mxu0  ;;  %v1042_v54 = vpop.f32.mrb[2].mxu1 }
  0xec   : > { %v727_v55 = vmax.f32 %v695_v49, 0.0  ;;  %v743_v56 = vmax.f32 %v711_v50, 0.0  ;;  %v658_v57 = vmul.f32 %v1018_v53, %v1262_v39  ;;  %v674_v58 = vmul.f32 %v1042_v54, %v1262_v39  ;;  %v499_v59 = vpop.f32.mrb[3].mxu0  ;;  %v579_v60 = vpop.f32.mrb[3].mxu1 }
  0xed   : > { %v726_v61 = vmax.f32 %v694_v51, 0.0  ;;  %v742_v62 = vmax.f32 %v710_v52, 0.0  ;;  %v657_v63 = vmul.f32 %v1262_v39, %v499_v59  ;;  %v673_v0 = vmul.f32 %v1262_v39, %v579_v60 }
  0xee   : > { %760 = vst.msk [vmem:[%s1280_s14 + $0x8] sm:$0xff] %vm758_vm2, %v727_v55  ;;  %776 = vst.msk [vmem:[%s1280_s14 + $0x88] sm:$0xff] %vm758_vm2, %v743_v56  ;;  %v697_v1 = vadd.f32 %v1267_v41, %v658_v57  ;;  %v713_v2 = vadd.f32 %v1267_v41, %v674_v58 }
  0xef   : > { %759 = vst.msk [vmem:[%s1280_s14] sm:$0xff] %vm758_vm2, %v726_v61  ;;  %775 = vst.msk [vmem:[%s1280_s14 + $0x80] sm:$0xff] %vm758_vm2, %v742_v62  ;;  %v696_v3 = vadd.f32 %v1267_v41, %v657_v63  ;;  %v712_v4 = vadd.f32 %v1267_v41, %v673_v0  ;;  %v1021_v5 = vpop.f32.mrb[4].mxu0  ;;  %v1045_v6 = vpop.f32.mrb[4].mxu1 }
  0xf0   : > { %v729_v7 = vmax.f32 %v697_v1, 0.0  ;;  %v745_v8 = vmax.f32 %v713_v2, 0.0  ;;  %v660_v9 = vmul.f32 %v1021_v5, %v1262_v39  ;;  %v676_v10 = vmul.f32 %v1045_v6, %v1262_v39  ;;  %v509_v11 = vpop.f32.mrb[5].mxu0  ;;  %v589_v12 = vpop.f32.mrb[5].mxu1 }
  0xf1   : > { %v728_v13 = vmax.f32 %v696_v3, 0.0  ;;  %v744_v14 = vmax.f32 %v712_v4, 0.0  ;;  %v659_v15 = vmul.f32 %v1262_v39, %v509_v11  ;;  %v675_v16 = vmul.f32 %v1262_v39, %v589_v12 }
  0xf2   : > { %762 = vst.msk [vmem:[%s1280_s14 + $0x18] sm:$0xff] %vm758_vm2, %v729_v7  ;;  %778 = vst.msk [vmem:[%s1280_s14 + $0x98] sm:$0xff] %vm758_vm2, %v745_v8  ;;  %v699_v17 = vadd.f32 %v1267_v41, %v660_v9  ;;  %v715_v18 = vadd.f32 %v1267_v41, %v676_v10 }
  0xf3   : > { %761 = vst.msk [vmem:[%s1280_s14 + $0x10] sm:$0xff] %vm758_vm2, %v728_v13  ;;  %777 = vst.msk [vmem:[%s1280_s14 + $0x90] sm:$0xff] %vm758_vm2, %v744_v14  ;;  %v698_v19 = vadd.f32 %v1267_v41, %v659_v15  ;;  %v714_v20 = vadd.f32 %v1267_v41, %v675_v16  ;;  %v1024_v21 = vpop.f32.mrb[6].mxu0  ;;  %v1048_v22 = vpop.f32.mrb[6].mxu1 }
  0xf4   : > { %v731_v23 = vmax.f32 %v699_v17, 0.0  ;;  %v747_v24 = vmax.f32 %v715_v18, 0.0  ;;  %v662_v25 = vmul.f32 %v1024_v21, %v1262_v39  ;;  %v678_v26 = vmul.f32 %v1048_v22, %v1262_v39  ;;  %v519_v27 = vpop.f32.mrb[7].mxu0  ;;  %v599_v28 = vpop.f32.mrb[7].mxu1 }
  0xf5   : > { %v730_v29 = vmax.f32 %v698_v19, 0.0  ;;  %v746_v30 = vmax.f32 %v714_v20, 0.0  ;;  %v661_v31 = vmul.f32 %v1262_v39, %v519_v27  ;;  %v677_v32 = vmul.f32 %v1262_v39, %v599_v28 }
  0xf6   : > { %764 = vst.msk [vmem:[%s1280_s14 + $0x28] sm:$0xff] %vm758_vm2, %v731_v23  ;;  %780 = vst.msk [vmem:[%s1280_s14 + $0xa8] sm:$0xff] %vm758_vm2, %v747_v24  ;;  %v701_v33 = vadd.f32 %v1267_v41, %v662_v25  ;;  %v717_v34 = vadd.f32 %v1267_v41, %v678_v26 }
  0xf7   : > { %763 = vst.msk [vmem:[%s1280_s14 + $0x20] sm:$0xff] %vm758_vm2, %v730_v29  ;;  %779 = vst.msk [vmem:[%s1280_s14 + $0xa0] sm:$0xff] %vm758_vm2, %v746_v30  ;;  %v700_v35 = vadd.f32 %v1267_v41, %v661_v31  ;;  %v716_v36 = vadd.f32 %v1267_v41, %v677_v32  ;;  %v1027_v37 = vpop.f32.mrb[8].mxu0  ;;  %v1051_v38 = vpop.f32.mrb[8].mxu1 }
  0xf8   : > { %v733_v40 = vmax.f32 %v701_v33, 0.0  ;;  %v749_v42 = vmax.f32 %v717_v34, 0.0  ;;  %v664_v43 = vmul.f32 %v1027_v37, %v1262_v39  ;;  %v680_v44 = vmul.f32 %v1051_v38, %v1262_v39  ;;  %v529_v45 = vpop.f32.mrb[9].mxu0  ;;  %v609_v46 = vpop.f32.mrb[9].mxu1 }
  0xf9   : > { %v732_v47 = vmax.f32 %v700_v35, 0.0  ;;  %v748_v48 = vmax.f32 %v716_v36, 0.0  ;;  %v663_v49 = vmul.f32 %v1262_v39, %v529_v45  ;;  %v679_v50 = vmul.f32 %v1262_v39, %v609_v46 }
  0xfa   : > { %766 = vst.msk [vmem:[%s1280_s14 + $0x38] sm:$0xff] %vm758_vm2, %v733_v40  ;;  %782 = vst.msk [vmem:[%s1280_s14 + $0xb8] sm:$0xff] %vm758_vm2, %v749_v42  ;;  %v703_v51 = vadd.f32 %v1267_v41, %v664_v43  ;;  %v719_v52 = vadd.f32 %v1267_v41, %v680_v44 }
  0xfb   : > { %765 = vst.msk [vmem:[%s1280_s14 + $0x30] sm:$0xff] %vm758_vm2, %v732_v47  ;;  %781 = vst.msk [vmem:[%s1280_s14 + $0xb0] sm:$0xff] %vm758_vm2, %v748_v48  ;;  %v702_v53 = vadd.f32 %v1267_v41, %v663_v49  ;;  %v718_v54 = vadd.f32 %v1267_v41, %v679_v50  ;;  %v1030_v55 = vpop.f32.mrb[10].mxu0  ;;  %v1054_v56 = vpop.f32.mrb[10].mxu1 }
  0xfc   : > { %v735_v57 = vmax.f32 %v703_v51, 0.0  ;;  %v751_v58 = vmax.f32 %v719_v52, 0.0  ;;  %v666_v59 = vmul.f32 %v1030_v55, %v1262_v39  ;;  %v682_v60 = vmul.f32 %v1054_v56, %v1262_v39  ;;  %v539_v61 = vpop.f32.mrb[11].mxu0  ;;  %v619_v62 = vpop.f32.mrb[11].mxu1 }
  0xfd   : > { %v734_v63 = vmax.f32 %v702_v53, 0.0  ;;  %v750_v0 = vmax.f32 %v718_v54, 0.0  ;;  %v665_v1 = vmul.f32 %v1262_v39, %v539_v61  ;;  %v681_v2 = vmul.f32 %v1262_v39, %v619_v62 }
  0xfe   : > { %768 = vst.msk [vmem:[%s1280_s14 + $0x48] sm:$0xff] %vm758_vm2, %v735_v57  ;;  %784 = vst.msk [vmem:[%s1280_s14 + $0xc8] sm:$0xff] %vm758_vm2, %v751_v58  ;;  %v705_v3 = vadd.f32 %v1267_v41, %v666_v59  ;;  %v721_v4 = vadd.f32 %v1267_v41, %v682_v60 }
  0xff   : > { %767 = vst.msk [vmem:[%s1280_s14 + $0x40] sm:$0xff] %vm758_vm2, %v734_v63  ;;  %783 = vst.msk [vmem:[%s1280_s14 + $0xc0] sm:$0xff] %vm758_vm2, %v750_v0  ;;  %v704_v5 = vadd.f32 %v1267_v41, %v665_v1  ;;  %v720_v6 = vadd.f32 %v1267_v41, %v681_v2  ;;  %v1033_v7 = vpop.f32.mrb[12].mxu0  ;;  %v1057_v8 = vpop.f32.mrb[12].mxu1 }
 0x100   : > { %v737_v9 = vmax.f32 %v705_v3, 0.0  ;;  %v753_v10 = vmax.f32 %v721_v4, 0.0  ;;  %v668_v11 = vmul.f32 %v1033_v7, %v1262_v39  ;;  %v684_v12 = vmul.f32 %v1057_v8, %v1262_v39  ;;  %v549_v13 = vpop.f32.mrb[13].mxu0  ;;  %v629_v14 = vpop.f32.mrb[13].mxu1 }
 0x101   : > { %v736_v15 = vmax.f32 %v704_v5, 0.0  ;;  %v752_v16 = vmax.f32 %v720_v6, 0.0  ;;  %v667_v17 = vmul.f32 %v1262_v39, %v549_v13  ;;  %v683_v18 = vmul.f32 %v1262_v39, %v629_v14 }
 0x102   : > { %770 = vst.msk [vmem:[%s1280_s14 + $0x58] sm:$0xff] %vm758_vm2, %v737_v9  ;;  %786 = vst.msk [vmem:[%s1280_s14 + $0xd8] sm:$0xff] %vm758_vm2, %v753_v10  ;;  %v707_v19 = vadd.f32 %v1267_v41, %v668_v11  ;;  %v723_v20 = vadd.f32 %v1267_v41, %v684_v12 }
 0x103   : > { %769 = vst.msk [vmem:[%s1280_s14 + $0x50] sm:$0xff] %vm758_vm2, %v736_v15  ;;  %785 = vst.msk [vmem:[%s1280_s14 + $0xd0] sm:$0xff] %vm758_vm2, %v752_v16  ;;  %v706_v21 = vadd.f32 %v1267_v41, %v667_v17  ;;  %v722_v22 = vadd.f32 %v1267_v41, %v683_v18  ;;  %v1036_v23 = vpop.f32.mrb[14].mxu0  ;;  %v1060_v24 = vpop.f32.mrb[14].mxu1 }
 0x104   : > { %v739_v25 = vmax.f32 %v707_v19, 0.0  ;;  %v755_v26 = vmax.f32 %v723_v20, 0.0  ;;  %v670_v27 = vmul.f32 %v1036_v23, %v1262_v39  ;;  %v686_v28 = vmul.f32 %v1060_v24, %v1262_v39  ;;  %v559_v29 = vpop.f32.mrb[15].mxu0  ;;  %v639_v30 = vpop.f32.mrb[15].mxu1 }
 0x105   : > { %v738_v31 = vmax.f32 %v706_v21, 0.0  ;;  %v754_v32 = vmax.f32 %v722_v22, 0.0  ;;  %v669_v33 = vmul.f32 %v1262_v39, %v559_v29  ;;  %v685_v34 = vmul.f32 %v1262_v39, %v639_v30 }
 0x106   : > { %772 = vst.msk [vmem:[%s1280_s14 + $0x68] sm:$0xff] %vm758_vm2, %v739_v25  ;;  %788 = vst.msk [vmem:[%s1280_s14 + $0xe8] sm:$0xff] %vm758_vm2, %v755_v26  ;;  %v709_v35 = vadd.f32 %v1267_v41, %v670_v27  ;;  %v725_v36 = vadd.f32 %v1267_v41, %v686_v28 }
 0x107   : > { %771 = vst.msk [vmem:[%s1280_s14 + $0x60] sm:$0xff] %vm758_vm2, %v738_v31  ;;  %787 = vst.msk [vmem:[%s1280_s14 + $0xe0] sm:$0xff] %vm758_vm2, %v754_v32  ;;  %v708_v37 = vadd.f32 %v1267_v41, %v669_v33  ;;  %v724_v38 = vadd.f32 %v1267_v41, %v685_v34 }
 0x108   : > { %v741_v40 = vmax.f32 %v709_v35, 0.0  ;;  %v757_v42 = vmax.f32 %v725_v36, 0.0 }
 0x109   : > { %v740_v39 = vmax.f32 %v708_v37, 0.0  ;;  %v756_v43 = vmax.f32 %v724_v38, 0.0 }
 0x10a   : > { %774 = vst.msk [vmem:[%s1280_s14 + $0x78] sm:$0xff] %vm758_vm2, %v741_v40  ;;  %790 = vst.msk [vmem:[%s1280_s14 + $0xf8] sm:$0xff] %vm758_vm2, %v757_v42 }
 0x10b   : > { %773 = vst.msk [vmem:[%s1280_s14 + $0x70] sm:$0xff] %vm758_vm2, %v740_v39  ;;  %789 = vst.msk [vmem:[%s1280_s14 + $0xf0] sm:$0xff] %vm758_vm2, %v756_v43 }
 0x10c PF: > { %s14_s17 = sadd.s32 1, %s1121_s17   ;;  %s1418_s15 = smov %s1117_s16 }
 0x10d   : > { %p11_p5 = scmp.ge.s32.totalorder %s14_s17, 4   ;;  %s1419_s16 = smov %s1421_s18 }
 0x10f   :  { %13 = sbr.rel (!%p11_p5) target bundleno = 2 (0x2), region = 75 }

// kernel: rfb7a_hs_att_forward.16
= control target key start
LH: loop header
LB: loop body
LE: loop exit
PB: predicated region body
PF: predicated region fallthrough
CT: control target
= control target key end

     0   :  { %s1162_s15 = smov 0   ;;  %s1164_s16 = smov 0   ;;  %s1429_s0 = inlined_call_operand.vmem [shape: f32[1,512,54], index: 0, kind: input, shape index: {}]   ;;  %s1430_s1 = inlined_call_operand.vmem [shape: f32[1,54,8], index: 1, kind: input, shape index: {}]   ;;  %s1431_s2 = inlined_call_operand.vmem [shape: f32[1,1,8], index: 2, kind: input, shape index: {}]   ;;  %s1432_s3 = inlined_call_operand.vmem [shape: f32[1,1,8], index: 3, kind: input, shape index: {}]   ;;  %s1433_s4 = inlined_call_operand.vmem [shape: f32[1,512,8], index: 4, kind: output, shape index: {}]  }
   0x1   :  { %s1166_s17 = smov 0  }
   0x2 LB: > { %s23_s18 = sadd.s32 1, %s1131_s16  ;;  %p926_p0 = scmp.ge.s32.totalorder %s1135_s17, 1  ;;  %s1135_s17 = sphi %s1166_s17, %s14_s17   ;;  %s1131_s16 = sphi %s1164_s16, %s1435_s16   ;;  %s1127_s15 = sphi %s1162_s15, %s1434_s15  }
   0x3   : > { %p24_p1 = scmp.ge.s32.totalorder %s23_s18, 2  ;;  %p209_p2 = scmp.lt.s32.totalorder %s1135_s17, 3 }
   0x5   : > { %s1437_s18 = smov (%p24_p1, %s23_s18), 0  ;;  %p210_p3 = pnand %p926_p0, %p209_p2 }
   0x6   : > { %v317_v0 = vld [vmem:[%s1430_s1] sm:$0xff] (!%p210_p3)  ;;  %v318_v1 = vld [vmem:[%s1430_s1 + $0x8] sm:$0xff] (!%p210_p3)  ;;  %v319_v2 = vld [vmem:[%s1430_s1 + $0x10] sm:$0xff] (!%p210_p3)  ;;  %s927_s25 = sshll.u32 (!%p210_p3), %s1127_s15, 5  ;;  %vm324_vm0 = vcmask (!%p210_p3), 441344   ;;  %vm421_vm1 = vcmask (!%p210_p3), 1045504  }
   0x7   : > { %213 = sbr.rel (%p210_p3) target bundleno = 272 (0x110), region = 36  ;;  %v1069_v3 = vpack.c.bf16 (!%p210_p3), %v318_v1, %v317_v0  ;;  %v320_v4 = vld [vmem:[%s1430_s1 + $0x18] sm:$0xff] (!%p210_p3)  ;;  %p257_p4 = scmp.lt.s32.totalorder (!%p210_p3), %s927_s25, 63  ;;  %v321_v6 = vld [vmem:[%s1430_s1 + $0x20] sm:$0xff] (!%p210_p3)  ;;  %v322_v7 = vld [vmem:[%s1430_s1 + $0x28] sm:$0xff] (!%p210_p3)  ;;  %vm760_vm2 = vcmask (!%p210_p3), 64512  }
   0x8   : > { %v1073_v5 = vpack.c.bf16 (!%p210_p3), %v320_v4, %v319_v2  ;;  %v1077_v8 = vpack.c.bf16 (!%p210_p3), %v322_v7, %v321_v6  ;;  %v323_v11 = vld [vmem:[%s1430_s1 + $0x30] sm:$0x3f] (!%p210_p3)  ;;  %v1278_v42 = vld [vmem:[%s1431_s2] ss:$0 sm:$0xff] (!%p210_p3) }
   0x9   : > { %1070 = vmatprep.subr.bf16.mxu0 (!%p210_p3), %v1069_v3  ;;  %1081 = vmatprep.subr.bf16.mxu1 (!%p210_p3), %v1069_v3  ;;  %v1283_v44 = vld [vmem:[%s1432_s3] ss:$0 sm:$0xff] (!%p210_p3) }
   0xa   : > { %1072 = vmatpush3.bf16.msra.mxu0 (!%p210_p3), %v1069_v3  ;;  %1085 = vmatpush3.bf16.msra.mxu1 (!%p210_p3), %v1069_v3 }
   0xb   : > { %1074 = vmatprep.subr.bf16.mxu0 (!%p210_p3), %v1073_v5  ;;  %1082 = vmatprep.subr.bf16.mxu1 (!%p210_p3), %v1073_v5 }
   0xe   : > { %s1439_s25 = smov (!%p257_p4, %s927_s25), 63  ;;  %1076 = vmatpush3.bf16.msra.mxu0 %v1073_v5  ;;  %1086 = vmatpush3.bf16.msra.mxu1 %v1073_v5 }
   0xf   : > { %s928_s6 = sshll.u32 %s1439_s25, 3  ;;  %1078 = vmatprep.subr.bf16.mxu0 %v1077_v8  ;;  %1083 = vmatprep.subr.bf16.mxu1 %v1077_v8 }
  0x10   : > { %s1206_s9 = scalar_lea.vmem %s1429_s0, %s928_s6  ;;  %s1296_s21 = scalar_lea.vmem %s1433_s4, %s928_s6 }
  0x11   : > { %v285_v9 = vld [vmem:[%s1206_s9] sm:$0xff]  ;;  %v286_v12 = vld [vmem:[%s1206_s9 + $0x8] sm:$0xff]  ;;  %v287_v14 = vld [vmem:[%s1206_s9 + $0x10] sm:$0xff] }
  0x12   : > { %v301_v10 = vld [vmem:[%s1206_s9 + $0x80] sm:$0xff]  ;;  %1021 = vmatprep.mubr.msk.f32.mxu0 %vm324_vm0, %v285_v9  ;;  %1080 = vmatpush3.bf16.msra.mxu0 %v1077_v8  ;;  %v302_v13 = vld [vmem:[%s1206_s9 + $0x88] sm:$0xff]  ;;  %v303_v15 = vld [vmem:[%s1206_s9 + $0x90] sm:$0xff] }
  0x13   : > { %1045 = vmatprep.mubr.msk.f32.mxu1 %vm324_vm0, %v301_v10  ;;  %1087 = vmatpush3.bf16.msra.mxu1 %v1077_v8  ;;  %v288_v16 = vld [vmem:[%s1206_s9 + $0x18] sm:$0xff]  ;;  %v289_v18 = vld [vmem:[%s1206_s9 + $0x20] sm:$0xff]  ;;  %v290_v20 = vld [vmem:[%s1206_s9 + $0x28] sm:$0xff] }
  0x14   : > { %1019 = vmatprep.subr.msk.mxu0 %vm421_vm1, %v323_v11  ;;  %1084 = vmatprep.subr.msk.mxu1 %vm421_vm1, %v323_v11  ;;  %v304_v17 = vld [vmem:[%s1206_s9 + $0x98] sm:$0xff]  ;;  %v305_v19 = vld [vmem:[%s1206_s9 + $0xa0] sm:$0xff]  ;;  %v306_v21 = vld [vmem:[%s1206_s9 + $0xa8] sm:$0xff] }
  0x15   : > { %v291_v22 = vld [vmem:[%s1206_s9 + $0x30] sm:$0xff]  ;;  %v292_v24 = vld [vmem:[%s1206_s9 + $0x38] sm:$0xff]  ;;  %v293_v26 = vld [vmem:[%s1206_s9 + $0x40] sm:$0xff] }
  0x16   : > { %1020 = vmatpush3.msk.msra.mxu0 %vm421_vm1, %v323_v11  ;;  %v307_v23 = vld [vmem:[%s1206_s9 + $0xb0] sm:$0xff]  ;;  %v308_v25 = vld [vmem:[%s1206_s9 + $0xb8] sm:$0xff]  ;;  %v309_v27 = vld [vmem:[%s1206_s9 + $0xc0] sm:$0xff] }
  0x17   : > { %1088 = vmatpush3.msk.msra.mxu1 %vm421_vm1, %v323_v11  ;;  %1022 = vmatmul.mubr.msk.f32.vlgmr.msra.gmra.mrb[0].mxu0 %vm324_vm0, %v286_v12  ;;  %v294_v28 = vld [vmem:[%s1206_s9 + $0x48] sm:$0xff]  ;;  %v295_v30 = vld [vmem:[%s1206_s9 + $0x50] sm:$0xff]  ;;  %v296_v32 = vld [vmem:[%s1206_s9 + $0x58] sm:$0xff] }
  0x18   : > { %1046 = vmatmul.mubr.msk.f32.vlgmr.msra.gmra.mrb[0].mxu1 %vm324_vm0, %v302_v13  ;;  %1024 = vmatprep.mubr.msk.f32.mxu0 %vm324_vm0, %v287_v14  ;;  %v310_v29 = vld [vmem:[%s1206_s9 + $0xc8] sm:$0xff]  ;;  %v311_v31 = vld [vmem:[%s1206_s9 + $0xd0] sm:$0xff]  ;;  %v312_v33 = vld [vmem:[%s1206_s9 + $0xd8] sm:$0xff] }
  0x19   : > { %1048 = vmatprep.mubr.msk.f32.mxu1 %vm324_vm0, %v303_v15  ;;  %v297_v34 = vld [vmem:[%s1206_s9 + $0x60] sm:$0xff]  ;;  %v298_v36 = vld [vmem:[%s1206_s9 + $0x68] sm:$0xff]  ;;  %v299_v38 = vld [vmem:[%s1206_s9 + $0x70] sm:$0xff] }
  0x1a   : > { %v313_v35 = vld [vmem:[%s1206_s9 + $0xe0] sm:$0xff]  ;;  %v314_v37 = vld [vmem:[%s1206_s9 + $0xe8] sm:$0xff]  ;;  %v315_v39 = vld [vmem:[%s1206_s9 + $0xf0] sm:$0xff] }
  0x1b   : > { %1025 = vmatmul.mubr.msk.f32.gmra.mrb[2].mxu0 %vm324_vm0, %v288_v16  ;;  %v300_v40 = vld [vmem:[%s1206_s9 + $0x78] sm:$0xff] }
  0x1c   : > { %1049 = vmatmul.mubr.msk.f32.gmra.mrb[2].mxu1 %vm324_vm0, %v304_v17  ;;  %1027 = vmatprep.mubr.msk.f32.mxu0 %vm324_vm0, %v289_v18  ;;  %v316_v41 = vld [vmem:[%s1206_s9 + $0xf8] sm:$0xff] }
  0x1d   : > { %1051 = vmatprep.mubr.msk.f32.mxu1 %vm324_vm0, %v305_v19 }
  0x1f   : > { %1028 = vmatmul.mubr.msk.f32.gmra.mrb[4].mxu0 %vm324_vm0, %v290_v20 }
  0x20   : > { %1052 = vmatmul.mubr.msk.f32.gmra.mrb[4].mxu1 %vm324_vm0, %v306_v21  ;;  %1030 = vmatprep.mubr.msk.f32.mxu0 %vm324_vm0, %v291_v22 }
  0x21   : > { %1054 = vmatprep.mubr.msk.f32.mxu1 %vm324_vm0, %v307_v23 }
  0x23   : > { %1031 = vmatmul.mubr.msk.f32.gmra.mrb[6].mxu0 %vm324_vm0, %v292_v24 }
  0x24   : > { %1055 = vmatmul.mubr.msk.f32.gmra.mrb[6].mxu1 %vm324_vm0, %v308_v25  ;;  %1033 = vmatprep.mubr.msk.f32.mxu0 %vm324_vm0, %v293_v26 }
  0x25   : > { %1057 = vmatprep.mubr.msk.f32.mxu1 %vm324_vm0, %v309_v27 }
  0x27   : > { %1034 = vmatmul.mubr.msk.f32.gmra.mrb[8].mxu0 %vm324_vm0, %v294_v28 }
  0x28   : > { %1058 = vmatmul.mubr.msk.f32.gmra.mrb[8].mxu1 %vm324_vm0, %v310_v29  ;;  %1036 = vmatprep.mubr.msk.f32.mxu0 %vm324_vm0, %v295_v30 }
  0x29   : > { %1060 = vmatprep.mubr.msk.f32.mxu1 %vm324_vm0, %v311_v31 }
  0x2b   : > { %1037 = vmatmul.mubr.msk.f32.gmra.mrb[10].mxu0 %vm324_vm0, %v296_v32 }
  0x2c   : > { %1061 = vmatmul.mubr.msk.f32.gmra.mrb[10].mxu1 %vm324_vm0, %v312_v33  ;;  %1039 = vmatprep.mubr.msk.f32.mxu0 %vm324_vm0, %v297_v34 }
  0x2d   : > { %1063 = vmatprep.mubr.msk.f32.mxu1 %vm324_vm0, %v313_v35 }
  0x2f   : > { %1040 = vmatmul.mubr.msk.f32.gmra.mrb[12].mxu0 %vm324_vm0, %v298_v36 }
  0x30   : > { %1064 = vmatmul.mubr.msk.f32.gmra.mrb[12].mxu1 %vm324_vm0, %v314_v37  ;;  %1042 = vmatprep.mubr.msk.f32.mxu0 %vm324_vm0, %v299_v38 }
  0x31   : > { %1066 = vmatprep.mubr.msk.f32.mxu1 %vm324_vm0, %v315_v39 }
  0x33   : > { %1043 = vmatmul.mubr.msk.f32.gmra.mrb[14].mxu0 %vm324_vm0, %v300_v40 }
  0x34   : > { %1067 = vmatmul.mubr.msk.f32.gmra.mrb[14].mxu1 %vm324_vm0, %v316_v41 }
  0xea   : > { %v1023_v43 = vpop.f32.mrb[0].mxu0 }
  0xeb   : > { %v1047_v45 = vpop.f32.mrb[0].mxu1  ;;  %v658_v46 = vmul.f32 %v1023_v43, %v1278_v42  ;;  %v491_v48 = vpop.f32.mrb[1].mxu0 }
  0xec   : > { %v674_v47 = vmul.f32 %v1047_v45, %v1278_v42  ;;  %v571_v49 = vpop.f32.mrb[1].mxu1  ;;  %v657_v50 = vmul.f32 %v1278_v42, %v491_v48 }
  0xed   : > { %v673_v51 = vmul.f32 %v1278_v42, %v571_v49  ;;  %v697_v52 = vadd.f32 %v1283_v44, %v658_v46 }
  0xee   : > { %v713_v53 = vadd.f32 %v1283_v44, %v674_v47  ;;  %v696_v54 = vadd.f32 %v1283_v44, %v657_v50  ;;  %v1026_v56 = vpop.f32.mrb[2].mxu0 }
  0xef   : > { %v712_v55 = vadd.f32 %v1283_v44, %v673_v51  ;;  %v1050_v57 = vpop.f32.mrb[2].mxu1  ;;  %v729_v58 = vmax.f32 %v697_v52, 0.0  ;;  %v660_v60 = vmul.f32 %v1026_v56, %v1278_v42  ;;  %v501_v62 = vpop.f32.mrb[3].mxu0 }
  0xf0   : > { %v745_v59 = vmax.f32 %v713_v53, 0.0  ;;  %v676_v61 = vmul.f32 %v1050_v57, %v1278_v42  ;;  %v581_v63 = vpop.f32.mrb[3].mxu1  ;;  %v728_v0 = vmax.f32 %v696_v54, 0.0  ;;  %v659_v2 = vmul.f32 %v1278_v42, %v501_v62 }
  0xf1   : > { %v744_v1 = vmax.f32 %v712_v55, 0.0  ;;  %v675_v3 = vmul.f32 %v1278_v42, %v581_v63  ;;  %762 = vst.msk [vmem:[%s1296_s21 + $0x8] sm:$0xff] %vm760_vm2, %v729_v58  ;;  %v699_v4 = vadd.f32 %v1283_v44, %v660_v60 }
  0xf2   : > { %778 = vst.msk [vmem:[%s1296_s21 + $0x88] sm:$0xff] %vm760_vm2, %v745_v59  ;;  %v715_v5 = vadd.f32 %v1283_v44, %v676_v61  ;;  %761 = vst.msk [vmem:[%s1296_s21] sm:$0xff] %vm760_vm2, %v728_v0  ;;  %v698_v6 = vadd.f32 %v1283_v44, %v659_v2  ;;  %v1029_v8 = vpop.f32.mrb[4].mxu0 }
  0xf3   : > { %777 = vst.msk [vmem:[%s1296_s21 + $0x80] sm:$0xff] %vm760_vm2, %v744_v1  ;;  %v714_v7 = vadd.f32 %v1283_v44, %v675_v3  ;;  %v1053_v9 = vpop.f32.mrb[4].mxu1  ;;  %v731_v10 = vmax.f32 %v699_v4, 0.0  ;;  %v662_v12 = vmul.f32 %v1029_v8, %v1278_v42  ;;  %v511_v14 = vpop.f32.mrb[5].mxu0 }
  0xf4   : > { %v747_v11 = vmax.f32 %v715_v5, 0.0  ;;  %v678_v13 = vmul.f32 %v1053_v9, %v1278_v42  ;;  %v591_v15 = vpop.f32.mrb[5].mxu1  ;;  %v730_v16 = vmax.f32 %v698_v6, 0.0  ;;  %v661_v18 = vmul.f32 %v1278_v42, %v511_v14 }
  0xf5   : > { %v746_v17 = vmax.f32 %v714_v7, 0.0  ;;  %v677_v19 = vmul.f32 %v1278_v42, %v591_v15  ;;  %764 = vst.msk [vmem:[%s1296_s21 + $0x18] sm:$0xff] %vm760_vm2, %v731_v10  ;;  %v701_v20 = vadd.f32 %v1283_v44, %v662_v12 }
  0xf6   : > { %780 = vst.msk [vmem:[%s1296_s21 + $0x98] sm:$0xff] %vm760_vm2, %v747_v11  ;;  %v717_v21 = vadd.f32 %v1283_v44, %v678_v13  ;;  %763 = vst.msk [vmem:[%s1296_s21 + $0x10] sm:$0xff] %vm760_vm2, %v730_v16  ;;  %v700_v22 = vadd.f32 %v1283_v44, %v661_v18  ;;  %v1032_v24 = vpop.f32.mrb[6].mxu0 }
  0xf7   : > { %779 = vst.msk [vmem:[%s1296_s21 + $0x90] sm:$0xff] %vm760_vm2, %v746_v17  ;;  %v716_v23 = vadd.f32 %v1283_v44, %v677_v19  ;;  %v1056_v25 = vpop.f32.mrb[6].mxu1  ;;  %v733_v26 = vmax.f32 %v701_v20, 0.0  ;;  %v664_v28 = vmul.f32 %v1032_v24, %v1278_v42  ;;  %v521_v30 = vpop.f32.mrb[7].mxu0 }
  0xf8   : > { %v749_v27 = vmax.f32 %v717_v21, 0.0  ;;  %v680_v29 = vmul.f32 %v1056_v25, %v1278_v42  ;;  %v601_v31 = vpop.f32.mrb[7].mxu1  ;;  %v732_v32 = vmax.f32 %v700_v22, 0.0  ;;  %v663_v34 = vmul.f32 %v1278_v42, %v521_v30 }
  0xf9   : > { %v748_v33 = vmax.f32 %v716_v23, 0.0  ;;  %v679_v35 = vmul.f32 %v1278_v42, %v601_v31  ;;  %766 = vst.msk [vmem:[%s1296_s21 + $0x28] sm:$0xff] %vm760_vm2, %v733_v26  ;;  %v703_v36 = vadd.f32 %v1283_v44, %v664_v28 }
  0xfa   : > { %782 = vst.msk [vmem:[%s1296_s21 + $0xa8] sm:$0xff] %vm760_vm2, %v749_v27  ;;  %v719_v37 = vadd.f32 %v1283_v44, %v680_v29  ;;  %765 = vst.msk [vmem:[%s1296_s21 + $0x20] sm:$0xff] %vm760_vm2, %v732_v32  ;;  %v702_v38 = vadd.f32 %v1283_v44, %v663_v34  ;;  %v1035_v40 = vpop.f32.mrb[8].mxu0 }
  0xfb   : > { %781 = vst.msk [vmem:[%s1296_s21 + $0xa0] sm:$0xff] %vm760_vm2, %v748_v33  ;;  %v718_v39 = vadd.f32 %v1283_v44, %v679_v35  ;;  %v1059_v41 = vpop.f32.mrb[8].mxu1  ;;  %v735_v43 = vmax.f32 %v703_v36, 0.0  ;;  %v666_v46 = vmul.f32 %v1035_v40, %v1278_v42  ;;  %v531_v48 = vpop.f32.mrb[9].mxu0 }
  0xfc   : > { %v751_v45 = vmax.f32 %v719_v37, 0.0  ;;  %v682_v47 = vmul.f32 %v1059_v41, %v1278_v42  ;;  %v611_v49 = vpop.f32.mrb[9].mxu1  ;;  %v734_v50 = vmax.f32 %v702_v38, 0.0  ;;  %v665_v52 = vmul.f32 %v1278_v42, %v531_v48 }
  0xfd   : > { %v750_v51 = vmax.f32 %v718_v39, 0.0  ;;  %v681_v53 = vmul.f32 %v1278_v42, %v611_v49  ;;  %768 = vst.msk [vmem:[%s1296_s21 + $0x38] sm:$0xff] %vm760_vm2, %v735_v43  ;;  %v705_v54 = vadd.f32 %v1283_v44, %v666_v46 }
  0xfe   : > { %784 = vst.msk [vmem:[%s1296_s21 + $0xb8] sm:$0xff] %vm760_vm2, %v751_v45  ;;  %v721_v55 = vadd.f32 %v1283_v44, %v682_v47  ;;  %767 = vst.msk [vmem:[%s1296_s21 + $0x30] sm:$0xff] %vm760_vm2, %v734_v50  ;;  %v704_v56 = vadd.f32 %v1283_v44, %v665_v52  ;;  %v1038_v58 = vpop.f32.mrb[10].mxu0 }
  0xff   : > { %783 = vst.msk [vmem:[%s1296_s21 + $0xb0] sm:$0xff] %vm760_vm2, %v750_v51  ;;  %v720_v57 = vadd.f32 %v1283_v44, %v681_v53  ;;  %v1062_v59 = vpop.f32.mrb[10].mxu1  ;;  %v737_v60 = vmax.f32 %v705_v54, 0.0  ;;  %v668_v62 = vmul.f32 %v1038_v58, %v1278_v42  ;;  %v541_v0 = vpop.f32.mrb[11].mxu0 }
 0x100   : > { %v753_v61 = vmax.f32 %v721_v55, 0.0  ;;  %v684_v63 = vmul.f32 %v1062_v59, %v1278_v42  ;;  %v621_v1 = vpop.f32.mrb[11].mxu1  ;;  %v736_v2 = vmax.f32 %v704_v56, 0.0  ;;  %v667_v4 = vmul.f32 %v1278_v42, %v541_v0 }
 0x101   : > { %v752_v3 = vmax.f32 %v720_v57, 0.0  ;;  %v683_v5 = vmul.f32 %v1278_v42, %v621_v1  ;;  %770 = vst.msk [vmem:[%s1296_s21 + $0x48] sm:$0xff] %vm760_vm2, %v737_v60  ;;  %v707_v6 = vadd.f32 %v1283_v44, %v668_v62 }
 0x102   : > { %786 = vst.msk [vmem:[%s1296_s21 + $0xc8] sm:$0xff] %vm760_vm2, %v753_v61  ;;  %v723_v7 = vadd.f32 %v1283_v44, %v684_v63  ;;  %769 = vst.msk [vmem:[%s1296_s21 + $0x40] sm:$0xff] %vm760_vm2, %v736_v2  ;;  %v706_v8 = vadd.f32 %v1283_v44, %v667_v4  ;;  %v1041_v10 = vpop.f32.mrb[12].mxu0 }
 0x103   : > { %785 = vst.msk [vmem:[%s1296_s21 + $0xc0] sm:$0xff] %vm760_vm2, %v752_v3  ;;  %v722_v9 = vadd.f32 %v1283_v44, %v683_v5  ;;  %v1065_v11 = vpop.f32.mrb[12].mxu1  ;;  %v739_v12 = vmax.f32 %v707_v6, 0.0  ;;  %v670_v14 = vmul.f32 %v1041_v10, %v1278_v42  ;;  %v551_v16 = vpop.f32.mrb[13].mxu0 }
 0x104   : > { %v755_v13 = vmax.f32 %v723_v7, 0.0  ;;  %v686_v15 = vmul.f32 %v1065_v11, %v1278_v42  ;;  %v631_v17 = vpop.f32.mrb[13].mxu1  ;;  %v738_v18 = vmax.f32 %v706_v8, 0.0  ;;  %v669_v20 = vmul.f32 %v1278_v42, %v551_v16 }
 0x105   : > { %v754_v19 = vmax.f32 %v722_v9, 0.0  ;;  %v685_v21 = vmul.f32 %v1278_v42, %v631_v17  ;;  %772 = vst.msk [vmem:[%s1296_s21 + $0x58] sm:$0xff] %vm760_vm2, %v739_v12  ;;  %v709_v22 = vadd.f32 %v1283_v44, %v670_v14 }
 0x106   : > { %788 = vst.msk [vmem:[%s1296_s21 + $0xd8] sm:$0xff] %vm760_vm2, %v755_v13  ;;  %v725_v23 = vadd.f32 %v1283_v44, %v686_v15  ;;  %771 = vst.msk [vmem:[%s1296_s21 + $0x50] sm:$0xff] %vm760_vm2, %v738_v18  ;;  %v708_v24 = vadd.f32 %v1283_v44, %v669_v20  ;;  %v1044_v26 = vpop.f32.mrb[14].mxu0 }
 0x107   : > { %787 = vst.msk [vmem:[%s1296_s21 + $0xd0] sm:$0xff] %vm760_vm2, %v754_v19  ;;  %v724_v25 = vadd.f32 %v1283_v44, %v685_v21  ;;  %v1068_v27 = vpop.f32.mrb[14].mxu1  ;;  %v741_v28 = vmax.f32 %v709_v22, 0.0  ;;  %v672_v30 = vmul.f32 %v1044_v26, %v1278_v42  ;;  %v561_v32 = vpop.f32.mrb[15].mxu0 }
 0x108   : > { %v757_v29 = vmax.f32 %v725_v23, 0.0  ;;  %v688_v31 = vmul.f32 %v1068_v27, %v1278_v42  ;;  %v641_v33 = vpop.f32.mrb[15].mxu1  ;;  %v740_v34 = vmax.f32 %v708_v24, 0.0  ;;  %v671_v36 = vmul.f32 %v1278_v42, %v561_v32 }
 0x109   : > { %v756_v35 = vmax.f32 %v724_v25, 0.0  ;;  %v687_v37 = vmul.f32 %v1278_v42, %v641_v33  ;;  %774 = vst.msk [vmem:[%s1296_s21 + $0x68] sm:$0xff] %vm760_vm2, %v741_v28  ;;  %v711_v38 = vadd.f32 %v1283_v44, %v672_v30 }
 0x10a   : > { %790 = vst.msk [vmem:[%s1296_s21 + $0xe8] sm:$0xff] %vm760_vm2, %v757_v29  ;;  %v727_v39 = vadd.f32 %v1283_v44, %v688_v31  ;;  %773 = vst.msk [vmem:[%s1296_s21 + $0x60] sm:$0xff] %vm760_vm2, %v740_v34  ;;  %v710_v40 = vadd.f32 %v1283_v44, %v671_v36 }
 0x10b   : > { %789 = vst.msk [vmem:[%s1296_s21 + $0xe0] sm:$0xff] %vm760_vm2, %v756_v35  ;;  %v726_v41 = vadd.f32 %v1283_v44, %v687_v37  ;;  %v743_v43 = vmax.f32 %v711_v38, 0.0 }
 0x10c   : > { %v759_v45 = vmax.f32 %v727_v39, 0.0  ;;  %v742_v42 = vmax.f32 %v710_v40, 0.0 }
 0x10d   : > { %v758_v46 = vmax.f32 %v726_v41, 0.0  ;;  %776 = vst.msk [vmem:[%s1296_s21 + $0x78] sm:$0xff] %vm760_vm2, %v743_v43 }
 0x10e   : > { %792 = vst.msk [vmem:[%s1296_s21 + $0xf8] sm:$0xff] %vm760_vm2, %v759_v45  ;;  %775 = vst.msk [vmem:[%s1296_s21 + $0x70] sm:$0xff] %vm760_vm2, %v742_v42 }
 0x10f   : > { %791 = vst.msk [vmem:[%s1296_s21 + $0xf0] sm:$0xff] %vm760_vm2, %v758_v46 }
 0x110 PF: > { %s14_s17 = sadd.s32 1, %s1135_s17   ;;  %s1434_s15 = smov %s1131_s16 }
 0x111   : > { %p11_p5 = scmp.ge.s32.totalorder %s14_s17, 4   ;;  %s1435_s16 = smov %s1437_s18 }
 0x113   :  { %13 = sbr.rel (!%p11_p5) target bundleno = 2 (0x2), region = 75 }

// kernel: rfb7a_hs_att_forward.18
= control target key start
LH: loop header
LB: loop body
LE: loop exit
PB: predicated region body
PF: predicated region fallthrough
CT: control target
= control target key end

     0   :  { %s1162_s15 = smov 0   ;;  %s1164_s16 = smov 0   ;;  %s1429_s0 = inlined_call_operand.vmem [shape: f32[1,512,54], index: 0, kind: input, shape index: {}]   ;;  %s1430_s1 = inlined_call_operand.vmem [shape: f32[1,54,6], index: 1, kind: input, shape index: {}]   ;;  %s1431_s2 = inlined_call_operand.vmem [shape: f32[1,1,6], index: 2, kind: input, shape index: {}]   ;;  %s1432_s3 = inlined_call_operand.vmem [shape: f32[1,1,6], index: 3, kind: input, shape index: {}]   ;;  %s1433_s4 = inlined_call_operand.vmem [shape: f32[1,512,6], index: 4, kind: output, shape index: {}]  }
   0x1   :  { %s1166_s17 = smov 0  }
   0x2 LB: > { %s23_s18 = sadd.s32 1, %s1131_s16  ;;  %p926_p0 = scmp.ge.s32.totalorder %s1135_s17, 1  ;;  %s1135_s17 = sphi %s1166_s17, %s14_s17   ;;  %s1131_s16 = sphi %s1164_s16, %s1435_s16   ;;  %s1127_s15 = sphi %s1162_s15, %s1434_s15  }
   0x3   : > { %p24_p1 = scmp.ge.s32.totalorder %s23_s18, 2  ;;  %p209_p2 = scmp.lt.s32.totalorder %s1135_s17, 3 }
   0x5   : > { %s1437_s18 = smov (%p24_p1, %s23_s18), 0  ;;  %p210_p3 = pnand %p926_p0, %p209_p2 }
   0x6   : > { %v317_v0 = vld [vmem:[%s1430_s1] sm:$0xff] (!%p210_p3)  ;;  %v318_v1 = vld [vmem:[%s1430_s1 + $0x8] sm:$0xff] (!%p210_p3)  ;;  %v319_v2 = vld [vmem:[%s1430_s1 + $0x10] sm:$0xff] (!%p210_p3)  ;;  %s927_s25 = sshll.u32 (!%p210_p3), %s1127_s15, 5  ;;  %vm324_vm0 = vcmask (!%p210_p3), 441344   ;;  %vm421_vm1 = vcmask (!%p210_p3), 1045504  }
   0x7   : > { %213 = sbr.rel (%p210_p3) target bundleno = 272 (0x110), region = 36  ;;  %v1069_v3 = vpack.c.bf16 (!%p210_p3), %v318_v1, %v317_v0  ;;  %v320_v4 = vld [vmem:[%s1430_s1 + $0x18] sm:$0xff] (!%p210_p3)  ;;  %p257_p4 = scmp.lt.s32.totalorder (!%p210_p3), %s927_s25, 63  ;;  %v321_v6 = vld [vmem:[%s1430_s1 + $0x20] sm:$0xff] (!%p210_p3)  ;;  %v322_v7 = vld [vmem:[%s1430_s1 + $0x28] sm:$0xff] (!%p210_p3)  ;;  %vm760_vm2 = vcmask (!%p210_p3), 48128  }
   0x8   : > { %v1073_v5 = vpack.c.bf16 (!%p210_p3), %v320_v4, %v319_v2  ;;  %v1077_v8 = vpack.c.bf16 (!%p210_p3), %v322_v7, %v321_v6  ;;  %v323_v11 = vld [vmem:[%s1430_s1 + $0x30] sm:$0x3f] (!%p210_p3)  ;;  %v1278_v42 = vld [vmem:[%s1431_s2] ss:$0 sm:$0xff] (!%p210_p3) }
   0x9   : > { %1070 = vmatprep.subr.bf16.mxu0 (!%p210_p3), %v1069_v3  ;;  %1081 = vmatprep.subr.bf16.mxu1 (!%p210_p3), %v1069_v3  ;;  %v1283_v44 = vld [vmem:[%s1432_s3] ss:$0 sm:$0xff] (!%p210_p3) }
   0xa   : > { %1072 = vmatpush3.bf16.msra.mxu0 (!%p210_p3), %v1069_v3  ;;  %1085 = vmatpush3.bf16.msra.mxu1 (!%p210_p3), %v1069_v3 }
   0xb   : > { %1074 = vmatprep.subr.bf16.mxu0 (!%p210_p3), %v1073_v5  ;;  %1082 = vmatprep.subr.bf16.mxu1 (!%p210_p3), %v1073_v5 }
   0xe   : > { %s1439_s25 = smov (!%p257_p4, %s927_s25), 63  ;;  %1076 = vmatpush3.bf16.msra.mxu0 %v1073_v5  ;;  %1086 = vmatpush3.bf16.msra.mxu1 %v1073_v5 }
   0xf   : > { %s928_s6 = sshll.u32 %s1439_s25, 3  ;;  %1078 = vmatprep.subr.bf16.mxu0 %v1077_v8  ;;  %1083 = vmatprep.subr.bf16.mxu1 %v1077_v8 }
  0x10   : > { %s1206_s9 = scalar_lea.vmem %s1429_s0, %s928_s6  ;;  %s1296_s21 = scalar_lea.vmem %s1433_s4, %s928_s6 }
  0x11   : > { %v285_v9 = vld [vmem:[%s1206_s9] sm:$0xff]  ;;  %v286_v12 = vld [vmem:[%s1206_s9 + $0x8] sm:$0xff]  ;;  %v287_v14 = vld [vmem:[%s1206_s9 + $0x10] sm:$0xff] }
  0x12   : > { %v301_v10 = vld [vmem:[%s1206_s9 + $0x80] sm:$0xff]  ;;  %1021 = vmatprep.mubr.msk.f32.mxu0 %vm324_vm0, %v285_v9  ;;  %1080 = vmatpush3.bf16.msra.mxu0 %v1077_v8  ;;  %v302_v13 = vld [vmem:[%s1206_s9 + $0x88] sm:$0xff]  ;;  %v303_v15 = vld [vmem:[%s1206_s9 + $0x90] sm:$0xff] }
  0x13   : > { %1045 = vmatprep.mubr.msk.f32.mxu1 %vm324_vm0, %v301_v10  ;;  %1087 = vmatpush3.bf16.msra.mxu1 %v1077_v8  ;;  %v288_v16 = vld [vmem:[%s1206_s9 + $0x18] sm:$0xff]  ;;  %v289_v18 = vld [vmem:[%s1206_s9 + $0x20] sm:$0xff]  ;;  %v290_v20 = vld [vmem:[%s1206_s9 + $0x28] sm:$0xff] }
  0x14   : > { %1019 = vmatprep.subr.msk.mxu0 %vm421_vm1, %v323_v11  ;;  %1084 = vmatprep.subr.msk.mxu1 %vm421_vm1, %v323_v11  ;;  %v304_v17 = vld [vmem:[%s1206_s9 + $0x98] sm:$0xff]  ;;  %v305_v19 = vld [vmem:[%s1206_s9 + $0xa0] sm:$0xff]  ;;  %v306_v21 = vld [vmem:[%s1206_s9 + $0xa8] sm:$0xff] }
  0x15   : > { %v291_v22 = vld [vmem:[%s1206_s9 + $0x30] sm:$0xff]  ;;  %v292_v24 = vld [vmem:[%s1206_s9 + $0x38] sm:$0xff]  ;;  %v293_v26 = vld [vmem:[%s1206_s9 + $0x40] sm:$0xff] }
  0x16   : > { %1020 = vmatpush3.msk.msra.mxu0 %vm421_vm1, %v323_v11  ;;  %v307_v23 = vld [vmem:[%s1206_s9 + $0xb0] sm:$0xff]  ;;  %v308_v25 = vld [vmem:[%s1206_s9 + $0xb8] sm:$0xff]  ;;  %v309_v27 = vld [vmem:[%s1206_s9 + $0xc0] sm:$0xff] }
  0x17   : > { %1088 = vmatpush3.msk.msra.mxu1 %vm421_vm1, %v323_v11  ;;  %1022 = vmatmul.mubr.msk.f32.vlgmr.msra.gmra.mrb[0].mxu0 %vm324_vm0, %v286_v12  ;;  %v294_v28 = vld [vmem:[%s1206_s9 + $0x48] sm:$0xff]  ;;  %v295_v30 = vld [vmem:[%s1206_s9 + $0x50] sm:$0xff]  ;;  %v296_v32 = vld [vmem:[%s1206_s9 + $0x58] sm:$0xff] }
  0x18   : > { %1046 = vmatmul.mubr.msk.f32.vlgmr.msra.gmra.mrb[0].mxu1 %vm324_vm0, %v302_v13  ;;  %1024 = vmatprep.mubr.msk.f32.mxu0 %vm324_vm0, %v287_v14  ;;  %v310_v29 = vld [vmem:[%s1206_s9 + $0xc8] sm:$0xff]  ;;  %v311_v31 = vld [vmem:[%s1206_s9 + $0xd0] sm:$0xff]  ;;  %v312_v33 = vld [vmem:[%s1206_s9 + $0xd8] sm:$0xff] }
  0x19   : > { %1048 = vmatprep.mubr.msk.f32.mxu1 %vm324_vm0, %v303_v15  ;;  %v297_v34 = vld [vmem:[%s1206_s9 + $0x60] sm:$0xff]  ;;  %v298_v36 = vld [vmem:[%s1206_s9 + $0x68] sm:$0xff]  ;;  %v299_v38 = vld [vmem:[%s1206_s9 + $0x70] sm:$0xff] }
  0x1a   : > { %v313_v35 = vld [vmem:[%s1206_s9 + $0xe0] sm:$0xff]  ;;  %v314_v37 = vld [vmem:[%s1206_s9 + $0xe8] sm:$0xff]  ;;  %v315_v39 = vld [vmem:[%s1206_s9 + $0xf0] sm:$0xff] }
  0x1b   : > { %1025 = vmatmul.mubr.msk.f32.gmra.mrb[2].mxu0 %vm324_vm0, %v288_v16  ;;  %v300_v40 = vld [vmem:[%s1206_s9 + $0x78] sm:$0xff] }
  0x1c   : > { %1049 = vmatmul.mubr.msk.f32.gmra.mrb[2].mxu1 %vm324_vm0, %v304_v17  ;;  %1027 = vmatprep.mubr.msk.f32.mxu0 %vm324_vm0, %v289_v18  ;;  %v316_v41 = vld [vmem:[%s1206_s9 + $0xf8] sm:$0xff] }
  0x1d   : > { %1051 = vmatprep.mubr.msk.f32.mxu1 %vm324_vm0, %v305_v19 }
  0x1f   : > { %1028 = vmatmul.mubr.msk.f32.gmra.mrb[4].mxu0 %vm324_vm0, %v290_v20 }
  0x20   : > { %1052 = vmatmul.mubr.msk.f32.gmra.mrb[4].mxu1 %vm324_vm0, %v306_v21  ;;  %1030 = vmatprep.mubr.msk.f32.mxu0 %vm324_vm0, %v291_v22 }
  0x21   : > { %1054 = vmatprep.mubr.msk.f32.mxu1 %vm324_vm0, %v307_v23 }
  0x23   : > { %1031 = vmatmul.mubr.msk.f32.gmra.mrb[6].mxu0 %vm324_vm0, %v292_v24 }
  0x24   : > { %1055 = vmatmul.mubr.msk.f32.gmra.mrb[6].mxu1 %vm324_vm0, %v308_v25  ;;  %1033 = vmatprep.mubr.msk.f32.mxu0 %vm324_vm0, %v293_v26 }
  0x25   : > { %1057 = vmatprep.mubr.msk.f32.mxu1 %vm324_vm0, %v309_v27 }
  0x27   : > { %1034 = vmatmul.mubr.msk.f32.gmra.mrb[8].mxu0 %vm324_vm0, %v294_v28 }
  0x28   : > { %1058 = vmatmul.mubr.msk.f32.gmra.mrb[8].mxu1 %vm324_vm0, %v310_v29  ;;  %1036 = vmatprep.mubr.msk.f32.mxu0 %vm324_vm0, %v295_v30 }
  0x29   : > { %1060 = vmatprep.mubr.msk.f32.mxu1 %vm324_vm0, %v311_v31 }
  0x2b   : > { %1037 = vmatmul.mubr.msk.f32.gmra.mrb[10].mxu0 %vm324_vm0, %v296_v32 }
  0x2c   : > { %1061 = vmatmul.mubr.msk.f32.gmra.mrb[10].mxu1 %vm324_vm0, %v312_v33  ;;  %1039 = vmatprep.mubr.msk.f32.mxu0 %vm324_vm0, %v297_v34 }
  0x2d   : > { %1063 = vmatprep.mubr.msk.f32.mxu1 %vm324_vm0, %v313_v35 }
  0x2f   : > { %1040 = vmatmul.mubr.msk.f32.gmra.mrb[12].mxu0 %vm324_vm0, %v298_v36 }
  0x30   : > { %1064 = vmatmul.mubr.msk.f32.gmra.mrb[12].mxu1 %vm324_vm0, %v314_v37  ;;  %1042 = vmatprep.mubr.msk.f32.mxu0 %vm324_vm0, %v299_v38 }
  0x31   : > { %1066 = vmatprep.mubr.msk.f32.mxu1 %vm324_vm0, %v315_v39 }
  0x33   : > { %1043 = vmatmul.mubr.msk.f32.gmra.mrb[14].mxu0 %vm324_vm0, %v300_v40 }
  0x34   : > { %1067 = vmatmul.mubr.msk.f32.gmra.mrb[14].mxu1 %vm324_vm0, %v316_v41 }
  0xea   : > { %v1023_v43 = vpop.f32.mrb[0].mxu0 }
  0xeb   : > { %v1047_v45 = vpop.f32.mrb[0].mxu1  ;;  %v658_v46 = vmul.f32 %v1023_v43, %v1278_v42  ;;  %v491_v48 = vpop.f32.mrb[1].mxu0 }
  0xec   : > { %v674_v47 = vmul.f32 %v1047_v45, %v1278_v42  ;;  %v571_v49 = vpop.f32.mrb[1].mxu1  ;;  %v657_v50 = vmul.f32 %v1278_v42, %v491_v48 }
  0xed   : > { %v673_v51 = vmul.f32 %v1278_v42, %v571_v49  ;;  %v697_v52 = vadd.f32 %v1283_v44, %v658_v46 }
  0xee   : > { %v713_v53 = vadd.f32 %v1283_v44, %v674_v47  ;;  %v696_v54 = vadd.f32 %v1283_v44, %v657_v50  ;;  %v1026_v56 = vpop.f32.mrb[2].mxu0 }
  0xef   : > { %v712_v55 = vadd.f32 %v1283_v44, %v673_v51  ;;  %v1050_v57 = vpop.f32.mrb[2].mxu1  ;;  %v729_v58 = vmax.f32 %v697_v52, 0.0  ;;  %v660_v60 = vmul.f32 %v1026_v56, %v1278_v42  ;;  %v501_v62 = vpop.f32.mrb[3].mxu0 }
  0xf0   : > { %v745_v59 = vmax.f32 %v713_v53, 0.0  ;;  %v676_v61 = vmul.f32 %v1050_v57, %v1278_v42  ;;  %v581_v63 = vpop.f32.mrb[3].mxu1  ;;  %v728_v0 = vmax.f32 %v696_v54, 0.0  ;;  %v659_v2 = vmul.f32 %v1278_v42, %v501_v62 }
  0xf1   : > { %v744_v1 = vmax.f32 %v712_v55, 0.0  ;;  %v675_v3 = vmul.f32 %v1278_v42, %v581_v63  ;;  %762 = vst.msk [vmem:[%s1296_s21 + $0x8] sm:$0xff] %vm760_vm2, %v729_v58  ;;  %v699_v4 = vadd.f32 %v1283_v44, %v660_v60 }
  0xf2   : > { %778 = vst.msk [vmem:[%s1296_s21 + $0x88] sm:$0xff] %vm760_vm2, %v745_v59  ;;  %v715_v5 = vadd.f32 %v1283_v44, %v676_v61  ;;  %761 = vst.msk [vmem:[%s1296_s21] sm:$0xff] %vm760_vm2, %v728_v0  ;;  %v698_v6 = vadd.f32 %v1283_v44, %v659_v2  ;;  %v1029_v8 = vpop.f32.mrb[4].mxu0 }
  0xf3   : > { %777 = vst.msk [vmem:[%s1296_s21 + $0x80] sm:$0xff] %vm760_vm2, %v744_v1  ;;  %v714_v7 = vadd.f32 %v1283_v44, %v675_v3  ;;  %v1053_v9 = vpop.f32.mrb[4].mxu1  ;;  %v731_v10 = vmax.f32 %v699_v4, 0.0  ;;  %v662_v12 = vmul.f32 %v1029_v8, %v1278_v42  ;;  %v511_v14 = vpop.f32.mrb[5].mxu0 }
  0xf4   : > { %v747_v11 = vmax.f32 %v715_v5, 0.0  ;;  %v678_v13 = vmul.f32 %v1053_v9, %v1278_v42  ;;  %v591_v15 = vpop.f32.mrb[5].mxu1  ;;  %v730_v16 = vmax.f32 %v698_v6, 0.0  ;;  %v661_v18 = vmul.f32 %v1278_v42, %v511_v14 }
  0xf5   : > { %v746_v17 = vmax.f32 %v714_v7, 0.0  ;;  %v677_v19 = vmul.f32 %v1278_v42, %v591_v15  ;;  %764 = vst.msk [vmem:[%s1296_s21 + $0x18] sm:$0xff] %vm760_vm2, %v731_v10  ;;  %v701_v20 = vadd.f32 %v1283_v44, %v662_v12 }
  0xf6   : > { %780 = vst.msk [vmem:[%s1296_s21 + $0x98] sm:$0xff] %vm760_vm2, %v747_v11  ;;  %v717_v21 = vadd.f32 %v1283_v44, %v678_v13  ;;  %763 = vst.msk [vmem:[%s1296_s21 + $0x10] sm:$0xff] %vm760_vm2, %v730_v16  ;;  %v700_v22 = vadd.f32 %v1283_v44, %v661_v18  ;;  %v1032_v24 = vpop.f32.mrb[6].mxu0 }
  0xf7   : > { %779 = vst.msk [vmem:[%s1296_s21 + $0x90] sm:$0xff] %vm760_vm2, %v746_v17  ;;  %v716_v23 = vadd.f32 %v1283_v44, %v677_v19  ;;  %v1056_v25 = vpop.f32.mrb[6].mxu1  ;;  %v733_v26 = vmax.f32 %v701_v20, 0.0  ;;  %v664_v28 = vmul.f32 %v1032_v24, %v1278_v42  ;;  %v521_v30 = vpop.f32.mrb[7].mxu0 }
  0xf8   : > { %v749_v27 = vmax.f32 %v717_v21, 0.0  ;;  %v680_v29 = vmul.f32 %v1056_v25, %v1278_v42  ;;  %v601_v31 = vpop.f32.mrb[7].mxu1  ;;  %v732_v32 = vmax.f32 %v700_v22, 0.0  ;;  %v663_v34 = vmul.f32 %v1278_v42, %v521_v30 }
  0xf9   : > { %v748_v33 = vmax.f32 %v716_v23, 0.0  ;;  %v679_v35 = vmul.f32 %v1278_v42, %v601_v31  ;;  %766 = vst.msk [vmem:[%s1296_s21 + $0x28] sm:$0xff] %vm760_vm2, %v733_v26  ;;  %v703_v36 = vadd.f32 %v1283_v44, %v664_v28 }
  0xfa   : > { %782 = vst.msk [vmem:[%s1296_s21 + $0xa8] sm:$0xff] %vm760_vm2, %v749_v27  ;;  %v719_v37 = vadd.f32 %v1283_v44, %v680_v29  ;;  %765 = vst.msk [vmem:[%s1296_s21 + $0x20] sm:$0xff] %vm760_vm2, %v732_v32  ;;  %v702_v38 = vadd.f32 %v1283_v44, %v663_v34  ;;  %v1035_v40 = vpop.f32.mrb[8].mxu0 }
  0xfb   : > { %781 = vst.msk [vmem:[%s1296_s21 + $0xa0] sm:$0xff] %vm760_vm2, %v748_v33  ;;  %v718_v39 = vadd.f32 %v1283_v44, %v679_v35  ;;  %v1059_v41 = vpop.f32.mrb[8].mxu1  ;;  %v735_v43 = vmax.f32 %v703_v36, 0.0  ;;  %v666_v46 = vmul.f32 %v1035_v40, %v1278_v42  ;;  %v531_v48 = vpop.f32.mrb[9].mxu0 }
  0xfc   : > { %v751_v45 = vmax.f32 %v719_v37, 0.0  ;;  %v682_v47 = vmul.f32 %v1059_v41, %v1278_v42  ;;  %v611_v49 = vpop.f32.mrb[9].mxu1  ;;  %v734_v50 = vmax.f32 %v702_v38, 0.0  ;;  %v665_v52 = vmul.f32 %v1278_v42, %v531_v48 }
  0xfd   : > { %v750_v51 = vmax.f32 %v718_v39, 0.0  ;;  %v681_v53 = vmul.f32 %v1278_v42, %v611_v49  ;;  %768 = vst.msk [vmem:[%s1296_s21 + $0x38] sm:$0xff] %vm760_vm2, %v735_v43  ;;  %v705_v54 = vadd.f32 %v1283_v44, %v666_v46 }
  0xfe   : > { %784 = vst.msk [vmem:[%s1296_s21 + $0xb8] sm:$0xff] %vm760_vm2, %v751_v45  ;;  %v721_v55 = vadd.f32 %v1283_v44, %v682_v47  ;;  %767 = vst.msk [vmem:[%s1296_s21 + $0x30] sm:$0xff] %vm760_vm2, %v734_v50  ;;  %v704_v56 = vadd.f32 %v1283_v44, %v665_v52  ;;  %v1038_v58 = vpop.f32.mrb[10].mxu0 }
  0xff   : > { %783 = vst.msk [vmem:[%s1296_s21 + $0xb0] sm:$0xff] %vm760_vm2, %v750_v51  ;;  %v720_v57 = vadd.f32 %v1283_v44, %v681_v53  ;;  %v1062_v59 = vpop.f32.mrb[10].mxu1  ;;  %v737_v60 = vmax.f32 %v705_v54, 0.0  ;;  %v668_v62 = vmul.f32 %v1038_v58, %v1278_v42  ;;  %v541_v0 = vpop.f32.mrb[11].mxu0 }
 0x100   : > { %v753_v61 = vmax.f32 %v721_v55, 0.0  ;;  %v684_v63 = vmul.f32 %v1062_v59, %v1278_v42  ;;  %v621_v1 = vpop.f32.mrb[11].mxu1  ;;  %v736_v2 = vmax.f32 %v704_v56, 0.0  ;;  %v667_v4 = vmul.f32 %v1278_v42, %v541_v0 }
 0x101   : > { %v752_v3 = vmax.f32 %v720_v57, 0.0  ;;  %v683_v5 = vmul.f32 %v1278_v42, %v621_v1  ;;  %770 = vst.msk [vmem:[%s1296_s21 + $0x48] sm:$0xff] %vm760_vm2, %v737_v60  ;;  %v707_v6 = vadd.f32 %v1283_v44, %v668_v62 }
 0x102   : > { %786 = vst.msk [vmem:[%s1296_s21 + $0xc8] sm:$0xff] %vm760_vm2, %v753_v61  ;;  %v723_v7 = vadd.f32 %v1283_v44, %v684_v63  ;;  %769 = vst.msk [vmem:[%s1296_s21 + $0x40] sm:$0xff] %vm760_vm2, %v736_v2  ;;  %v706_v8 = vadd.f32 %v1283_v44, %v667_v4  ;;  %v1041_v10 = vpop.f32.mrb[12].mxu0 }
 0x103   : > { %785 = vst.msk [vmem:[%s1296_s21 + $0xc0] sm:$0xff] %vm760_vm2, %v752_v3  ;;  %v722_v9 = vadd.f32 %v1283_v44, %v683_v5  ;;  %v1065_v11 = vpop.f32.mrb[12].mxu1  ;;  %v739_v12 = vmax.f32 %v707_v6, 0.0  ;;  %v670_v14 = vmul.f32 %v1041_v10, %v1278_v42  ;;  %v551_v16 = vpop.f32.mrb[13].mxu0 }
 0x104   : > { %v755_v13 = vmax.f32 %v723_v7, 0.0  ;;  %v686_v15 = vmul.f32 %v1065_v11, %v1278_v42  ;;  %v631_v17 = vpop.f32.mrb[13].mxu1  ;;  %v738_v18 = vmax.f32 %v706_v8, 0.0  ;;  %v669_v20 = vmul.f32 %v1278_v42, %v551_v16 }
 0x105   : > { %v754_v19 = vmax.f32 %v722_v9, 0.0  ;;  %v685_v21 = vmul.f32 %v1278_v42, %v631_v17  ;;  %772 = vst.msk [vmem:[%s1296_s21 + $0x58] sm:$0xff] %vm760_vm2, %v739_v12  ;;  %v709_v22 = vadd.f32 %v1283_v44, %v670_v14 }
 0x106   : > { %788 = vst.msk [vmem:[%s1296_s21 + $0xd8] sm:$0xff] %vm760_vm2, %v755_v13  ;;  %v725_v23 = vadd.f32 %v1283_v44, %v686_v15  ;;  %771 = vst.msk [vmem:[%s1296_s21 + $0x50] sm:$0xff] %vm760_vm2, %v738_v18  ;;  %v708_v24 = vadd.f32 %v1283_v44, %v669_v20  ;;  %v1044_v26 = vpop.f32.mrb[14].mxu0 }
 0x107   : > { %787 = vst.msk [vmem:[%s1296_s21 + $0xd0] sm:$0xff] %vm760_vm2, %v754_v19  ;;  %v724_v25 = vadd.f32 %v1283_v44, %v685_v21  ;;  %v1068_v27 = vpop.f32.mrb[14].mxu1  ;;  %v741_v28 = vmax.f32 %v709_v22, 0.0  ;;  %v672_v30 = vmul.f32 %v1044_v26, %v1278_v42  ;;  %v561_v32 = vpop.f32.mrb[15].mxu0 }
 0x108   : > { %v757_v29 = vmax.f32 %v725_v23, 0.0  ;;  %v688_v31 = vmul.f32 %v1068_v27, %v1278_v42  ;;  %v641_v33 = vpop.f32.mrb[15].mxu1  ;;  %v740_v34 = vmax.f32 %v708_v24, 0.0  ;;  %v671_v36 = vmul.f32 %v1278_v42, %v561_v32 }
 0x109   : > { %v756_v35 = vmax.f32 %v724_v25, 0.0  ;;  %v687_v37 = vmul.f32 %v1278_v42, %v641_v33  ;;  %774 = vst.msk [vmem:[%s1296_s21 + $0x68] sm:$0xff] %vm760_vm2, %v741_v28  ;;  %v711_v38 = vadd.f32 %v1283_v44, %v672_v30 }
 0x10a   : > { %790 = vst.msk [vmem:[%s1296_s21 + $0xe8] sm:$0xff] %vm760_vm2, %v757_v29  ;;  %v727_v39 = vadd.f32 %v1283_v44, %v688_v31  ;;  %773 = vst.msk [vmem:[%s1296_s21 + $0x60] sm:$0xff] %vm760_vm2, %v740_v34  ;;  %v710_v40 = vadd.f32 %v1283_v44, %v671_v36 }
 0x10b   : > { %789 = vst.msk [vmem:[%s1296_s21 + $0xe0] sm:$0xff] %vm760_vm2, %v756_v35  ;;  %v726_v41 = vadd.f32 %v1283_v44, %v687_v37  ;;  %v743_v43 = vmax.f32 %v711_v38, 0.0 }
 0x10c   : > { %v759_v45 = vmax.f32 %v727_v39, 0.0  ;;  %v742_v42 = vmax.f32 %v710_v40, 0.0 }
 0x10d   : > { %v758_v46 = vmax.f32 %v726_v41, 0.0  ;;  %776 = vst.msk [vmem:[%s1296_s21 + $0x78] sm:$0xff] %vm760_vm2, %v743_v43 }
 0x10e   : > { %792 = vst.msk [vmem:[%s1296_s21 + $0xf8] sm:$0xff] %vm760_vm2, %v759_v45  ;;  %775 = vst.msk [vmem:[%s1296_s21 + $0x70] sm:$0xff] %vm760_vm2, %v742_v42 }
 0x10f   : > { %791 = vst.msk [vmem:[%s1296_s21 + $0xf0] sm:$0xff] %vm760_vm2, %v758_v46 }
 0x110 PF: > { %s14_s17 = sadd.s32 1, %s1135_s17   ;;  %s1434_s15 = smov %s1131_s16 }
 0x111   : > { %p11_p5 = scmp.ge.s32.totalorder %s14_s17, 4   ;;  %s1435_s16 = smov %s1437_s18 }
 0x113   :  { %13 = sbr.rel (!%p11_p5) target bundleno = 2 (0x2), region = 75 }

// kernel: rfb7a_hs_att_forward.20
= control target key start
LH: loop header
LB: loop body
LE: loop exit
PB: predicated region body
PF: predicated region fallthrough
CT: control target
= control target key end

     0   :  { %s1654_s15 = smov 0   ;;  %s1656_s16 = smov 0   ;;  %s2098_s0 = inlined_call_operand.vmem [shape: f32[4,512,18], index: 0, kind: input, shape index: {}]   ;;  %s2099_s1 = inlined_call_operand.vmem [shape: f32[4,18,2], index: 1, kind: input, shape index: {}]   ;;  %s2100_s2 = inlined_call_operand.vmem [shape: f32[4,1,2], index: 2, kind: input, shape index: {}]   ;;  %s2101_s3 = inlined_call_operand.vmem [shape: f32[4,1,2], index: 3, kind: input, shape index: {}]   ;;  %s2102_s4 = inlined_call_operand.vmem [shape: f32[4,512,2], index: 4, kind: output, shape index: {}]  }
   0x1   :  { %s1658_s17 = smov 0  }
   0x2 LB: > { %s26_s18 = sadd.s32 1, %s1623_s16  ;;  %p1326_p0 = scmp.ge.s32.totalorder %s1627_s17, 1  ;;  %s1627_s17 = sphi %s1658_s17, %s14_s17   ;;  %s1623_s16 = sphi %s1656_s16, %s2104_s16   ;;  %s1619_s15 = sphi %s1654_s15, %s2103_s15  }
   0x3   : > { %p28_p1 = scmp.ge.s32.totalorder %s26_s18, 4  ;;  %p209_p2 = scmp.lt.s32.totalorder %s1627_s17, 5 }
   0x5   : > { %s2106_s18 = smov (%p28_p1, %s26_s18), 0  ;;  %p210_p3 = pnand %p1326_p0, %p209_p2 }
   0x6   : > { %p255_p4 = scmp.lt.s32.totalorder (!%p210_p3), %s1619_s15, 3  ;;  %vm352_vm0 = vcmask (!%p210_p3), 146432   ;;  %vm545_vm1 = vcmask (!%p210_p3), 1041408   ;;  %vm1140_vm2 = vcmask (!%p210_p3), 15360  }
   0x7   : > { %213 = sbr.rel (%p210_p3) target bundleno = 308 (0x134), region = 36 }
   0xe   : > { %s2108_s15 = smov (!%p255_p4, %s1619_s15), 3 }
   0xf   : > { %s1580_s19 = smul.u32 24, %s2108_s15  ;;  %s1401_s20 = sshll.u32 %s2108_s15, 9 }
  0x10   : > { %s1681_s23 = scalar_lea.vmem %s2098_s0, %s1401_s20  ;;  %s271_s29 = scalar_lea.vmem %s2100_s2, %s2108_s15 }
  0x11   : > { %s268_s26 = scalar_lea.vmem %s2099_s1, %s1580_s19  ;;  %v285_v0 = vld [vmem:[%s1681_s23] sm:$0xff]  ;;  %v286_v6 = vld [vmem:[%s1681_s23 + $0x8] sm:$0xff]  ;;  %v287_v8 = vld [vmem:[%s1681_s23 + $0x10] sm:$0xff]  ;;  %s274_s6 = scalar_lea.vmem %s2101_s3, %s2108_s15 }
  0x12   : > { %v317_v1 = vld [vmem:[%s1681_s23 + $0x100] sm:$0xff]  ;;  %v350_v3 = vld [vmem:[%s268_s26 + $0x8] sm:$0xff]  ;;  %1476 = vmatprep.mubr.msk.f32.mxu0 %vm352_vm0, %v285_v0  ;;  %v351_v5 = vld [vmem:[%s268_s26 + $0x10] sm:$0x3]  ;;  %s1837_s9 = scalar_lea.vmem %s2102_s4, %s1401_s20 }
  0x13   : > { %v349_v2 = vld [vmem:[%s268_s26] sm:$0xff]  ;;  %1524 = vmatprep.mubr.msk.f32.mxu1 %vm352_vm0, %v317_v1  ;;  %v318_v7 = vld [vmem:[%s1681_s23 + $0x108] sm:$0xff]  ;;  %v319_v9 = vld [vmem:[%s1681_s23 + $0x110] sm:$0xff] }
  0x14   : > { %v1572_v4 = vpack.c.bf16 %v350_v3, %v349_v2  ;;  %v288_v10 = vld [vmem:[%s1681_s23 + $0x18] sm:$0xff]  ;;  %v289_v12 = vld [vmem:[%s1681_s23 + $0x20] sm:$0xff]  ;;  %v290_v14 = vld [vmem:[%s1681_s23 + $0x28] sm:$0xff] }
  0x15   : > { %v320_v11 = vld [vmem:[%s1681_s23 + $0x118] sm:$0xff]  ;;  %v321_v13 = vld [vmem:[%s1681_s23 + $0x120] sm:$0xff]  ;;  %v322_v15 = vld [vmem:[%s1681_s23 + $0x128] sm:$0xff] }
  0x16   : > { %1573 = vmatprep.subr.bf16.mxu0 %v1572_v4  ;;  %1576 = vmatprep.subr.bf16.mxu1 %v1572_v4  ;;  %v291_v16 = vld [vmem:[%s1681_s23 + $0x30] sm:$0xff]  ;;  %v292_v18 = vld [vmem:[%s1681_s23 + $0x38] sm:$0xff]  ;;  %v293_v20 = vld [vmem:[%s1681_s23 + $0x40] sm:$0xff] }
  0x17   : > { %1575 = vmatpush3.bf16.msra.mxu0 %v1572_v4  ;;  %1578 = vmatpush3.bf16.msra.mxu1 %v1572_v4  ;;  %v323_v17 = vld [vmem:[%s1681_s23 + $0x130] sm:$0xff]  ;;  %v324_v19 = vld [vmem:[%s1681_s23 + $0x138] sm:$0xff]  ;;  %v325_v21 = vld [vmem:[%s1681_s23 + $0x140] sm:$0xff] }
  0x18   : > { %1474 = vmatprep.subr.msk.mxu0 %vm545_vm1, %v351_v5  ;;  %1577 = vmatprep.subr.msk.mxu1 %vm545_vm1, %v351_v5  ;;  %v294_v22 = vld [vmem:[%s1681_s23 + $0x48] sm:$0xff]  ;;  %v295_v24 = vld [vmem:[%s1681_s23 + $0x50] sm:$0xff]  ;;  %v296_v26 = vld [vmem:[%s1681_s23 + $0x58] sm:$0xff] }
  0x19   : > { %v326_v23 = vld [vmem:[%s1681_s23 + $0x148] sm:$0xff]  ;;  %v327_v25 = vld [vmem:[%s1681_s23 + $0x150] sm:$0xff]  ;;  %v328_v27 = vld [vmem:[%s1681_s23 + $0x158] sm:$0xff] }
  0x1a   : > { %v297_v28 = vld [vmem:[%s1681_s23 + $0x60] sm:$0xff]  ;;  %v298_v30 = vld [vmem:[%s1681_s23 + $0x68] sm:$0xff]  ;;  %v299_v32 = vld [vmem:[%s1681_s23 + $0x70] sm:$0xff] }
  0x1b   : > { %1475 = vmatpush3.msk.msra.mxu0 %vm545_vm1, %v351_v5  ;;  %1579 = vmatpush3.msk.msra.mxu1 %vm545_vm1, %v351_v5  ;;  %v329_v29 = vld [vmem:[%s1681_s23 + $0x160] sm:$0xff]  ;;  %v330_v31 = vld [vmem:[%s1681_s23 + $0x168] sm:$0xff]  ;;  %v331_v33 = vld [vmem:[%s1681_s23 + $0x170] sm:$0xff] }
  0x1c   : > { %1477 = vmatmul.mubr.msk.f32.vlgmr.msra.gmra.mrb[0].mxu0 %vm352_vm0, %v286_v6  ;;  %1525 = vmatmul.mubr.msk.f32.vlgmr.msra.gmra.mrb[0].mxu1 %vm352_vm0, %v318_v7  ;;  %v300_v34 = vld [vmem:[%s1681_s23 + $0x78] sm:$0xff]  ;;  %v301_v36 = vld [vmem:[%s1681_s23 + $0x80] sm:$0xff]  ;;  %v302_v38 = vld [vmem:[%s1681_s23 + $0x88] sm:$0xff] }
  0x1d   : > { %1479 = vmatprep.mubr.msk.f32.mxu0 %vm352_vm0, %v287_v8  ;;  %1527 = vmatprep.mubr.msk.f32.mxu1 %vm352_vm0, %v319_v9  ;;  %v332_v35 = vld [vmem:[%s1681_s23 + $0x178] sm:$0xff]  ;;  %v333_v37 = vld [vmem:[%s1681_s23 + $0x180] sm:$0xff]  ;;  %v334_v39 = vld [vmem:[%s1681_s23 + $0x188] sm:$0xff] }
  0x1e   : > { %v303_v40 = vld [vmem:[%s1681_s23 + $0x90] sm:$0xff]  ;;  %v304_v42 = vld [vmem:[%s1681_s23 + $0x98] sm:$0xff]  ;;  %v305_v44 = vld [vmem:[%s1681_s23 + $0xa0] sm:$0xff] }
  0x1f   : > { %v335_v41 = vld [vmem:[%s1681_s23 + $0x190] sm:$0xff]  ;;  %v336_v43 = vld [vmem:[%s1681_s23 + $0x198] sm:$0xff]  ;;  %v337_v45 = vld [vmem:[%s1681_s23 + $0x1a0] sm:$0xff] }
  0x20   : > { %1480 = vmatmul.mubr.msk.f32.gmra.mrb[2].mxu0 %vm352_vm0, %v288_v10  ;;  %1528 = vmatmul.mubr.msk.f32.gmra.mrb[2].mxu1 %vm352_vm0, %v320_v11  ;;  %v306_v46 = vld [vmem:[%s1681_s23 + $0xa8] sm:$0xff]  ;;  %v307_v48 = vld [vmem:[%s1681_s23 + $0xb0] sm:$0xff]  ;;  %v308_v50 = vld [vmem:[%s1681_s23 + $0xb8] sm:$0xff] }
  0x21   : > { %1482 = vmatprep.mubr.msk.f32.mxu0 %vm352_vm0, %v289_v12  ;;  %1530 = vmatprep.mubr.msk.f32.mxu1 %vm352_vm0, %v321_v13  ;;  %v338_v47 = vld [vmem:[%s1681_s23 + $0x1a8] sm:$0xff]  ;;  %v339_v49 = vld [vmem:[%s1681_s23 + $0x1b0] sm:$0xff]  ;;  %v340_v51 = vld [vmem:[%s1681_s23 + $0x1b8] sm:$0xff] }
  0x22   : > { %v309_v52 = vld [vmem:[%s1681_s23 + $0xc0] sm:$0xff]  ;;  %v310_v54 = vld [vmem:[%s1681_s23 + $0xc8] sm:$0xff]  ;;  %v311_v56 = vld [vmem:[%s1681_s23 + $0xd0] sm:$0xff] }
  0x23   : > { %v341_v53 = vld [vmem:[%s1681_s23 + $0x1c0] sm:$0xff]  ;;  %v342_v55 = vld [vmem:[%s1681_s23 + $0x1c8] sm:$0xff]  ;;  %v343_v57 = vld [vmem:[%s1681_s23 + $0x1d0] sm:$0xff] }
  0x24   : > { %1483 = vmatmul.mubr.msk.f32.gmra.mrb[4].mxu0 %vm352_vm0, %v290_v14  ;;  %1531 = vmatmul.mubr.msk.f32.gmra.mrb[4].mxu1 %vm352_vm0, %v322_v15  ;;  %v312_v58 = vld [vmem:[%s1681_s23 + $0xd8] sm:$0xff]  ;;  %v313_v60 = vld [vmem:[%s1681_s23 + $0xe0] sm:$0xff]  ;;  %v314_v62 = vld [vmem:[%s1681_s23 + $0xe8] sm:$0xff] }
  0x25   : > { %1485 = vmatprep.mubr.msk.f32.mxu0 %vm352_vm0, %v291_v16  ;;  %1533 = vmatprep.mubr.msk.f32.mxu1 %vm352_vm0, %v323_v17  ;;  %v344_v59 = vld [vmem:[%s1681_s23 + $0x1d8] sm:$0xff]  ;;  %v345_v61 = vld [vmem:[%s1681_s23 + $0x1e0] sm:$0xff]  ;;  %v346_v63 = vld [vmem:[%s1681_s23 + $0x1e8] sm:$0xff] }
  0x26   : > { %v315_v0 = vld [vmem:[%s1681_s23 + $0xf0] sm:$0xff]  ;;  %v316_v2 = vld [vmem:[%s1681_s23 + $0xf8] sm:$0xff]  ;;  %v1822_v4 = vld [vmem:[%s271_s29] ss:$0 sm:$0xff] }
  0x27   : > { %v347_v1 = vld [vmem:[%s1681_s23 + $0x1f0] sm:$0xff]  ;;  %v348_v3 = vld [vmem:[%s1681_s23 + $0x1f8] sm:$0xff]  ;;  %v1824_v6 = vld [vmem:[%s274_s6] ss:$0 sm:$0xff] }
  0x28   : > { %1486 = vmatmul.mubr.msk.f32.gmra.mrb[6].mxu0 %vm352_vm0, %v292_v18  ;;  %1534 = vmatmul.mubr.msk.f32.gmra.mrb[6].mxu1 %vm352_vm0, %v324_v19 }
  0x29   : > { %1488 = vmatprep.mubr.msk.f32.mxu0 %vm352_vm0, %v293_v20  ;;  %1536 = vmatprep.mubr.msk.f32.mxu1 %vm352_vm0, %v325_v21 }
  0x2c   : > { %1489 = vmatmul.mubr.msk.f32.gmra.mrb[8].mxu0 %vm352_vm0, %v294_v22  ;;  %1537 = vmatmul.mubr.msk.f32.gmra.mrb[8].mxu1 %vm352_vm0, %v326_v23 }
  0x2d   : > { %1491 = vmatprep.mubr.msk.f32.mxu0 %vm352_vm0, %v295_v24  ;;  %1539 = vmatprep.mubr.msk.f32.mxu1 %vm352_vm0, %v327_v25 }
  0x30   : > { %1492 = vmatmul.mubr.msk.f32.gmra.mrb[10].mxu0 %vm352_vm0, %v296_v26  ;;  %1540 = vmatmul.mubr.msk.f32.gmra.mrb[10].mxu1 %vm352_vm0, %v328_v27 }
  0x31   : > { %1494 = vmatprep.mubr.msk.f32.mxu0 %vm352_vm0, %v297_v28  ;;  %1542 = vmatprep.mubr.msk.f32.mxu1 %vm352_vm0, %v329_v29 }
  0x34   : > { %1495 = vmatmul.mubr.msk.f32.gmra.mrb[12].mxu0 %vm352_vm0, %v298_v30  ;;  %1543 = vmatmul.mubr.msk.f32.gmra.mrb[12].mxu1 %vm352_vm0, %v330_v31 }
  0x35   : > { %1497 = vmatprep.mubr.msk.f32.mxu0 %vm352_vm0, %v299_v32  ;;  %1545 = vmatprep.mubr.msk.f32.mxu1 %vm352_vm0, %v331_v33 }
  0x38   : > { %1498 = vmatmul.mubr.msk.f32.gmra.mrb[14].mxu0 %vm352_vm0, %v300_v34  ;;  %1546 = vmatmul.mubr.msk.f32.gmra.mrb[14].mxu1 %vm352_vm0, %v332_v35 }
  0x39   : > { %1500 = vmatprep.mubr.msk.f32.mxu0 %vm352_vm0, %v301_v36  ;;  %1548 = vmatprep.mubr.msk.f32.mxu1 %vm352_vm0, %v333_v37 }
  0x3c   : > { %1501 = vmatmul.mubr.msk.f32.gmra.mrb[16].mxu0 %vm352_vm0, %v302_v38  ;;  %1549 = vmatmul.mubr.msk.f32.gmra.mrb[16].mxu1 %vm352_vm0, %v334_v39 }
  0x3d   : > { %1503 = vmatprep.mubr.msk.f32.mxu0 %vm352_vm0, %v303_v40  ;;  %1551 = vmatprep.mubr.msk.f32.mxu1 %vm352_vm0, %v335_v41 }
  0x40   : > { %1504 = vmatmul.mubr.msk.f32.gmra.mrb[18].mxu0 %vm352_vm0, %v304_v42  ;;  %1552 = vmatmul.mubr.msk.f32.gmra.mrb[18].mxu1 %vm352_vm0, %v336_v43 }
  0x41   : > { %1506 = vmatprep.mubr.msk.f32.mxu0 %vm352_vm0, %v305_v44  ;;  %1554 = vmatprep.mubr.msk.f32.mxu1 %vm352_vm0, %v337_v45 }
  0x44   : > { %1507 = vmatmul.mubr.msk.f32.gmra.mrb[20].mxu0 %vm352_vm0, %v306_v46  ;;  %1555 = vmatmul.mubr.msk.f32.gmra.mrb[20].mxu1 %vm352_vm0, %v338_v47 }
  0x45   : > { %1509 = vmatprep.mubr.msk.f32.mxu0 %vm352_vm0, %v307_v48  ;;  %1557 = vmatprep.mubr.msk.f32.mxu1 %vm352_vm0, %v339_v49 }
  0x48   : > { %1510 = vmatmul.mubr.msk.f32.gmra.mrb[22].mxu0 %vm352_vm0, %v308_v50  ;;  %1558 = vmatmul.mubr.msk.f32.gmra.mrb[22].mxu1 %vm352_vm0, %v340_v51 }
  0x49   : > { %1512 = vmatprep.mubr.msk.f32.mxu0 %vm352_vm0, %v309_v52  ;;  %1560 = vmatprep.mubr.msk.f32.mxu1 %vm352_vm0, %v341_v53 }
  0x4c   : > { %1513 = vmatmul.mubr.msk.f32.gmra.mrb[24].mxu0 %vm352_vm0, %v310_v54  ;;  %1561 = vmatmul.mubr.msk.f32.gmra.mrb[24].mxu1 %vm352_vm0, %v342_v55 }
  0x4d   : > { %1515 = vmatprep.mubr.msk.f32.mxu0 %vm352_vm0, %v311_v56  ;;  %1563 = vmatprep.mubr.msk.f32.mxu1 %vm352_vm0, %v343_v57 }
  0x50   : > { %1516 = vmatmul.mubr.msk.f32.gmra.mrb[26].mxu0 %vm352_vm0, %v312_v58  ;;  %1564 = vmatmul.mubr.msk.f32.gmra.mrb[26].mxu1 %vm352_vm0, %v344_v59 }
  0x51   : > { %1518 = vmatprep.mubr.msk.f32.mxu0 %vm352_vm0, %v313_v60  ;;  %1566 = vmatprep.mubr.msk.f32.mxu1 %vm352_vm0, %v345_v61 }
  0x54   : > { %1519 = vmatmul.mubr.msk.f32.gmra.mrb[28].mxu0 %vm352_vm0, %v314_v62  ;;  %1567 = vmatmul.mubr.msk.f32.gmra.mrb[28].mxu1 %vm352_vm0, %v346_v63 }
  0x55   : > { %1521 = vmatprep.mubr.msk.f32.mxu0 %vm352_vm0, %v315_v0  ;;  %1569 = vmatprep.mubr.msk.f32.mxu1 %vm352_vm0, %v347_v1 }
  0x58   : > { %1522 = vmatmul.mubr.msk.f32.gmra.mrb[30].mxu0 %vm352_vm0, %v316_v2  ;;  %1570 = vmatmul.mubr.msk.f32.gmra.mrb[30].mxu1 %vm352_vm0, %v348_v3 }
  0xef   : > { %v1478_v5 = vpop.f32.mrb[0].mxu0  ;;  %v1526_v7 = vpop.f32.mrb[0].mxu1 }
  0xf0   : > { %v942_v8 = vmul.f32 %v1478_v5, %v1822_v4  ;;  %v974_v9 = vmul.f32 %v1526_v7, %v1822_v4  ;;  %v615_v10 = vpop.f32.mrb[1].mxu0  ;;  %v775_v11 = vpop.f32.mrb[1].mxu1 }
  0xf1   : > { %v941_v12 = vmul.f32 %v1822_v4, %v615_v10  ;;  %v973_v13 = vmul.f32 %v1822_v4, %v775_v11 }
  0xf2   : > { %v1013_v14 = vadd.f32 %v1824_v6, %v942_v8  ;;  %v1045_v15 = vadd.f32 %v1824_v6, %v974_v9 }
  0xf3   : > { %v1012_v16 = vadd.f32 %v1824_v6, %v941_v12  ;;  %v1044_v17 = vadd.f32 %v1824_v6, %v973_v13  ;;  %v1481_v18 = vpop.f32.mrb[2].mxu0  ;;  %v1529_v19 = vpop.f32.mrb[2].mxu1 }
  0xf4   : > { %v1077_v20 = vmax.f32 %v1013_v14, 0.0  ;;  %v1109_v21 = vmax.f32 %v1045_v15, 0.0  ;;  %v944_v22 = vmul.f32 %v1481_v18, %v1822_v4  ;;  %v976_v23 = vmul.f32 %v1529_v19, %v1822_v4  ;;  %v625_v24 = vpop.f32.mrb[3].mxu0  ;;  %v785_v25 = vpop.f32.mrb[3].mxu1 }
  0xf5   : > { %v1076_v26 = vmax.f32 %v1012_v16, 0.0  ;;  %v1108_v27 = vmax.f32 %v1044_v17, 0.0  ;;  %v943_v28 = vmul.f32 %v1822_v4, %v625_v24  ;;  %v975_v29 = vmul.f32 %v1822_v4, %v785_v25 }
  0xf6   : > { %1142 = vst.msk [vmem:[%s1837_s9 + $0x8] sm:$0xff] %vm1140_vm2, %v1077_v20  ;;  %1174 = vst.msk [vmem:[%s1837_s9 + $0x108] sm:$0xff] %vm1140_vm2, %v1109_v21  ;;  %v1015_v30 = vadd.f32 %v1824_v6, %v944_v22  ;;  %v1047_v31 = vadd.f32 %v1824_v6, %v976_v23 }
  0xf7   : > { %1141 = vst.msk [vmem:[%s1837_s9] sm:$0xff] %vm1140_vm2, %v1076_v26  ;;  %1173 = vst.msk [vmem:[%s1837_s9 + $0x100] sm:$0xff] %vm1140_vm2, %v1108_v27  ;;  %v1014_v32 = vadd.f32 %v1824_v6, %v943_v28  ;;  %v1046_v33 = vadd.f32 %v1824_v6, %v975_v29  ;;  %v1484_v34 = vpop.f32.mrb[4].mxu0  ;;  %v1532_v35 = vpop.f32.mrb[4].mxu1 }
  0xf8   : > { %v1079_v36 = vmax.f32 %v1015_v30, 0.0  ;;  %v1111_v37 = vmax.f32 %v1047_v31, 0.0  ;;  %v946_v38 = vmul.f32 %v1484_v34, %v1822_v4  ;;  %v978_v39 = vmul.f32 %v1532_v35, %v1822_v4  ;;  %v635_v40 = vpop.f32.mrb[5].mxu0  ;;  %v795_v41 = vpop.f32.mrb[5].mxu1 }
  0xf9   : > { %v1078_v42 = vmax.f32 %v1014_v32, 0.0  ;;  %v1110_v43 = vmax.f32 %v1046_v33, 0.0  ;;  %v945_v44 = vmul.f32 %v1822_v4, %v635_v40  ;;  %v977_v45 = vmul.f32 %v1822_v4, %v795_v41 }
  0xfa   : > { %1144 = vst.msk [vmem:[%s1837_s9 + $0x18] sm:$0xff] %vm1140_vm2, %v1079_v36  ;;  %1176 = vst.msk [vmem:[%s1837_s9 + $0x118] sm:$0xff] %vm1140_vm2, %v1111_v37  ;;  %v1017_v46 = vadd.f32 %v1824_v6, %v946_v38  ;;  %v1049_v47 = vadd.f32 %v1824_v6, %v978_v39 }
  0xfb   : > { %1143 = vst.msk [vmem:[%s1837_s9 + $0x10] sm:$0xff] %vm1140_vm2, %v1078_v42  ;;  %1175 = vst.msk [vmem:[%s1837_s9 + $0x110] sm:$0xff] %vm1140_vm2, %v1110_v43  ;;  %v1016_v48 = vadd.f32 %v1824_v6, %v945_v44  ;;  %v1048_v49 = vadd.f32 %v1824_v6, %v977_v45  ;;  %v1487_v50 = vpop.f32.mrb[6].mxu0  ;;  %v1535_v51 = vpop.f32.mrb[6].mxu1 }
  0xfc   : > { %v1081_v52 = vmax.f32 %v1017_v46, 0.0  ;;  %v1113_v53 = vmax.f32 %v1049_v47, 0.0  ;;  %v948_v54 = vmul.f32 %v1487_v50, %v1822_v4  ;;  %v980_v55 = vmul.f32 %v1535_v51, %v1822_v4  ;;  %v645_v56 = vpop.f32.mrb[7].mxu0  ;;  %v805_v57 = vpop.f32.mrb[7].mxu1 }
  0xfd   : > { %v1080_v58 = vmax.f32 %v1016_v48, 0.0  ;;  %v1112_v59 = vmax.f32 %v1048_v49, 0.0  ;;  %v947_v60 = vmul.f32 %v1822_v4, %v645_v56  ;;  %v979_v61 = vmul.f32 %v1822_v4, %v805_v57 }
  0xfe   : > { %1146 = vst.msk [vmem:[%s1837_s9 + $0x28] sm:$0xff] %vm1140_vm2, %v1081_v52  ;;  %1178 = vst.msk [vmem:[%s1837_s9 + $0x128] sm:$0xff] %vm1140_vm2, %v1113_v53  ;;  %v1019_v62 = vadd.f32 %v1824_v6, %v948_v54  ;;  %v1051_v63 = vadd.f32 %v1824_v6, %v980_v55 }
  0xff   : > { %1145 = vst.msk [vmem:[%s1837_s9 + $0x20] sm:$0xff] %vm1140_vm2, %v1080_v58  ;;  %1177 = vst.msk [vmem:[%s1837_s9 + $0x120] sm:$0xff] %vm1140_vm2, %v1112_v59  ;;  %v1018_v0 = vadd.f32 %v1824_v6, %v947_v60  ;;  %v1050_v1 = vadd.f32 %v1824_v6, %v979_v61  ;;  %v1490_v2 = vpop.f32.mrb[8].mxu0  ;;  %v1538_v3 = vpop.f32.mrb[8].mxu1 }
 0x100   : > { %v1083_v5 = vmax.f32 %v1019_v62, 0.0  ;;  %v1115_v7 = vmax.f32 %v1051_v63, 0.0  ;;  %v950_v8 = vmul.f32 %v1490_v2, %v1822_v4  ;;  %v982_v9 = vmul.f32 %v1538_v3, %v1822_v4  ;;  %v655_v10 = vpop.f32.mrb[9].mxu0  ;;  %v815_v11 = vpop.f32.mrb[9].mxu1 }
 0x101   : > { %v1082_v12 = vmax.f32 %v1018_v0, 0.0  ;;  %v1114_v13 = vmax.f32 %v1050_v1, 0.0  ;;  %v949_v14 = vmul.f32 %v1822_v4, %v655_v10  ;;  %v981_v15 = vmul.f32 %v1822_v4, %v815_v11 }
 0x102   : > { %1148 = vst.msk [vmem:[%s1837_s9 + $0x38] sm:$0xff] %vm1140_vm2, %v1083_v5  ;;  %1180 = vst.msk [vmem:[%s1837_s9 + $0x138] sm:$0xff] %vm1140_vm2, %v1115_v7  ;;  %v1021_v16 = vadd.f32 %v1824_v6, %v950_v8  ;;  %v1053_v17 = vadd.f32 %v1824_v6, %v982_v9 }
 0x103   : > { %1147 = vst.msk [vmem:[%s1837_s9 + $0x30] sm:$0xff] %vm1140_vm2, %v1082_v12  ;;  %1179 = vst.msk [vmem:[%s1837_s9 + $0x130] sm:$0xff] %vm1140_vm2, %v1114_v13  ;;  %v1020_v18 = vadd.f32 %v1824_v6, %v949_v14  ;;  %v1052_v19 = vadd.f32 %v1824_v6, %v981_v15  ;;  %v1493_v20 = vpop.f32.mrb[10].mxu0  ;;  %v1541_v21 = vpop.f32.mrb[10].mxu1 }
 0x104   : > { %v1085_v22 = vmax.f32 %v1021_v16, 0.0  ;;  %v1117_v23 = vmax.f32 %v1053_v17, 0.0  ;;  %v952_v24 = vmul.f32 %v1493_v20, %v1822_v4  ;;  %v984_v25 = vmul.f32 %v1541_v21, %v1822_v4  ;;  %v665_v26 = vpop.f32.mrb[11].mxu0  ;;  %v825_v27 = vpop.f32.mrb[11].mxu1 }
 0x105   : > { %v1084_v28 = vmax.f32 %v1020_v18, 0.0  ;;  %v1116_v29 = vmax.f32 %v1052_v19, 0.0  ;;  %v951_v30 = vmul.f32 %v1822_v4, %v665_v26  ;;  %v983_v31 = vmul.f32 %v1822_v4, %v825_v27 }
 0x106   : > { %1150 = vst.msk [vmem:[%s1837_s9 + $0x48] sm:$0xff] %vm1140_vm2, %v1085_v22  ;;  %1182 = vst.msk [vmem:[%s1837_s9 + $0x148] sm:$0xff] %vm1140_vm2, %v1117_v23  ;;  %v1023_v32 = vadd.f32 %v1824_v6, %v952_v24  ;;  %v1055_v33 = vadd.f32 %v1824_v6, %v984_v25 }
 0x107   : > { %1149 = vst.msk [vmem:[%s1837_s9 + $0x40] sm:$0xff] %vm1140_vm2, %v1084_v28  ;;  %1181 = vst.msk [vmem:[%s1837_s9 + $0x140] sm:$0xff] %vm1140_vm2, %v1116_v29  ;;  %v1022_v34 = vadd.f32 %v1824_v6, %v951_v30  ;;  %v1054_v35 = vadd.f32 %v1824_v6, %v983_v31  ;;  %v1496_v36 = vpop.f32.mrb[12].mxu0  ;;  %v1544_v37 = vpop.f32.mrb[12].mxu1 }
 0x108   : > { %v1087_v38 = vmax.f32 %v1023_v32, 0.0  ;;  %v1119_v39 = vmax.f32 %v1055_v33, 0.0  ;;  %v954_v40 = vmul.f32 %v1496_v36, %v1822_v4  ;;  %v986_v41 = vmul.f32 %v1544_v37, %v1822_v4  ;;  %v675_v42 = vpop.f32.mrb[13].mxu0  ;;  %v835_v43 = vpop.f32.mrb[13].mxu1 }
 0x109   : > { %v1086_v44 = vmax.f32 %v1022_v34, 0.0  ;;  %v1118_v45 = vmax.f32 %v1054_v35, 0.0  ;;  %v953_v46 = vmul.f32 %v1822_v4, %v675_v42  ;;  %v985_v47 = vmul.f32 %v1822_v4, %v835_v43 }
 0x10a   : > { %1152 = vst.msk [vmem:[%s1837_s9 + $0x58] sm:$0xff] %vm1140_vm2, %v1087_v38  ;;  %1184 = vst.msk [vmem:[%s1837_s9 + $0x158] sm:$0xff] %vm1140_vm2, %v1119_v39  ;;  %v1025_v48 = vadd.f32 %v1824_v6, %v954_v40  ;;  %v1057_v49 = vadd.f32 %v1824_v6, %v986_v41 }
 0x10b   : > { %1151 = vst.msk [vmem:[%s1837_s9 + $0x50] sm:$0xff] %vm1140_vm2, %v1086_v44  ;;  %1183 = vst.msk [vmem:[%s1837_s9 + $0x150] sm:$0xff] %vm1140_vm2, %v1118_v45  ;;  %v1024_v50 = vadd.f32 %v1824_v6, %v953_v46  ;;  %v1056_v51 = vadd.f32 %v1824_v6, %v985_v47  ;;  %v1499_v52 = vpop.f32.mrb[14].mxu0  ;;  %v1547_v53 = vpop.f32.mrb[14].mxu1 }
 0x10c   : > { %v1089_v54 = vmax.f32 %v1025_v48, 0.0  ;;  %v1121_v55 = vmax.f32 %v1057_v49, 0.0  ;;  %v956_v56 = vmul.f32 %v1499_v52, %v1822_v4  ;;  %v988_v57 = vmul.f32 %v1547_v53, %v1822_v4  ;;  %v685_v58 = vpop.f32.mrb[15].mxu0  ;;  %v845_v59 = vpop.f32.mrb[15].mxu1 }
 0x10d   : > { %v1088_v60 = vmax.f32 %v1024_v50, 0.0  ;;  %v1120_v61 = vmax.f32 %v1056_v51, 0.0  ;;  %v955_v62 = vmul.f32 %v1822_v4, %v685_v58  ;;  %v987_v63 = vmul.f32 %v1822_v4, %v845_v59 }
 0x10e   : > { %1154 = vst.msk [vmem:[%s1837_s9 + $0x68] sm:$0xff] %vm1140_vm2, %v1089_v54  ;;  %1186 = vst.msk [vmem:[%s1837_s9 + $0x168] sm:$0xff] %vm1140_vm2, %v1121_v55  ;;  %v1027_v0 = vadd.f32 %v1824_v6, %v956_v56  ;;  %v1059_v1 = vadd.f32 %v1824_v6, %v988_v57 }
 0x10f   : > { %1153 = vst.msk [vmem:[%s1837_s9 + $0x60] sm:$0xff] %vm1140_vm2, %v1088_v60  ;;  %1185 = vst.msk [vmem:[%s1837_s9 + $0x160] sm:$0xff] %vm1140_vm2, %v1120_v61  ;;  %v1026_v2 = vadd.f32 %v1824_v6, %v955_v62  ;;  %v1058_v3 = vadd.f32 %v1824_v6, %v987_v63  ;;  %v1502_v5 = vpop.f32.mrb[16].mxu0  ;;  %v1550_v7 = vpop.f32.mrb[16].mxu1 }
 0x110   : > { %v1091_v8 = vmax.f32 %v1027_v0, 0.0  ;;  %v1123_v9 = vmax.f32 %v1059_v1, 0.0  ;;  %v958_v10 = vmul.f32 %v1502_v5, %v1822_v4  ;;  %v990_v11 = vmul.f32 %v1550_v7, %v1822_v4  ;;  %v695_v12 = vpop.f32.mrb[17].mxu0  ;;  %v855_v13 = vpop.f32.mrb[17].mxu1 }
 0x111   : > { %v1090_v14 = vmax.f32 %v1026_v2, 0.0  ;;  %v1122_v15 = vmax.f32 %v1058_v3, 0.0  ;;  %v957_v16 = vmul.f32 %v1822_v4, %v695_v12  ;;  %v989_v17 = vmul.f32 %v1822_v4, %v855_v13 }
 0x112   : > { %1156 = vst.msk [vmem:[%s1837_s9 + $0x78] sm:$0xff] %vm1140_vm2, %v1091_v8  ;;  %1188 = vst.msk [vmem:[%s1837_s9 + $0x178] sm:$0xff] %vm1140_vm2, %v1123_v9  ;;  %v1029_v18 = vadd.f32 %v1824_v6, %v958_v10  ;;  %v1061_v19 = vadd.f32 %v1824_v6, %v990_v11 }
 0x113   : > { %1155 = vst.msk [vmem:[%s1837_s9 + $0x70] sm:$0xff] %vm1140_vm2, %v1090_v14  ;;  %1187 = vst.msk [vmem:[%s1837_s9 + $0x170] sm:$0xff] %vm1140_vm2, %v1122_v15  ;;  %v1028_v20 = vadd.f32 %v1824_v6, %v957_v16  ;;  %v1060_v21 = vadd.f32 %v1824_v6, %v989_v17  ;;  %v1505_v22 = vpop.f32.mrb[18].mxu0  ;;  %v1553_v23 = vpop.f32.mrb[18].mxu1 }
 0x114   : > { %v1093_v24 = vmax.f32 %v1029_v18, 0.0  ;;  %v1125_v25 = vmax.f32 %v1061_v19, 0.0  ;;  %v960_v26 = vmul.f32 %v1505_v22, %v1822_v4  ;;  %v992_v27 = vmul.f32 %v1553_v23, %v1822_v4  ;;  %v705_v28 = vpop.f32.mrb[19].mxu0  ;;  %v865_v29 = vpop.f32.mrb[19].mxu1 }
 0x115   : > { %v1092_v30 = vmax.f32 %v1028_v20, 0.0  ;;  %v1124_v31 = vmax.f32 %v1060_v21, 0.0  ;;  %v959_v32 = vmul.f32 %v1822_v4, %v705_v28  ;;  %v991_v33 = vmul.f32 %v1822_v4, %v865_v29 }
 0x116   : > { %1158 = vst.msk [vmem:[%s1837_s9 + $0x88] sm:$0xff] %vm1140_vm2, %v1093_v24  ;;  %1190 = vst.msk [vmem:[%s1837_s9 + $0x188] sm:$0xff] %vm1140_vm2, %v1125_v25  ;;  %v1031_v34 = vadd.f32 %v1824_v6, %v960_v26  ;;  %v1063_v35 = vadd.f32 %v1824_v6, %v992_v27 }
 0x117   : > { %1157 = vst.msk [vmem:[%s1837_s9 + $0x80] sm:$0xff] %vm1140_vm2, %v1092_v30  ;;  %1189 = vst.msk [vmem:[%s1837_s9 + $0x180] sm:$0xff] %vm1140_vm2, %v1124_v31  ;;  %v1030_v36 = vadd.f32 %v1824_v6, %v959_v32  ;;  %v1062_v37 = vadd.f32 %v1824_v6, %v991_v33  ;;  %v1508_v38 = vpop.f32.mrb[20].mxu0  ;;  %v1556_v39 = vpop.f32.mrb[20].mxu1 }
 0x118   : > { %v1095_v40 = vmax.f32 %v1031_v34, 0.0  ;;  %v1127_v41 = vmax.f32 %v1063_v35, 0.0  ;;  %v962_v42 = vmul.f32 %v1508_v38, %v1822_v4  ;;  %v994_v43 = vmul.f32 %v1556_v39, %v1822_v4  ;;  %v715_v44 = vpop.f32.mrb[21].mxu0  ;;  %v875_v45 = vpop.f32.mrb[21].mxu1 }
 0x119   : > { %v1094_v46 = vmax.f32 %v1030_v36, 0.0  ;;  %v1126_v47 = vmax.f32 %v1062_v37, 0.0  ;;  %v961_v48 = vmul.f32 %v1822_v4, %v715_v44  ;;  %v993_v49 = vmul.f32 %v1822_v4, %v875_v45 }
 0x11a   : > { %1160 = vst.msk [vmem:[%s1837_s9 + $0x98] sm:$0xff] %vm1140_vm2, %v1095_v40  ;;  %1192 = vst.msk [vmem:[%s1837_s9 + $0x198] sm:$0xff] %vm1140_vm2, %v1127_v41  ;;  %v1033_v50 = vadd.f32 %v1824_v6, %v962_v42  ;;  %v1065_v51 = vadd.f32 %v1824_v6, %v994_v43 }
 0x11b   : > { %1159 = vst.msk [vmem:[%s1837_s9 + $0x90] sm:$0xff] %vm1140_vm2, %v1094_v46  ;;  %1191 = vst.msk [vmem:[%s1837_s9 + $0x190] sm:$0xff] %vm1140_vm2, %v1126_v47  ;;  %v1032_v52 = vadd.f32 %v1824_v6, %v961_v48  ;;  %v1064_v53 = vadd.f32 %v1824_v6, %v993_v49  ;;  %v1511_v54 = vpop.f32.mrb[22].mxu0  ;;  %v1559_v55 = vpop.f32.mrb[22].mxu1 }
 0x11c   : > { %v1097_v56 = vmax.f32 %v1033_v50, 0.0  ;;  %v1129_v57 = vmax.f32 %v1065_v51, 0.0  ;;  %v964_v58 = vmul.f32 %v1511_v54, %v1822_v4  ;;  %v996_v59 = vmul.f32 %v1559_v55, %v1822_v4  ;;  %v725_v60 = vpop.f32.mrb[23].mxu0  ;;  %v885_v61 = vpop.f32.mrb[23].mxu1 }
 0x11d   : > { %v1096_v62 = vmax.f32 %v1032_v52, 0.0  ;;  %v1128_v63 = vmax.f32 %v1064_v53, 0.0  ;;  %v963_v0 = vmul.f32 %v1822_v4, %v725_v60  ;;  %v995_v1 = vmul.f32 %v1822_v4, %v885_v61 }
 0x11e   : > { %1162 = vst.msk [vmem:[%s1837_s9 + $0xa8] sm:$0xff] %vm1140_vm2, %v1097_v56  ;;  %1194 = vst.msk [vmem:[%s1837_s9 + $0x1a8] sm:$0xff] %vm1140_vm2, %v1129_v57  ;;  %v1035_v2 = vadd.f32 %v1824_v6, %v964_v58  ;;  %v1067_v3 = vadd.f32 %v1824_v6, %v996_v59 }
 0x11f   : > { %1161 = vst.msk [vmem:[%s1837_s9 + $0xa0] sm:$0xff] %vm1140_vm2, %v1096_v62  ;;  %1193 = vst.msk [vmem:[%s1837_s9 + $0x1a0] sm:$0xff] %vm1140_vm2, %v1128_v63  ;;  %v1034_v5 = vadd.f32 %v1824_v6, %v963_v0  ;;  %v1066_v7 = vadd.f32 %v1824_v6, %v995_v1  ;;  %v1514_v8 = vpop.f32.mrb[24].mxu0  ;;  %v1562_v9 = vpop.f32.mrb[24].mxu1 }
 0x120   : > { %v1099_v10 = vmax.f32 %v1035_v2, 0.0  ;;  %v1131_v11 = vmax.f32 %v1067_v3, 0.0  ;;  %v966_v12 = vmul.f32 %v1514_v8, %v1822_v4  ;;  %v998_v13 = vmul.f32 %v1562_v9, %v1822_v4  ;;  %v735_v14 = vpop.f32.mrb[25].mxu0  ;;  %v895_v15 = vpop.f32.mrb[25].mxu1 }
 0x121   : > { %v1098_v16 = vmax.f32 %v1034_v5, 0.0  ;;  %v1130_v17 = vmax.f32 %v1066_v7, 0.0  ;;  %v965_v18 = vmul.f32 %v1822_v4, %v735_v14  ;;  %v997_v19 = vmul.f32 %v1822_v4, %v895_v15 }
 0x122   : > { %1164 = vst.msk [vmem:[%s1837_s9 + $0xb8] sm:$0xff] %vm1140_vm2, %v1099_v10  ;;  %1196 = vst.msk [vmem:[%s1837_s9 + $0x1b8] sm:$0xff] %vm1140_vm2, %v1131_v11  ;;  %v1037_v20 = vadd.f32 %v1824_v6, %v966_v12  ;;  %v1069_v21 = vadd.f32 %v1824_v6, %v998_v13 }
 0x123   : > { %1163 = vst.msk [vmem:[%s1837_s9 + $0xb0] sm:$0xff] %vm1140_vm2, %v1098_v16  ;;  %1195 = vst.msk [vmem:[%s1837_s9 + $0x1b0] sm:$0xff] %vm1140_vm2, %v1130_v17  ;;  %v1036_v22 = vadd.f32 %v1824_v6, %v965_v18  ;;  %v1068_v23 = vadd.f32 %v1824_v6, %v997_v19  ;;  %v1517_v24 = vpop.f32.mrb[26].mxu0  ;;  %v1565_v25 = vpop.f32.mrb[26].mxu1 }
 0x124   : > { %v1101_v26 = vmax.f32 %v1037_v20, 0.0  ;;  %v1133_v27 = vmax.f32 %v1069_v21, 0.0  ;;  %v968_v28 = vmul.f32 %v1517_v24, %v1822_v4  ;;  %v1000_v29 = vmul.f32 %v1565_v25, %v1822_v4  ;;  %v745_v30 = vpop.f32.mrb[27].mxu0  ;;  %v905_v31 = vpop.f32.mrb[27].mxu1 }
 0x125   : > { %v1100_v32 = vmax.f32 %v1036_v22, 0.0  ;;  %v1132_v33 = vmax.f32 %v1068_v23, 0.0  ;;  %v967_v34 = vmul.f32 %v1822_v4, %v745_v30  ;;  %v999_v35 = vmul.f32 %v1822_v4, %v905_v31 }
 0x126   : > { %1166 = vst.msk [vmem:[%s1837_s9 + $0xc8] sm:$0xff] %vm1140_vm2, %v1101_v26  ;;  %1198 = vst.msk [vmem:[%s1837_s9 + $0x1c8] sm:$0xff] %vm1140_vm2, %v1133_v27  ;;  %v1039_v36 = vadd.f32 %v1824_v6, %v968_v28  ;;  %v1071_v37 = vadd.f32 %v1824_v6, %v1000_v29 }
 0x127   : > { %1165 = vst.msk [vmem:[%s1837_s9 + $0xc0] sm:$0xff] %vm1140_vm2, %v1100_v32  ;;  %1197 = vst.msk [vmem:[%s1837_s9 + $0x1c0] sm:$0xff] %vm1140_vm2, %v1132_v33  ;;  %v1038_v38 = vadd.f32 %v1824_v6, %v967_v34  ;;  %v1070_v39 = vadd.f32 %v1824_v6, %v999_v35  ;;  %v1520_v40 = vpop.f32.mrb[28].mxu0  ;;  %v1568_v41 = vpop.f32.mrb[28].mxu1 }
 0x128   : > { %v1103_v42 = vmax.f32 %v1039_v36, 0.0  ;;  %v1135_v43 = vmax.f32 %v1071_v37, 0.0  ;;  %v970_v44 = vmul.f32 %v1520_v40, %v1822_v4  ;;  %v1002_v45 = vmul.f32 %v1568_v41, %v1822_v4  ;;  %v755_v46 = vpop.f32.mrb[29].mxu0  ;;  %v915_v47 = vpop.f32.mrb[29].mxu1 }
 0x129   : > { %v1102_v48 = vmax.f32 %v1038_v38, 0.0  ;;  %v1134_v49 = vmax.f32 %v1070_v39, 0.0  ;;  %v969_v50 = vmul.f32 %v1822_v4, %v755_v46  ;;  %v1001_v51 = vmul.f32 %v1822_v4, %v915_v47 }
 0x12a   : > { %1168 = vst.msk [vmem:[%s1837_s9 + $0xd8] sm:$0xff] %vm1140_vm2, %v1103_v42  ;;  %1200 = vst.msk [vmem:[%s1837_s9 + $0x1d8] sm:$0xff] %vm1140_vm2, %v1135_v43  ;;  %v1041_v52 = vadd.f32 %v1824_v6, %v970_v44  ;;  %v1073_v53 = vadd.f32 %v1824_v6, %v1002_v45 }
 0x12b   : > { %1167 = vst.msk [vmem:[%s1837_s9 + $0xd0] sm:$0xff] %vm1140_vm2, %v1102_v48  ;;  %1199 = vst.msk [vmem:[%s1837_s9 + $0x1d0] sm:$0xff] %vm1140_vm2, %v1134_v49  ;;  %v1040_v54 = vadd.f32 %v1824_v6, %v969_v50  ;;  %v1072_v55 = vadd.f32 %v1824_v6, %v1001_v51  ;;  %v1523_v56 = vpop.f32.mrb[30].mxu0  ;;  %v1571_v57 = vpop.f32.mrb[30].mxu1 }
 0x12c   : > { %v1105_v58 = vmax.f32 %v1041_v52, 0.0  ;;  %v1137_v59 = vmax.f32 %v1073_v53, 0.0  ;;  %v972_v60 = vmul.f32 %v1523_v56, %v1822_v4  ;;  %v1004_v61 = vmul.f32 %v1571_v57, %v1822_v4  ;;  %v765_v62 = vpop.f32.mrb[31].mxu0  ;;  %v925_v63 = vpop.f32.mrb[31].mxu1 }
 0x12d   : > { %v1104_v0 = vmax.f32 %v1040_v54, 0.0  ;;  %v1136_v1 = vmax.f32 %v1072_v55, 0.0  ;;  %v971_v2 = vmul.f32 %v1822_v4, %v765_v62  ;;  %v1003_v3 = vmul.f32 %v1822_v4, %v925_v63 }
 0x12e   : > { %1170 = vst.msk [vmem:[%s1837_s9 + $0xe8] sm:$0xff] %vm1140_vm2, %v1105_v58  ;;  %1202 = vst.msk [vmem:[%s1837_s9 + $0x1e8] sm:$0xff] %vm1140_vm2, %v1137_v59  ;;  %v1043_v5 = vadd.f32 %v1824_v6, %v972_v60  ;;  %v1075_v7 = vadd.f32 %v1824_v6, %v1004_v61 }
 0x12f   : > { %1169 = vst.msk [vmem:[%s1837_s9 + $0xe0] sm:$0xff] %vm1140_vm2, %v1104_v0  ;;  %1201 = vst.msk [vmem:[%s1837_s9 + $0x1e0] sm:$0xff] %vm1140_vm2, %v1136_v1  ;;  %v1042_v8 = vadd.f32 %v1824_v6, %v971_v2  ;;  %v1074_v9 = vadd.f32 %v1824_v6, %v1003_v3 }
 0x130   : > { %v1107_v10 = vmax.f32 %v1043_v5, 0.0  ;;  %v1139_v11 = vmax.f32 %v1075_v7, 0.0 }
 0x131   : > { %v1106_v4 = vmax.f32 %v1042_v8, 0.0  ;;  %v1138_v12 = vmax.f32 %v1074_v9, 0.0 }
 0x132   : > { %1172 = vst.msk [vmem:[%s1837_s9 + $0xf8] sm:$0xff] %vm1140_vm2, %v1107_v10  ;;  %1204 = vst.msk [vmem:[%s1837_s9 + $0x1f8] sm:$0xff] %vm1140_vm2, %v1139_v11 }
 0x133   : > { %1171 = vst.msk [vmem:[%s1837_s9 + $0xf0] sm:$0xff] %vm1140_vm2, %v1106_v4  ;;  %1203 = vst.msk [vmem:[%s1837_s9 + $0x1f0] sm:$0xff] %vm1140_vm2, %v1138_v12 }
 0x134 PF: > { %s14_s17 = sadd.s32 1, %s1627_s17   ;;  %s2103_s15 = smov %s1623_s16 }
 0x135   : > { %p11_p5 = scmp.ge.s32.totalorder %s14_s17, 6   ;;  %s2104_s16 = smov %s2106_s18 }
 0x137   :  { %13 = sbr.rel (!%p11_p5) target bundleno = 2 (0x2), region = 75 }

// kernel: rfb7a_hs_att_forward.21
= control target key start
LH: loop header
LB: loop body
LE: loop exit
PB: predicated region body
PF: predicated region fallthrough
CT: control target
= control target key end

     0   :  { %s1667_s15 = smov 0   ;;  %s1669_s16 = smov 0   ;;  %s2111_s0 = inlined_call_operand.vmem [shape: f32[4,512,27], index: 0, kind: input, shape index: {}]   ;;  %s2112_s1 = inlined_call_operand.vmem [shape: f32[4,27,3], index: 1, kind: input, shape index: {}]   ;;  %s2113_s2 = inlined_call_operand.vmem [shape: f32[4,1,3], index: 2, kind: input, shape index: {}]   ;;  %s2114_s3 = inlined_call_operand.vmem [shape: f32[4,1,3], index: 3, kind: input, shape index: {}]   ;;  %s2115_s4 = inlined_call_operand.vmem [shape: f32[4,512,3], index: 4, kind: output, shape index: {}]  }
   0x1   :  { %s1671_s17 = smov 0  }
   0x2 LB: > { %s26_s18 = sadd.s32 1, %s1635_s16  ;;  %p1327_p0 = scmp.ge.s32.totalorder %s1639_s17, 1  ;;  %s1639_s17 = sphi %s1671_s17, %s14_s17   ;;  %s1635_s16 = sphi %s1669_s16, %s2117_s16   ;;  %s1631_s15 = sphi %s1667_s15, %s2116_s15  }
   0x3   : > { %p28_p1 = scmp.ge.s32.totalorder %s26_s18, 4  ;;  %p209_p2 = scmp.lt.s32.totalorder %s1639_s17, 5 }
   0x5   : > { %s2119_s18 = smov (%p28_p1, %s26_s18), 0  ;;  %p210_p3 = pnand %p1327_p0, %p209_p2 }
   0x6   : > { %p255_p4 = scmp.lt.s32.totalorder (!%p210_p3), %s1631_s15, 3  ;;  %vm546_vm0 = vcmask (!%p210_p3), 1042432   ;;  %vm353_vm1 = vcmask (!%p210_p3), 220160   ;;  %vm1641_vm2 = vmmov (!%p210_p3), 1   ;;  %vm1141_vm4 = vcmask (!%p210_p3), 23552  }
   0x7   : > { %213 = sbr.rel (%p210_p3) target bundleno = 309 (0x135), region = 36  ;;  %vm1583_vm3 = vmpackc.low (!%p210_p3), %vm546_vm0, %vm1641_vm2 }
   0xe   : > { %s2121_s15 = smov (!%p255_p4, %s1631_s15), 3 }
   0xf   : > { %s1404_s19 = sshll.u32 %s2121_s15, 5  ;;  %s1403_s20 = sshll.u32 %s2121_s15, 9 }
  0x10   : > { %s268_s23 = scalar_lea.vmem %s2112_s1, %s1404_s19  ;;  %s1697_s26 = scalar_lea.vmem %s2111_s0, %s1403_s20 }
  0x11   : > { %v349_v0 = vld [vmem:[%s268_s23] sm:$0xff]  ;;  %v350_v1 = vld [vmem:[%s268_s23 + $0x8] sm:$0xff]  ;;  %v351_v2 = vld [vmem:[%s268_s23 + $0x10] sm:$0xff]  ;;  %s271_s29 = scalar_lea.vmem %s2113_s2, %s2121_s15  ;;  %s274_s6 = scalar_lea.vmem %s2114_s3, %s2121_s15 }
  0x12   : > { %v1578_v3 = vpack.c.bf16 %v350_v1, %v349_v0  ;;  %v352_v4 = vld [vmem:[%s268_s23 + $0x18] sm:$0x7]  ;;  %v285_v5 = vld [vmem:[%s1697_s26] sm:$0xff]  ;;  %v286_v8 = vld [vmem:[%s1697_s26 + $0x8] sm:$0xff]  ;;  %s1850_s9 = scalar_lea.vmem %s2115_s4, %s1403_s20 }
  0x13   : > { %v317_v6 = vld [vmem:[%s1697_s26 + $0x100] sm:$0xff]  ;;  %v1582_v7 = vpack.c.bf16 %v352_v4, %v351_v2  ;;  %1482 = vmatprep.mubr.msk.f32.mxu0 %vm353_vm1, %v285_v5  ;;  %v318_v9 = vld [vmem:[%s1697_s26 + $0x108] sm:$0xff]  ;;  %v287_v10 = vld [vmem:[%s1697_s26 + $0x10] sm:$0xff] }
  0x14   : > { %1530 = vmatprep.mubr.msk.f32.mxu1 %vm353_vm1, %v317_v6  ;;  %1579 = vmatprep.subr.bf16.mxu0 %v1578_v3  ;;  %v319_v11 = vld [vmem:[%s1697_s26 + $0x110] sm:$0xff]  ;;  %v288_v12 = vld [vmem:[%s1697_s26 + $0x18] sm:$0xff]  ;;  %v289_v14 = vld [vmem:[%s1697_s26 + $0x20] sm:$0xff] }
  0x15   : > { %1588 = vmatprep.subr.bf16.mxu1 %v1578_v3  ;;  %1581 = vmatpush3.bf16.msra.mxu0 %v1578_v3  ;;  %v320_v13 = vld [vmem:[%s1697_s26 + $0x118] sm:$0xff]  ;;  %v321_v15 = vld [vmem:[%s1697_s26 + $0x120] sm:$0xff]  ;;  %v290_v16 = vld [vmem:[%s1697_s26 + $0x28] sm:$0xff] }
  0x16   : > { %1590 = vmatpush3.bf16.msra.mxu1 %v1578_v3  ;;  %1584 = vmatprep.subr.msk.bf16.mxu0 %vm1583_vm3, %v1582_v7  ;;  %v322_v17 = vld [vmem:[%s1697_s26 + $0x128] sm:$0xff]  ;;  %v291_v18 = vld [vmem:[%s1697_s26 + $0x30] sm:$0xff]  ;;  %v292_v20 = vld [vmem:[%s1697_s26 + $0x38] sm:$0xff] }
  0x17   : > { %1589 = vmatprep.subr.msk.bf16.mxu1 %vm1583_vm3, %v1582_v7  ;;  %v323_v19 = vld [vmem:[%s1697_s26 + $0x130] sm:$0xff]  ;;  %v324_v21 = vld [vmem:[%s1697_s26 + $0x138] sm:$0xff]  ;;  %v293_v22 = vld [vmem:[%s1697_s26 + $0x40] sm:$0xff] }
  0x18   : > { %v325_v23 = vld [vmem:[%s1697_s26 + $0x140] sm:$0xff]  ;;  %v294_v24 = vld [vmem:[%s1697_s26 + $0x48] sm:$0xff]  ;;  %v295_v26 = vld [vmem:[%s1697_s26 + $0x50] sm:$0xff] }
  0x19   : > { %1587 = vmatpush3.bf16.msk.msra.mxu0 %vm1583_vm3, %v1582_v7  ;;  %v326_v25 = vld [vmem:[%s1697_s26 + $0x148] sm:$0xff]  ;;  %v327_v27 = vld [vmem:[%s1697_s26 + $0x150] sm:$0xff]  ;;  %v296_v28 = vld [vmem:[%s1697_s26 + $0x58] sm:$0xff] }
  0x1a   : > { %1591 = vmatpush3.bf16.msk.msra.mxu1 %vm1583_vm3, %v1582_v7  ;;  %v328_v29 = vld [vmem:[%s1697_s26 + $0x158] sm:$0xff]  ;;  %v297_v30 = vld [vmem:[%s1697_s26 + $0x60] sm:$0xff]  ;;  %v298_v32 = vld [vmem:[%s1697_s26 + $0x68] sm:$0xff] }
  0x1b   : > { %v329_v31 = vld [vmem:[%s1697_s26 + $0x160] sm:$0xff]  ;;  %v330_v33 = vld [vmem:[%s1697_s26 + $0x168] sm:$0xff]  ;;  %v299_v34 = vld [vmem:[%s1697_s26 + $0x70] sm:$0xff] }
  0x1c   : > { %1483 = vmatmul.mubr.msk.f32.vlgmr.msra.gmra.mrb[0].mxu0 %vm353_vm1, %v286_v8  ;;  %v331_v35 = vld [vmem:[%s1697_s26 + $0x170] sm:$0xff]  ;;  %v300_v36 = vld [vmem:[%s1697_s26 + $0x78] sm:$0xff]  ;;  %v301_v38 = vld [vmem:[%s1697_s26 + $0x80] sm:$0xff] }
  0x1d   : > { %1531 = vmatmul.mubr.msk.f32.vlgmr.msra.gmra.mrb[0].mxu1 %vm353_vm1, %v318_v9  ;;  %1485 = vmatprep.mubr.msk.f32.mxu0 %vm353_vm1, %v287_v10  ;;  %v332_v37 = vld [vmem:[%s1697_s26 + $0x178] sm:$0xff]  ;;  %v333_v39 = vld [vmem:[%s1697_s26 + $0x180] sm:$0xff]  ;;  %v302_v40 = vld [vmem:[%s1697_s26 + $0x88] sm:$0xff] }
  0x1e   : > { %1533 = vmatprep.mubr.msk.f32.mxu1 %vm353_vm1, %v319_v11  ;;  %v334_v41 = vld [vmem:[%s1697_s26 + $0x188] sm:$0xff]  ;;  %v303_v42 = vld [vmem:[%s1697_s26 + $0x90] sm:$0xff]  ;;  %v304_v44 = vld [vmem:[%s1697_s26 + $0x98] sm:$0xff] }
  0x1f   : > { %v335_v43 = vld [vmem:[%s1697_s26 + $0x190] sm:$0xff]  ;;  %v336_v45 = vld [vmem:[%s1697_s26 + $0x198] sm:$0xff]  ;;  %v305_v46 = vld [vmem:[%s1697_s26 + $0xa0] sm:$0xff] }
  0x20   : > { %1486 = vmatmul.mubr.msk.f32.gmra.mrb[2].mxu0 %vm353_vm1, %v288_v12  ;;  %v337_v47 = vld [vmem:[%s1697_s26 + $0x1a0] sm:$0xff]  ;;  %v306_v48 = vld [vmem:[%s1697_s26 + $0xa8] sm:$0xff]  ;;  %v307_v50 = vld [vmem:[%s1697_s26 + $0xb0] sm:$0xff] }
  0x21   : > { %1534 = vmatmul.mubr.msk.f32.gmra.mrb[2].mxu1 %vm353_vm1, %v320_v13  ;;  %1488 = vmatprep.mubr.msk.f32.mxu0 %vm353_vm1, %v289_v14  ;;  %v338_v49 = vld [vmem:[%s1697_s26 + $0x1a8] sm:$0xff]  ;;  %v339_v51 = vld [vmem:[%s1697_s26 + $0x1b0] sm:$0xff]  ;;  %v308_v52 = vld [vmem:[%s1697_s26 + $0xb8] sm:$0xff] }
  0x22   : > { %1536 = vmatprep.mubr.msk.f32.mxu1 %vm353_vm1, %v321_v15  ;;  %v340_v53 = vld [vmem:[%s1697_s26 + $0x1b8] sm:$0xff]  ;;  %v309_v54 = vld [vmem:[%s1697_s26 + $0xc0] sm:$0xff]  ;;  %v310_v56 = vld [vmem:[%s1697_s26 + $0xc8] sm:$0xff] }
  0x23   : > { %v341_v55 = vld [vmem:[%s1697_s26 + $0x1c0] sm:$0xff]  ;;  %v342_v57 = vld [vmem:[%s1697_s26 + $0x1c8] sm:$0xff]  ;;  %v311_v58 = vld [vmem:[%s1697_s26 + $0xd0] sm:$0xff] }
  0x24   : > { %1489 = vmatmul.mubr.msk.f32.gmra.mrb[4].mxu0 %vm353_vm1, %v290_v16  ;;  %v343_v59 = vld [vmem:[%s1697_s26 + $0x1d0] sm:$0xff]  ;;  %v312_v60 = vld [vmem:[%s1697_s26 + $0xd8] sm:$0xff]  ;;  %v313_v62 = vld [vmem:[%s1697_s26 + $0xe0] sm:$0xff] }
  0x25   : > { %1537 = vmatmul.mubr.msk.f32.gmra.mrb[4].mxu1 %vm353_vm1, %v322_v17  ;;  %1491 = vmatprep.mubr.msk.f32.mxu0 %vm353_vm1, %v291_v18  ;;  %v344_v61 = vld [vmem:[%s1697_s26 + $0x1d8] sm:$0xff]  ;;  %v345_v63 = vld [vmem:[%s1697_s26 + $0x1e0] sm:$0xff]  ;;  %v314_v0 = vld [vmem:[%s1697_s26 + $0xe8] sm:$0xff] }
  0x26   : > { %1539 = vmatprep.mubr.msk.f32.mxu1 %vm353_vm1, %v323_v19  ;;  %v346_v1 = vld [vmem:[%s1697_s26 + $0x1e8] sm:$0xff]  ;;  %v315_v2 = vld [vmem:[%s1697_s26 + $0xf0] sm:$0xff]  ;;  %v316_v4 = vld [vmem:[%s1697_s26 + $0xf8] sm:$0xff] }
  0x27   : > { %v347_v3 = vld [vmem:[%s1697_s26 + $0x1f0] sm:$0xff]  ;;  %v348_v5 = vld [vmem:[%s1697_s26 + $0x1f8] sm:$0xff]  ;;  %v1835_v6 = vld [vmem:[%s271_s29] ss:$0 sm:$0xff] }
  0x28   : > { %1492 = vmatmul.mubr.msk.f32.gmra.mrb[6].mxu0 %vm353_vm1, %v292_v20  ;;  %v1837_v8 = vld [vmem:[%s274_s6] ss:$0 sm:$0xff] }
  0x29   : > { %1540 = vmatmul.mubr.msk.f32.gmra.mrb[6].mxu1 %vm353_vm1, %v324_v21  ;;  %1494 = vmatprep.mubr.msk.f32.mxu0 %vm353_vm1, %v293_v22 }
  0x2a   : > { %1542 = vmatprep.mubr.msk.f32.mxu1 %vm353_vm1, %v325_v23 }
  0x2c   : > { %1495 = vmatmul.mubr.msk.f32.gmra.mrb[8].mxu0 %vm353_vm1, %v294_v24 }
  0x2d   : > { %1543 = vmatmul.mubr.msk.f32.gmra.mrb[8].mxu1 %vm353_vm1, %v326_v25  ;;  %1497 = vmatprep.mubr.msk.f32.mxu0 %vm353_vm1, %v295_v26 }
  0x2e   : > { %1545 = vmatprep.mubr.msk.f32.mxu1 %vm353_vm1, %v327_v27 }
  0x30   : > { %1498 = vmatmul.mubr.msk.f32.gmra.mrb[10].mxu0 %vm353_vm1, %v296_v28 }
  0x31   : > { %1546 = vmatmul.mubr.msk.f32.gmra.mrb[10].mxu1 %vm353_vm1, %v328_v29  ;;  %1500 = vmatprep.mubr.msk.f32.mxu0 %vm353_vm1, %v297_v30 }
  0x32   : > { %1548 = vmatprep.mubr.msk.f32.mxu1 %vm353_vm1, %v329_v31 }
  0x34   : > { %1501 = vmatmul.mubr.msk.f32.gmra.mrb[12].mxu0 %vm353_vm1, %v298_v32 }
  0x35   : > { %1549 = vmatmul.mubr.msk.f32.gmra.mrb[12].mxu1 %vm353_vm1, %v330_v33  ;;  %1503 = vmatprep.mubr.msk.f32.mxu0 %vm353_vm1, %v299_v34 }
  0x36   : > { %1551 = vmatprep.mubr.msk.f32.mxu1 %vm353_vm1, %v331_v35 }
  0x38   : > { %1504 = vmatmul.mubr.msk.f32.gmra.mrb[14].mxu0 %vm353_vm1, %v300_v36 }
  0x39   : > { %1552 = vmatmul.mubr.msk.f32.gmra.mrb[14].mxu1 %vm353_vm1, %v332_v37  ;;  %1506 = vmatprep.mubr.msk.f32.mxu0 %vm353_vm1, %v301_v38 }
  0x3a   : > { %1554 = vmatprep.mubr.msk.f32.mxu1 %vm353_vm1, %v333_v39 }
  0x3c   : > { %1507 = vmatmul.mubr.msk.f32.gmra.mrb[16].mxu0 %vm353_vm1, %v302_v40 }
  0x3d   : > { %1555 = vmatmul.mubr.msk.f32.gmra.mrb[16].mxu1 %vm353_vm1, %v334_v41  ;;  %1509 = vmatprep.mubr.msk.f32.mxu0 %vm353_vm1, %v303_v42 }
  0x3e   : > { %1557 = vmatprep.mubr.msk.f32.mxu1 %vm353_vm1, %v335_v43 }
  0x40   : > { %1510 = vmatmul.mubr.msk.f32.gmra.mrb[18].mxu0 %vm353_vm1, %v304_v44 }
  0x41   : > { %1558 = vmatmul.mubr.msk.f32.gmra.mrb[18].mxu1 %vm353_vm1, %v336_v45  ;;  %1512 = vmatprep.mubr.msk.f32.mxu0 %vm353_vm1, %v305_v46 }
  0x42   : > { %1560 = vmatprep.mubr.msk.f32.mxu1 %vm353_vm1, %v337_v47 }
  0x44   : > { %1513 = vmatmul.mubr.msk.f32.gmra.mrb[20].mxu0 %vm353_vm1, %v306_v48 }
  0x45   : > { %1561 = vmatmul.mubr.msk.f32.gmra.mrb[20].mxu1 %vm353_vm1, %v338_v49  ;;  %1515 = vmatprep.mubr.msk.f32.mxu0 %vm353_vm1, %v307_v50 }
  0x46   : > { %1563 = vmatprep.mubr.msk.f32.mxu1 %vm353_vm1, %v339_v51 }
  0x48   : > { %1516 = vmatmul.mubr.msk.f32.gmra.mrb[22].mxu0 %vm353_vm1, %v308_v52 }
  0x49   : > { %1564 = vmatmul.mubr.msk.f32.gmra.mrb[22].mxu1 %vm353_vm1, %v340_v53  ;;  %1518 = vmatprep.mubr.msk.f32.mxu0 %vm353_vm1, %v309_v54 }
  0x4a   : > { %1566 = vmatprep.mubr.msk.f32.mxu1 %vm353_vm1, %v341_v55 }
  0x4c   : > { %1519 = vmatmul.mubr.msk.f32.gmra.mrb[24].mxu0 %vm353_vm1, %v310_v56 }
  0x4d   : > { %1567 = vmatmul.mubr.msk.f32.gmra.mrb[24].mxu1 %vm353_vm1, %v342_v57  ;;  %1521 = vmatprep.mubr.msk.f32.mxu0 %vm353_vm1, %v311_v58 }
  0x4e   : > { %1569 = vmatprep.mubr.msk.f32.mxu1 %vm353_vm1, %v343_v59 }
  0x50   : > { %1522 = vmatmul.mubr.msk.f32.gmra.mrb[26].mxu0 %vm353_vm1, %v312_v60 }
  0x51   : > { %1570 = vmatmul.mubr.msk.f32.gmra.mrb[26].mxu1 %vm353_vm1, %v344_v61  ;;  %1524 = vmatprep.mubr.msk.f32.mxu0 %vm353_vm1, %v313_v62 }
  0x52   : > { %1572 = vmatprep.mubr.msk.f32.mxu1 %vm353_vm1, %v345_v63 }
  0x54   : > { %1525 = vmatmul.mubr.msk.f32.gmra.mrb[28].mxu0 %vm353_vm1, %v314_v0 }
  0x55   : > { %1573 = vmatmul.mubr.msk.f32.gmra.mrb[28].mxu1 %vm353_vm1, %v346_v1  ;;  %1527 = vmatprep.mubr.msk.f32.mxu0 %vm353_vm1, %v315_v2 }
  0x56   : > { %1575 = vmatprep.mubr.msk.f32.mxu1 %vm353_vm1, %v347_v3 }
  0x58   : > { %1528 = vmatmul.mubr.msk.f32.gmra.mrb[30].mxu0 %vm353_vm1, %v316_v4 }
  0x59   : > { %1576 = vmatmul.mubr.msk.f32.gmra.mrb[30].mxu1 %vm353_vm1, %v348_v5 }
  0xef   : > { %v1484_v7 = vpop.f32.mrb[0].mxu0 }
  0xf0   : > { %v1532_v9 = vpop.f32.mrb[0].mxu1  ;;  %v943_v10 = vmul.f32 %v1484_v7, %v1835_v6  ;;  %v616_v12 = vpop.f32.mrb[1].mxu0 }
  0xf1   : > { %v975_v11 = vmul.f32 %v1532_v9, %v1835_v6  ;;  %v776_v13 = vpop.f32.mrb[1].mxu1  ;;  %v942_v14 = vmul.f32 %v1835_v6, %v616_v12 }
  0xf2   : > { %v974_v15 = vmul.f32 %v1835_v6, %v776_v13  ;;  %v1014_v16 = vadd.f32 %v1837_v8, %v943_v10 }
  0xf3   : > { %v1046_v17 = vadd.f32 %v1837_v8, %v975_v11  ;;  %v1013_v18 = vadd.f32 %v1837_v8, %v942_v14  ;;  %v1487_v20 = vpop.f32.mrb[2].mxu0 }
  0xf4   : > { %v1045_v19 = vadd.f32 %v1837_v8, %v974_v15  ;;  %v1535_v21 = vpop.f32.mrb[2].mxu1  ;;  %v1078_v22 = vmax.f32 %v1014_v16, 0.0  ;;  %v945_v24 = vmul.f32 %v1487_v20, %v1835_v6  ;;  %v626_v26 = vpop.f32.mrb[3].mxu0 }
  0xf5   : > { %v1110_v23 = vmax.f32 %v1046_v17, 0.0  ;;  %v977_v25 = vmul.f32 %v1535_v21, %v1835_v6  ;;  %v786_v27 = vpop.f32.mrb[3].mxu1  ;;  %v1077_v28 = vmax.f32 %v1013_v18, 0.0  ;;  %v944_v30 = vmul.f32 %v1835_v6, %v626_v26 }
  0xf6   : > { %v1109_v29 = vmax.f32 %v1045_v19, 0.0  ;;  %v976_v31 = vmul.f32 %v1835_v6, %v786_v27  ;;  %1143 = vst.msk [vmem:[%s1850_s9 + $0x8] sm:$0xff] %vm1141_vm4, %v1078_v22  ;;  %v1016_v32 = vadd.f32 %v1837_v8, %v945_v24 }
  0xf7   : > { %1175 = vst.msk [vmem:[%s1850_s9 + $0x108] sm:$0xff] %vm1141_vm4, %v1110_v23  ;;  %v1048_v33 = vadd.f32 %v1837_v8, %v977_v25  ;;  %1142 = vst.msk [vmem:[%s1850_s9] sm:$0xff] %vm1141_vm4, %v1077_v28  ;;  %v1015_v34 = vadd.f32 %v1837_v8, %v944_v30  ;;  %v1490_v36 = vpop.f32.mrb[4].mxu0 }
  0xf8   : > { %1174 = vst.msk [vmem:[%s1850_s9 + $0x100] sm:$0xff] %vm1141_vm4, %v1109_v29  ;;  %v1047_v35 = vadd.f32 %v1837_v8, %v976_v31  ;;  %v1538_v37 = vpop.f32.mrb[4].mxu1  ;;  %v1080_v38 = vmax.f32 %v1016_v32, 0.0  ;;  %v947_v40 = vmul.f32 %v1490_v36, %v1835_v6  ;;  %v636_v42 = vpop.f32.mrb[5].mxu0 }
  0xf9   : > { %v1112_v39 = vmax.f32 %v1048_v33, 0.0  ;;  %v979_v41 = vmul.f32 %v1538_v37, %v1835_v6  ;;  %v796_v43 = vpop.f32.mrb[5].mxu1  ;;  %v1079_v44 = vmax.f32 %v1015_v34, 0.0  ;;  %v946_v46 = vmul.f32 %v1835_v6, %v636_v42 }
  0xfa   : > { %v1111_v45 = vmax.f32 %v1047_v35, 0.0  ;;  %v978_v47 = vmul.f32 %v1835_v6, %v796_v43  ;;  %1145 = vst.msk [vmem:[%s1850_s9 + $0x18] sm:$0xff] %vm1141_vm4, %v1080_v38  ;;  %v1018_v48 = vadd.f32 %v1837_v8, %v947_v40 }
  0xfb   : > { %1177 = vst.msk [vmem:[%s1850_s9 + $0x118] sm:$0xff] %vm1141_vm4, %v1112_v39  ;;  %v1050_v49 = vadd.f32 %v1837_v8, %v979_v41  ;;  %1144 = vst.msk [vmem:[%s1850_s9 + $0x10] sm:$0xff] %vm1141_vm4, %v1079_v44  ;;  %v1017_v50 = vadd.f32 %v1837_v8, %v946_v46  ;;  %v1493_v52 = vpop.f32.mrb[6].mxu0 }
  0xfc   : > { %1176 = vst.msk [vmem:[%s1850_s9 + $0x110] sm:$0xff] %vm1141_vm4, %v1111_v45  ;;  %v1049_v51 = vadd.f32 %v1837_v8, %v978_v47  ;;  %v1541_v53 = vpop.f32.mrb[6].mxu1  ;;  %v1082_v54 = vmax.f32 %v1018_v48, 0.0  ;;  %v949_v56 = vmul.f32 %v1493_v52, %v1835_v6  ;;  %v646_v58 = vpop.f32.mrb[7].mxu0 }
  0xfd   : > { %v1114_v55 = vmax.f32 %v1050_v49, 0.0  ;;  %v981_v57 = vmul.f32 %v1541_v53, %v1835_v6  ;;  %v806_v59 = vpop.f32.mrb[7].mxu1  ;;  %v1081_v60 = vmax.f32 %v1017_v50, 0.0  ;;  %v948_v62 = vmul.f32 %v1835_v6, %v646_v58 }
  0xfe   : > { %v1113_v61 = vmax.f32 %v1049_v51, 0.0  ;;  %v980_v63 = vmul.f32 %v1835_v6, %v806_v59  ;;  %1147 = vst.msk [vmem:[%s1850_s9 + $0x28] sm:$0xff] %vm1141_vm4, %v1082_v54  ;;  %v1020_v0 = vadd.f32 %v1837_v8, %v949_v56 }
  0xff   : > { %1179 = vst.msk [vmem:[%s1850_s9 + $0x128] sm:$0xff] %vm1141_vm4, %v1114_v55  ;;  %v1052_v1 = vadd.f32 %v1837_v8, %v981_v57  ;;  %1146 = vst.msk [vmem:[%s1850_s9 + $0x20] sm:$0xff] %vm1141_vm4, %v1081_v60  ;;  %v1019_v2 = vadd.f32 %v1837_v8, %v948_v62  ;;  %v1496_v4 = vpop.f32.mrb[8].mxu0 }
 0x100   : > { %1178 = vst.msk [vmem:[%s1850_s9 + $0x120] sm:$0xff] %vm1141_vm4, %v1113_v61  ;;  %v1051_v3 = vadd.f32 %v1837_v8, %v980_v63  ;;  %v1544_v5 = vpop.f32.mrb[8].mxu1  ;;  %v1084_v7 = vmax.f32 %v1020_v0, 0.0  ;;  %v951_v10 = vmul.f32 %v1496_v4, %v1835_v6  ;;  %v656_v12 = vpop.f32.mrb[9].mxu0 }
 0x101   : > { %v1116_v9 = vmax.f32 %v1052_v1, 0.0  ;;  %v983_v11 = vmul.f32 %v1544_v5, %v1835_v6  ;;  %v816_v13 = vpop.f32.mrb[9].mxu1  ;;  %v1083_v14 = vmax.f32 %v1019_v2, 0.0  ;;  %v950_v16 = vmul.f32 %v1835_v6, %v656_v12 }
 0x102   : > { %v1115_v15 = vmax.f32 %v1051_v3, 0.0  ;;  %v982_v17 = vmul.f32 %v1835_v6, %v816_v13  ;;  %1149 = vst.msk [vmem:[%s1850_s9 + $0x38] sm:$0xff] %vm1141_vm4, %v1084_v7  ;;  %v1022_v18 = vadd.f32 %v1837_v8, %v951_v10 }
 0x103   : > { %1181 = vst.msk [vmem:[%s1850_s9 + $0x138] sm:$0xff] %vm1141_vm4, %v1116_v9  ;;  %v1054_v19 = vadd.f32 %v1837_v8, %v983_v11  ;;  %1148 = vst.msk [vmem:[%s1850_s9 + $0x30] sm:$0xff] %vm1141_vm4, %v1083_v14  ;;  %v1021_v20 = vadd.f32 %v1837_v8, %v950_v16  ;;  %v1499_v22 = vpop.f32.mrb[10].mxu0 }
 0x104   : > { %1180 = vst.msk [vmem:[%s1850_s9 + $0x130] sm:$0xff] %vm1141_vm4, %v1115_v15  ;;  %v1053_v21 = vadd.f32 %v1837_v8, %v982_v17  ;;  %v1547_v23 = vpop.f32.mrb[10].mxu1  ;;  %v1086_v24 = vmax.f32 %v1022_v18, 0.0  ;;  %v953_v26 = vmul.f32 %v1499_v22, %v1835_v6  ;;  %v666_v28 = vpop.f32.mrb[11].mxu0 }
 0x105   : > { %v1118_v25 = vmax.f32 %v1054_v19, 0.0  ;;  %v985_v27 = vmul.f32 %v1547_v23, %v1835_v6  ;;  %v826_v29 = vpop.f32.mrb[11].mxu1  ;;  %v1085_v30 = vmax.f32 %v1021_v20, 0.0  ;;  %v952_v32 = vmul.f32 %v1835_v6, %v666_v28 }
 0x106   : > { %v1117_v31 = vmax.f32 %v1053_v21, 0.0  ;;  %v984_v33 = vmul.f32 %v1835_v6, %v826_v29  ;;  %1151 = vst.msk [vmem:[%s1850_s9 + $0x48] sm:$0xff] %vm1141_vm4, %v1086_v24  ;;  %v1024_v34 = vadd.f32 %v1837_v8, %v953_v26 }
 0x107   : > { %1183 = vst.msk [vmem:[%s1850_s9 + $0x148] sm:$0xff] %vm1141_vm4, %v1118_v25  ;;  %v1056_v35 = vadd.f32 %v1837_v8, %v985_v27  ;;  %1150 = vst.msk [vmem:[%s1850_s9 + $0x40] sm:$0xff] %vm1141_vm4, %v1085_v30  ;;  %v1023_v36 = vadd.f32 %v1837_v8, %v952_v32  ;;  %v1502_v38 = vpop.f32.mrb[12].mxu0 }
 0x108   : > { %1182 = vst.msk [vmem:[%s1850_s9 + $0x140] sm:$0xff] %vm1141_vm4, %v1117_v31  ;;  %v1055_v37 = vadd.f32 %v1837_v8, %v984_v33  ;;  %v1550_v39 = vpop.f32.mrb[12].mxu1  ;;  %v1088_v40 = vmax.f32 %v1024_v34, 0.0  ;;  %v955_v42 = vmul.f32 %v1502_v38, %v1835_v6  ;;  %v676_v44 = vpop.f32.mrb[13].mxu0 }
 0x109   : > { %v1120_v41 = vmax.f32 %v1056_v35, 0.0  ;;  %v987_v43 = vmul.f32 %v1550_v39, %v1835_v6  ;;  %v836_v45 = vpop.f32.mrb[13].mxu1  ;;  %v1087_v46 = vmax.f32 %v1023_v36, 0.0  ;;  %v954_v48 = vmul.f32 %v1835_v6, %v676_v44 }
 0x10a   : > { %v1119_v47 = vmax.f32 %v1055_v37, 0.0  ;;  %v986_v49 = vmul.f32 %v1835_v6, %v836_v45  ;;  %1153 = vst.msk [vmem:[%s1850_s9 + $0x58] sm:$0xff] %vm1141_vm4, %v1088_v40  ;;  %v1026_v50 = vadd.f32 %v1837_v8, %v955_v42 }
 0x10b   : > { %1185 = vst.msk [vmem:[%s1850_s9 + $0x158] sm:$0xff] %vm1141_vm4, %v1120_v41  ;;  %v1058_v51 = vadd.f32 %v1837_v8, %v987_v43  ;;  %1152 = vst.msk [vmem:[%s1850_s9 + $0x50] sm:$0xff] %vm1141_vm4, %v1087_v46  ;;  %v1025_v52 = vadd.f32 %v1837_v8, %v954_v48  ;;  %v1505_v54 = vpop.f32.mrb[14].mxu0 }
 0x10c   : > { %1184 = vst.msk [vmem:[%s1850_s9 + $0x150] sm:$0xff] %vm1141_vm4, %v1119_v47  ;;  %v1057_v53 = vadd.f32 %v1837_v8, %v986_v49  ;;  %v1553_v55 = vpop.f32.mrb[14].mxu1  ;;  %v1090_v56 = vmax.f32 %v1026_v50, 0.0  ;;  %v957_v58 = vmul.f32 %v1505_v54, %v1835_v6  ;;  %v686_v60 = vpop.f32.mrb[15].mxu0 }
 0x10d   : > { %v1122_v57 = vmax.f32 %v1058_v51, 0.0  ;;  %v989_v59 = vmul.f32 %v1553_v55, %v1835_v6  ;;  %v846_v61 = vpop.f32.mrb[15].mxu1  ;;  %v1089_v62 = vmax.f32 %v1025_v52, 0.0  ;;  %v956_v0 = vmul.f32 %v1835_v6, %v686_v60 }
 0x10e   : > { %v1121_v63 = vmax.f32 %v1057_v53, 0.0  ;;  %v988_v1 = vmul.f32 %v1835_v6, %v846_v61  ;;  %1155 = vst.msk [vmem:[%s1850_s9 + $0x68] sm:$0xff] %vm1141_vm4, %v1090_v56  ;;  %v1028_v2 = vadd.f32 %v1837_v8, %v957_v58 }
 0x10f   : > { %1187 = vst.msk [vmem:[%s1850_s9 + $0x168] sm:$0xff] %vm1141_vm4, %v1122_v57  ;;  %v1060_v3 = vadd.f32 %v1837_v8, %v989_v59  ;;  %1154 = vst.msk [vmem:[%s1850_s9 + $0x60] sm:$0xff] %vm1141_vm4, %v1089_v62  ;;  %v1027_v4 = vadd.f32 %v1837_v8, %v956_v0  ;;  %v1508_v7 = vpop.f32.mrb[16].mxu0 }
 0x110   : > { %1186 = vst.msk [vmem:[%s1850_s9 + $0x160] sm:$0xff] %vm1141_vm4, %v1121_v63  ;;  %v1059_v5 = vadd.f32 %v1837_v8, %v988_v1  ;;  %v1556_v9 = vpop.f32.mrb[16].mxu1  ;;  %v1092_v10 = vmax.f32 %v1028_v2, 0.0  ;;  %v959_v12 = vmul.f32 %v1508_v7, %v1835_v6  ;;  %v696_v14 = vpop.f32.mrb[17].mxu0 }
 0x111   : > { %v1124_v11 = vmax.f32 %v1060_v3, 0.0  ;;  %v991_v13 = vmul.f32 %v1556_v9, %v1835_v6  ;;  %v856_v15 = vpop.f32.mrb[17].mxu1  ;;  %v1091_v16 = vmax.f32 %v1027_v4, 0.0  ;;  %v958_v18 = vmul.f32 %v1835_v6, %v696_v14 }
 0x112   : > { %v1123_v17 = vmax.f32 %v1059_v5, 0.0  ;;  %v990_v19 = vmul.f32 %v1835_v6, %v856_v15  ;;  %1157 = vst.msk [vmem:[%s1850_s9 + $0x78] sm:$0xff] %vm1141_vm4, %v1092_v10  ;;  %v1030_v20 = vadd.f32 %v1837_v8, %v959_v12 }
 0x113   : > { %1189 = vst.msk [vmem:[%s1850_s9 + $0x178] sm:$0xff] %vm1141_vm4, %v1124_v11  ;;  %v1062_v21 = vadd.f32 %v1837_v8, %v991_v13  ;;  %1156 = vst.msk [vmem:[%s1850_s9 + $0x70] sm:$0xff] %vm1141_vm4, %v1091_v16  ;;  %v1029_v22 = vadd.f32 %v1837_v8, %v958_v18  ;;  %v1511_v24 = vpop.f32.mrb[18].mxu0 }
 0x114   : > { %1188 = vst.msk [vmem:[%s1850_s9 + $0x170] sm:$0xff] %vm1141_vm4, %v1123_v17  ;;  %v1061_v23 = vadd.f32 %v1837_v8, %v990_v19  ;;  %v1559_v25 = vpop.f32.mrb[18].mxu1  ;;  %v1094_v26 = vmax.f32 %v1030_v20, 0.0  ;;  %v961_v28 = vmul.f32 %v1511_v24, %v1835_v6  ;;  %v706_v30 = vpop.f32.mrb[19].mxu0 }
 0x115   : > { %v1126_v27 = vmax.f32 %v1062_v21, 0.0  ;;  %v993_v29 = vmul.f32 %v1559_v25, %v1835_v6  ;;  %v866_v31 = vpop.f32.mrb[19].mxu1  ;;  %v1093_v32 = vmax.f32 %v1029_v22, 0.0  ;;  %v960_v34 = vmul.f32 %v1835_v6, %v706_v30 }
 0x116   : > { %v1125_v33 = vmax.f32 %v1061_v23, 0.0  ;;  %v992_v35 = vmul.f32 %v1835_v6, %v866_v31  ;;  %1159 = vst.msk [vmem:[%s1850_s9 + $0x88] sm:$0xff] %vm1141_vm4, %v1094_v26  ;;  %v1032_v36 = vadd.f32 %v1837_v8, %v961_v28 }
 0x117   : > { %1191 = vst.msk [vmem:[%s1850_s9 + $0x188] sm:$0xff] %vm1141_vm4, %v1126_v27  ;;  %v1064_v37 = vadd.f32 %v1837_v8, %v993_v29  ;;  %1158 = vst.msk [vmem:[%s1850_s9 + $0x80] sm:$0xff] %vm1141_vm4, %v1093_v32  ;;  %v1031_v38 = vadd.f32 %v1837_v8, %v960_v34  ;;  %v1514_v40 = vpop.f32.mrb[20].mxu0 }
 0x118   : > { %1190 = vst.msk [vmem:[%s1850_s9 + $0x180] sm:$0xff] %vm1141_vm4, %v1125_v33  ;;  %v1063_v39 = vadd.f32 %v1837_v8, %v992_v35  ;;  %v1562_v41 = vpop.f32.mrb[20].mxu1  ;;  %v1096_v42 = vmax.f32 %v1032_v36, 0.0  ;;  %v963_v44 = vmul.f32 %v1514_v40, %v1835_v6  ;;  %v716_v46 = vpop.f32.mrb[21].mxu0 }
 0x119   : > { %v1128_v43 = vmax.f32 %v1064_v37, 0.0  ;;  %v995_v45 = vmul.f32 %v1562_v41, %v1835_v6  ;;  %v876_v47 = vpop.f32.mrb[21].mxu1  ;;  %v1095_v48 = vmax.f32 %v1031_v38, 0.0  ;;  %v962_v50 = vmul.f32 %v1835_v6, %v716_v46 }
 0x11a   : > { %v1127_v49 = vmax.f32 %v1063_v39, 0.0  ;;  %v994_v51 = vmul.f32 %v1835_v6, %v876_v47  ;;  %1161 = vst.msk [vmem:[%s1850_s9 + $0x98] sm:$0xff] %vm1141_vm4, %v1096_v42  ;;  %v1034_v52 = vadd.f32 %v1837_v8, %v963_v44 }
 0x11b   : > { %1193 = vst.msk [vmem:[%s1850_s9 + $0x198] sm:$0xff] %vm1141_vm4, %v1128_v43  ;;  %v1066_v53 = vadd.f32 %v1837_v8, %v995_v45  ;;  %1160 = vst.msk [vmem:[%s1850_s9 + $0x90] sm:$0xff] %vm1141_vm4, %v1095_v48  ;;  %v1033_v54 = vadd.f32 %v1837_v8, %v962_v50  ;;  %v1517_v56 = vpop.f32.mrb[22].mxu0 }
 0x11c   : > { %1192 = vst.msk [vmem:[%s1850_s9 + $0x190] sm:$0xff] %vm1141_vm4, %v1127_v49  ;;  %v1065_v55 = vadd.f32 %v1837_v8, %v994_v51  ;;  %v1565_v57 = vpop.f32.mrb[22].mxu1  ;;  %v1098_v58 = vmax.f32 %v1034_v52, 0.0  ;;  %v965_v60 = vmul.f32 %v1517_v56, %v1835_v6  ;;  %v726_v62 = vpop.f32.mrb[23].mxu0 }
 0x11d   : > { %v1130_v59 = vmax.f32 %v1066_v53, 0.0  ;;  %v997_v61 = vmul.f32 %v1565_v57, %v1835_v6  ;;  %v886_v63 = vpop.f32.mrb[23].mxu1  ;;  %v1097_v0 = vmax.f32 %v1033_v54, 0.0  ;;  %v964_v2 = vmul.f32 %v1835_v6, %v726_v62 }
 0x11e   : > { %v1129_v1 = vmax.f32 %v1065_v55, 0.0  ;;  %v996_v3 = vmul.f32 %v1835_v6, %v886_v63  ;;  %1163 = vst.msk [vmem:[%s1850_s9 + $0xa8] sm:$0xff] %vm1141_vm4, %v1098_v58  ;;  %v1036_v4 = vadd.f32 %v1837_v8, %v965_v60 }
 0x11f   : > { %1195 = vst.msk [vmem:[%s1850_s9 + $0x1a8] sm:$0xff] %vm1141_vm4, %v1130_v59  ;;  %v1068_v5 = vadd.f32 %v1837_v8, %v997_v61  ;;  %1162 = vst.msk [vmem:[%s1850_s9 + $0xa0] sm:$0xff] %vm1141_vm4, %v1097_v0  ;;  %v1035_v7 = vadd.f32 %v1837_v8, %v964_v2  ;;  %v1520_v10 = vpop.f32.mrb[24].mxu0 }
 0x120   : > { %1194 = vst.msk [vmem:[%s1850_s9 + $0x1a0] sm:$0xff] %vm1141_vm4, %v1129_v1  ;;  %v1067_v9 = vadd.f32 %v1837_v8, %v996_v3  ;;  %v1568_v11 = vpop.f32.mrb[24].mxu1  ;;  %v1100_v12 = vmax.f32 %v1036_v4, 0.0  ;;  %v967_v14 = vmul.f32 %v1520_v10, %v1835_v6  ;;  %v736_v16 = vpop.f32.mrb[25].mxu0 }
 0x121   : > { %v1132_v13 = vmax.f32 %v1068_v5, 0.0  ;;  %v999_v15 = vmul.f32 %v1568_v11, %v1835_v6  ;;  %v896_v17 = vpop.f32.mrb[25].mxu1  ;;  %v1099_v18 = vmax.f32 %v1035_v7, 0.0  ;;  %v966_v20 = vmul.f32 %v1835_v6, %v736_v16 }
 0x122   : > { %v1131_v19 = vmax.f32 %v1067_v9, 0.0  ;;  %v998_v21 = vmul.f32 %v1835_v6, %v896_v17  ;;  %1165 = vst.msk [vmem:[%s1850_s9 + $0xb8] sm:$0xff] %vm1141_vm4, %v1100_v12  ;;  %v1038_v22 = vadd.f32 %v1837_v8, %v967_v14 }
 0x123   : > { %1197 = vst.msk [vmem:[%s1850_s9 + $0x1b8] sm:$0xff] %vm1141_vm4, %v1132_v13  ;;  %v1070_v23 = vadd.f32 %v1837_v8, %v999_v15  ;;  %1164 = vst.msk [vmem:[%s1850_s9 + $0xb0] sm:$0xff] %vm1141_vm4, %v1099_v18  ;;  %v1037_v24 = vadd.f32 %v1837_v8, %v966_v20  ;;  %v1523_v26 = vpop.f32.mrb[26].mxu0 }
 0x124   : > { %1196 = vst.msk [vmem:[%s1850_s9 + $0x1b0] sm:$0xff] %vm1141_vm4, %v1131_v19  ;;  %v1069_v25 = vadd.f32 %v1837_v8, %v998_v21  ;;  %v1571_v27 = vpop.f32.mrb[26].mxu1  ;;  %v1102_v28 = vmax.f32 %v1038_v22, 0.0  ;;  %v969_v30 = vmul.f32 %v1523_v26, %v1835_v6  ;;  %v746_v32 = vpop.f32.mrb[27].mxu0 }
 0x125   : > { %v1134_v29 = vmax.f32 %v1070_v23, 0.0  ;;  %v1001_v31 = vmul.f32 %v1571_v27, %v1835_v6  ;;  %v906_v33 = vpop.f32.mrb[27].mxu1  ;;  %v1101_v34 = vmax.f32 %v1037_v24, 0.0  ;;  %v968_v36 = vmul.f32 %v1835_v6, %v746_v32 }
 0x126   : > { %v1133_v35 = vmax.f32 %v1069_v25, 0.0  ;;  %v1000_v37 = vmul.f32 %v1835_v6, %v906_v33  ;;  %1167 = vst.msk [vmem:[%s1850_s9 + $0xc8] sm:$0xff] %vm1141_vm4, %v1102_v28  ;;  %v1040_v38 = vadd.f32 %v1837_v8, %v969_v30 }
 0x127   : > { %1199 = vst.msk [vmem:[%s1850_s9 + $0x1c8] sm:$0xff] %vm1141_vm4, %v1134_v29  ;;  %v1072_v39 = vadd.f32 %v1837_v8, %v1001_v31  ;;  %1166 = vst.msk [vmem:[%s1850_s9 + $0xc0] sm:$0xff] %vm1141_vm4, %v1101_v34  ;;  %v1039_v40 = vadd.f32 %v1837_v8, %v968_v36  ;;  %v1526_v42 = vpop.f32.mrb[28].mxu0 }
 0x128   : > { %1198 = vst.msk [vmem:[%s1850_s9 + $0x1c0] sm:$0xff] %vm1141_vm4, %v1133_v35  ;;  %v1071_v41 = vadd.f32 %v1837_v8, %v1000_v37  ;;  %v1574_v43 = vpop.f32.mrb[28].mxu1  ;;  %v1104_v44 = vmax.f32 %v1040_v38, 0.0  ;;  %v971_v46 = vmul.f32 %v1526_v42, %v1835_v6  ;;  %v756_v48 = vpop.f32.mrb[29].mxu0 }
 0x129   : > { %v1136_v45 = vmax.f32 %v1072_v39, 0.0  ;;  %v1003_v47 = vmul.f32 %v1574_v43, %v1835_v6  ;;  %v916_v49 = vpop.f32.mrb[29].mxu1  ;;  %v1103_v50 = vmax.f32 %v1039_v40, 0.0  ;;  %v970_v52 = vmul.f32 %v1835_v6, %v756_v48 }
 0x12a   : > { %v1135_v51 = vmax.f32 %v1071_v41, 0.0  ;;  %v1002_v53 = vmul.f32 %v1835_v6, %v916_v49  ;;  %1169 = vst.msk [vmem:[%s1850_s9 + $0xd8] sm:$0xff] %vm1141_vm4, %v1104_v44  ;;  %v1042_v54 = vadd.f32 %v1837_v8, %v971_v46 }
 0x12b   : > { %1201 = vst.msk [vmem:[%s1850_s9 + $0x1d8] sm:$0xff] %vm1141_vm4, %v1136_v45  ;;  %v1074_v55 = vadd.f32 %v1837_v8, %v1003_v47  ;;  %1168 = vst.msk [vmem:[%s1850_s9 + $0xd0] sm:$0xff] %vm1141_vm4, %v1103_v50  ;;  %v1041_v56 = vadd.f32 %v1837_v8, %v970_v52  ;;  %v1529_v58 = vpop.f32.mrb[30].mxu0 }
 0x12c   : > { %1200 = vst.msk [vmem:[%s1850_s9 + $0x1d0] sm:$0xff] %vm1141_vm4, %v1135_v51  ;;  %v1073_v57 = vadd.f32 %v1837_v8, %v1002_v53  ;;  %v1577_v59 = vpop.f32.mrb[30].mxu1  ;;  %v1106_v60 = vmax.f32 %v1042_v54, 0.0  ;;  %v973_v62 = vmul.f32 %v1529_v58, %v1835_v6  ;;  %v766_v0 = vpop.f32.mrb[31].mxu0 }
 0x12d   : > { %v1138_v61 = vmax.f32 %v1074_v55, 0.0  ;;  %v1005_v63 = vmul.f32 %v1577_v59, %v1835_v6  ;;  %v926_v1 = vpop.f32.mrb[31].mxu1  ;;  %v1105_v2 = vmax.f32 %v1041_v56, 0.0  ;;  %v972_v4 = vmul.f32 %v1835_v6, %v766_v0 }
 0x12e   : > { %v1137_v3 = vmax.f32 %v1073_v57, 0.0  ;;  %v1004_v5 = vmul.f32 %v1835_v6, %v926_v1  ;;  %1171 = vst.msk [vmem:[%s1850_s9 + $0xe8] sm:$0xff] %vm1141_vm4, %v1106_v60  ;;  %v1044_v7 = vadd.f32 %v1837_v8, %v973_v62 }
 0x12f   : > { %1203 = vst.msk [vmem:[%s1850_s9 + $0x1e8] sm:$0xff] %vm1141_vm4, %v1138_v61  ;;  %v1076_v9 = vadd.f32 %v1837_v8, %v1005_v63  ;;  %1170 = vst.msk [vmem:[%s1850_s9 + $0xe0] sm:$0xff] %vm1141_vm4, %v1105_v2  ;;  %v1043_v10 = vadd.f32 %v1837_v8, %v972_v4 }
 0x130   : > { %1202 = vst.msk [vmem:[%s1850_s9 + $0x1e0] sm:$0xff] %vm1141_vm4, %v1137_v3  ;;  %v1075_v11 = vadd.f32 %v1837_v8, %v1004_v5  ;;  %v1108_v12 = vmax.f32 %v1044_v7, 0.0 }
 0x131   : > { %v1140_v13 = vmax.f32 %v1076_v9, 0.0  ;;  %v1107_v6 = vmax.f32 %v1043_v10, 0.0 }
 0x132   : > { %v1139_v14 = vmax.f32 %v1075_v11, 0.0  ;;  %1173 = vst.msk [vmem:[%s1850_s9 + $0xf8] sm:$0xff] %vm1141_vm4, %v1108_v12 }
 0x133   : > { %1205 = vst.msk [vmem:[%s1850_s9 + $0x1f8] sm:$0xff] %vm1141_vm4, %v1140_v13  ;;  %1172 = vst.msk [vmem:[%s1850_s9 + $0xf0] sm:$0xff] %vm1141_vm4, %v1107_v6 }
 0x134   : > { %1204 = vst.msk [vmem:[%s1850_s9 + $0x1f0] sm:$0xff] %vm1141_vm4, %v1139_v14 }
 0x135 PF: > { %s14_s17 = sadd.s32 1, %s1639_s17   ;;  %s2116_s15 = smov %s1635_s16 }
 0x136   : > { %p11_p5 = scmp.ge.s32.totalorder %s14_s17, 6   ;;  %s2117_s16 = smov %s2119_s18 }
 0x138   :  { %13 = sbr.rel (!%p11_p5) target bundleno = 2 (0x2), region = 75 }

// kernel: rfb7a_hs_att_forward.23
= control target key start
LH: loop header
LB: loop body
LE: loop exit
PB: predicated region body
PF: predicated region fallthrough
CT: control target
= control target key end

     0   :  { %s1797_s18 = smov 0   ;;  %s1799_s19 = smov 0   ;;  %s2386_s0 = inlined_call_operand.vmem [shape: f32[4,512,72], index: 0, kind: input, shape index: {}]   ;;  %s2387_s1 = inlined_call_operand.vmem [shape: f32[4,72,10], index: 1, kind: input, shape index: {}]   ;;  %s2388_s2 = inlined_call_operand.vmem [shape: f32[4,1,10], index: 2, kind: input, shape index: {}]   ;;  %s2389_s3 = inlined_call_operand.vmem [shape: f32[4,1,10], index: 3, kind: input, shape index: {}]   ;;  %s2390_s4 = inlined_call_operand.vmem [shape: f32[1,10], index: 4, kind: input, shape index: {}]   ;;  %s2391_s5 = inlined_call_operand.vmem [shape: f32[4,512,10], index: 5, kind: output, shape index: {}]  }
   0x1   :  { %s1801_s20 = smov 0  }
   0x2 LB: > { %s27_s21 = sadd.s32 1, %s1760_s19  ;;  %p1427_p0 = scmp.ge.s32.totalorder %s1764_s20, 1  ;;  %s1764_s20 = sphi %s1801_s20, %s15_s20   ;;  %s1760_s19 = sphi %s1799_s19, %s2393_s19   ;;  %s1756_s18 = sphi %s1797_s18, %s2392_s18  }
   0x3   : > { %p29_p1 = scmp.ge.s32.totalorder %s27_s21, 4  ;;  %p234_p2 = scmp.lt.s32.totalorder %s1764_s20, 5 }
   0x5   : > { %s2395_s21 = smov (%p29_p1, %s27_s21), 0  ;;  %p235_p3 = pnand %p1427_p0, %p234_p2 }
   0x6   : > { %p282_p4 = scmp.lt.s32.totalorder (!%p235_p3), %s1756_s18, 3  ;;  %vm385_vm0 = vcmask (!%p235_p3), 588800   ;;  %vm1241_vm3 = vcmask (!%p235_p3), 80896  }
   0x7   : > { %238 = sbr.rel (%p235_p3) target bundleno = 322 (0x142), region = 40 }
   0xe   : > { %s2397_s18 = smov (!%p282_p4, %s1756_s18), 3 }
   0xf   : > { %s1716_s22 = smul.u32 72, %s2397_s18  ;;  %s1501_s23 = sshll.u32 %s2397_s18, 9 }
  0x10   : > { %s1824_s26 = scalar_lea.vmem %s2386_s0, %s1501_s23  ;;  %s298_s9 = scalar_lea.vmem %s2388_s2, %s2397_s18 }
  0x11   : > { %s1829_s29 = scalar_lea.vmem %s2387_s1, %s1716_s22  ;;  %v312_v0 = vld [vmem:[%s1824_s26] sm:$0xff]  ;;  %v313_v15 = vld [vmem:[%s1824_s26 + $0x8] sm:$0xff]  ;;  %v314_v17 = vld [vmem:[%s1824_s26 + $0x10] sm:$0xff]  ;;  %s301_s12 = scalar_lea.vmem %s2389_s3, %s2397_s18 }
  0x12   : > { %v344_v1 = vld [vmem:[%s1824_s26 + $0x100] sm:$0xff]  ;;  %v377_v3 = vld [vmem:[%s1829_s29 + $0x8] sm:$0xff]  ;;  %v378_v4 = vld [vmem:[%s1829_s29 + $0x10] sm:$0xff]  ;;  %1594 = vmatprep.mubr.msk.f32.mxu0 %vm385_vm0, %v312_v0  ;;  %s1999_s15 = scalar_lea.vmem %s2391_s5, %s1501_s23 }
  0x13   : > { %v376_v2 = vld [vmem:[%s1829_s29] sm:$0xff]  ;;  %1642 = vmatprep.mubr.msk.f32.mxu1 %vm385_vm0, %v344_v1  ;;  %v379_v6 = vld [vmem:[%s1829_s29 + $0x18] sm:$0xff]  ;;  %v381_v9 = vld [vmem:[%s1829_s29 + $0x28] sm:$0xff] }
  0x14   : > { %v1690_v5 = vpack.c.bf16 %v377_v3, %v376_v2  ;;  %v1694_v7 = vpack.c.bf16 %v379_v6, %v378_v4  ;;  %v380_v8 = vld [vmem:[%s1829_s29 + $0x20] sm:$0xff]  ;;  %v382_v11 = vld [vmem:[%s1829_s29 + $0x30] sm:$0xff]  ;;  %v383_v12 = vld [vmem:[%s1829_s29 + $0x38] sm:$0xff] }
  0x15   : > { %v1698_v10 = vpack.c.bf16 %v381_v9, %v380_v8  ;;  %v1702_v13 = vpack.c.bf16 %v383_v12, %v382_v11  ;;  %v384_v14 = vld [vmem:[%s1829_s29 + $0x40] sm:$0xff]  ;;  %v345_v16 = vld [vmem:[%s1824_s26 + $0x108] sm:$0xff]  ;;  %v346_v18 = vld [vmem:[%s1824_s26 + $0x110] sm:$0xff] }
  0x16   : > { %1691 = vmatprep.subr.bf16.mxu0 %v1690_v5  ;;  %1706 = vmatprep.subr.bf16.mxu1 %v1690_v5  ;;  %v315_v19 = vld [vmem:[%s1824_s26 + $0x18] sm:$0xff]  ;;  %v316_v21 = vld [vmem:[%s1824_s26 + $0x20] sm:$0xff]  ;;  %v317_v23 = vld [vmem:[%s1824_s26 + $0x28] sm:$0xff] }
  0x17   : > { %1693 = vmatpush3.bf16.msra.mxu0 %v1690_v5  ;;  %1711 = vmatpush3.bf16.msra.mxu1 %v1690_v5  ;;  %v347_v20 = vld [vmem:[%s1824_s26 + $0x118] sm:$0xff]  ;;  %v348_v22 = vld [vmem:[%s1824_s26 + $0x120] sm:$0xff]  ;;  %v349_v24 = vld [vmem:[%s1824_s26 + $0x128] sm:$0xff] }
  0x18   : > { %1695 = vmatprep.subr.bf16.mxu0 %v1694_v7  ;;  %1707 = vmatprep.subr.bf16.mxu1 %v1694_v7  ;;  %v318_v25 = vld [vmem:[%s1824_s26 + $0x30] sm:$0xff]  ;;  %v319_v27 = vld [vmem:[%s1824_s26 + $0x38] sm:$0xff]  ;;  %v320_v29 = vld [vmem:[%s1824_s26 + $0x40] sm:$0xff] }
  0x19   : > { %v350_v26 = vld [vmem:[%s1824_s26 + $0x130] sm:$0xff]  ;;  %v351_v28 = vld [vmem:[%s1824_s26 + $0x138] sm:$0xff]  ;;  %v352_v30 = vld [vmem:[%s1824_s26 + $0x140] sm:$0xff] }
  0x1a   : > { %v321_v31 = vld [vmem:[%s1824_s26 + $0x48] sm:$0xff]  ;;  %v322_v33 = vld [vmem:[%s1824_s26 + $0x50] sm:$0xff]  ;;  %v323_v35 = vld [vmem:[%s1824_s26 + $0x58] sm:$0xff] }
  0x1b   : > { %1697 = vmatpush3.bf16.msra.mxu0 %v1694_v7  ;;  %1712 = vmatpush3.bf16.msra.mxu1 %v1694_v7  ;;  %v353_v32 = vld [vmem:[%s1824_s26 + $0x148] sm:$0xff]  ;;  %v354_v34 = vld [vmem:[%s1824_s26 + $0x150] sm:$0xff]  ;;  %v355_v36 = vld [vmem:[%s1824_s26 + $0x158] sm:$0xff] }
  0x1c   : > { %1699 = vmatprep.subr.bf16.mxu0 %v1698_v10  ;;  %1708 = vmatprep.subr.bf16.mxu1 %v1698_v10  ;;  %v324_v37 = vld [vmem:[%s1824_s26 + $0x60] sm:$0xff]  ;;  %v325_v39 = vld [vmem:[%s1824_s26 + $0x68] sm:$0xff]  ;;  %v326_v41 = vld [vmem:[%s1824_s26 + $0x70] sm:$0xff] }
  0x1d   : > { %v356_v38 = vld [vmem:[%s1824_s26 + $0x160] sm:$0xff]  ;;  %v357_v40 = vld [vmem:[%s1824_s26 + $0x168] sm:$0xff]  ;;  %v358_v42 = vld [vmem:[%s1824_s26 + $0x170] sm:$0xff] }
  0x1e   : > { %v327_v43 = vld [vmem:[%s1824_s26 + $0x78] sm:$0xff]  ;;  %v328_v45 = vld [vmem:[%s1824_s26 + $0x80] sm:$0xff]  ;;  %v329_v47 = vld [vmem:[%s1824_s26 + $0x88] sm:$0xff] }
  0x1f   : > { %1701 = vmatpush3.bf16.msra.mxu0 %v1698_v10  ;;  %1713 = vmatpush3.bf16.msra.mxu1 %v1698_v10  ;;  %v359_v44 = vld [vmem:[%s1824_s26 + $0x178] sm:$0xff]  ;;  %v360_v46 = vld [vmem:[%s1824_s26 + $0x180] sm:$0xff]  ;;  %v361_v48 = vld [vmem:[%s1824_s26 + $0x188] sm:$0xff] }
  0x20   : > { %1703 = vmatprep.subr.bf16.mxu0 %v1702_v13  ;;  %1709 = vmatprep.subr.bf16.mxu1 %v1702_v13  ;;  %v330_v49 = vld [vmem:[%s1824_s26 + $0x90] sm:$0xff]  ;;  %v331_v51 = vld [vmem:[%s1824_s26 + $0x98] sm:$0xff]  ;;  %v332_v53 = vld [vmem:[%s1824_s26 + $0xa0] sm:$0xff] }
  0x21   : > { %v362_v50 = vld [vmem:[%s1824_s26 + $0x190] sm:$0xff]  ;;  %v363_v52 = vld [vmem:[%s1824_s26 + $0x198] sm:$0xff]  ;;  %v364_v54 = vld [vmem:[%s1824_s26 + $0x1a0] sm:$0xff] }
  0x22   : > { %v333_v55 = vld [vmem:[%s1824_s26 + $0xa8] sm:$0xff]  ;;  %v334_v57 = vld [vmem:[%s1824_s26 + $0xb0] sm:$0xff]  ;;  %v335_v59 = vld [vmem:[%s1824_s26 + $0xb8] sm:$0xff] }
  0x23   : > { %1705 = vmatpush3.bf16.msra.mxu0 %v1702_v13  ;;  %1714 = vmatpush3.bf16.msra.mxu1 %v1702_v13  ;;  %v365_v56 = vld [vmem:[%s1824_s26 + $0x1a8] sm:$0xff]  ;;  %v366_v58 = vld [vmem:[%s1824_s26 + $0x1b0] sm:$0xff]  ;;  %v367_v60 = vld [vmem:[%s1824_s26 + $0x1b8] sm:$0xff]  ;;  %v1172_v13 = vlaneseq }
  0x24   : > { %1592 = vmatprep.subr.mxu0 %v384_v14  ;;  %1710 = vmatprep.subr.mxu1 %v384_v14  ;;  %v336_v61 = vld [vmem:[%s1824_s26 + $0xc0] sm:$0xff]  ;;  %v337_v63 = vld [vmem:[%s1824_s26 + $0xc8] sm:$0xff]  ;;  %v338_v1 = vld [vmem:[%s1824_s26 + $0xd0] sm:$0xff] }
  0x25   : > { %v368_v62 = vld [vmem:[%s1824_s26 + $0x1c0] sm:$0xff]  ;;  %v369_v0 = vld [vmem:[%s1824_s26 + $0x1c8] sm:$0xff]  ;;  %v370_v2 = vld [vmem:[%s1824_s26 + $0x1d0] sm:$0xff] }
  0x26   : > { %v339_v3 = vld [vmem:[%s1824_s26 + $0xd8] sm:$0xff]  ;;  %v340_v5 = vld [vmem:[%s1824_s26 + $0xe0] sm:$0xff]  ;;  %v341_v7 = vld [vmem:[%s1824_s26 + $0xe8] sm:$0xff] }
  0x27   : > { %1593 = vmatpush3.msra.mxu0 %v384_v14  ;;  %1715 = vmatpush3.msra.mxu1 %v384_v14  ;;  %v371_v4 = vld [vmem:[%s1824_s26 + $0x1d8] sm:$0xff]  ;;  %v372_v6 = vld [vmem:[%s1824_s26 + $0x1e0] sm:$0xff]  ;;  %v373_v8 = vld [vmem:[%s1824_s26 + $0x1e8] sm:$0xff] }
  0x28   : > { %1595 = vmatmul.mubr.msk.f32.vlgmr.msra.gmra.mrb[0].mxu0 %vm385_vm0, %v313_v15  ;;  %1643 = vmatmul.mubr.msk.f32.vlgmr.msra.gmra.mrb[0].mxu1 %vm385_vm0, %v345_v16  ;;  %v342_v9 = vld [vmem:[%s1824_s26 + $0xf0] sm:$0xff]  ;;  %v343_v11 = vld [vmem:[%s1824_s26 + $0xf8] sm:$0xff]  ;;  %v1105_v14 = vld [vmem:[%s2390_s4] sm:$0x1]  ;;  %v1173_v15 = vshrl.u32 %v1172_v13, 7 }
  0x29   : > { %1597 = vmatprep.mubr.msk.f32.mxu0 %vm385_vm0, %v314_v17  ;;  %1645 = vmatprep.mubr.msk.f32.mxu1 %vm385_vm0, %v346_v18  ;;  %v374_v10 = vld [vmem:[%s1824_s26 + $0x1f0] sm:$0xff]  ;;  %v375_v12 = vld [vmem:[%s1824_s26 + $0x1f8] sm:$0xff]  ;;  %vm1106_vm1 = vcmp.gt.f32.partialorder %v1105_v14, 0.5  ;;  %v1766_v17 = vmov 0  }
  0x2a   : > { %v1174_v16 = vsub.s32 0, %v1173_v15  ;;  %v1171_v18 = vsel %vm1106_vm1, 1, %v1766_v17 }
  0x2c   : > { %1598 = vmatmul.mubr.msk.f32.gmra.mrb[2].mxu0 %vm385_vm0, %v315_v19  ;;  %1646 = vmatmul.mubr.msk.f32.gmra.mrb[2].mxu1 %vm385_vm0, %v347_v20  ;;  %v1979_v19 = vld [vmem:[%s298_s9] ss:$0 sm:$0xff] }
  0x2d   : > { %1600 = vmatprep.mubr.msk.f32.mxu0 %vm385_vm0, %v316_v21  ;;  %1648 = vmatprep.mubr.msk.f32.mxu1 %vm385_vm0, %v348_v22  ;;  %v1981_v21 = vld [vmem:[%s301_s12] ss:$0 sm:$0xff]  ;;  %v1983_v22 = vrot.slane %v1171_v18, %v1174_v16 }
  0x2f   : > { %vm1176_vm2 = vcmp.eq.s32.totalorder %v1983_v22, 1 }
  0x30   : > { %1601 = vmatmul.mubr.msk.f32.gmra.mrb[4].mxu0 %vm385_vm0, %v317_v23  ;;  %1649 = vmatmul.mubr.msk.f32.gmra.mrb[4].mxu1 %vm385_vm0, %v349_v24 }
  0x31   : > { %1603 = vmatprep.mubr.msk.f32.mxu0 %vm385_vm0, %v318_v25  ;;  %1651 = vmatprep.mubr.msk.f32.mxu1 %vm385_vm0, %v350_v26 }
  0x34   : > { %1604 = vmatmul.mubr.msk.f32.gmra.mrb[6].mxu0 %vm385_vm0, %v319_v27  ;;  %1652 = vmatmul.mubr.msk.f32.gmra.mrb[6].mxu1 %vm385_vm0, %v351_v28 }
  0x35   : > { %1606 = vmatprep.mubr.msk.f32.mxu0 %vm385_vm0, %v320_v29  ;;  %1654 = vmatprep.mubr.msk.f32.mxu1 %vm385_vm0, %v352_v30 }
  0x38   : > { %1607 = vmatmul.mubr.msk.f32.gmra.mrb[8].mxu0 %vm385_vm0, %v321_v31  ;;  %1655 = vmatmul.mubr.msk.f32.gmra.mrb[8].mxu1 %vm385_vm0, %v353_v32 }
  0x39   : > { %1609 = vmatprep.mubr.msk.f32.mxu0 %vm385_vm0, %v322_v33  ;;  %1657 = vmatprep.mubr.msk.f32.mxu1 %vm385_vm0, %v354_v34 }
  0x3c   : > { %1610 = vmatmul.mubr.msk.f32.gmra.mrb[10].mxu0 %vm385_vm0, %v323_v35  ;;  %1658 = vmatmul.mubr.msk.f32.gmra.mrb[10].mxu1 %vm385_vm0, %v355_v36 }
  0x3d   : > { %1612 = vmatprep.mubr.msk.f32.mxu0 %vm385_vm0, %v324_v37  ;;  %1660 = vmatprep.mubr.msk.f32.mxu1 %vm385_vm0, %v356_v38 }
  0x40   : > { %1613 = vmatmul.mubr.msk.f32.gmra.mrb[12].mxu0 %vm385_vm0, %v325_v39  ;;  %1661 = vmatmul.mubr.msk.f32.gmra.mrb[12].mxu1 %vm385_vm0, %v357_v40 }
  0x41   : > { %1615 = vmatprep.mubr.msk.f32.mxu0 %vm385_vm0, %v326_v41  ;;  %1663 = vmatprep.mubr.msk.f32.mxu1 %vm385_vm0, %v358_v42 }
  0x44   : > { %1616 = vmatmul.mubr.msk.f32.gmra.mrb[14].mxu0 %vm385_vm0, %v327_v43  ;;  %1664 = vmatmul.mubr.msk.f32.gmra.mrb[14].mxu1 %vm385_vm0, %v359_v44 }
  0x45   : > { %1618 = vmatprep.mubr.msk.f32.mxu0 %vm385_vm0, %v328_v45  ;;  %1666 = vmatprep.mubr.msk.f32.mxu1 %vm385_vm0, %v360_v46 }
  0x48   : > { %1619 = vmatmul.mubr.msk.f32.gmra.mrb[16].mxu0 %vm385_vm0, %v329_v47  ;;  %1667 = vmatmul.mubr.msk.f32.gmra.mrb[16].mxu1 %vm385_vm0, %v361_v48 }
  0x49   : > { %1621 = vmatprep.mubr.msk.f32.mxu0 %vm385_vm0, %v330_v49  ;;  %1669 = vmatprep.mubr.msk.f32.mxu1 %vm385_vm0, %v362_v50 }
  0x4c   : > { %1622 = vmatmul.mubr.msk.f32.gmra.mrb[18].mxu0 %vm385_vm0, %v331_v51  ;;  %1670 = vmatmul.mubr.msk.f32.gmra.mrb[18].mxu1 %vm385_vm0, %v363_v52 }
  0x4d   : > { %1624 = vmatprep.mubr.msk.f32.mxu0 %vm385_vm0, %v332_v53  ;;  %1672 = vmatprep.mubr.msk.f32.mxu1 %vm385_vm0, %v364_v54 }
  0x50   : > { %1625 = vmatmul.mubr.msk.f32.gmra.mrb[20].mxu0 %vm385_vm0, %v333_v55  ;;  %1673 = vmatmul.mubr.msk.f32.gmra.mrb[20].mxu1 %vm385_vm0, %v365_v56 }
  0x51   : > { %1627 = vmatprep.mubr.msk.f32.mxu0 %vm385_vm0, %v334_v57  ;;  %1675 = vmatprep.mubr.msk.f32.mxu1 %vm385_vm0, %v366_v58 }
  0x54   : > { %1628 = vmatmul.mubr.msk.f32.gmra.mrb[22].mxu0 %vm385_vm0, %v335_v59  ;;  %1676 = vmatmul.mubr.msk.f32.gmra.mrb[22].mxu1 %vm385_vm0, %v367_v60 }
  0x55   : > { %1630 = vmatprep.mubr.msk.f32.mxu0 %vm385_vm0, %v336_v61  ;;  %1678 = vmatprep.mubr.msk.f32.mxu1 %vm385_vm0, %v368_v62 }
  0x58   : > { %1631 = vmatmul.mubr.msk.f32.gmra.mrb[24].mxu0 %vm385_vm0, %v337_v63  ;;  %1679 = vmatmul.mubr.msk.f32.gmra.mrb[24].mxu1 %vm385_vm0, %v369_v0 }
  0x59   : > { %1633 = vmatprep.mubr.msk.f32.mxu0 %vm385_vm0, %v338_v1  ;;  %1681 = vmatprep.mubr.msk.f32.mxu1 %vm385_vm0, %v370_v2 }
  0x5c   : > { %1634 = vmatmul.mubr.msk.f32.gmra.mrb[26].mxu0 %vm385_vm0, %v339_v3  ;;  %1682 = vmatmul.mubr.msk.f32.gmra.mrb[26].mxu1 %vm385_vm0, %v371_v4 }
  0x5d   : > { %1636 = vmatprep.mubr.msk.f32.mxu0 %vm385_vm0, %v340_v5  ;;  %1684 = vmatprep.mubr.msk.f32.mxu1 %vm385_vm0, %v372_v6 }
  0x60   : > { %1637 = vmatmul.mubr.msk.f32.gmra.mrb[28].mxu0 %vm385_vm0, %v341_v7  ;;  %1685 = vmatmul.mubr.msk.f32.gmra.mrb[28].mxu1 %vm385_vm0, %v373_v8 }
  0x61   : > { %1639 = vmatprep.mubr.msk.f32.mxu0 %vm385_vm0, %v342_v9  ;;  %1687 = vmatprep.mubr.msk.f32.mxu1 %vm385_vm0, %v374_v10 }
  0x64   : > { %1640 = vmatmul.mubr.msk.f32.gmra.mrb[30].mxu0 %vm385_vm0, %v343_v11  ;;  %1688 = vmatmul.mubr.msk.f32.gmra.mrb[30].mxu1 %vm385_vm0, %v375_v12 }
  0xfb   : > { %v1596_v20 = vpop.f32.mrb[0].mxu0  ;;  %v1644_v23 = vpop.f32.mrb[0].mxu1 }
  0xfc   : > { %v971_v24 = vmul.f32 %v1596_v20, %v1979_v19  ;;  %v1003_v25 = vmul.f32 %v1644_v23, %v1979_v19  ;;  %v644_v26 = vpop.f32.mrb[1].mxu0  ;;  %v804_v27 = vpop.f32.mrb[1].mxu1 }
  0xfd   : > { %v970_v28 = vmul.f32 %v1979_v19, %v644_v26  ;;  %v1002_v29 = vmul.f32 %v1979_v19, %v804_v27 }
  0xfe   : > { %v1042_v30 = vadd.f32 %v1981_v21, %v971_v24  ;;  %v1074_v31 = vadd.f32 %v1981_v21, %v1003_v25 }
  0xff   : > { %v1041_v32 = vadd.f32 %v1981_v21, %v970_v28  ;;  %v1073_v33 = vadd.f32 %v1981_v21, %v1002_v29  ;;  %v1599_v34 = vpop.f32.mrb[2].mxu0  ;;  %v1647_v35 = vpop.f32.mrb[2].mxu1 }
 0x100   : > { %v1108_v36 = vmax.f32 %v1042_v30, 0.0  ;;  %v1140_v37 = vmax.f32 %v1074_v31, 0.0  ;;  %v973_v38 = vmul.f32 %v1599_v34, %v1979_v19  ;;  %v1005_v39 = vmul.f32 %v1647_v35, %v1979_v19  ;;  %v654_v40 = vpop.f32.mrb[3].mxu0  ;;  %v814_v41 = vpop.f32.mrb[3].mxu1 }
 0x101   : > { %v1107_v42 = vmax.f32 %v1041_v32, 0.0  ;;  %v1139_v43 = vmax.f32 %v1073_v33, 0.0  ;;  %v972_v44 = vmul.f32 %v1979_v19, %v654_v40  ;;  %v1004_v45 = vmul.f32 %v1979_v19, %v814_v41 }
 0x102   : > { %v1178_v46 = vsel %vm1176_vm2, %v1108_v36, %v1042_v30  ;;  %v1210_v47 = vsel %vm1176_vm2, %v1140_v37, %v1074_v31  ;;  %v1044_v48 = vadd.f32 %v1981_v21, %v973_v38  ;;  %v1076_v49 = vadd.f32 %v1981_v21, %v1005_v39 }
 0x103   : > { %1243 = vst.msk [vmem:[%s1999_s15 + $0x8] sm:$0xff] %vm1241_vm3, %v1178_v46  ;;  %1275 = vst.msk [vmem:[%s1999_s15 + $0x108] sm:$0xff] %vm1241_vm3, %v1210_v47  ;;  %v1177_v50 = vsel %vm1176_vm2, %v1107_v42, %v1041_v32  ;;  %v1209_v51 = vsel %vm1176_vm2, %v1139_v43, %v1073_v33  ;;  %v1043_v52 = vadd.f32 %v1981_v21, %v972_v44  ;;  %v1602_v54 = vpop.f32.mrb[4].mxu0  ;;  %v1650_v55 = vpop.f32.mrb[4].mxu1 }
 0x104   : > { %v1075_v53 = vadd.f32 %v1981_v21, %v1004_v45  ;;  %1242 = vst.msk [vmem:[%s1999_s15] sm:$0xff] %vm1241_vm3, %v1177_v50  ;;  %1274 = vst.msk [vmem:[%s1999_s15 + $0x100] sm:$0xff] %vm1241_vm3, %v1209_v51  ;;  %v1110_v56 = vmax.f32 %v1044_v48, 0.0  ;;  %v1142_v57 = vmax.f32 %v1076_v49, 0.0  ;;  %v975_v58 = vmul.f32 %v1602_v54, %v1979_v19  ;;  %v664_v60 = vpop.f32.mrb[5].mxu0  ;;  %v824_v61 = vpop.f32.mrb[5].mxu1 }
 0x105   : > { %v1007_v59 = vmul.f32 %v1650_v55, %v1979_v19  ;;  %v1109_v62 = vmax.f32 %v1043_v52, 0.0  ;;  %v974_v0 = vmul.f32 %v1979_v19, %v664_v60  ;;  %v1006_v1 = vmul.f32 %v1979_v19, %v824_v61 }
 0x106   : > { %v1141_v63 = vmax.f32 %v1075_v53, 0.0  ;;  %v1180_v2 = vsel %vm1176_vm2, %v1110_v56, %v1044_v48  ;;  %v1212_v3 = vsel %vm1176_vm2, %v1142_v57, %v1076_v49  ;;  %v1046_v4 = vadd.f32 %v1981_v21, %v975_v58 }
 0x107   : > { %v1078_v5 = vadd.f32 %v1981_v21, %v1007_v59  ;;  %1245 = vst.msk [vmem:[%s1999_s15 + $0x18] sm:$0xff] %vm1241_vm3, %v1180_v2  ;;  %1277 = vst.msk [vmem:[%s1999_s15 + $0x118] sm:$0xff] %vm1241_vm3, %v1212_v3  ;;  %v1179_v6 = vsel %vm1176_vm2, %v1109_v62, %v1043_v52  ;;  %v1045_v8 = vadd.f32 %v1981_v21, %v974_v0  ;;  %v1605_v10 = vpop.f32.mrb[6].mxu0  ;;  %v1653_v11 = vpop.f32.mrb[6].mxu1 }
 0x108   : > { %v1211_v7 = vsel %vm1176_vm2, %v1141_v63, %v1075_v53  ;;  %v1077_v9 = vadd.f32 %v1981_v21, %v1006_v1  ;;  %1244 = vst.msk [vmem:[%s1999_s15 + $0x10] sm:$0xff] %vm1241_vm3, %v1179_v6  ;;  %v1112_v12 = vmax.f32 %v1046_v4, 0.0  ;;  %v977_v14 = vmul.f32 %v1605_v10, %v1979_v19  ;;  %v674_v16 = vpop.f32.mrb[7].mxu0  ;;  %v834_v17 = vpop.f32.mrb[7].mxu1 }
 0x109   : > { %1276 = vst.msk [vmem:[%s1999_s15 + $0x110] sm:$0xff] %vm1241_vm3, %v1211_v7  ;;  %v1144_v13 = vmax.f32 %v1078_v5, 0.0  ;;  %v1009_v15 = vmul.f32 %v1653_v11, %v1979_v19  ;;  %v1111_v18 = vmax.f32 %v1045_v8, 0.0  ;;  %v976_v23 = vmul.f32 %v1979_v19, %v674_v16 }
 0x10a   : > { %v1143_v20 = vmax.f32 %v1077_v9, 0.0  ;;  %v1008_v24 = vmul.f32 %v1979_v19, %v834_v17  ;;  %v1182_v25 = vsel %vm1176_vm2, %v1112_v12, %v1046_v4  ;;  %v1048_v27 = vadd.f32 %v1981_v21, %v977_v14 }
 0x10b   : > { %v1214_v26 = vsel %vm1176_vm2, %v1144_v13, %v1078_v5  ;;  %v1080_v28 = vadd.f32 %v1981_v21, %v1009_v15  ;;  %1247 = vst.msk [vmem:[%s1999_s15 + $0x28] sm:$0xff] %vm1241_vm3, %v1182_v25  ;;  %v1181_v29 = vsel %vm1176_vm2, %v1111_v18, %v1045_v8  ;;  %v1047_v31 = vadd.f32 %v1981_v21, %v976_v23  ;;  %v1608_v33 = vpop.f32.mrb[8].mxu0  ;;  %v1656_v34 = vpop.f32.mrb[8].mxu1 }
 0x10c   : > { %1279 = vst.msk [vmem:[%s1999_s15 + $0x128] sm:$0xff] %vm1241_vm3, %v1214_v26  ;;  %v1213_v30 = vsel %vm1176_vm2, %v1143_v20, %v1077_v9  ;;  %v1079_v32 = vadd.f32 %v1981_v21, %v1008_v24  ;;  %1246 = vst.msk [vmem:[%s1999_s15 + $0x20] sm:$0xff] %vm1241_vm3, %v1181_v29  ;;  %v1114_v35 = vmax.f32 %v1048_v27, 0.0  ;;  %v979_v37 = vmul.f32 %v1608_v33, %v1979_v19  ;;  %v684_v39 = vpop.f32.mrb[9].mxu0  ;;  %v844_v40 = vpop.f32.mrb[9].mxu1 }
 0x10d   : > { %1278 = vst.msk [vmem:[%s1999_s15 + $0x120] sm:$0xff] %vm1241_vm3, %v1213_v30  ;;  %v1146_v36 = vmax.f32 %v1080_v28, 0.0  ;;  %v1011_v38 = vmul.f32 %v1656_v34, %v1979_v19  ;;  %v1113_v41 = vmax.f32 %v1047_v31, 0.0  ;;  %v978_v43 = vmul.f32 %v1979_v19, %v684_v39 }
 0x10e   : > { %v1145_v42 = vmax.f32 %v1079_v32, 0.0  ;;  %v1010_v44 = vmul.f32 %v1979_v19, %v844_v40  ;;  %v1184_v45 = vsel %vm1176_vm2, %v1114_v35, %v1048_v27  ;;  %v1050_v47 = vadd.f32 %v1981_v21, %v979_v37 }
 0x10f   : > { %v1216_v46 = vsel %vm1176_vm2, %v1146_v36, %v1080_v28  ;;  %v1082_v48 = vadd.f32 %v1981_v21, %v1011_v38  ;;  %1249 = vst.msk [vmem:[%s1999_s15 + $0x38] sm:$0xff] %vm1241_vm3, %v1184_v45  ;;  %v1183_v49 = vsel %vm1176_vm2, %v1113_v41, %v1047_v31  ;;  %v1049_v51 = vadd.f32 %v1981_v21, %v978_v43  ;;  %v1611_v53 = vpop.f32.mrb[10].mxu0  ;;  %v1659_v54 = vpop.f32.mrb[10].mxu1 }
 0x110   : > { %1281 = vst.msk [vmem:[%s1999_s15 + $0x138] sm:$0xff] %vm1241_vm3, %v1216_v46  ;;  %v1215_v50 = vsel %vm1176_vm2, %v1145_v42, %v1079_v32  ;;  %v1081_v52 = vadd.f32 %v1981_v21, %v1010_v44  ;;  %1248 = vst.msk [vmem:[%s1999_s15 + $0x30] sm:$0xff] %vm1241_vm3, %v1183_v49  ;;  %v1116_v55 = vmax.f32 %v1050_v47, 0.0  ;;  %v981_v57 = vmul.f32 %v1611_v53, %v1979_v19  ;;  %v694_v59 = vpop.f32.mrb[11].mxu0  ;;  %v854_v60 = vpop.f32.mrb[11].mxu1 }
 0x111   : > { %1280 = vst.msk [vmem:[%s1999_s15 + $0x130] sm:$0xff] %vm1241_vm3, %v1215_v50  ;;  %v1148_v56 = vmax.f32 %v1082_v48, 0.0  ;;  %v1013_v58 = vmul.f32 %v1659_v54, %v1979_v19  ;;  %v1115_v61 = vmax.f32 %v1049_v51, 0.0  ;;  %v980_v63 = vmul.f32 %v1979_v19, %v694_v59 }
 0x112   : > { %v1147_v62 = vmax.f32 %v1081_v52, 0.0  ;;  %v1012_v0 = vmul.f32 %v1979_v19, %v854_v60  ;;  %v1186_v1 = vsel %vm1176_vm2, %v1116_v55, %v1050_v47  ;;  %v1052_v3 = vadd.f32 %v1981_v21, %v981_v57 }
 0x113   : > { %v1218_v2 = vsel %vm1176_vm2, %v1148_v56, %v1082_v48  ;;  %v1084_v4 = vadd.f32 %v1981_v21, %v1013_v58  ;;  %1251 = vst.msk [vmem:[%s1999_s15 + $0x48] sm:$0xff] %vm1241_vm3, %v1186_v1  ;;  %v1185_v5 = vsel %vm1176_vm2, %v1115_v61, %v1049_v51  ;;  %v1051_v7 = vadd.f32 %v1981_v21, %v980_v63  ;;  %v1614_v9 = vpop.f32.mrb[12].mxu0  ;;  %v1662_v10 = vpop.f32.mrb[12].mxu1 }
 0x114   : > { %1283 = vst.msk [vmem:[%s1999_s15 + $0x148] sm:$0xff] %vm1241_vm3, %v1218_v2  ;;  %v1217_v6 = vsel %vm1176_vm2, %v1147_v62, %v1081_v52  ;;  %v1083_v8 = vadd.f32 %v1981_v21, %v1012_v0  ;;  %1250 = vst.msk [vmem:[%s1999_s15 + $0x40] sm:$0xff] %vm1241_vm3, %v1185_v5  ;;  %v1118_v11 = vmax.f32 %v1052_v3, 0.0  ;;  %v983_v13 = vmul.f32 %v1614_v9, %v1979_v19  ;;  %v704_v15 = vpop.f32.mrb[13].mxu0  ;;  %v864_v16 = vpop.f32.mrb[13].mxu1 }
 0x115   : > { %1282 = vst.msk [vmem:[%s1999_s15 + $0x140] sm:$0xff] %vm1241_vm3, %v1217_v6  ;;  %v1150_v12 = vmax.f32 %v1084_v4, 0.0  ;;  %v1015_v14 = vmul.f32 %v1662_v10, %v1979_v19  ;;  %v1117_v17 = vmax.f32 %v1051_v7, 0.0  ;;  %v982_v20 = vmul.f32 %v1979_v19, %v704_v15 }
 0x116   : > { %v1149_v18 = vmax.f32 %v1083_v8, 0.0  ;;  %v1014_v23 = vmul.f32 %v1979_v19, %v864_v16  ;;  %v1188_v24 = vsel %vm1176_vm2, %v1118_v11, %v1052_v3  ;;  %v1054_v26 = vadd.f32 %v1981_v21, %v983_v13 }
 0x117   : > { %v1220_v25 = vsel %vm1176_vm2, %v1150_v12, %v1084_v4  ;;  %v1086_v27 = vadd.f32 %v1981_v21, %v1015_v14  ;;  %1253 = vst.msk [vmem:[%s1999_s15 + $0x58] sm:$0xff] %vm1241_vm3, %v1188_v24  ;;  %v1187_v28 = vsel %vm1176_vm2, %v1117_v17, %v1051_v7  ;;  %v1053_v30 = vadd.f32 %v1981_v21, %v982_v20  ;;  %v1617_v32 = vpop.f32.mrb[14].mxu0  ;;  %v1665_v33 = vpop.f32.mrb[14].mxu1 }
 0x118   : > { %1285 = vst.msk [vmem:[%s1999_s15 + $0x158] sm:$0xff] %vm1241_vm3, %v1220_v25  ;;  %v1219_v29 = vsel %vm1176_vm2, %v1149_v18, %v1083_v8  ;;  %v1085_v31 = vadd.f32 %v1981_v21, %v1014_v23  ;;  %1252 = vst.msk [vmem:[%s1999_s15 + $0x50] sm:$0xff] %vm1241_vm3, %v1187_v28  ;;  %v1120_v34 = vmax.f32 %v1054_v26, 0.0  ;;  %v985_v36 = vmul.f32 %v1617_v32, %v1979_v19  ;;  %v714_v38 = vpop.f32.mrb[15].mxu0  ;;  %v874_v39 = vpop.f32.mrb[15].mxu1 }
 0x119   : > { %1284 = vst.msk [vmem:[%s1999_s15 + $0x150] sm:$0xff] %vm1241_vm3, %v1219_v29  ;;  %v1152_v35 = vmax.f32 %v1086_v27, 0.0  ;;  %v1017_v37 = vmul.f32 %v1665_v33, %v1979_v19  ;;  %v1119_v40 = vmax.f32 %v1053_v30, 0.0  ;;  %v984_v42 = vmul.f32 %v1979_v19, %v714_v38 }
 0x11a   : > { %v1151_v41 = vmax.f32 %v1085_v31, 0.0  ;;  %v1016_v43 = vmul.f32 %v1979_v19, %v874_v39  ;;  %v1190_v44 = vsel %vm1176_vm2, %v1120_v34, %v1054_v26  ;;  %v1056_v46 = vadd.f32 %v1981_v21, %v985_v36 }
 0x11b   : > { %v1222_v45 = vsel %vm1176_vm2, %v1152_v35, %v1086_v27  ;;  %v1088_v47 = vadd.f32 %v1981_v21, %v1017_v37  ;;  %1255 = vst.msk [vmem:[%s1999_s15 + $0x68] sm:$0xff] %vm1241_vm3, %v1190_v44  ;;  %v1189_v48 = vsel %vm1176_vm2, %v1119_v40, %v1053_v30  ;;  %v1055_v50 = vadd.f32 %v1981_v21, %v984_v42  ;;  %v1620_v52 = vpop.f32.mrb[16].mxu0  ;;  %v1668_v53 = vpop.f32.mrb[16].mxu1 }
 0x11c   : > { %1287 = vst.msk [vmem:[%s1999_s15 + $0x168] sm:$0xff] %vm1241_vm3, %v1222_v45  ;;  %v1221_v49 = vsel %vm1176_vm2, %v1151_v41, %v1085_v31  ;;  %v1087_v51 = vadd.f32 %v1981_v21, %v1016_v43  ;;  %1254 = vst.msk [vmem:[%s1999_s15 + $0x60] sm:$0xff] %vm1241_vm3, %v1189_v48  ;;  %v1122_v54 = vmax.f32 %v1056_v46, 0.0  ;;  %v987_v56 = vmul.f32 %v1620_v52, %v1979_v19  ;;  %v724_v58 = vpop.f32.mrb[17].mxu0  ;;  %v884_v59 = vpop.f32.mrb[17].mxu1 }
 0x11d   : > { %1286 = vst.msk [vmem:[%s1999_s15 + $0x160] sm:$0xff] %vm1241_vm3, %v1221_v49  ;;  %v1154_v55 = vmax.f32 %v1088_v47, 0.0  ;;  %v1019_v57 = vmul.f32 %v1668_v53, %v1979_v19  ;;  %v1121_v60 = vmax.f32 %v1055_v50, 0.0  ;;  %v986_v62 = vmul.f32 %v1979_v19, %v724_v58 }
 0x11e   : > { %v1153_v61 = vmax.f32 %v1087_v51, 0.0  ;;  %v1018_v63 = vmul.f32 %v1979_v19, %v884_v59  ;;  %v1192_v0 = vsel %vm1176_vm2, %v1122_v54, %v1056_v46  ;;  %v1058_v2 = vadd.f32 %v1981_v21, %v987_v56 }
 0x11f   : > { %v1224_v1 = vsel %vm1176_vm2, %v1154_v55, %v1088_v47  ;;  %v1090_v3 = vadd.f32 %v1981_v21, %v1019_v57  ;;  %1257 = vst.msk [vmem:[%s1999_s15 + $0x78] sm:$0xff] %vm1241_vm3, %v1192_v0  ;;  %v1191_v4 = vsel %vm1176_vm2, %v1121_v60, %v1055_v50  ;;  %v1057_v6 = vadd.f32 %v1981_v21, %v986_v62  ;;  %v1623_v8 = vpop.f32.mrb[18].mxu0  ;;  %v1671_v9 = vpop.f32.mrb[18].mxu1 }
 0x120   : > { %1289 = vst.msk [vmem:[%s1999_s15 + $0x178] sm:$0xff] %vm1241_vm3, %v1224_v1  ;;  %v1223_v5 = vsel %vm1176_vm2, %v1153_v61, %v1087_v51  ;;  %v1089_v7 = vadd.f32 %v1981_v21, %v1018_v63  ;;  %1256 = vst.msk [vmem:[%s1999_s15 + $0x70] sm:$0xff] %vm1241_vm3, %v1191_v4  ;;  %v1124_v10 = vmax.f32 %v1058_v2, 0.0  ;;  %v989_v12 = vmul.f32 %v1623_v8, %v1979_v19  ;;  %v734_v14 = vpop.f32.mrb[19].mxu0  ;;  %v894_v15 = vpop.f32.mrb[19].mxu1 }
 0x121   : > { %1288 = vst.msk [vmem:[%s1999_s15 + $0x170] sm:$0xff] %vm1241_vm3, %v1223_v5  ;;  %v1156_v11 = vmax.f32 %v1090_v3, 0.0  ;;  %v1021_v13 = vmul.f32 %v1671_v9, %v1979_v19  ;;  %v1123_v16 = vmax.f32 %v1057_v6, 0.0  ;;  %v988_v18 = vmul.f32 %v1979_v19, %v734_v14 }
 0x122   : > { %v1155_v17 = vmax.f32 %v1089_v7, 0.0  ;;  %v1020_v20 = vmul.f32 %v1979_v19, %v894_v15  ;;  %v1194_v23 = vsel %vm1176_vm2, %v1124_v10, %v1058_v2  ;;  %v1060_v25 = vadd.f32 %v1981_v21, %v989_v12 }
 0x123   : > { %v1226_v24 = vsel %vm1176_vm2, %v1156_v11, %v1090_v3  ;;  %v1092_v26 = vadd.f32 %v1981_v21, %v1021_v13  ;;  %1259 = vst.msk [vmem:[%s1999_s15 + $0x88] sm:$0xff] %vm1241_vm3, %v1194_v23  ;;  %v1193_v27 = vsel %vm1176_vm2, %v1123_v16, %v1057_v6  ;;  %v1059_v29 = vadd.f32 %v1981_v21, %v988_v18  ;;  %v1626_v31 = vpop.f32.mrb[20].mxu0  ;;  %v1674_v32 = vpop.f32.mrb[20].mxu1 }
 0x124   : > { %1291 = vst.msk [vmem:[%s1999_s15 + $0x188] sm:$0xff] %vm1241_vm3, %v1226_v24  ;;  %v1225_v28 = vsel %vm1176_vm2, %v1155_v17, %v1089_v7  ;;  %v1091_v30 = vadd.f32 %v1981_v21, %v1020_v20  ;;  %1258 = vst.msk [vmem:[%s1999_s15 + $0x80] sm:$0xff] %vm1241_vm3, %v1193_v27  ;;  %v1126_v33 = vmax.f32 %v1060_v25, 0.0  ;;  %v991_v35 = vmul.f32 %v1626_v31, %v1979_v19  ;;  %v744_v37 = vpop.f32.mrb[21].mxu0  ;;  %v904_v38 = vpop.f32.mrb[21].mxu1 }
 0x125   : > { %1290 = vst.msk [vmem:[%s1999_s15 + $0x180] sm:$0xff] %vm1241_vm3, %v1225_v28  ;;  %v1158_v34 = vmax.f32 %v1092_v26, 0.0  ;;  %v1023_v36 = vmul.f32 %v1674_v32, %v1979_v19  ;;  %v1125_v39 = vmax.f32 %v1059_v29, 0.0  ;;  %v990_v41 = vmul.f32 %v1979_v19, %v744_v37 }
 0x126   : > { %v1157_v40 = vmax.f32 %v1091_v30, 0.0  ;;  %v1022_v42 = vmul.f32 %v1979_v19, %v904_v38  ;;  %v1196_v43 = vsel %vm1176_vm2, %v1126_v33, %v1060_v25  ;;  %v1062_v45 = vadd.f32 %v1981_v21, %v991_v35 }
 0x127   : > { %v1228_v44 = vsel %vm1176_vm2, %v1158_v34, %v1092_v26  ;;  %v1094_v46 = vadd.f32 %v1981_v21, %v1023_v36  ;;  %1261 = vst.msk [vmem:[%s1999_s15 + $0x98] sm:$0xff] %vm1241_vm3, %v1196_v43  ;;  %v1195_v47 = vsel %vm1176_vm2, %v1125_v39, %v1059_v29  ;;  %v1061_v49 = vadd.f32 %v1981_v21, %v990_v41  ;;  %v1629_v51 = vpop.f32.mrb[22].mxu0  ;;  %v1677_v52 = vpop.f32.mrb[22].mxu1 }
 0x128   : > { %1293 = vst.msk [vmem:[%s1999_s15 + $0x198] sm:$0xff] %vm1241_vm3, %v1228_v44  ;;  %v1227_v48 = vsel %vm1176_vm2, %v1157_v40, %v1091_v30  ;;  %v1093_v50 = vadd.f32 %v1981_v21, %v1022_v42  ;;  %1260 = vst.msk [vmem:[%s1999_s15 + $0x90] sm:$0xff] %vm1241_vm3, %v1195_v47  ;;  %v1128_v53 = vmax.f32 %v1062_v45, 0.0  ;;  %v993_v55 = vmul.f32 %v1629_v51, %v1979_v19  ;;  %v754_v57 = vpop.f32.mrb[23].mxu0  ;;  %v914_v58 = vpop.f32.mrb[23].mxu1 }
 0x129   : > { %1292 = vst.msk [vmem:[%s1999_s15 + $0x190] sm:$0xff] %vm1241_vm3, %v1227_v48  ;;  %v1160_v54 = vmax.f32 %v1094_v46, 0.0  ;;  %v1025_v56 = vmul.f32 %v1677_v52, %v1979_v19  ;;  %v1127_v59 = vmax.f32 %v1061_v49, 0.0  ;;  %v992_v61 = vmul.f32 %v1979_v19, %v754_v57 }
 0x12a   : > { %v1159_v60 = vmax.f32 %v1093_v50, 0.0  ;;  %v1024_v62 = vmul.f32 %v1979_v19, %v914_v58  ;;  %v1198_v63 = vsel %vm1176_vm2, %v1128_v53, %v1062_v45  ;;  %v1064_v1 = vadd.f32 %v1981_v21, %v993_v55 }
 0x12b   : > { %v1230_v0 = vsel %vm1176_vm2, %v1160_v54, %v1094_v46  ;;  %v1096_v2 = vadd.f32 %v1981_v21, %v1025_v56  ;;  %1263 = vst.msk [vmem:[%s1999_s15 + $0xa8] sm:$0xff] %vm1241_vm3, %v1198_v63  ;;  %v1197_v3 = vsel %vm1176_vm2, %v1127_v59, %v1061_v49  ;;  %v1063_v5 = vadd.f32 %v1981_v21, %v992_v61  ;;  %v1632_v7 = vpop.f32.mrb[24].mxu0  ;;  %v1680_v8 = vpop.f32.mrb[24].mxu1 }
 0x12c   : > { %1295 = vst.msk [vmem:[%s1999_s15 + $0x1a8] sm:$0xff] %vm1241_vm3, %v1230_v0  ;;  %v1229_v4 = vsel %vm1176_vm2, %v1159_v60, %v1093_v50  ;;  %v1095_v6 = vadd.f32 %v1981_v21, %v1024_v62  ;;  %1262 = vst.msk [vmem:[%s1999_s15 + $0xa0] sm:$0xff] %vm1241_vm3, %v1197_v3  ;;  %v1130_v9 = vmax.f32 %v1064_v1, 0.0  ;;  %v995_v11 = vmul.f32 %v1632_v7, %v1979_v19  ;;  %v764_v13 = vpop.f32.mrb[25].mxu0  ;;  %v924_v14 = vpop.f32.mrb[25].mxu1 }
 0x12d   : > { %1294 = vst.msk [vmem:[%s1999_s15 + $0x1a0] sm:$0xff] %vm1241_vm3, %v1229_v4  ;;  %v1162_v10 = vmax.f32 %v1096_v2, 0.0  ;;  %v1027_v12 = vmul.f32 %v1680_v8, %v1979_v19  ;;  %v1129_v15 = vmax.f32 %v1063_v5, 0.0  ;;  %v994_v17 = vmul.f32 %v1979_v19, %v764_v13 }
 0x12e   : > { %v1161_v16 = vmax.f32 %v1095_v6, 0.0  ;;  %v1026_v18 = vmul.f32 %v1979_v19, %v924_v14  ;;  %v1200_v20 = vsel %vm1176_vm2, %v1130_v9, %v1064_v1  ;;  %v1066_v24 = vadd.f32 %v1981_v21, %v995_v11 }
 0x12f   : > { %v1232_v23 = vsel %vm1176_vm2, %v1162_v10, %v1096_v2  ;;  %v1098_v25 = vadd.f32 %v1981_v21, %v1027_v12  ;;  %1265 = vst.msk [vmem:[%s1999_s15 + $0xb8] sm:$0xff] %vm1241_vm3, %v1200_v20  ;;  %v1199_v26 = vsel %vm1176_vm2, %v1129_v15, %v1063_v5  ;;  %v1065_v28 = vadd.f32 %v1981_v21, %v994_v17  ;;  %v1635_v30 = vpop.f32.mrb[26].mxu0  ;;  %v1683_v31 = vpop.f32.mrb[26].mxu1 }
 0x130   : > { %1297 = vst.msk [vmem:[%s1999_s15 + $0x1b8] sm:$0xff] %vm1241_vm3, %v1232_v23  ;;  %v1231_v27 = vsel %vm1176_vm2, %v1161_v16, %v1095_v6  ;;  %v1097_v29 = vadd.f32 %v1981_v21, %v1026_v18  ;;  %1264 = vst.msk [vmem:[%s1999_s15 + $0xb0] sm:$0xff] %vm1241_vm3, %v1199_v26  ;;  %v1132_v32 = vmax.f32 %v1066_v24, 0.0  ;;  %v997_v34 = vmul.f32 %v1635_v30, %v1979_v19  ;;  %v774_v36 = vpop.f32.mrb[27].mxu0  ;;  %v934_v37 = vpop.f32.mrb[27].mxu1 }
 0x131   : > { %1296 = vst.msk [vmem:[%s1999_s15 + $0x1b0] sm:$0xff] %vm1241_vm3, %v1231_v27  ;;  %v1164_v33 = vmax.f32 %v1098_v25, 0.0  ;;  %v1029_v35 = vmul.f32 %v1683_v31, %v1979_v19  ;;  %v1131_v38 = vmax.f32 %v1065_v28, 0.0  ;;  %v996_v40 = vmul.f32 %v1979_v19, %v774_v36 }
 0x132   : > { %v1163_v39 = vmax.f32 %v1097_v29, 0.0  ;;  %v1028_v41 = vmul.f32 %v1979_v19, %v934_v37  ;;  %v1202_v42 = vsel %vm1176_vm2, %v1132_v32, %v1066_v24  ;;  %v1068_v44 = vadd.f32 %v1981_v21, %v997_v34 }
 0x133   : > { %v1234_v43 = vsel %vm1176_vm2, %v1164_v33, %v1098_v25  ;;  %v1100_v45 = vadd.f32 %v1981_v21, %v1029_v35  ;;  %1267 = vst.msk [vmem:[%s1999_s15 + $0xc8] sm:$0xff] %vm1241_vm3, %v1202_v42  ;;  %v1201_v46 = vsel %vm1176_vm2, %v1131_v38, %v1065_v28  ;;  %v1067_v48 = vadd.f32 %v1981_v21, %v996_v40  ;;  %v1638_v50 = vpop.f32.mrb[28].mxu0  ;;  %v1686_v51 = vpop.f32.mrb[28].mxu1 }
 0x134   : > { %1299 = vst.msk [vmem:[%s1999_s15 + $0x1c8] sm:$0xff] %vm1241_vm3, %v1234_v43  ;;  %v1233_v47 = vsel %vm1176_vm2, %v1163_v39, %v1097_v29  ;;  %v1099_v49 = vadd.f32 %v1981_v21, %v1028_v41  ;;  %1266 = vst.msk [vmem:[%s1999_s15 + $0xc0] sm:$0xff] %vm1241_vm3, %v1201_v46  ;;  %v1134_v52 = vmax.f32 %v1068_v44, 0.0  ;;  %v999_v54 = vmul.f32 %v1638_v50, %v1979_v19  ;;  %v784_v56 = vpop.f32.mrb[29].mxu0  ;;  %v944_v57 = vpop.f32.mrb[29].mxu1 }
 0x135   : > { %1298 = vst.msk [vmem:[%s1999_s15 + $0x1c0] sm:$0xff] %vm1241_vm3, %v1233_v47  ;;  %v1166_v53 = vmax.f32 %v1100_v45, 0.0  ;;  %v1031_v55 = vmul.f32 %v1686_v51, %v1979_v19  ;;  %v1133_v58 = vmax.f32 %v1067_v48, 0.0  ;;  %v998_v60 = vmul.f32 %v1979_v19, %v784_v56 }
 0x136   : > { %v1165_v59 = vmax.f32 %v1099_v49, 0.0  ;;  %v1030_v61 = vmul.f32 %v1979_v19, %v944_v57  ;;  %v1204_v62 = vsel %vm1176_vm2, %v1134_v52, %v1068_v44  ;;  %v1070_v0 = vadd.f32 %v1981_v21, %v999_v54 }
 0x137   : > { %v1236_v63 = vsel %vm1176_vm2, %v1166_v53, %v1100_v45  ;;  %v1102_v1 = vadd.f32 %v1981_v21, %v1031_v55  ;;  %1269 = vst.msk [vmem:[%s1999_s15 + $0xd8] sm:$0xff] %vm1241_vm3, %v1204_v62  ;;  %v1203_v2 = vsel %vm1176_vm2, %v1133_v58, %v1067_v48  ;;  %v1069_v4 = vadd.f32 %v1981_v21, %v998_v60  ;;  %v1641_v6 = vpop.f32.mrb[30].mxu0  ;;  %v1689_v7 = vpop.f32.mrb[30].mxu1 }
 0x138   : > { %1301 = vst.msk [vmem:[%s1999_s15 + $0x1d8] sm:$0xff] %vm1241_vm3, %v1236_v63  ;;  %v1235_v3 = vsel %vm1176_vm2, %v1165_v59, %v1099_v49  ;;  %v1101_v5 = vadd.f32 %v1981_v21, %v1030_v61  ;;  %1268 = vst.msk [vmem:[%s1999_s15 + $0xd0] sm:$0xff] %vm1241_vm3, %v1203_v2  ;;  %v1136_v8 = vmax.f32 %v1070_v0, 0.0  ;;  %v1001_v10 = vmul.f32 %v1641_v6, %v1979_v19  ;;  %v794_v12 = vpop.f32.mrb[31].mxu0  ;;  %v954_v13 = vpop.f32.mrb[31].mxu1 }
 0x139   : > { %1300 = vst.msk [vmem:[%s1999_s15 + $0x1d0] sm:$0xff] %vm1241_vm3, %v1235_v3  ;;  %v1168_v9 = vmax.f32 %v1102_v1, 0.0  ;;  %v1033_v11 = vmul.f32 %v1689_v7, %v1979_v19  ;;  %v1135_v14 = vmax.f32 %v1069_v4, 0.0  ;;  %v1000_v16 = vmul.f32 %v1979_v19, %v794_v12 }
 0x13a   : > { %v1167_v15 = vmax.f32 %v1101_v5, 0.0  ;;  %v1032_v17 = vmul.f32 %v1979_v19, %v954_v13  ;;  %v1206_v18 = vsel %vm1176_vm2, %v1136_v8, %v1070_v0  ;;  %v1072_v23 = vadd.f32 %v1981_v21, %v1001_v10 }
 0x13b   : > { %v1238_v20 = vsel %vm1176_vm2, %v1168_v9, %v1102_v1  ;;  %v1104_v24 = vadd.f32 %v1981_v21, %v1033_v11  ;;  %1271 = vst.msk [vmem:[%s1999_s15 + $0xe8] sm:$0xff] %vm1241_vm3, %v1206_v18  ;;  %v1205_v25 = vsel %vm1176_vm2, %v1135_v14, %v1069_v4  ;;  %v1071_v26 = vadd.f32 %v1981_v21, %v1000_v16 }
 0x13c   : > { %1303 = vst.msk [vmem:[%s1999_s15 + $0x1e8] sm:$0xff] %vm1241_vm3, %v1238_v20  ;;  %v1237_v19 = vsel %vm1176_vm2, %v1167_v15, %v1101_v5  ;;  %v1103_v27 = vadd.f32 %v1981_v21, %v1032_v17  ;;  %1270 = vst.msk [vmem:[%s1999_s15 + $0xe0] sm:$0xff] %vm1241_vm3, %v1205_v25  ;;  %v1138_v28 = vmax.f32 %v1072_v23, 0.0 }
 0x13d   : > { %1302 = vst.msk [vmem:[%s1999_s15 + $0x1e0] sm:$0xff] %vm1241_vm3, %v1237_v19  ;;  %v1170_v29 = vmax.f32 %v1104_v24, 0.0  ;;  %v1137_v30 = vmax.f32 %v1071_v26, 0.0 }
 0x13e   : > { %v1169_v31 = vmax.f32 %v1103_v27, 0.0  ;;  %v1208_v32 = vsel %vm1176_vm2, %v1138_v28, %v1072_v23 }
 0x13f   : > { %v1240_v33 = vsel %vm1176_vm2, %v1170_v29, %v1104_v24  ;;  %1273 = vst.msk [vmem:[%s1999_s15 + $0xf8] sm:$0xff] %vm1241_vm3, %v1208_v32  ;;  %v1207_v21 = vsel %vm1176_vm2, %v1137_v30, %v1071_v26 }
 0x140   : > { %1305 = vst.msk [vmem:[%s1999_s15 + $0x1f8] sm:$0xff] %vm1241_vm3, %v1240_v33  ;;  %v1239_v34 = vsel %vm1176_vm2, %v1169_v31, %v1103_v27  ;;  %1272 = vst.msk [vmem:[%s1999_s15 + $0xf0] sm:$0xff] %vm1241_vm3, %v1207_v21 }
 0x141   : > { %1304 = vst.msk [vmem:[%s1999_s15 + $0x1f0] sm:$0xff] %vm1241_vm3, %v1239_v34 }
 0x142 PF: > { %s15_s20 = sadd.s32 1, %s1764_s20   ;;  %s2392_s18 = smov %s1760_s19 }
 0x143   : > { %p12_p5 = scmp.ge.s32.totalorder %s15_s20, 6   ;;  %s2393_s19 = smov %s2395_s21 }
 0x145   :  { %14 = sbr.rel (!%p12_p5) target bundleno = 2 (0x2), region = 79 }

// kernel: rfb7a_hs_att_forward.25
= control target key start
LH: loop header
LB: loop body
LE: loop exit
PB: predicated region body
PF: predicated region fallthrough
CT: control target
= control target key end

     0   :  { %10 = vsyncpa [#allocation3], 0  ;;  %s1797_s0 = inlined_call_operand.vmem [shape: f32[1,512,32], index: 0, kind: input, shape index: {}]   ;;  %s1798_s1 = inlined_call_operand.vmem [shape: f32[1,32,32], index: 1, kind: input, shape index: {}]   ;;  %s1799_s2 = inlined_call_operand.vmem [shape: f32[1,1,32], index: 2, kind: input, shape index: {}]   ;;  %s1800_s3 = inlined_call_operand.vmem [shape: f32[1,1,32], index: 3, kind: input, shape index: {}]   ;;  %s1801_s4 = inlined_call_operand.vmem [shape: f32[1,512,32], index: 4, kind: input, shape index: {}]   ;;  %s1802_s5 = inlined_call_operand.hbm [shape: f32[1,512,32], index: 5, kind: output, shape index: {}]  }
   0x1   :  { %12 = vsyncpa [#allocation3 + $0x1], 0  ;;  %s1413_s18 = smov 0   ;;  %s1415_s19 = smov 0  }
   0x2   :  { %s1417_s20 = smov 0   ;;  %s1419_s21 = smov 0  }
   0x3   :  { %s1421_s22 = smov 0   ;;  %s1423_s23 = smov 0  }
   0x4 LB: > { %s1086_s24 = sadd.s32 4294967295, %s1378_s23   ;;  %s1087_s25 = sadd.s32 4294967294, %s1378_s23   ;;  %s1378_s23 = sphi %s1423_s23, %s18_s23   ;;  %s1374_s22 = sphi %s1421_s22, %s1809_s22   ;;  %s1370_s21 = sphi %s1419_s21, %s1808_s21   ;;  %s1366_s20 = sphi %s1417_s20, %s1807_s20   ;;  %s1362_s19 = sphi %s1415_s19, %s1806_s19   ;;  %s1358_s18 = sphi %s1413_s18, %s1805_s18  }
   0x5   : > { %s27_s26 = sadd.s32 1, %s1374_s22  ;;  %s173_s27 = sadd.s32 1, %s1366_s20 }
   0x6   : > { %p28_p0 = scmp.ge.s32.totalorder %s27_s26, 2  ;;  %p183_p1 = scmp.ne.s32.totalorder %s1366_s20, %s1362_s19 }
   0x7   : > { %p184_p2 = scmp.eq.s32.totalorder %s1086_s24, 1  ;;  %p189_p3 = scmp.ne.s32.totalorder %s1362_s19, %s1358_s18 }
   0x8   : > { %s1811_s26 = smov (%p28_p0, %s27_s26), 0  ;;  %p190_p5 = scmp.eq.s32.totalorder %s1087_s25, 1 }
   0x9   : > { %p1453_p4 = por %p184_p2, %p183_p1  ;;  %s169_s29 = ssub.s32 %s1374_s22, %s1811_s26 }
   0xa   : > { %p1093_p6 = scmp.ge.s32.totalorder %s1378_s23, 1  ;;  %p171_p7 = scmp.eq.s32.totalorder %s169_s29, 0 }
   0xb   : > { %p1460_p8 = por %p190_p5, %p189_p3  ;;  %p254_p9 = scmp.lt.s32.totalorder %s1378_s23, 3 }
   0xc   : > { %s1466_s6 = scalar_select %p171_p7, %s1366_s20, %s173_s27  }
   0xd   : > { %p255_p10 = pnand %p1093_p6, %p254_p9 }
   0xe   : > { %v370_v0 = vld [vmem:[%s1798_s1] sm:$0xff] (!%p255_p10)  ;;  %v371_v1 = vld [vmem:[%s1798_s1 + $0x8] sm:$0xff] (!%p255_p10)  ;;  %v372_v2 = vld [vmem:[%s1798_s1 + $0x10] sm:$0xff] (!%p255_p10)  ;;  %s1095_s13 = sshll.u32 (!%p255_p10), %s1370_s21, 5  ;;  %vm374_vm0 = vcmask (!%p255_p10), 261120   ;;  %s303_s12 = sand.u32 (!%p255_p10), 1, %s1362_s19  }
   0xf   : > { %258 = sbr.rel (%p255_p10) target bundleno = 300 (0x12c), region = 40  ;;  %v1231_v3 = vpack.c.bf16 (!%p255_p10), %v371_v1, %v370_v0  ;;  %v373_v4 = vld [vmem:[%s1798_s1 + $0x18] sm:$0xff] (!%p255_p10)  ;;  %p309_p11 = scmp.lt.s32.totalorder (!%p255_p10), %s1095_s13, 63  ;;  %v1558_v38 = vld [vmem:[%s1799_s2] ss:$0 sm:$0xff] (!%p255_p10) }
  0x10   : > { %v1235_v5 = vpack.c.bf16 (!%p255_p10), %v373_v4, %v372_v2  ;;  %v1570_v40 = vld [vmem:[%s1800_s3] ss:$0 sm:$0xff] (!%p255_p10)  ;;  %s1138_s15 = sshll.u32 (!%p255_p10), %s1370_s21, 12  ;;  %s1380_s29 = smov (!%p255_p10), [#allocation2]  }
  0x11   : > { %1232 = vmatprep.subr.bf16.mxu0 (!%p255_p10), %v1231_v3  ;;  %1239 = vmatprep.subr.bf16.mxu1 (!%p255_p10), %v1231_v3  ;;  %s1737_s24 = scalar_lea.hbm (!%p255_p10), %s1802_s5, %s1138_s15  ;;  %s1304_s7 = sshll.u32 (!%p255_p10), %s1380_s29, 4  ;;  %s1305_s7 = int_to_ptr.vmem [resolvable:$false] %s1304_s7 }
  0x12   : > { %1234 = vmatpush3.bf16.msra.mxu0 (!%p255_p10), %v1231_v3  ;;  %1241 = vmatpush3.bf16.msra.mxu1 (!%p255_p10), %v1231_v3  ;;  %s1306_s8 = scalar_lea.vmem (!%p255_p10), %s1305_s7, 8192 }
  0x13   : > { %1236 = vmatprep.subr.bf16.mxu0 (!%p255_p10), %v1235_v5  ;;  %1240 = vmatprep.subr.bf16.mxu1 (!%p255_p10), %v1235_v5 }
  0x16   : > { %s1813_s13 = smov (!%p309_p11, %s1095_s13), 63  ;;  %1238 = vmatpush3.bf16.msra.mxu0 %v1235_v5  ;;  %1242 = vmatpush3.bf16.msra.mxu1 %v1235_v5 }
  0x17   : > { %s1096_s16 = sshll.u32 %s1813_s13, 3  ;;  %s1582_s13 = sshll.u32 %s303_s12, 8 }
  0x18   : > { %s1489_s25 = scalar_lea.vmem %s1797_s0, %s1096_s16  ;;  %s1565_s9 = scalar_lea.vmem %s1801_s4, %s1096_s16 }
  0x19   : > { %v338_v6 = vld [vmem:[%s1489_s25] sm:$0xff]  ;;  %v339_v8 = vld [vmem:[%s1489_s25 + $0x8] sm:$0xff]  ;;  %v340_v10 = vld [vmem:[%s1489_s25 + $0x10] sm:$0xff]  ;;  %s1602_s14 = scalar_lea.vmem [#allocation2], %s1582_s13 }
  0x1a   : > { %v354_v7 = vld [vmem:[%s1489_s25 + $0x80] sm:$0xff]  ;;  %v355_v9 = vld [vmem:[%s1489_s25 + $0x88] sm:$0xff]  ;;  %1183 = vmatprep.mubr.msk.f32.mxu0 %vm374_vm0, %v338_v6  ;;  %v356_v11 = vld [vmem:[%s1489_s25 + $0x90] sm:$0xff]  ;;  %s950_s16 = sshll.u32 %s1602_s14, 4  ;;  %s1739_s16 = int_to_ptr.vmem [resolvable:$true] %s950_s16 }
  0x1b   : > { %1207 = vmatprep.mubr.msk.f32.mxu1 %vm374_vm0, %v354_v7  ;;  %1184 = vmatmul.mubr.msk.f32.vlgmr.msra.gmra.mrb[0].mxu0 %vm374_vm0, %v339_v8  ;;  %v341_v12 = vld [vmem:[%s1489_s25 + $0x18] sm:$0xff]  ;;  %v342_v14 = vld [vmem:[%s1489_s25 + $0x20] sm:$0xff]  ;;  %v343_v16 = vld [vmem:[%s1489_s25 + $0x28] sm:$0xff]  ;;  %s1300_s27 = scalar_lea.vmem %s1739_s16, 4096  ;;  %p1307_p1 = scmp.lt.s32.totalorder %s1739_s16, %s1305_s7 }
  0x1c   : > { %1208 = vmatmul.mubr.msk.f32.vlgmr.msra.gmra.mrb[0].mxu1 %vm374_vm0, %v355_v9  ;;  %1186 = vmatprep.mubr.msk.f32.mxu0 %vm374_vm0, %v340_v10  ;;  %v357_v13 = vld [vmem:[%s1489_s25 + $0x98] sm:$0xff]  ;;  %v358_v15 = vld [vmem:[%s1489_s25 + $0xa0] sm:$0xff]  ;;  %v359_v17 = vld [vmem:[%s1489_s25 + $0xa8] sm:$0xff]  ;;  %p1301_p12 = scmp.ne.s32.totalorder %s1739_s16, %s1300_s27  ;;  %p1308_p2 = scmp.lt.s32.totalorder %s1306_s8, %s1300_s27 }
  0x1d   : > { %1210 = vmatprep.mubr.msk.f32.mxu1 %vm374_vm0, %v356_v11  ;;  %v344_v18 = vld [vmem:[%s1489_s25 + $0x30] sm:$0xff]  ;;  %v345_v20 = vld [vmem:[%s1489_s25 + $0x38] sm:$0xff]  ;;  %v346_v22 = vld [vmem:[%s1489_s25 + $0x40] sm:$0xff] }
  0x1e   : > { %v360_v19 = vld [vmem:[%s1489_s25 + $0xb0] sm:$0xff]  ;;  %v361_v21 = vld [vmem:[%s1489_s25 + $0xb8] sm:$0xff]  ;;  %v362_v23 = vld [vmem:[%s1489_s25 + $0xc0] sm:$0xff]  ;;  %p1302_p13 = pnand %p1301_p12, %p1453_p4  ;;  %p1309_p3 = por %p1308_p2, %p1307_p1 }
  0x1f   : > { %1187 = vmatmul.mubr.msk.f32.gmra.mrb[2].mxu0 %vm374_vm0, %v341_v12  ;;  %v347_v24 = vld [vmem:[%s1489_s25 + $0x48] sm:$0xff]  ;;  %v348_v26 = vld [vmem:[%s1489_s25 + $0x50] sm:$0xff]  ;;  %v349_v28 = vld [vmem:[%s1489_s25 + $0x58] sm:$0xff] }
  0x20   : > { %1211 = vmatmul.mubr.msk.f32.gmra.mrb[2].mxu1 %vm374_vm0, %v357_v13  ;;  %1189 = vmatprep.mubr.msk.f32.mxu0 %vm374_vm0, %v342_v14  ;;  %v363_v25 = vld [vmem:[%s1489_s25 + $0xc8] sm:$0xff]  ;;  %v364_v27 = vld [vmem:[%s1489_s25 + $0xd0] sm:$0xff]  ;;  %v365_v29 = vld [vmem:[%s1489_s25 + $0xd8] sm:$0xff]  ;;  %p1303_p0 = pneg %p1302_p13 }
  0x21   : > { %1213 = vmatprep.mubr.msk.f32.mxu1 %vm374_vm0, %v358_v15  ;;  %v350_v30 = vld [vmem:[%s1489_s25 + $0x60] sm:$0xff]  ;;  %v351_v32 = vld [vmem:[%s1489_s25 + $0x68] sm:$0xff]  ;;  %v352_v34 = vld [vmem:[%s1489_s25 + $0x70] sm:$0xff] }
  0x22   : > { %v366_v31 = vld [vmem:[%s1489_s25 + $0xe0] sm:$0xff]  ;;  %v367_v33 = vld [vmem:[%s1489_s25 + $0xe8] sm:$0xff]  ;;  %v368_v35 = vld [vmem:[%s1489_s25 + $0xf0] sm:$0xff]  ;;  %p1310_p5 = pnand %p1309_p3, %p1303_p0 }
  0x23   : > { %1190 = vmatmul.mubr.msk.f32.gmra.mrb[4].mxu0 %vm374_vm0, %v343_v16  ;;  %v353_v36 = vld [vmem:[%s1489_s25 + $0x78] sm:$0xff]  ;;  %v807_v49 = vld [vmem:[%s1565_s9 + $0x8] sm:$0xff]  ;;  %v806_v53 = vld [vmem:[%s1565_s9] sm:$0xff] }
  0x24   : > { %1214 = vmatmul.mubr.msk.f32.gmra.mrb[4].mxu1 %vm374_vm0, %v359_v17  ;;  %1192 = vmatprep.mubr.msk.f32.mxu0 %vm374_vm0, %v344_v18  ;;  %v369_v37 = vld [vmem:[%s1489_s25 + $0xf8] sm:$0xff]  ;;  %v823_v51 = vld [vmem:[%s1565_s9 + $0x88] sm:$0xff]  ;;  %v822_v55 = vld [vmem:[%s1565_s9 + $0x80] sm:$0xff]  ;;  %s1751_s25 = scalar_lea.sflag [#allocation3], %s303_s12 }
  0x25   : > { %1216 = vmatprep.mubr.msk.f32.mxu1 %vm374_vm0, %v360_v19  ;;  %v809_v7 = vld [vmem:[%s1565_s9 + $0x18] sm:$0xff]  ;;  %v808_v13 = vld [vmem:[%s1565_s9 + $0x10] sm:$0xff] }
  0x26   : > { %v825_v11 = vld [vmem:[%s1565_s9 + $0x98] sm:$0xff]  ;;  %v824_v15 = vld [vmem:[%s1565_s9 + $0x90] sm:$0xff] }
  0x27   : > { %1193 = vmatmul.mubr.msk.f32.gmra.mrb[6].mxu0 %vm374_vm0, %v345_v20 }
  0x28   : > { %1217 = vmatmul.mubr.msk.f32.gmra.mrb[6].mxu1 %vm374_vm0, %v361_v21  ;;  %1195 = vmatprep.mubr.msk.f32.mxu0 %vm374_vm0, %v346_v22 }
  0x29   : > { %1219 = vmatprep.mubr.msk.f32.mxu1 %vm374_vm0, %v362_v23 }
  0x2b   : > { %1196 = vmatmul.mubr.msk.f32.gmra.mrb[8].mxu0 %vm374_vm0, %v347_v24 }
  0x2c   : > { %1220 = vmatmul.mubr.msk.f32.gmra.mrb[8].mxu1 %vm374_vm0, %v363_v25  ;;  %1198 = vmatprep.mubr.msk.f32.mxu0 %vm374_vm0, %v348_v26 }
  0x2d   : > { %1222 = vmatprep.mubr.msk.f32.mxu1 %vm374_vm0, %v364_v27 }
  0x2f   : > { %1199 = vmatmul.mubr.msk.f32.gmra.mrb[10].mxu0 %vm374_vm0, %v349_v28 }
  0x30   : > { %1223 = vmatmul.mubr.msk.f32.gmra.mrb[10].mxu1 %vm374_vm0, %v365_v29  ;;  %1201 = vmatprep.mubr.msk.f32.mxu0 %vm374_vm0, %v350_v30 }
  0x31   : > { %1225 = vmatprep.mubr.msk.f32.mxu1 %vm374_vm0, %v366_v31 }
  0x33   : > { %1202 = vmatmul.mubr.msk.f32.gmra.mrb[12].mxu0 %vm374_vm0, %v351_v32 }
  0x34   : > { %1226 = vmatmul.mubr.msk.f32.gmra.mrb[12].mxu1 %vm374_vm0, %v367_v33  ;;  %1204 = vmatprep.mubr.msk.f32.mxu0 %vm374_vm0, %v352_v34 }
  0x35   : > { %1228 = vmatprep.mubr.msk.f32.mxu1 %vm374_vm0, %v368_v35 }
  0x37   : > { %1205 = vmatmul.mubr.msk.f32.gmra.mrb[14].mxu0 %vm374_vm0, %v353_v36 }
  0x38   : > { %1229 = vmatmul.mubr.msk.f32.gmra.mrb[14].mxu1 %vm374_vm0, %v369_v37 }
  0xee   : > { %v1185_v39 = vpop.f32.mrb[0].mxu0 }
  0xef   : > { %v1209_v41 = vpop.f32.mrb[0].mxu1  ;;  %v704_v42 = vmul.f32 %v1185_v39, %v1558_v38  ;;  %v537_v44 = vpop.f32.mrb[1].mxu0 }
  0xf0   : > { %v720_v43 = vmul.f32 %v1209_v41, %v1558_v38  ;;  %v617_v45 = vpop.f32.mrb[1].mxu1  ;;  %v703_v46 = vmul.f32 %v1558_v38, %v537_v44 }
  0xf1   : > { %v719_v47 = vmul.f32 %v1558_v38, %v617_v45  ;;  %v743_v48 = vadd.f32 %v1570_v40, %v704_v42 }
  0xf2   : > { %v759_v50 = vadd.f32 %v1570_v40, %v720_v43  ;;  %v742_v52 = vadd.f32 %v1570_v40, %v703_v46  ;;  %v1188_v56 = vpop.f32.mrb[2].mxu0 }
  0xf3   : > { %v758_v54 = vadd.f32 %v1570_v40, %v719_v47  ;;  %v1212_v57 = vpop.f32.mrb[2].mxu1  ;;  %v775_v58 = vmul.f32 0.1, %v743_v48  ;;  %v706_v60 = vmul.f32 %v1188_v56, %v1558_v38  ;;  %v547_v62 = vpop.f32.mrb[3].mxu0  ;;  %v811_v48 = vld [vmem:[%s1565_s9 + $0x28] sm:$0xff] }
  0xf4   : > { %v791_v59 = vmul.f32 0.1, %v759_v50  ;;  %v722_v61 = vmul.f32 %v1212_v57, %v1558_v38  ;;  %v627_v63 = vpop.f32.mrb[3].mxu1  ;;  %v774_v0 = vmul.f32 0.1, %v742_v52  ;;  %v705_v2 = vmul.f32 %v1558_v38, %v547_v62 }
  0xf5   : > { %v790_v1 = vmul.f32 0.1, %v758_v54  ;;  %v721_v3 = vmul.f32 %v1558_v38, %v627_v63  ;;  %v839_v4 = vadd.f32 %v807_v49, %v775_v58  ;;  %v745_v6 = vadd.f32 %v1570_v40, %v706_v60  ;;  %v827_v49 = vld [vmem:[%s1565_s9 + $0xa8] sm:$0xff]  ;;  %v810_v54 = vld [vmem:[%s1565_s9 + $0x20] sm:$0xff] }
  0xf6   : > { %v855_v5 = vadd.f32 %v823_v51, %v791_v59  ;;  %v761_v8 = vadd.f32 %v1570_v40, %v722_v61  ;;  %v838_v9 = vadd.f32 %v806_v53, %v774_v0  ;;  %v744_v12 = vadd.f32 %v1570_v40, %v705_v2  ;;  %v1191_v16 = vpop.f32.mrb[4].mxu0 }
  0xf7   : > { %v854_v10 = vadd.f32 %v822_v55, %v790_v1  ;;  %v760_v14 = vadd.f32 %v1570_v40, %v721_v3  ;;  %v1215_v17 = vpop.f32.mrb[4].mxu1  ;;  %v871_v18 = vmax.f32 %v839_v4, 0.0  ;;  %v777_v20 = vmul.f32 0.1, %v745_v6  ;;  %v557_v30 = vpop.f32.mrb[5].mxu0  ;;  %v826_v55 = vld [vmem:[%s1565_s9 + $0xa0] sm:$0xff] }
  0xf8   : > { %v887_v19 = vmax.f32 %v855_v5, 0.0  ;;  %v793_v21 = vmul.f32 0.1, %v761_v8  ;;  %v870_v22 = vmax.f32 %v838_v9, 0.0  ;;  %v776_v24 = vmul.f32 0.1, %v744_v12 }
  0xf9   : > { %v886_v23 = vmax.f32 %v854_v10, 0.0  ;;  %v792_v25 = vmul.f32 0.1, %v760_v14  ;;  %903 = vst.msk [vmem:[%s1602_s14 + $0x8] sm:$0xff] %vm374_vm0, %v871_v18  ;;  %v841_v26 = vadd.f32 %v809_v7, %v777_v20  ;;  %v708_v28 = vmul.f32 %v1191_v16, %v1558_v38  ;;  %v637_v31 = vpop.f32.mrb[5].mxu1  ;;  %v813_v3 = vld [vmem:[%s1565_s9 + $0x38] sm:$0xff] }
  0xfa   : > { %919 = vst.msk [vmem:[%s1602_s14 + $0x88] sm:$0xff] %vm374_vm0, %v887_v19  ;;  %v857_v27 = vadd.f32 %v825_v11, %v793_v21  ;;  %v724_v29 = vmul.f32 %v1215_v17, %v1558_v38  ;;  %902 = vst.msk [vmem:[%s1602_s14] sm:$0xff] %vm374_vm0, %v870_v22  ;;  %v840_v32 = vadd.f32 %v808_v13, %v776_v24  ;;  %v1194_v36 = vpop.f32.mrb[6].mxu0  ;;  %v829_v9 = vld [vmem:[%s1565_s9 + $0xb8] sm:$0xff]  ;;  %v812_v11 = vld [vmem:[%s1565_s9 + $0x30] sm:$0xff] }
  0xfb   : > { %918 = vst.msk [vmem:[%s1602_s14 + $0x80] sm:$0xff] %vm374_vm0, %v886_v23  ;;  %v856_v33 = vadd.f32 %v824_v15, %v792_v25  ;;  %v707_v34 = vmul.f32 %v1558_v38, %v557_v30  ;;  %v723_v35 = vmul.f32 %v1558_v38, %v637_v31  ;;  %v1218_v37 = vpop.f32.mrb[6].mxu1  ;;  %v873_v39 = vmax.f32 %v841_v26, 0.0  ;;  %v567_v44 = vpop.f32.mrb[7].mxu0  ;;  %v828_v13 = vld [vmem:[%s1565_s9 + $0xb0] sm:$0xff] }
  0xfc   : > { %v889_v41 = vmax.f32 %v857_v27, 0.0  ;;  %v747_v42 = vadd.f32 %v1570_v40, %v708_v28  ;;  %v763_v43 = vadd.f32 %v1570_v40, %v724_v29  ;;  %v647_v45 = vpop.f32.mrb[7].mxu1  ;;  %v872_v46 = vmax.f32 %v840_v32, 0.0 }
  0xfd   : > { %v888_v47 = vmax.f32 %v856_v33, 0.0  ;;  %v746_v50 = vadd.f32 %v1570_v40, %v707_v34  ;;  %v762_v51 = vadd.f32 %v1570_v40, %v723_v35  ;;  %905 = vst.msk [vmem:[%s1602_s14 + $0x18] sm:$0xff] %vm374_vm0, %v873_v39  ;;  %v710_v56 = vmul.f32 %v1194_v36, %v1558_v38 }
  0xfe   : > { %921 = vst.msk [vmem:[%s1602_s14 + $0x98] sm:$0xff] %vm374_vm0, %v889_v41  ;;  %v779_v52 = vmul.f32 0.1, %v747_v42  ;;  %v795_v53 = vmul.f32 0.1, %v763_v43  ;;  %v726_v57 = vmul.f32 %v1218_v37, %v1558_v38  ;;  %904 = vst.msk [vmem:[%s1602_s14 + $0x10] sm:$0xff] %vm374_vm0, %v872_v46  ;;  %v709_v60 = vmul.f32 %v1558_v38, %v567_v44 }
  0xff   : > { %920 = vst.msk [vmem:[%s1602_s14 + $0x90] sm:$0xff] %vm374_vm0, %v888_v47  ;;  %v778_v58 = vmul.f32 0.1, %v746_v50  ;;  %v794_v59 = vmul.f32 0.1, %v762_v51  ;;  %v725_v61 = vmul.f32 %v1558_v38, %v647_v45  ;;  %v1197_v62 = vpop.f32.mrb[8].mxu0  ;;  %v749_v2 = vadd.f32 %v1570_v40, %v710_v56 }
 0x100   : > { %v1221_v63 = vpop.f32.mrb[8].mxu1  ;;  %v843_v0 = vadd.f32 %v811_v48, %v779_v52  ;;  %v859_v1 = vadd.f32 %v827_v49, %v795_v53  ;;  %v765_v4 = vadd.f32 %v1570_v40, %v726_v57  ;;  %v577_v5 = vpop.f32.mrb[9].mxu0  ;;  %v748_v10 = vadd.f32 %v1570_v40, %v709_v60  ;;  %v815_v37 = vld [vmem:[%s1565_s9 + $0x48] sm:$0xff]  ;;  %v814_v45 = vld [vmem:[%s1565_s9 + $0x40] sm:$0xff] }
 0x101   : > { %v657_v6 = vpop.f32.mrb[9].mxu1  ;;  %v842_v7 = vadd.f32 %v810_v54, %v778_v58  ;;  %v858_v8 = vadd.f32 %v826_v55, %v794_v59  ;;  %v764_v12 = vadd.f32 %v1570_v40, %v725_v61  ;;  %v781_v16 = vmul.f32 0.1, %v749_v2  ;;  %v831_v41 = vld [vmem:[%s1565_s9 + $0xc8] sm:$0xff]  ;;  %v830_v47 = vld [vmem:[%s1565_s9 + $0xc0] sm:$0xff] }
 0x102   : > { %v875_v14 = vmax.f32 %v843_v0, 0.0  ;;  %v891_v15 = vmax.f32 %v859_v1, 0.0  ;;  %v797_v17 = vmul.f32 0.1, %v765_v4  ;;  %v780_v20 = vmul.f32 0.1, %v748_v10 }
 0x103   : > { %v874_v18 = vmax.f32 %v842_v7, 0.0  ;;  %v890_v19 = vmax.f32 %v858_v8, 0.0  ;;  %v796_v21 = vmul.f32 0.1, %v764_v12  ;;  %v845_v22 = vadd.f32 %v813_v3, %v781_v16  ;;  %v1200_v26 = vpop.f32.mrb[10].mxu0  ;;  %v1224_v27 = vpop.f32.mrb[10].mxu1 }
 0x104   : > { %907 = vst.msk [vmem:[%s1602_s14 + $0x28] sm:$0xff] %vm374_vm0, %v875_v14  ;;  %923 = vst.msk [vmem:[%s1602_s14 + $0xa8] sm:$0xff] %vm374_vm0, %v891_v15  ;;  %v861_v23 = vadd.f32 %v829_v9, %v797_v17  ;;  %v712_v24 = vmul.f32 %v1197_v62, %v1558_v38  ;;  %v728_v25 = vmul.f32 %v1221_v63, %v1558_v38  ;;  %v587_v32 = vpop.f32.mrb[11].mxu0  ;;  %v667_v33 = vpop.f32.mrb[11].mxu1  ;;  %v817_v63 = vld [vmem:[%s1565_s9 + $0x58] sm:$0xff]  ;;  %v832_v7 = vld [vmem:[%s1565_s9 + $0xd0] sm:$0xff] }
 0x105   : > { %906 = vst.msk [vmem:[%s1602_s14 + $0x20] sm:$0xff] %vm374_vm0, %v874_v18  ;;  %922 = vst.msk [vmem:[%s1602_s14 + $0xa0] sm:$0xff] %vm374_vm0, %v890_v19  ;;  %v844_v28 = vadd.f32 %v812_v11, %v780_v20  ;;  %v860_v29 = vadd.f32 %v828_v13, %v796_v21  ;;  %v711_v30 = vmul.f32 %v1558_v38, %v577_v5  ;;  %v877_v34 = vmax.f32 %v845_v22, 0.0  ;;  %v833_v3 = vld [vmem:[%s1565_s9 + $0xd8] sm:$0xff]  ;;  %v816_v5 = vld [vmem:[%s1565_s9 + $0x50] sm:$0xff] }
 0x106   : > { %v727_v31 = vmul.f32 %v1558_v38, %v657_v6  ;;  %v893_v35 = vmax.f32 %v861_v23, 0.0  ;;  %v751_v36 = vadd.f32 %v1570_v40, %v712_v24  ;;  %v767_v39 = vadd.f32 %v1570_v40, %v728_v25  ;;  %v1203_v48 = vpop.f32.mrb[12].mxu0 }
 0x107   : > { %v876_v42 = vmax.f32 %v844_v28, 0.0  ;;  %v892_v43 = vmax.f32 %v860_v29, 0.0  ;;  %v750_v44 = vadd.f32 %v1570_v40, %v711_v30  ;;  %v1227_v49 = vpop.f32.mrb[12].mxu1  ;;  %909 = vst.msk [vmem:[%s1602_s14 + $0x38] sm:$0xff] %vm374_vm0, %v877_v34  ;;  %v714_v52 = vmul.f32 %v1200_v26, %v1558_v38  ;;  %v597_v54 = vpop.f32.mrb[13].mxu0  ;;  %v819_v34 = vld [vmem:[%s1565_s9 + $0x68] sm:$0xff] }
 0x108   : > { %v766_v46 = vadd.f32 %v1570_v40, %v727_v31  ;;  %925 = vst.msk [vmem:[%s1602_s14 + $0xb8] sm:$0xff] %vm374_vm0, %v893_v35  ;;  %v783_v50 = vmul.f32 0.1, %v751_v36  ;;  %v799_v51 = vmul.f32 0.1, %v767_v39  ;;  %v730_v53 = vmul.f32 %v1224_v27, %v1558_v38  ;;  %v677_v55 = vpop.f32.mrb[13].mxu1 }
 0x109   : > { %908 = vst.msk [vmem:[%s1602_s14 + $0x30] sm:$0xff] %vm374_vm0, %v876_v42  ;;  %924 = vst.msk [vmem:[%s1602_s14 + $0xb0] sm:$0xff] %vm374_vm0, %v892_v43  ;;  %v782_v56 = vmul.f32 0.1, %v750_v44  ;;  %v713_v58 = vmul.f32 %v1558_v38, %v587_v32  ;;  %v729_v59 = vmul.f32 %v1558_v38, %v667_v33  ;;  %v753_v62 = vadd.f32 %v1570_v40, %v714_v52  ;;  %v835_v35 = vld [vmem:[%s1565_s9 + $0xe8] sm:$0xff]  ;;  %v818_v42 = vld [vmem:[%s1565_s9 + $0x60] sm:$0xff] }
 0x10a   : > { %v798_v57 = vmul.f32 0.1, %v766_v46  ;;  %v847_v60 = vadd.f32 %v815_v37, %v783_v50  ;;  %v863_v61 = vadd.f32 %v831_v41, %v799_v51  ;;  %v769_v0 = vadd.f32 %v1570_v40, %v730_v53  ;;  %v1206_v8 = vpop.f32.mrb[14].mxu0  ;;  %v834_v43 = vld [vmem:[%s1565_s9 + $0xe0] sm:$0xff]  ;;  %v821_v53 = vld [vmem:[%s1565_s9 + $0x78] sm:$0xff] }
 0x10b   : > { %v846_v1 = vadd.f32 %v814_v45, %v782_v56  ;;  %v752_v4 = vadd.f32 %v1570_v40, %v713_v58  ;;  %v768_v6 = vadd.f32 %v1570_v40, %v729_v59  ;;  %v1230_v9 = vpop.f32.mrb[14].mxu1  ;;  %v785_v12 = vmul.f32 0.1, %v753_v62  ;;  %v607_v22 = vpop.f32.mrb[15].mxu0  ;;  %v820_v59 = vld [vmem:[%s1565_s9 + $0x70] sm:$0xff] }
 0x10c   : > { %v862_v2 = vadd.f32 %v830_v47, %v798_v57  ;;  %v879_v10 = vmax.f32 %v847_v60, 0.0  ;;  %v895_v11 = vmax.f32 %v863_v61, 0.0  ;;  %v801_v13 = vmul.f32 0.1, %v769_v0  ;;  %v687_v23 = vpop.f32.mrb[15].mxu1  ;;  %v837_v57 = vld [vmem:[%s1565_s9 + $0xf8] sm:$0xff] }
 0x10d   : > { %v878_v14 = vmax.f32 %v846_v1, 0.0  ;;  %v784_v16 = vmul.f32 0.1, %v752_v4  ;;  %v800_v17 = vmul.f32 0.1, %v768_v6  ;;  %v849_v18 = vadd.f32 %v817_v63, %v785_v12  ;;  %v836_v61 = vld [vmem:[%s1565_s9 + $0xf0] sm:$0xff] }
 0x10e   : > { %v894_v15 = vmax.f32 %v862_v2, 0.0  ;;  %911 = vst.msk [vmem:[%s1602_s14 + $0x48] sm:$0xff] %vm374_vm0, %v879_v10  ;;  %927 = vst.msk [vmem:[%s1602_s14 + $0xc8] sm:$0xff] %vm374_vm0, %v895_v11  ;;  %v865_v19 = vadd.f32 %v833_v3, %v801_v13  ;;  %v716_v20 = vmul.f32 %v1203_v48, %v1558_v38  ;;  %v732_v21 = vmul.f32 %v1227_v49, %v1558_v38 }
 0x10f   : > { %910 = vst.msk [vmem:[%s1602_s14 + $0x40] sm:$0xff] %vm374_vm0, %v878_v14  ;;  %v848_v24 = vadd.f32 %v816_v5, %v784_v16  ;;  %v864_v25 = vadd.f32 %v832_v7, %v800_v17  ;;  %v715_v26 = vmul.f32 %v1558_v38, %v597_v54  ;;  %v731_v27 = vmul.f32 %v1558_v38, %v677_v55 }
 0x110   : > { %926 = vst.msk [vmem:[%s1602_s14 + $0xc0] sm:$0xff] %vm374_vm0, %v894_v15  ;;  %v881_v28 = vmax.f32 %v849_v18, 0.0  ;;  %v897_v29 = vmax.f32 %v865_v19, 0.0  ;;  %v755_v30 = vadd.f32 %v1570_v40, %v716_v20  ;;  %v771_v31 = vadd.f32 %v1570_v40, %v732_v21 }
 0x111   : > { %v880_v32 = vmax.f32 %v848_v24, 0.0  ;;  %v896_v33 = vmax.f32 %v864_v25, 0.0  ;;  %v754_v36 = vadd.f32 %v1570_v40, %v715_v26  ;;  %v770_v37 = vadd.f32 %v1570_v40, %v731_v27 }
 0x112   : > { %913 = vst.msk [vmem:[%s1602_s14 + $0x58] sm:$0xff] %vm374_vm0, %v881_v28  ;;  %929 = vst.msk [vmem:[%s1602_s14 + $0xd8] sm:$0xff] %vm374_vm0, %v897_v29  ;;  %v787_v39 = vmul.f32 0.1, %v755_v30  ;;  %v803_v41 = vmul.f32 0.1, %v771_v31  ;;  %v718_v44 = vmul.f32 %v1206_v8, %v1558_v38  ;;  %v734_v45 = vmul.f32 %v1230_v9, %v1558_v38 }
 0x113   : > { %912 = vst.msk [vmem:[%s1602_s14 + $0x50] sm:$0xff] %vm374_vm0, %v880_v32  ;;  %928 = vst.msk [vmem:[%s1602_s14 + $0xd0] sm:$0xff] %vm374_vm0, %v896_v33  ;;  %v786_v46 = vmul.f32 0.1, %v754_v36  ;;  %v802_v47 = vmul.f32 0.1, %v770_v37  ;;  %v717_v48 = vmul.f32 %v1558_v38, %v607_v22  ;;  %v733_v49 = vmul.f32 %v1558_v38, %v687_v23 }
 0x114   : > { %v851_v50 = vadd.f32 %v819_v34, %v787_v39  ;;  %v867_v51 = vadd.f32 %v835_v35, %v803_v41  ;;  %v757_v52 = vadd.f32 %v1570_v40, %v718_v44  ;;  %v773_v54 = vadd.f32 %v1570_v40, %v734_v45 }
 0x115   : > { %v850_v55 = vadd.f32 %v818_v42, %v786_v46  ;;  %v866_v56 = vadd.f32 %v834_v43, %v802_v47  ;;  %v756_v58 = vadd.f32 %v1570_v40, %v717_v48  ;;  %v772_v60 = vadd.f32 %v1570_v40, %v733_v49 }
 0x116   : > { %v883_v38 = vmax.f32 %v851_v50, 0.0  ;;  %v899_v62 = vmax.f32 %v867_v51, 0.0  ;;  %v789_v63 = vmul.f32 0.1, %v757_v52  ;;  %v805_v0 = vmul.f32 0.1, %v773_v54 }
 0x117   : > { %v882_v1 = vmax.f32 %v850_v55, 0.0  ;;  %v898_v2 = vmax.f32 %v866_v56, 0.0  ;;  %v788_v3 = vmul.f32 0.1, %v756_v58  ;;  %v804_v4 = vmul.f32 0.1, %v772_v60 }
 0x118   : > { %915 = vst.msk [vmem:[%s1602_s14 + $0x68] sm:$0xff] %vm374_vm0, %v883_v38  ;;  %931 = vst.msk [vmem:[%s1602_s14 + $0xe8] sm:$0xff] %vm374_vm0, %v899_v62  ;;  %v853_v40 = vadd.f32 %v821_v53, %v789_v63  ;;  %v869_v5 = vadd.f32 %v837_v57, %v805_v0 }
 0x119   : > { %914 = vst.msk [vmem:[%s1602_s14 + $0x60] sm:$0xff] %vm374_vm0, %v882_v1  ;;  %930 = vst.msk [vmem:[%s1602_s14 + $0xe0] sm:$0xff] %vm374_vm0, %v898_v2  ;;  %v852_v6 = vadd.f32 %v820_v59, %v788_v3  ;;  %v868_v7 = vadd.f32 %v836_v61, %v804_v4 }
 0x11a   : > { %v885_v8 = vmax.f32 %v853_v40, 0.0  ;;  %v901_v9 = vmax.f32 %v869_v5, 0.0 }
 0x11b   : > { %v884_v10 = vmax.f32 %v852_v6, 0.0  ;;  %v900_v11 = vmax.f32 %v868_v7, 0.0 }
 0x11c   : > { %917 = vst.msk [vmem:[%s1602_s14 + $0x78] sm:$0xff] %vm374_vm0, %v885_v8  ;;  %933 = vst.msk [vmem:[%s1602_s14 + $0xf8] sm:$0xff] %vm374_vm0, %v901_v9 }
 0x11d   : > { %916 = vst.msk [vmem:[%s1602_s14 + $0x70] sm:$0xff] %vm374_vm0, %v884_v10  ;;  %932 = vst.msk [vmem:[%s1602_s14 + $0xf0] sm:$0xff] %vm374_vm0, %v900_v11 }
 0x11e   : > { %1313 = shalt.err (!%p1310_p5)
}
 0x11f   : > { %s1314_s9 = scalar_lea.hbm %s1737_s24, 4096  ;;  %s1318_s12 = scalar_lea.hbm %s1802_s5, 8192 }
 0x120   : > { %p1315_p6 = scmp.ne.s32.totalorder %s1737_s24, %s1314_s9  ;;  %p1319_p10 = scmp.lt.u32.totalorder %s1737_s24, %s1802_s5 }
 0x121   : > { %p1320_p11 = scmp.lt.u32.totalorder %s1318_s12, %s1314_s9  ;;  %p1322_p13 = scmp.lt.u32.totalorder %s1314_s9, %s1737_s24 }
 0x122   : > { %p1316_p7 = pnand %p1315_p6, %p1453_p4 }
 0x123   : > { %p1321_p12 = por %p1320_p11, %p1319_p10 }
 0x124   : > { %p1317_p9 = pneg %p1316_p7 }
 0x125   : > { %p1323_p0 = por %p1322_p13, %p1321_p12 }
 0x127   : > { %p1324_p1 = pnand %p1323_p0, %p1317_p9 }
 0x129   : > { %1327 = shalt.err (!%p1324_p1)
}
 0x12a   : > { %s1381_s15 = smov 128   ;;  %s1382_s21 = smov 8  }
 0x12b   : > { %1243 = dma.vmem_to_hbm [thread:$0]  (%p1453_p4), %s1739_s16, 4096, %s1737_s24, %s1751_s25, %s1381_s15, %s1381_s15, %s1382_s21  }
 0x12c PF: > { %p1249_p2 = scmp.ge.s32.totalorder %s1378_s23, 2  ;;  %s965_s17 = sand.u32 1, %s1358_s18  }
 0x12d   : > { %s966_s27 = scalar_lea.sflag [#allocation3], %s965_s17 }
 0x12e   : > { %p1246_p3 = pnand %p1249_p2, %p1460_p8 }
 0x130   : > { %1353 = dma.done.wait (!%p1246_p3), %s966_s27, 4096  }
 0x131   : > { %1355 = vsyncadd (!%p1246_p3), %s966_s27, 4294963200  ;;  %s18_s23 = sadd.s32 1, %s1378_s23   ;;  %s1805_s18 = smov %s1362_s19 }
 0x132   : > { %p15_p5 = scmp.ge.s32.totalorder %s18_s23, 4   ;;  %s1806_s19 = smov %s1366_s20 }
 0x133   : > { %s1807_s20 = smov %s1466_s6  ;;  %s1808_s21 = smov %s1374_s22 }
 0x134   : > { %s1809_s22 = smov %s1811_s26  ;;  %17 = sbr.rel (!%p15_p5) target bundleno = 4 (0x4), region = 87 }
 0x13b   :  { %971 = vsyncpa [#allocation3], 1 }
 0x13c   :  { %973 = vsyncpa [#allocation3 + $0x1], 1 }

// kernel: rfb7a_hs_att_forward.24
= control target key start
LH: loop header
LB: loop body
LE: loop exit
PB: predicated region body
PF: predicated region fallthrough
CT: control target
= control target key end

     0   :  { %s3194_s18 = smov 0   ;;  %s4778_s0 = inlined_call_operand.vmem [shape: f32[8,256,10], index: 0, kind: input, shape index: {}]   ;;  %s4779_s1 = inlined_call_operand.vmem [shape: f32[8,256,8], index: 1, kind: input, shape index: {}]   ;;  %s4780_s2 = inlined_call_operand.vmem [shape: f32[8,8,256], index: 2, kind: input, shape index: {}]   ;;  %s4781_s3 = inlined_call_operand.vmem [shape: f32[8,1,1], index: 3, kind: input, shape index: {}]   ;;  %s4782_s4 = inlined_call_operand.vmem [shape: f32[8,1,1], index: 4, kind: input, shape index: {}]   ;;  %s4783_s5 = inlined_call_operand.vmem [shape: f32[8,256,8], index: 5, kind: output, shape index: {}]  }
   0x1 LB: > { %s2357_s19 = sadd.s32 4294967295, %s3158_s18   ;;  %p2361_p0 = scmp.ge.s32.totalorder %s3158_s18, 1  ;;  %s3158_s18 = sphi %s3194_s18, %s15_s18  }
   0x2   : > { %p223_p1 = scmp.lt.s32.totalorder %s3158_s18, 9 }
   0x4   : > { %p224_p2 = pnand %p2361_p0, %p223_p1 }
   0x6   : > { %227 = sbr.rel (%p224_p2) target bundleno = 1617 (0x651), region = 40 }
   0xd   : > { %p267_p3 = scmp.lt.s32.totalorder %s2357_s19, 7  ;;  %vm457_vm0 = vcmask 7168   ;;  %s3160_s24 = smov 127   ;;  %vm1787_vm2 = vcmask 64512  }
   0xe   : > { %s3161_s25 = smov 126   ;;  %vm3395_vm1 = vmpackc.low %vm457_vm0, %vm457_vm0 }
   0xf   : > { %s4973_s19 = smov (!%p267_p3, %s2357_s19), 7 }
  0x10   : > { %s3205_s20 = sshll.u32 %s4973_s19, 8  ;;  %s2473_s26 = sshll.u32 %s4973_s19, 4 }
  0x11   : > { %s3211_s23 = scalar_lea.vmem %s4778_s0, %s3205_s20  ;;  %s281_s29 = scalar_lea.vmem %s4780_s2, %s2473_s26 }
  0x12   : > { %v3214_v0 = vld [vmem:[%s3211_s23 + $0x80] sm:$0xff]  ;;  %v3217_v1 = vld [vmem:[%s3211_s23 + $0x88] sm:$0xff]  ;;  %v3230_v5 = vld [vmem:[%s3211_s23 + $0x90] sm:$0xff]  ;;  %s284_s7 = scalar_lea.vmem %s4781_s3, %s4973_s19  ;;  %s4329_s10 = scalar_lea.vmem %s4779_s1, %s3205_s20 }
  0x13   : > { %v3220_v2 = vld [vmem:[%s3211_s23] sm:$0xff]  ;;  %v3224_v3 = vpack.i.bf16 %v3217_v1, %v3214_v0  ;;  %v3227_v4 = vld [vmem:[%s3211_s23 + $0x8] sm:$0xff]  ;;  %v3233_v6 = vld [vmem:[%s3211_s23 + $0x98] sm:$0xff]  ;;  %s287_s13 = scalar_lea.vmem %s4782_s4, %s4973_s19  ;;  %s4562_s16 = scalar_lea.vmem %s4783_s5, %s3205_s20 }
  0x14   : > { %2507 = vmatprep.mubr.msk.f32.mxu0 %vm457_vm0, %v3220_v2  ;;  %v3239_v7 = vpack.i.bf16 %v3233_v6, %v3230_v5  ;;  %v3242_v8 = vld [vmem:[%s3211_s23 + $0x10] sm:$0xff]  ;;  %v3245_v9 = vld [vmem:[%s3211_s23 + $0x18] sm:$0xff]  ;;  %v2799_v10 = vpack.i.bf16 %v3227_v4, %v3220_v2  ;;  %v3256_v12 = vld [vmem:[%s3211_s23 + $0xa0] sm:$0xff] }
  0x15   : > { %2795 = vrot.lane.b32.xlu0 %v3224_v3, %s3160_s24  ;;  %v2809_v11 = vpack.i.bf16 %v3245_v9, %v3242_v8  ;;  %v3259_v13 = vld [vmem:[%s3211_s23 + $0xa8] sm:$0xff]  ;;  %v3262_v14 = vld [vmem:[%s3211_s23 + $0x20] sm:$0xff]  ;;  %v3274_v18 = vld [vmem:[%s3211_s23 + $0xb0] sm:$0xff] }
  0x16   : > { %2805 = vrot.lane.b32.xlu1 %v3239_v7, %s3160_s24  ;;  %v3265_v15 = vld [vmem:[%s3211_s23 + $0x28] sm:$0xff]  ;;  %v2814_v16 = vpack.i.bf16 %v3259_v13, %v3256_v12  ;;  %v3277_v19 = vld [vmem:[%s3211_s23 + $0xb8] sm:$0xff]  ;;  %v3280_v20 = vld [vmem:[%s3211_s23 + $0x30] sm:$0xff] }
  0x17   : > { %v2819_v17 = vpack.i.bf16 %v3265_v15, %v3262_v14  ;;  %v3283_v21 = vld [vmem:[%s3211_s23 + $0x38] sm:$0xff]  ;;  %v3288_v22 = vpack.i.bf16 %v3277_v19, %v3274_v18  ;;  %v3294_v24 = vld [vmem:[%s3211_s23 + $0xc0] sm:$0xff]  ;;  %v3297_v25 = vld [vmem:[%s3211_s23 + $0xc8] sm:$0xff] }
  0x18   : > { %v2829_v23 = vpack.i.bf16 %v3283_v21, %v3280_v20  ;;  %v3300_v26 = vld [vmem:[%s3211_s23 + $0x40] sm:$0xff]  ;;  %v3303_v27 = vld [vmem:[%s3211_s23 + $0x48] sm:$0xff]  ;;  %v3309_v28 = vpack.i.bf16 %v3297_v25, %v3294_v24  ;;  %v3315_v30 = vld [vmem:[%s3211_s23 + $0xd0] sm:$0xff] }
  0x19   : > { %2800 = vrot.lane.b32.xlu0 %v2799_v10, %s3160_s24  ;;  %v2839_v29 = vpack.i.bf16 %v3303_v27, %v3300_v26  ;;  %v3318_v31 = vld [vmem:[%s3211_s23 + $0xd8] sm:$0xff]  ;;  %v3321_v32 = vld [vmem:[%s3211_s23 + $0x50] sm:$0xff]  ;;  %v3336_v36 = vld [vmem:[%s3211_s23 + $0xe0] sm:$0xff] }
  0x1a   : > { %2810 = vrot.lane.b32.xlu1 %v2809_v11, %s3160_s24  ;;  %v3324_v33 = vld [vmem:[%s3211_s23 + $0x58] sm:$0xff]  ;;  %v3330_v34 = vpack.i.bf16 %v3318_v31, %v3315_v30  ;;  %v3339_v37 = vld [vmem:[%s3211_s23 + $0xe8] sm:$0xff]  ;;  %v3342_v38 = vld [vmem:[%s3211_s23 + $0x60] sm:$0xff] }
  0x1b   : > { %v2849_v35 = vpack.i.bf16 %v3324_v33, %v3321_v32  ;;  %v3345_v39 = vld [vmem:[%s3211_s23 + $0x68] sm:$0xff]  ;;  %v3351_v40 = vpack.i.bf16 %v3339_v37, %v3336_v36  ;;  %v3357_v42 = vld [vmem:[%s3211_s23 + $0xf0] sm:$0xff]  ;;  %v3360_v43 = vld [vmem:[%s3211_s23 + $0xf8] sm:$0xff] }
  0x1c   : > { %v2859_v41 = vpack.i.bf16 %v3345_v39, %v3342_v38  ;;  %v3363_v44 = vld [vmem:[%s3211_s23 + $0x70] sm:$0xff]  ;;  %v3366_v45 = vld [vmem:[%s3211_s23 + $0x78] sm:$0xff]  ;;  %v3372_v46 = vpack.i.bf16 %v3360_v43, %v3357_v42 }
  0x1d   : > { %2815 = vrot.lane.b32.xlu0 %v2814_v16, %s3160_s24  ;;  %v2869_v47 = vpack.i.bf16 %v3366_v45, %v3363_v44 }
  0x1e   : > { %2820 = vrot.lane.b32.xlu1 %v2819_v17, %s3160_s24 }
  0x21   : > { %2825 = vrot.lane.b32.xlu0 %v3288_v22, %s3160_s24 }
  0x22   : > { %2830 = vrot.lane.b32.xlu1 %v2829_v23, %s3160_s24 }
  0x25   : > { %2835 = vrot.lane.b32.xlu0 %v3309_v28, %s3160_s24 }
  0x26   : > { %2840 = vrot.lane.b32.xlu1 %v2839_v29, %s3160_s24 }
  0x29   : > { %2845 = vrot.lane.b32.xlu0 %v3330_v34, %s3160_s24 }
  0x2a   : > { %2850 = vrot.lane.b32.xlu1 %v2849_v35, %s3160_s24 }
  0x2d   : > { %2855 = vrot.lane.b32.xlu0 %v3351_v40, %s3160_s24 }
  0x2e   : > { %2860 = vrot.lane.b32.xlu1 %v2859_v41, %s3160_s24 }
  0x31   : > { %2865 = vrot.lane.b32.xlu0 %v3372_v46, %s3160_s24 }
  0x32   : > { %2870 = vrot.lane.b32.xlu1 %v2869_v47, %s3160_s24 }
  0x35   : > { %2875 = vrot.lane.b32.xlu0 %v2799_v10, %s3161_s25 }
  0x36   : > { %2880 = vrot.lane.b32.xlu1 %v2809_v11, %s3161_s25 }
  0x39   : > { %2890 = vrot.lane.b32.xlu0 %v2829_v23, %s3161_s25 }
  0x3a   : > { %2885 = vrot.lane.b32.xlu1 %v2819_v17, %s3161_s25 }
  0x3d   : > { %2900 = vrot.lane.b32.xlu0 %v2849_v35, %s3161_s25 }
  0x3e   : > { %2895 = vrot.lane.b32.xlu1 %v2839_v29, %s3161_s25 }
  0x41   : > { %2910 = vrot.lane.b32.xlu0 %v2869_v47, %s3161_s25 }
  0x42   : > { %2905 = vrot.lane.b32.xlu1 %v2859_v41, %s3161_s25 }
  0x45   : > { %2920 = vrot.lane.b32.xlu0 %v3239_v7, %s3161_s25 }
  0x46   : > { %2915 = vrot.lane.b32.xlu1 %v3224_v3, %s3161_s25 }
  0x49   : > { %2925 = vrot.lane.b32.xlu0 %v2814_v16, %s3161_s25 }
  0x87   : > { %v2796_v48 = vpop.permute.xlu0 %2795 }
  0x88   : > { %v2798_v49 = vunpack.i.h.bf16 %v2796_v48  ;;  %v2797_v50 = vunpack.i.l.bf16 %v2796_v48  ;;  %v2806_v51 = vpop.permute.xlu1 %2805 }
  0x89   : > { %v2808_v53 = vunpack.i.h.bf16 %v2806_v51  ;;  %v2807_v54 = vunpack.i.l.bf16 %v2806_v51 }
  0x8a   : > { %v2654_v55 = vpack.c.bf16 %v2798_v49, %v2797_v50 }
  0x8b   : > { %v2801_v56 = vpop.permute.xlu0 %2800  ;;  %v2660_v59 = vpack.c.bf16 %v2808_v53, %v2807_v54 }
  0x8c   : > { %v2803_v57 = vunpack.i.h.bf16 %v2801_v56  ;;  %v2802_v58 = vunpack.i.l.bf16 %v2801_v56  ;;  %2656 = vmatprep.subr.msk.bf16.mxu0 %vm3395_vm1, %v2654_v55  ;;  %v2811_v60 = vpop.permute.xlu1 %2810 }
  0x8d   : > { %v2813_v63 = vunpack.i.h.bf16 %v2811_v60  ;;  %v2812_v3 = vunpack.i.l.bf16 %v2811_v60 }
  0x8e   : > { %v2657_v61 = vpack.c.bf16 %v2803_v57, %v2802_v58 }
  0x8f   : > { %v2816_v62 = vpop.permute.xlu0 %2815  ;;  %v2663_v11 = vpack.c.bf16 %v2813_v63, %v2812_v3 }
  0x90   : > { %2659 = vmatpush3.bf16.xpose.msk.msra.mxu0 %vm3395_vm1, %v2657_v61  ;;  %v2818_v7 = vunpack.i.h.bf16 %v2816_v62  ;;  %v2817_v10 = vunpack.i.l.bf16 %v2816_v62  ;;  %v2821_v17 = vpop.permute.xlu1 %2820 }
  0x91   : > { %2662 = vmatprep.subr.msk.bf16.mxu0 %vm3395_vm1, %v2660_v59  ;;  %v2823_v29 = vunpack.i.h.bf16 %v2821_v17  ;;  %v2822_v35 = vunpack.i.l.bf16 %v2821_v17 }
  0x92   : > { %v2666_v16 = vpack.c.bf16 %v2818_v7, %v2817_v10 }
  0x93   : > { %v2826_v23 = vpop.permute.xlu0 %2825  ;;  %v2669_v48 = vpack.c.bf16 %v2823_v29, %v2822_v35 }
  0x94   : > { %v2828_v41 = vunpack.i.h.bf16 %v2826_v23  ;;  %v2827_v47 = vunpack.i.l.bf16 %v2826_v23  ;;  %v2831_v50 = vpop.permute.xlu1 %2830 }
  0x95   : > { %v2833_v53 = vunpack.i.h.bf16 %v2831_v50  ;;  %v2832_v54 = vunpack.i.l.bf16 %v2831_v50 }
  0x96   : > { %v2672_v49 = vpack.c.bf16 %v2828_v41, %v2827_v47 }
  0x97   : > { %v2836_v51 = vpop.permute.xlu0 %2835  ;;  %v2675_v57 = vpack.c.bf16 %v2833_v53, %v2832_v54 }
  0x98   : > { %2665 = vmatpush3.bf16.xpose.msk.msra.mxu0 %vm3395_vm1, %v2663_v11  ;;  %v2838_v55 = vunpack.i.h.bf16 %v2836_v51  ;;  %v2837_v56 = vunpack.i.l.bf16 %v2836_v51  ;;  %v2841_v59 = vpop.permute.xlu1 %2840 }
  0x99   : > { %2668 = vmatprep.subr.msk.bf16.mxu0 %vm3395_vm1, %v2666_v16  ;;  %v2843_v61 = vunpack.i.h.bf16 %v2841_v59  ;;  %v2842_v62 = vunpack.i.l.bf16 %v2841_v59 }
  0x9a   : > { %v2678_v58 = vpack.c.bf16 %v2838_v55, %v2837_v56 }
  0x9b   : > { %v2846_v60 = vpop.permute.xlu0 %2845  ;;  %v2681_v7 = vpack.c.bf16 %v2843_v61, %v2842_v62 }
  0x9c   : > { %v2848_v63 = vunpack.i.h.bf16 %v2846_v60  ;;  %v2847_v3 = vunpack.i.l.bf16 %v2846_v60  ;;  %v2851_v11 = vpop.permute.xlu1 %2850 }
  0x9d   : > { %v2853_v17 = vunpack.i.h.bf16 %v2851_v11  ;;  %v2852_v23 = vunpack.i.l.bf16 %v2851_v11 }
  0x9e   : > { %v2684_v10 = vpack.c.bf16 %v2848_v63, %v2847_v3 }
  0x9f   : > { %v2856_v16 = vpop.permute.xlu0 %2855  ;;  %v2687_v41 = vpack.c.bf16 %v2853_v17, %v2852_v23 }
  0xa0   : > { %2671 = vmatpush3.bf16.xpose.msk.msra.mxu0 %vm3395_vm1, %v2669_v48  ;;  %v2858_v29 = vunpack.i.h.bf16 %v2856_v16  ;;  %v2857_v35 = vunpack.i.l.bf16 %v2856_v16  ;;  %v2861_v48 = vpop.permute.xlu1 %2860 }
  0xa1   : > { %2674 = vmatprep.subr.msk.bf16.mxu0 %vm3395_vm1, %v2672_v49  ;;  %v2863_v50 = vunpack.i.h.bf16 %v2861_v48  ;;  %v2862_v51 = vunpack.i.l.bf16 %v2861_v48 }
  0xa2   : > { %v2690_v47 = vpack.c.bf16 %v2858_v29, %v2857_v35 }
  0xa3   : > { %v2866_v49 = vpop.permute.xlu0 %2865  ;;  %v2693_v55 = vpack.c.bf16 %v2863_v50, %v2862_v51 }
  0xa4   : > { %v2868_v53 = vunpack.i.h.bf16 %v2866_v49  ;;  %v2867_v54 = vunpack.i.l.bf16 %v2866_v49 }
  0xa6   : > { %v2696_v56 = vpack.c.bf16 %v2868_v53, %v2867_v54 }
  0xa8   : > { %2677 = vmatpush3.bf16.xpose.msk.msra.mxu0 %vm3395_vm1, %v2675_v57  ;;  %v2871_v57 = vpop.permute.xlu1 %2870 }
  0xa9   : > { %2680 = vmatprep.subr.msk.bf16.mxu0 %vm3395_vm1, %v2678_v58  ;;  %v2873_v58 = vunpack.i.h.bf16 %v2871_v57  ;;  %v2872_v59 = vunpack.i.l.bf16 %v2871_v57 }
  0xab   : > { %v2699_v60 = vpack.c.bf16 %v2873_v58, %v2872_v59 }
  0xb0   : > { %2683 = vmatpush3.bf16.xpose.msk.msra.mxu0 %vm3395_vm1, %v2681_v7 }
  0xb1   : > { %2686 = vmatprep.subr.msk.bf16.mxu0 %vm3395_vm1, %v2684_v10 }
  0xb8   : > { %2689 = vmatpush3.bf16.xpose.msk.msra.mxu0 %vm3395_vm1, %v2687_v41 }
  0xb9   : > { %2692 = vmatprep.subr.msk.bf16.mxu0 %vm3395_vm1, %v2690_v47 }
  0xc0   : > { %2695 = vmatpush3.bf16.xpose.msk.msra.mxu0 %vm3395_vm1, %v2693_v55 }
  0xc1   : > { %2698 = vmatprep.subr.msk.bf16.mxu0 %vm3395_vm1, %v2696_v56 }
  0xc8   : > { %2701 = vmatpush3.bf16.xpose.msk.msra.mxu0 %vm3395_vm1, %v2699_v60 }
  0xcf   : > { %2508 = vmatmul.mubr.msk.f32.vlgmr.msra.gmra.mrb[0].mxu0 %vm457_vm0, %v3220_v2 }
  0xd0   : > { %2509 = vmatprep.mubr.msk.f32.mxu0 %vm457_vm0, %v3227_v4 }
  0xd3   : > { %2510 = vmatmul.mubr.msk.f32.gmra.mrb[2].mxu0 %vm457_vm0, %v3227_v4 }
  0xd4   : > { %2511 = vmatprep.mubr.msk.f32.mxu0 %vm457_vm0, %v3242_v8 }
  0xd7   : > { %2512 = vmatmul.mubr.msk.f32.gmra.mrb[4].mxu0 %vm457_vm0, %v3242_v8 }
  0xd8   : > { %2513 = vmatprep.mubr.msk.f32.mxu0 %vm457_vm0, %v3245_v9 }
  0xdb   : > { %2514 = vmatmul.mubr.msk.f32.gmra.mrb[6].mxu0 %vm457_vm0, %v3245_v9 }
  0xdc   : > { %2515 = vmatprep.mubr.msk.f32.mxu0 %vm457_vm0, %v3262_v14 }
  0xdf   : > { %2516 = vmatmul.mubr.msk.f32.gmra.mrb[8].mxu0 %vm457_vm0, %v3262_v14 }
  0xe0   : > { %2517 = vmatprep.mubr.msk.f32.mxu0 %vm457_vm0, %v3265_v15 }
  0xe3   : > { %2518 = vmatmul.mubr.msk.f32.gmra.mrb[10].mxu0 %vm457_vm0, %v3265_v15 }
  0xe4   : > { %2519 = vmatprep.mubr.msk.f32.mxu0 %vm457_vm0, %v3280_v20 }
  0xe7   : > { %2520 = vmatmul.mubr.msk.f32.gmra.mrb[12].mxu0 %vm457_vm0, %v3280_v20 }
  0xe8   : > { %2521 = vmatprep.mubr.msk.f32.mxu0 %vm457_vm0, %v3283_v21 }
  0xeb   : > { %2522 = vmatmul.mubr.msk.f32.gmra.mrb[14].mxu0 %vm457_vm0, %v3283_v21 }
  0xec   : > { %2523 = vmatprep.mubr.msk.f32.mxu0 %vm457_vm0, %v3300_v26 }
  0xef   : > { %2524 = vmatmul.mubr.msk.f32.gmra.mrb[16].mxu0 %vm457_vm0, %v3300_v26 }
  0xf0   : > { %2525 = vmatprep.mubr.msk.f32.mxu0 %vm457_vm0, %v3303_v27 }
  0xf3   : > { %2526 = vmatmul.mubr.msk.f32.gmra.mrb[18].mxu0 %vm457_vm0, %v3303_v27 }
  0xf4   : > { %2527 = vmatprep.mubr.msk.f32.mxu0 %vm457_vm0, %v3321_v32 }
  0xf7   : > { %2528 = vmatmul.mubr.msk.f32.gmra.mrb[20].mxu0 %vm457_vm0, %v3321_v32 }
  0xf8   : > { %2529 = vmatprep.mubr.msk.f32.mxu0 %vm457_vm0, %v3324_v33 }
  0xfb   : > { %2530 = vmatmul.mubr.msk.f32.gmra.mrb[22].mxu0 %vm457_vm0, %v3324_v33 }
  0xfc   : > { %2531 = vmatprep.mubr.msk.f32.mxu0 %vm457_vm0, %v3342_v38 }
  0xff   : > { %2532 = vmatmul.mubr.msk.f32.gmra.mrb[24].mxu0 %vm457_vm0, %v3342_v38 }
 0x100   : > { %2533 = vmatprep.mubr.msk.f32.mxu0 %vm457_vm0, %v3345_v39 }
 0x103   : > { %2534 = vmatmul.mubr.msk.f32.gmra.mrb[26].mxu0 %vm457_vm0, %v3345_v39 }
 0x104   : > { %2535 = vmatprep.mubr.msk.f32.mxu0 %vm457_vm0, %v3363_v44 }
 0x107   : > { %2536 = vmatmul.mubr.msk.f32.gmra.mrb[28].mxu0 %vm457_vm0, %v3363_v44 }
 0x108   : > { %2537 = vmatprep.mubr.msk.f32.mxu0 %vm457_vm0, %v3366_v45 }
 0x10b   : > { %2538 = vmatmul.mubr.msk.f32.gmra.mrb[30].mxu0 %vm457_vm0, %v3366_v45 }
 0x10c   : > { %2539 = vmatprep.mubr.msk.f32.mxu0 %vm457_vm0, %v3214_v0 }
 0x10f   : > { %2540 = vmatmul.mubr.msk.f32.gmra.mrb[32].mxu0 %vm457_vm0, %v3214_v0  ;;  %v2876_v0 = vpop.permute.xlu0 %2875 }
 0x110   : > { %2541 = vmatprep.mubr.msk.f32.mxu0 %vm457_vm0, %v3217_v1  ;;  %v2878_v2 = vunpack.i.h.bf16 %v2876_v0  ;;  %v2877_v4 = vunpack.i.l.bf16 %v2876_v0 }
 0x112   : > { %v2703_v9 = vpack.c.bf16 %v2878_v2, %v2877_v4 }
 0x113   : > { %2542 = vmatmul.mubr.msk.f32.gmra.mrb[34].mxu0 %vm457_vm0, %v3217_v1  ;;  %v2881_v1 = vpop.permute.xlu1 %2880 }
 0x114   : > { %2543 = vmatprep.mubr.msk.f32.mxu0 %vm457_vm0, %v3230_v5  ;;  %v2882_v8 = vunpack.i.l.bf16 %v2881_v1 }
 0x117   : > { %2544 = vmatmul.mubr.msk.f32.gmra.mrb[36].mxu0 %vm457_vm0, %v3230_v5  ;;  %v4784_v5 = vmov 0.0|0.0  }
 0x118   : > { %2545 = vmatprep.mubr.msk.f32.mxu0 %vm457_vm0, %v3233_v6  ;;  %2750 = vmatprep.subr.bf16.mxu1 %v4784_v5 }
 0x119   : > { %2702 = vmatprep.subr.bf16.mxu0 %v4784_v5  ;;  %2766 = vmatpush1.bf16.msra.mxu1 %v2703_v9 }
 0x11a   : > { %2704 = vmatpush1.bf16.msra.mxu0 %v2703_v9  ;;  %2751 = vmatprep.subr.bf16.mxu1 %v4784_v5 }
 0x11b   : > { %2546 = vmatmul.mubr.msk.f32.gmra.mrb[38].mxu0 %vm457_vm0, %v3233_v6  ;;  %v2883_v6 = vunpack.i.h.bf16 %v2881_v1  ;;  %2705 = vmatprep.subr.bf16.mxu0 %v4784_v5 }
 0x11c   : > { %2547 = vmatprep.mubr.msk.f32.mxu0 %vm457_vm0, %v3256_v12 }
 0x11f   : > { %2548 = vmatmul.mubr.msk.f32.gmra.mrb[40].mxu0 %vm457_vm0, %v3256_v12  ;;  %v2886_v12 = vpop.permute.xlu1 %2885 }
 0x120   : > { %2549 = vmatprep.mubr.msk.f32.mxu0 %vm457_vm0, %v3259_v13  ;;  %v2888_v14 = vunpack.i.h.bf16 %v2886_v12  ;;  %v2887_v15 = vunpack.i.l.bf16 %v2886_v12 }
 0x123   : > { %2550 = vmatmul.mubr.msk.f32.gmra.mrb[42].mxu0 %vm457_vm0, %v3259_v13  ;;  %v2706_v13 = vpack.c.bf16 %v2883_v6, %v2882_v8 }
 0x124   : > { %2551 = vmatprep.mubr.msk.f32.mxu0 %vm457_vm0, %v3274_v18 }
 0x125   : > { %2707 = vmatpush1.bf16.msra.mxu0 %v2706_v13  ;;  %2767 = vmatpush1.bf16.msra.mxu1 %v2706_v13 }
 0x126   : > { %2708 = vmatprep.subr.bf16.mxu0 %v4784_v5  ;;  %2752 = vmatprep.subr.bf16.mxu1 %v4784_v5 }
 0x127   : > { %2552 = vmatmul.mubr.msk.f32.gmra.mrb[44].mxu0 %vm457_vm0, %v3274_v18  ;;  %v2891_v18 = vpop.permute.xlu0 %2890 }
 0x128   : > { %2553 = vmatprep.mubr.msk.f32.mxu0 %vm457_vm0, %v3277_v19  ;;  %v2893_v20 = vunpack.i.h.bf16 %v2891_v18  ;;  %v2892_v21 = vunpack.i.l.bf16 %v2891_v18 }
 0x12b   : > { %2554 = vmatmul.mubr.msk.f32.gmra.mrb[46].mxu0 %vm457_vm0, %v3277_v19  ;;  %v2709_v19 = vpack.c.bf16 %v2888_v14, %v2887_v15 }
 0x12c   : > { %2555 = vmatprep.mubr.msk.f32.mxu0 %vm457_vm0, %v3294_v24 }
 0x12d   : > { %2710 = vmatpush1.bf16.msra.mxu0 %v2709_v19  ;;  %2768 = vmatpush1.bf16.msra.mxu1 %v2709_v19 }
 0x12e   : > { %2711 = vmatprep.subr.bf16.mxu0 %v4784_v5  ;;  %2753 = vmatprep.subr.bf16.mxu1 %v4784_v5 }
 0x12f   : > { %2556 = vmatmul.mubr.msk.f32.gmra.mrb[48].mxu0 %vm457_vm0, %v3294_v24  ;;  %v2896_v24 = vpop.permute.xlu1 %2895 }
 0x130   : > { %2557 = vmatprep.mubr.msk.f32.mxu0 %vm457_vm0, %v3297_v25  ;;  %v2898_v26 = vunpack.i.h.bf16 %v2896_v24  ;;  %v2897_v27 = vunpack.i.l.bf16 %v2896_v24 }
 0x133   : > { %2558 = vmatmul.mubr.msk.f32.gmra.mrb[50].mxu0 %vm457_vm0, %v3297_v25  ;;  %v2712_v25 = vpack.c.bf16 %v2893_v20, %v2892_v21 }
 0x134   : > { %2559 = vmatprep.mubr.msk.f32.mxu0 %vm457_vm0, %v3315_v30 }
 0x135   : > { %2713 = vmatpush1.bf16.msra.mxu0 %v2712_v25  ;;  %2769 = vmatpush1.bf16.msra.mxu1 %v2712_v25 }
 0x136   : > { %2714 = vmatprep.subr.bf16.mxu0 %v4784_v5  ;;  %2754 = vmatprep.subr.bf16.mxu1 %v4784_v5 }
 0x137   : > { %2560 = vmatmul.mubr.msk.f32.gmra.mrb[52].mxu0 %vm457_vm0, %v3315_v30  ;;  %v2901_v30 = vpop.permute.xlu0 %2900 }
 0x138   : > { %2561 = vmatprep.mubr.msk.f32.mxu0 %vm457_vm0, %v3318_v31  ;;  %v2903_v32 = vunpack.i.h.bf16 %v2901_v30  ;;  %v2902_v33 = vunpack.i.l.bf16 %v2901_v30 }
 0x13b   : > { %2562 = vmatmul.mubr.msk.f32.gmra.mrb[54].mxu0 %vm457_vm0, %v3318_v31  ;;  %v2715_v31 = vpack.c.bf16 %v2898_v26, %v2897_v27 }
 0x13c   : > { %2563 = vmatprep.mubr.msk.f32.mxu0 %vm457_vm0, %v3336_v36 }
 0x13d   : > { %2716 = vmatpush1.bf16.msra.mxu0 %v2715_v31  ;;  %2770 = vmatpush1.bf16.msra.mxu1 %v2715_v31 }
 0x13e   : > { %2717 = vmatprep.subr.bf16.mxu0 %v4784_v5  ;;  %2755 = vmatprep.subr.bf16.mxu1 %v4784_v5 }
 0x13f   : > { %2564 = vmatmul.mubr.msk.f32.gmra.mrb[56].mxu0 %vm457_vm0, %v3336_v36  ;;  %v2906_v36 = vpop.permute.xlu1 %2905 }
 0x140   : > { %2565 = vmatprep.mubr.msk.f32.mxu0 %vm457_vm0, %v3339_v37  ;;  %v2908_v38 = vunpack.i.h.bf16 %v2906_v36  ;;  %v2907_v39 = vunpack.i.l.bf16 %v2906_v36 }
 0x143   : > { %2566 = vmatmul.mubr.msk.f32.gmra.mrb[58].mxu0 %vm457_vm0, %v3339_v37  ;;  %v2718_v37 = vpack.c.bf16 %v2903_v32, %v2902_v33  ;;  %v2916_v52 = vpop.permute.xlu1 %2915 }
 0x144   : > { %2567 = vmatprep.mubr.msk.f32.mxu0 %vm457_vm0, %v3357_v42  ;;  %v2918_v63 = vunpack.i.h.bf16 %v2916_v52  ;;  %v2917_v3 = vunpack.i.l.bf16 %v2916_v52 }
 0x145   : > { %2719 = vmatpush1.bf16.msra.mxu0 %v2718_v37  ;;  %2771 = vmatpush1.bf16.msra.mxu1 %v2718_v37 }
 0x146   : > { %2720 = vmatprep.subr.bf16.mxu0 %v4784_v5  ;;  %2756 = vmatprep.subr.bf16.mxu1 %v4784_v5  ;;  %v2727_v7 = vpack.c.bf16 %v2918_v63, %v2917_v3 }
 0x147   : > { %2568 = vmatmul.mubr.msk.f32.gmra.mrb[60].mxu0 %vm457_vm0, %v3357_v42  ;;  %v2911_v42 = vpop.permute.xlu0 %2910 }
 0x148   : > { %2569 = vmatprep.mubr.msk.f32.mxu0 %vm457_vm0, %v3360_v43  ;;  %v2913_v44 = vunpack.i.h.bf16 %v2911_v42  ;;  %v2912_v45 = vunpack.i.l.bf16 %v2911_v42 }
 0x14a   : > { %v2724_v62 = vpack.c.bf16 %v2913_v44, %v2912_v45 }
 0x14b   : > { %2570 = vmatmul.mubr.msk.f32.gmra.mrb[62].mxu0 %vm457_vm0, %v3360_v43  ;;  %v2721_v43 = vpack.c.bf16 %v2908_v38, %v2907_v39  ;;  %v2921_v61 = vpop.permute.xlu0 %2920 }
 0x14c   : > { %v2923_v10 = vunpack.i.h.bf16 %v2921_v61  ;;  %v2922_v11 = vunpack.i.l.bf16 %v2921_v61 }
 0x14d   : > { %2722 = vmatpush1.bf16.msra.mxu0 %v2721_v43  ;;  %2772 = vmatpush1.bf16.msra.mxu1 %v2721_v43 }
 0x14e   : > { %2723 = vmatprep.subr.bf16.mxu0 %v4784_v5  ;;  %2757 = vmatprep.subr.bf16.mxu1 %v4784_v5  ;;  %v2730_v17 = vpack.c.bf16 %v2923_v10, %v2922_v11 }
 0x14f   : > { %v2926_v16 = vpop.permute.xlu0 %2925 }
 0x150   : > { %v2928_v23 = vunpack.i.h.bf16 %v2926_v16  ;;  %v2927_v29 = vunpack.i.l.bf16 %v2926_v16 }
 0x151   : > { %2725 = vmatpush1.bf16.msra.mxu0 %v2724_v62  ;;  %2773 = vmatpush1.bf16.msra.mxu1 %v2724_v62 }
 0x152   : > { %2726 = vmatprep.subr.bf16.mxu0 %v4784_v5  ;;  %2758 = vmatprep.subr.bf16.mxu1 %v4784_v5  ;;  %v2733_v35 = vpack.c.bf16 %v2928_v23, %v2927_v29 }
 0x155   : > { %2728 = vmatpush1.bf16.msra.mxu0 %v2727_v7  ;;  %2774 = vmatpush1.bf16.msra.mxu1 %v2727_v7 }
 0x156   : > { %2729 = vmatprep.subr.bf16.mxu0 %v4784_v5  ;;  %2759 = vmatprep.subr.bf16.mxu1 %v4784_v5 }
 0x159   : > { %2731 = vmatpush1.bf16.msra.mxu0 %v2730_v17  ;;  %2775 = vmatpush1.bf16.msra.mxu1 %v2730_v17 }
 0x15a   : > { %2732 = vmatprep.subr.bf16.mxu0 %v4784_v5  ;;  %2760 = vmatprep.subr.bf16.mxu1 %v4784_v5 }
 0x15d   : > { %2734 = vmatpush1.bf16.msra.mxu0 %v2733_v35  ;;  %2776 = vmatpush1.bf16.msra.mxu1 %v2733_v35 }
 0x15e   : > { %2735 = vmatprep.subr.bf16.mxu0 %v4784_v5  ;;  %2761 = vmatprep.subr.bf16.mxu1 %v4784_v5 }
 0x1a2   : > { %v3581_v41 = vpop.f32.mrb[0].mxu0 }
 0x1a3   : > { %v3583_v47 = vpop.f32.mrb[1].mxu0 }
 0x1a4   : > { %v843_v48 = vmax.f32 %v3581_v41, %v3583_v47 }
 0x1a6   : > { %844 = vmax.xlane.f32.xlu0 %v843_v48  ;;  %v3587_v49 = vpop.f32.mrb[2].mxu0 }
 0x1a7   : > { %v3589_v50 = vpop.f32.mrb[3].mxu0 }
 0x1a8   : > { %v846_v51 = vmax.f32 %v3587_v49, %v3589_v50 }
 0x1aa   : > { %847 = vmax.xlane.f32.xlu1 %v846_v51  ;;  %v3593_v53 = vpop.f32.mrb[4].mxu0 }
 0x1ab   : > { %v3595_v54 = vpop.f32.mrb[5].mxu0 }
 0x1ac   : > { %v849_v55 = vmax.f32 %v3593_v53, %v3595_v54 }
 0x1ae   : > { %850 = vmax.xlane.f32.xlu0 %v849_v55  ;;  %v3599_v56 = vpop.f32.mrb[6].mxu0 }
 0x1af   : > { %v3601_v57 = vpop.f32.mrb[7].mxu0 }
 0x1b0   : > { %v852_v58 = vmax.f32 %v3599_v56, %v3601_v57 }
 0x1b2   : > { %853 = vmax.xlane.f32.xlu0 %v852_v58  ;;  %v3605_v59 = vpop.f32.mrb[8].mxu0 }
 0x1b3   : > { %v3607_v60 = vpop.f32.mrb[9].mxu0 }
 0x1b4   : > { %v855_v0 = vmax.f32 %v3605_v59, %v3607_v60 }
 0x1b6   : > { %856 = vmax.xlane.f32.xlu1 %v855_v0  ;;  %v3611_v1 = vpop.f32.mrb[10].mxu0 }
 0x1b7   : > { %v3613_v2 = vpop.f32.mrb[11].mxu0 }
 0x1b8   : > { %v858_v4 = vmax.f32 %v3611_v1, %v3613_v2 }
 0x1ba   : > { %859 = vmax.xlane.f32.xlu0 %v858_v4  ;;  %v3617_v6 = vpop.f32.mrb[12].mxu0 }
 0x1bb   : > { %v3619_v8 = vpop.f32.mrb[13].mxu0 }
 0x1bc   : > { %v861_v9 = vmax.f32 %v3617_v6, %v3619_v8 }
 0x1be   : > { %862 = vmax.xlane.f32.xlu1 %v861_v9  ;;  %v3629_v12 = vpop.f32.mrb[14].mxu0 }
 0x1bf   : > { %v3631_v13 = vpop.f32.mrb[15].mxu0 }
 0x1c2   : > { %v3633_v14 = vpop.f32.mrb[16].mxu0 }
 0x1c3   : > { %v3637_v18 = vpop.f32.mrb[17].mxu0 }
 0x1c6   : > { %v3641_v19 = vpop.f32.mrb[18].mxu0 }
 0x1cf   : > { %2930 = vrot.lane.b32.xlu1 %v3288_v22, %s3161_s25 }
 0x1d0   : > { %2935 = vrot.lane.b32.xlu0 %v3309_v28, %s3161_s25  ;;  %v3643_v28 = vpop.f32.mrb[19].mxu0 }
 0x1d1   : > { %v3647_v20 = vpop.f32.mrb[20].mxu0 }
 0x1d2   : > { %v3649_v21 = vpop.f32.mrb[21].mxu0 }
 0x1d3   : > { %v3653_v25 = vpop.f32.mrb[22].mxu0 }
 0x1d4   : > { %2940 = vrot.lane.b32.xlu0 %v3330_v34, %s3161_s25  ;;  %v3655_v26 = vpop.f32.mrb[23].mxu0 }
 0x1d5   : > { %v3657_v27 = vpop.f32.mrb[24].mxu0 }
 0x1d6   : > { %v3661_v31 = vpop.f32.mrb[25].mxu0 }
 0x1d7   : > { %v3663_v32 = vpop.f32.mrb[26].mxu0 }
 0x1d8   : > { %v3667_v36 = vpop.f32.mrb[27].mxu0 }
 0x1da   : > { %v3669_v37 = vpop.f32.mrb[28].mxu0 }
 0x1db   : > { %v3673_v39 = vpop.f32.mrb[29].mxu0 }
 0x1de   : > { %v3675_v42 = vpop.f32.mrb[30].mxu0 }
 0x1df   : > { %v3679_v44 = vpop.f32.mrb[31].mxu0 }
 0x1e2   : > { %v3681_v45 = vpop.f32.mrb[32].mxu0 }
 0x1e3   : > { %v3685_v61 = vpop.f32.mrb[33].mxu0 }
 0x1e6   : > { %v3687_v62 = vpop.f32.mrb[34].mxu0 }
 0x1e7   : > { %v3691_v3 = vpop.f32.mrb[35].mxu0 }
 0x1ea   : > { %v3693_v7 = vpop.f32.mrb[36].mxu0 }
 0x1eb   : > { %v3697_v11 = vpop.f32.mrb[37].mxu0 }
 0x1ee   : > { %v3699_v16 = vpop.f32.mrb[38].mxu0 }
 0x1ef   : > { %v3703_v23 = vpop.f32.mrb[39].mxu0 }
 0x1f2   : > { %v3705_v29 = vpop.f32.mrb[40].mxu0 }
 0x1f3   : > { %v3709_v48 = vpop.f32.mrb[41].mxu0 }
 0x1f6   : > { %v3711_v51 = vpop.f32.mrb[42].mxu0 }
 0x1f7   : > { %v3715_v58 = vpop.f32.mrb[43].mxu0 }
 0x1fa   : > { %v3717_v0 = vpop.f32.mrb[44].mxu0 }
 0x1fb   : > { %v3721_v9 = vpop.f32.mrb[45].mxu0 }
 0x1fe   : > { %v3723_v10 = vpop.f32.mrb[46].mxu0 }
 0x1ff   : > { %4840 = vst [vmem:[#allocation2_spill] sm:$0xff] %v3723_v10  ;;  %v3727_v17 = vpop.f32.mrb[47].mxu0 }
 0x200   : > { %4841 = vst [vmem:[#allocation3_spill] sm:$0xff] %v3727_v17 }
 0x202   : > { %v3729_v52 = vpop.f32.mrb[48].mxu0 }
 0x203   : > { %v3733_v63 = vpop.f32.mrb[49].mxu0 }
 0x204   : > { %4842 = vst [vmem:[#allocation4_spill] sm:$0xff] %v3733_v63 }
 0x206   : > { %v3735_v38 = vpop.f32.mrb[50].mxu0 }
 0x207   : > { %4843 = vst [vmem:[#allocation5_spill] sm:$0xff] %v3735_v38  ;;  %v3739_v43 = vpop.f32.mrb[51].mxu0 }
 0x208   : > { %4844 = vst [vmem:[#allocation6_spill] sm:$0xff] %v3739_v43 }
 0x20a   : > { %v3741_v30 = vpop.f32.mrb[52].mxu0 }
 0x20b   : > { %4845 = vst [vmem:[#allocation7_spill] sm:$0xff] %v3741_v30  ;;  %v3745_v33 = vpop.f32.mrb[53].mxu0 }
 0x20c   : > { %4846 = vst [vmem:[#allocation8_spill] sm:$0xff] %v3745_v33 }
 0x20e   : > { %v3747_v34 = vpop.f32.mrb[54].mxu0 }
 0x20f   : > { %4847 = vst [vmem:[#allocation9_spill] sm:$0xff] %v3747_v34  ;;  %v3753_v4 = vpop.f32.mrb[55].mxu0 }
 0x210   : > { %4848 = vst [vmem:[#allocation10_spill] sm:$0xff] %v3753_v4 }
 0x212   : > { %v3755_v5 = vpop.f32.mrb[56].mxu0 }
 0x213   : > { %4849 = vst [vmem:[#allocation11_spill] sm:$0xff] %v3755_v5  ;;  %v3759_v38 = vpop.f32.mrb[57].mxu0 }
 0x214   : > { %4850 = vst [vmem:[#allocation12_spill] sm:$0xff] %v3759_v38 }
 0x216   : > { %v3761_v63 = vpop.f32.mrb[58].mxu0 }
 0x217   : > { %4851 = vst [vmem:[#allocation13_spill] sm:$0xff] %v3761_v63 }
 0x233   : > { %v845_v24 = vpop.xlane.xlu0 %844 }
 0x234   : > { %v939_v15 = vsub.f32 %v3581_v41, %v845_v24  ;;  %v940_v22 = vsub.f32 %v3583_v47, %v845_v24  ;;  %v3767_v24 = vpop.f32.mrb[59].mxu0 }
 0x235   : > { %4852 = vst [vmem:[#allocation14_spill] sm:$0xff] %v3767_v24  ;;  %v3771_v34 = vpop.f32.mrb[60].mxu0 }
 0x236   : > { %v1003_v35 = vmul.f32 1.442695, %v939_v15  ;;  %v1005_v43 = vmul.f32 1.442695, %v940_v22  ;;  %4853 = vst [vmem:[#allocation15_spill] sm:$0xff] %v3771_v34  ;;  %v3775_v55 = vpop.f32.mrb[61].mxu0 }
 0x237   : > { %v848_v10 = vpop.xlane.xlu1 %847  ;;  %4854 = vst [vmem:[#allocation16_spill] sm:$0xff] %v3775_v55 }
 0x238   : > { %2956 = vpow2.f32 %v1003_v35  ;;  %v941_v41 = vsub.f32 %v3587_v49, %v848_v10  ;;  %v942_v47 = vsub.f32 %v3589_v50, %v848_v10 }
 0x239   : > { %2958 = vpow2.f32 %v1005_v43 }
 0x23a   : > { %v1007_v22 = vmul.f32 1.442695, %v941_v41  ;;  %v1009_v17 = vmul.f32 1.442695, %v942_v47 }
 0x23b   : > { %v851_v4 = vpop.xlane.xlu0 %850 }
 0x23c   : > { %2960 = vpow2.f32 %v1007_v22  ;;  %v943_v33 = vsub.f32 %v3593_v53, %v851_v4  ;;  %v944_v35 = vsub.f32 %v3595_v54, %v851_v4 }
 0x23d   : > { %2962 = vpow2.f32 %v1009_v17 }
 0x23e   : > { %v1011_v50 = vmul.f32 1.442695, %v943_v33  ;;  %v1013_v43 = vmul.f32 1.442695, %v944_v35 }
 0x23f   : > { %v854_v10 = vpop.xlane.xlu0 %853 }
 0x240   : > { %2964 = vpow2.f32 %v1011_v50  ;;  %v945_v41 = vsub.f32 %v3599_v56, %v854_v10  ;;  %v946_v47 = vsub.f32 %v3601_v57, %v854_v10 }
 0x241   : > { %2966 = vpow2.f32 %v1013_v43 }
 0x242   : > { %v3781_v22 = vpop.eup %2956  ;;  %v1015_v53 = vmul.f32 1.442695, %v945_v41  ;;  %v1017_v15 = vmul.f32 1.442695, %v946_v47 }
 0x243   : > { %4855 = vst [vmem:[#allocation17_spill] sm:$0xff] %v3781_v22  ;;  %v3783_v54 = vpop.eup %2958  ;;  %v857_v4 = vpop.xlane.xlu1 %856 }
 0x244   : > { %2968 = vpow2.f32 %v1015_v53  ;;  %v947_v17 = vsub.f32 %v3605_v59, %v857_v4  ;;  %v948_v33 = vsub.f32 %v3607_v60, %v857_v4  ;;  %v1131_v35 = vadd.f32 %v3783_v54, %v3781_v22 }
 0x245   : > { %2970 = vpow2.f32 %v1017_v15  ;;  %v4860_v22 = vmov 0.0|0.0  }
 0x246   : > { %v3789_v56 = vpop.eup %2960  ;;  %v1019_v57 = vmul.f32 1.442695, %v947_v17  ;;  %v1021_v50 = vmul.f32 1.442695, %v948_v33  ;;  %1132 = vadd.xlane.f32.xlu1 %v1131_v35 }
 0x247   : > { %4856 = vst [vmem:[#allocation18_spill] sm:$0xff] %v3789_v56  ;;  %v3791_v43 = vpop.eup %2962  ;;  %v860_v10 = vpop.xlane.xlu0 %859 }
 0x248   : > { %4857 = vst [vmem:[#allocation19_spill] sm:$0xff] %v3791_v43  ;;  %2972 = vpow2.f32 %v1019_v57  ;;  %v949_v41 = vsub.f32 %v3611_v1, %v860_v10  ;;  %v950_v47 = vsub.f32 %v3613_v2, %v860_v10  ;;  %v1134_v59 = vadd.f32 %v3791_v43, %v3789_v56 }
 0x249   : > { %2974 = vpow2.f32 %v1021_v50 }
 0x24a   : > { %v3797_v60 = vpop.eup %2964  ;;  %v1023_v15 = vmul.f32 1.442695, %v949_v41  ;;  %v1025_v53 = vmul.f32 1.442695, %v950_v47  ;;  %1135 = vadd.xlane.f32.xlu0 %v1134_v59 }
 0x24b   : > { %4858 = vst [vmem:[#allocation20_spill] sm:$0xff] %v3797_v60  ;;  %v3799_v4 = vpop.eup %2966  ;;  %v863_v17 = vpop.xlane.xlu1 %862 }
 0x24c   : > { %4859 = vst [vmem:[#allocation21_spill] sm:$0xff] %v3799_v4  ;;  %v2936_v33 = vpop.permute.xlu0 %2935  ;;  %2976 = vpow2.f32 %v1023_v15  ;;  %v1137_v35 = vadd.f32 %v3799_v4, %v3797_v60 }
 0x24d   : > { %2978 = vpow2.f32 %v1025_v53  ;;  %v2938_v50 = vunpack.i.h.bf16 %v2936_v33  ;;  %v2937_v59 = vunpack.i.l.bf16 %v2936_v33 }
 0x24e   : > { %v3803_v1 = vpop.eup %2968  ;;  %1138 = vadd.xlane.f32.xlu0 %v1137_v35 }
 0x24f   : > { %v3805_v2 = vpop.eup %2970  ;;  %v2931_v57 = vpop.permute.xlu1 %2930  ;;  %v2739_v35 = vpack.c.bf16 %v2938_v50, %v2937_v59 }
 0x250   : > { %v1140_v10 = vadd.f32 %v3805_v2, %v3803_v1  ;;  %v2933_v41 = vunpack.i.h.bf16 %v2931_v57  ;;  %v2932_v47 = vunpack.i.l.bf16 %v2931_v57  ;;  %v2941_v49 = vpop.permute.xlu0 %2940 }
 0x251   : > { %v2943_v4 = vunpack.i.h.bf16 %v2941_v49  ;;  %v2942_v43 = vunpack.i.l.bf16 %v2941_v49  ;;  %v951_v49 = vsub.f32 %v3617_v6, %v863_v17  ;;  %v4862_v6 = vmax.f32 %v3629_v12, %v3631_v13 }
 0x252   : > { %v3809_v56 = vpop.eup %2972  ;;  %1141 = vadd.xlane.f32.xlu1 %v1140_v10  ;;  %v2736_v15 = vpack.c.bf16 %v2933_v41, %v2932_v47 }
 0x253   : > { %v3811_v60 = vpop.eup %2974  ;;  %v2742_v41 = vpack.c.bf16 %v2943_v4, %v2942_v43  ;;  %v952_v43 = vsub.f32 %v3619_v8, %v863_v17  ;;  %v1027_v4 = vmul.f32 1.442695, %v951_v49  ;;  %v4864_v8 = vmax.f32 %v3647_v20, %v3649_v21 }
 0x254   : > { %v1143_v53 = vadd.f32 %v3811_v60, %v3809_v56  ;;  %2737 = vmatpush1.bf16.msra.mxu0 %v2736_v15  ;;  %2777 = vmatpush1.bf16.msra.mxu1 %v2736_v15  ;;  %v4865_v17 = vmax.f32 %v3657_v27, %v3661_v31  ;;  %v4870_v49 = vmax.f32 %v3675_v42, %v3679_v44 }
 0x255   : > { %2738 = vmatprep.subr.bf16.mxu0 %v4860_v22  ;;  %2762 = vmatprep.subr.bf16.mxu1 %v4860_v22  ;;  %v1029_v50 = vmul.f32 1.442695, %v952_v43  ;;  %2980 = vpow2.f32 %v1027_v4  ;;  %v4871_v43 = vmax.f32 %v3693_v7, %v3697_v11  ;;  %v4872_v4 = vmax.f32 %v3687_v62, %v3691_v3 }
 0x256   : > { %v3817_v33 = vpop.eup %2976  ;;  %1144 = vadd.xlane.f32.xlu0 %v1143_v53  ;;  %v4866_v53 = vmax.f32 %v3653_v25, %v3655_v26 }
 0x257   : > { %v3819_v57 = vpop.eup %2978  ;;  %2982 = vpow2.f32 %v1029_v50  ;;  %v4873_v50 = vmax.f32 %v3705_v29, %v3709_v48 }
 0x258   : > { %v1146_v10 = vadd.f32 %v3819_v57, %v3817_v33  ;;  %2740 = vmatpush1.bf16.msra.mxu0 %v2739_v35  ;;  %2778 = vmatpush1.bf16.msra.mxu1 %v2739_v35  ;;  %v4867_v35 = vmax.f32 %v3669_v37, %v3673_v39 }
 0x259   : > { %2741 = vmatprep.subr.bf16.mxu0 %v4860_v22  ;;  %2763 = vmatprep.subr.bf16.mxu1 %v4860_v22 }
 0x25a   : > { %1147 = vadd.xlane.f32.xlu0 %v1146_v10  ;;  %v4868_v10 = vmax.f32 %v3663_v32, %v3667_v36 }
 0x25c   : > { %2743 = vmatpush1.bf16.msra.mxu0 %v2742_v41  ;;  %2779 = vmatpush1.bf16.msra.mxu1 %v2742_v41  ;;  %v4869_v41 = vmax.f32 %v3681_v45, %v3685_v61 }
 0x25d   : > { %2744 = vmatprep.subr.bf16.mxu0 %v4860_v22  ;;  %2764 = vmatprep.subr.bf16.mxu1 %v4860_v22 }
 0x25f   : > { %v3833_v47 = vpop.eup %2980 }
 0x261   : > { %v3835_v59 = vpop.eup %2982 }
 0x262   : > { %v1149_v15 = vadd.f32 %v3835_v59, %v3833_v47 }
 0x263   : > { %2945 = vrot.lane.b32.xlu1 %v3351_v40, %s3161_s25  ;;  %v4861_v40 = vmax.f32 %v3633_v14, %v3637_v18 }
 0x270   : > { %2950 = vrot.lane.b32.xlu0 %v3372_v46, %s3161_s25  ;;  %v4863_v46 = vmax.f32 %v3641_v19, %v3643_v28 }
 0x287   : > { %1150 = vadd.xlane.f32.xlu1 %v1149_v15  ;;  %v4874_v15 = vmax.f32 %v3699_v16, %v3703_v23 }
 0x28b   : > { %868 = vmax.xlane.f32.xlu1 %v4861_v40  ;;  %v4875_v40 = vmax.f32 %v3717_v0, %v3721_v9 }
 0x28f   : > { %865 = vmax.xlane.f32.xlu0 %v4862_v6  ;;  %871 = vmax.xlane.f32.xlu1 %v4863_v46  ;;  %v4876_v6 = vmax.f32 %v3711_v51, %v3715_v58  ;;  %v4877_v46 = vld [vmem:[#allocation4_spill] sm:$0xff] }
 0x293   : > { %874 = vmax.xlane.f32.xlu1 %v4864_v8  ;;  %880 = vmax.xlane.f32.xlu0 %v4865_v17  ;;  %v4878_v8 = vmax.f32 %v3729_v52, %v4877_v46  ;;  %v4879_v17 = vld [vmem:[#allocation2_spill] sm:$0xff] }
 0x297   : > { %877 = vmax.xlane.f32.xlu1 %v4866_v53  ;;  %886 = vmax.xlane.f32.xlu0 %v4867_v35  ;;  %v4880_v53 = vld [vmem:[#allocation3_spill] sm:$0xff] }
 0x298   : > { %v4881_v35 = vmax.f32 %v4879_v17, %v4880_v53 }
 0x29b   : > { %883 = vmax.xlane.f32.xlu1 %v4868_v10  ;;  %892 = vmax.xlane.f32.xlu0 %v4869_v41  ;;  %v4882_v10 = vld [vmem:[#allocation8_spill] sm:$0xff] }
 0x29c   : > { %v4883_v41 = vmax.f32 %v3741_v30, %v4882_v10 }
 0x29f   : > { %889 = vmax.xlane.f32.xlu1 %v4870_v49  ;;  %898 = vmax.xlane.f32.xlu0 %v4871_v43  ;;  %v4884_v49 = vld [vmem:[#allocation5_spill] sm:$0xff]  ;;  %v4885_v43 = vld [vmem:[#allocation6_spill] sm:$0xff] }
 0x2a3   : > { %895 = vmax.xlane.f32.xlu1 %v4872_v4  ;;  %904 = vmax.xlane.f32.xlu0 %v4873_v50  ;;  %v4886_v4 = vmax.f32 %v4884_v49, %v4885_v43  ;;  %v4887_v50 = vmax.f32 %v3755_v5, %v3759_v38 }
 0x2a7   : > { %901 = vmax.xlane.f32.xlu1 %v4874_v15  ;;  %910 = vmax.xlane.f32.xlu0 %v4875_v40  ;;  %v4888_v15 = vld [vmem:[#allocation9_spill] sm:$0xff]  ;;  %v4889_v40 = vld [vmem:[#allocation10_spill] sm:$0xff] }
 0x2ab   : > { %907 = vmax.xlane.f32.xlu1 %v4876_v6  ;;  %916 = vmax.xlane.f32.xlu0 %v4878_v8  ;;  %v4890_v6 = vmax.f32 %v4888_v15, %v4889_v40  ;;  %v4891_v8 = vmax.f32 %v3761_v63, %v3767_v24 }
 0x2af   : > { %913 = vmax.xlane.f32.xlu1 %v4881_v35  ;;  %922 = vmax.xlane.f32.xlu0 %v4883_v41  ;;  %v4892_v35 = vmax.f32 %v3771_v34, %v3775_v55  ;;  %v3911_v41 = vpop.f32.mrb[62].mxu0 }
 0x2b0   : > { %4893 = vst [vmem:[#allocation4_spill] sm:$0xff] %v3911_v41  ;;  %v3913_v10 = vpop.f32.mrb[63].mxu0 }
 0x2b1   : > { %4894 = vst [vmem:[#allocation2_spill] sm:$0xff] %v3913_v10 }
 0x2b3   : > { %919 = vmax.xlane.f32.xlu1 %v4886_v4  ;;  %928 = vmax.xlane.f32.xlu0 %v4887_v50  ;;  %v936_v4 = vmax.f32 %v3911_v41, %v3913_v10  ;;  %v4897_v10 = vld [vmem:[#allocation18_spill] sm:$0xff] }
 0x2b7   : > { %925 = vmax.xlane.f32.xlu1 %v4890_v6 }
 0x2bb   : > { %931 = vmax.xlane.f32.xlu1 %v4891_v8 }
 0x2bf   : > { %934 = vmax.xlane.f32.xlu1 %v4892_v35 }
 0x2c3   : > { %937 = vmax.xlane.f32.xlu1 %v936_v4 }
 0x2d3   : > { %v1133_v50 = vpop.xlane.xlu1 %1132 }
 0x2d4   : > { %2984 = vrcp.f32 %v1133_v50 }
 0x2d7   : > { %v1136_v6 = vpop.xlane.xlu0 %1135 }
 0x2d8   : > { %2986 = vrcp.f32 %v1136_v6  ;;  %v3924_v6 = vld [vmem:[%s281_s29 + $0x8] sm:$0xff] }
 0x2db   : > { %v1139_v5 = vpop.xlane.xlu0 %1138 }
 0x2dc   : > { %2988 = vrcp.f32 %v1139_v5 }
 0x2de   : > { %v2985_v38 = vpop.eup %2984 }
 0x2df   : > { %v1142_v24 = vpop.xlane.xlu1 %1141  ;;  %v1260_v8 = vmul.f32 %v2985_v38, %v3783_v54 }
 0x2e0   : > { %2990 = vrcp.f32 %v1142_v24  ;;  %v4898_v24 = vld [vmem:[#allocation21_spill] sm:$0xff] }
 0x2e1   : > { %1483 = vmatprep.mubr.f32.mxu0 %v1260_v8 }
 0x2e3   : > { %v1145_v55 = vpop.xlane.xlu0 %1144  ;;  %v2946_v35 = vpop.permute.xlu1 %2945 }
 0x2e4   : > { %v2948_v34 = vunpack.i.h.bf16 %v2946_v35  ;;  %v2947_v63 = vunpack.i.l.bf16 %v2946_v35  ;;  %2992 = vrcp.f32 %v1145_v55 }
 0x2e6   : > { %v2745_v40 = vpack.c.bf16 %v2948_v34, %v2947_v63  ;;  %v2987_v34 = vpop.eup %2986  ;;  %v4895_v63 = vld [vmem:[#allocation17_spill] sm:$0xff] }
 0x2e7   : > { %v1148_v15 = vpop.xlane.xlu0 %1147  ;;  %v1259_v5 = vmul.f32 %v2985_v38, %v4895_v63  ;;  %v2989_v35 = vpop.eup %2988 }
 0x2e8   : > { %2746 = vmatpush1.bf16.msra.mxu0 %v2745_v40  ;;  %2780 = vmatpush1.bf16.msra.mxu1 %v2745_v40  ;;  %2994 = vrcp.f32 %v1148_v15 }
 0x2e9   : > { %2747 = vmatprep.subr.bf16.mxu0 %v4860_v22  ;;  %2765 = vmatprep.subr.bf16.mxu1 %v4860_v22  ;;  %v4896_v22 = vld [vmem:[#allocation19_spill] sm:$0xff] }
 0x2ea   : > { %v1262_v40 = vmul.f32 %v2987_v34, %v4896_v22  ;;  %v2991_v41 = vpop.eup %2990 }
 0x2eb   : > { %v2951_v4 = vpop.permute.xlu0 %2950  ;;  %v1266_v38 = vmul.f32 %v2991_v41, %v3805_v2  ;;  %v1265_v63 = vmul.f32 %v2991_v41, %v3803_v1 }
 0x2ec   : > { %v2953_v54 = vunpack.i.h.bf16 %v2951_v4  ;;  %v2952_v50 = vunpack.i.l.bf16 %v2951_v4  ;;  %v1261_v4 = vmul.f32 %v2987_v34, %v4897_v10 }
 0x2ee   : > { %v2748_v8 = vpack.c.bf16 %v2953_v54, %v2952_v50  ;;  %v1264_v54 = vmul.f32 %v2989_v35, %v4898_v24  ;;  %v357_v50 = vld [vmem:[%s281_s29] sm:$0xff]  ;;  %v2993_v55 = vpop.eup %2992 }
 0x2ef   : > { %v1268_v15 = vmul.f32 %v2993_v55, %v3811_v60  ;;  %v1267_v10 = vmul.f32 %v2993_v55, %v3809_v56 }
 0x2f0   : > { %2749 = vmatpush1.bf16.msra.mxu0 %v2748_v8  ;;  %2781 = vmatpush1.bf16.msra.mxu1 %v2748_v8  ;;  %v4899_v8 = vld [vmem:[#allocation20_spill] sm:$0xff] }
 0x2f1   : > { %1717 = vmatprep.subr.mxu0 %v3924_v6  ;;  %v1263_v30 = vmul.f32 %v2989_v35, %v4899_v8 }
 0x2f3   : > { %1484 = vmatmul.mubr.f32.vlgmr.msra.gmra.mrb[64].mxu0 %v1259_v5  ;;  %v2995_v5 = vpop.eup %2994 }
 0x2f4   : > { %1488 = vmatprep.mubr.f32.mxu0 %v1262_v40  ;;  %v1270_v34 = vmul.f32 %v2995_v5, %v3819_v57  ;;  %v1269_v22 = vmul.f32 %v2995_v5, %v3817_v33 }
 0x2f7   : > { %1489 = vmatmul.mubr.f32.gmra.mrb[66].mxu0 %v1261_v4 }
 0x2f8   : > { %1493 = vmatprep.mubr.f32.mxu0 %v1264_v54 }
 0x2f9   : > { %1718 = vmatpush1.xpose.msra.mxu0 %v357_v50 }
 0x2fb   : > { %1494 = vmatmul.mubr.f32.gmra.mrb[68].mxu0 %v1263_v30 }
 0x2fc   : > { %1498 = vmatprep.mubr.f32.mxu0 %v1266_v38 }
 0x2ff   : > { %1499 = vmatmul.mubr.f32.gmra.mrb[70].mxu0 %v1265_v63 }
 0x300   : > { %1503 = vmatprep.mubr.f32.mxu0 %v1268_v15 }
 0x303   : > { %1504 = vmatmul.mubr.f32.gmra.mrb[72].mxu0 %v1267_v10 }
 0x304   : > { %1508 = vmatprep.mubr.f32.mxu0 %v1270_v34 }
 0x307   : > { %1509 = vmatmul.mubr.f32.gmra.mrb[74].mxu0 %v1269_v22 }
 0x314   : > { %v1151_v2 = vpop.xlane.xlu1 %1150 }
 0x315   : > { %2996 = vrcp.f32 %v1151_v2 }
 0x318   : > { %v869_v30 = vpop.xlane.xlu1 %868 }
 0x319   : > { %v955_v40 = vsub.f32 %v3633_v14, %v869_v30  ;;  %v956_v1 = vsub.f32 %v3637_v18, %v869_v30 }
 0x31b   : > { %v1035_v60 = vmul.f32 1.442695, %v955_v40  ;;  %v1037_v35 = vmul.f32 1.442695, %v956_v1  ;;  %v4909_v40 = vld [vmem:[#allocation16_spill] sm:$0xff] }
 0x31c   : > { %v866_v41 = vpop.xlane.xlu0 %865  ;;  %v872_v4 = vpop.xlane.xlu1 %871 }
 0x31d   : > { %v953_v56 = vsub.f32 %v3629_v12, %v866_v41  ;;  %v954_v57 = vsub.f32 %v3631_v13, %v866_v41  ;;  %v957_v24 = vsub.f32 %v3641_v19, %v872_v4  ;;  %v958_v33 = vsub.f32 %v3643_v28, %v872_v4 }
 0x31e   : > { %2998 = vpow2.f32 %v1035_v60 }
 0x31f   : > { %v2997_v54 = vpop.eup %2996  ;;  %v1031_v8 = vmul.f32 1.442695, %v953_v56  ;;  %v1033_v38 = vmul.f32 1.442695, %v954_v57  ;;  %3000 = vpow2.f32 %v1037_v35  ;;  %v1039_v15 = vmul.f32 1.442695, %v957_v24 }
 0x320   : > { %v1272_v14 = vmul.f32 %v2997_v54, %v3835_v59  ;;  %v1271_v18 = vmul.f32 %v2997_v54, %v3833_v47  ;;  %v875_v55 = vpop.xlane.xlu1 %874  ;;  %v881_v63 = vpop.xlane.xlu0 %880  ;;  %v1041_v13 = vmul.f32 1.442695, %v958_v33 }
 0x321   : > { %3002 = vpow2.f32 %v1031_v8  ;;  %v959_v12 = vsub.f32 %v3647_v20, %v875_v55  ;;  %v960_v19 = vsub.f32 %v3649_v21, %v875_v55  ;;  %v963_v59 = vsub.f32 %v3657_v27, %v881_v63 }
 0x322   : > { %3004 = vpow2.f32 %v1033_v38  ;;  %1513 = vmatprep.mubr.f32.mxu0 %v1272_v14  ;;  %v964_v21 = vsub.f32 %v3661_v31, %v881_v63 }
 0x323   : > { %1514 = vmatmul.mubr.f32.gmra.mrb[76].mxu0 %v1271_v18  ;;  %3006 = vpow2.f32 %v1039_v15  ;;  %v1043_v47 = vmul.f32 1.442695, %v959_v12  ;;  %v1045_v34 = vmul.f32 1.442695, %v960_v19  ;;  %v1051_v22 = vmul.f32 1.442695, %v963_v59 }
 0x324   : > { %1781 = vmatprep.mubr.f32.mxu0 %v3924_v6  ;;  %v3949_v28 = vpop.xlane.xlu1 %877  ;;  %v887_v5 = vpop.xlane.xlu0 %886  ;;  %3008 = vpow2.f32 %v1041_v13  ;;  %v1053_v31 = vmul.f32 1.442695, %v964_v21 }
 0x325   : > { %v967_v2 = vsub.f32 %v3669_v37, %v887_v5  ;;  %3010 = vpow2.f32 %v1043_v47 }
 0x326   : > { %3012 = vpow2.f32 %v1045_v34 }
 0x327   : > { %1782 = vmatmul.mubr.f32.vlgmr.msra.gmra.mrb[78].mxu0 %v357_v50  ;;  %v968_v50 = vsub.f32 %v3673_v39, %v887_v5  ;;  %3014 = vpow2.f32 %v1051_v22  ;;  %v1059_v37 = vmul.f32 1.442695, %v967_v2  ;;  %v4903_v22 = vld [vmem:[#allocation10_spill] sm:$0xff] }
 0x328   : > { %v3957_v6 = vpop.xlane.xlu1 %883  ;;  %v893_v27 = vpop.xlane.xlu0 %892  ;;  %3016 = vpow2.f32 %v1053_v31 }
 0x329   : > { %v3960_v30 = vpop.eup %2998  ;;  %v971_v39 = vsub.f32 %v3681_v45, %v893_v27  ;;  %v1061_v54 = vmul.f32 1.442695, %v968_v50  ;;  %v972_v8 = vsub.f32 %v3685_v61, %v893_v27  ;;  %3018 = vpow2.f32 %v1059_v37 }
 0x32a   : > { %v3966_v60 = vpop.eup %3000 }
 0x32b   : > { %v3969_v41 = vpop.eup %3002  ;;  %v1155_v14 = vadd.f32 %v3966_v60, %v3960_v30  ;;  %v1067_v12 = vmul.f32 1.442695, %v971_v39  ;;  %3020 = vpow2.f32 %v1061_v54  ;;  %v1069_v13 = vmul.f32 1.442695, %v972_v8 }
 0x32c   : > { %v3971_v35 = vpop.eup %3004  ;;  %v3973_v4 = vpop.xlane.xlu1 %889 }
 0x32d   : > { %v899_v56 = vpop.xlane.xlu0 %898  ;;  %v1152_v57 = vadd.f32 %v3971_v35, %v3969_v41  ;;  %v3983_v38 = vpop.eup %3006  ;;  %3022 = vpow2.f32 %v1067_v12 }
 0x32e   : > { %v3987_v18 = vpop.eup %3008  ;;  %v975_v63 = vsub.f32 %v3693_v7, %v899_v56  ;;  %v976_v19 = vsub.f32 %v3697_v11, %v899_v56  ;;  %3024 = vpow2.f32 %v1069_v13 }
 0x32f   : > { %1153 = vadd.xlane.f32.xlu0 %v1152_v57  ;;  %v3997_v59 = vpop.eup %3010  ;;  %v1158_v5 = vadd.f32 %v3987_v18, %v3983_v38 }
 0x330   : > { %v3989_v55 = vpop.xlane.xlu1 %895  ;;  %v4001_v7 = vpop.eup %3012  ;;  %v1075_v47 = vmul.f32 1.442695, %v975_v63  ;;  %v1077_v31 = vmul.f32 1.442695, %v976_v19 }
 0x331   : > { %v905_v15 = vpop.xlane.xlu0 %904  ;;  %v4010_v27 = vpop.eup %3014  ;;  %v1161_v37 = vadd.f32 %v4001_v7, %v3997_v59 }
 0x332   : > { %v979_v11 = vsub.f32 %v3705_v29, %v905_v15  ;;  %v980_v50 = vsub.f32 %v3709_v48, %v905_v15  ;;  %v4015_v56 = vpop.eup %3016  ;;  %3026 = vpow2.f32 %v1075_v47 }
 0x333   : > { %1156 = vadd.xlane.f32.xlu0 %v1155_v14  ;;  %3028 = vpow2.f32 %v1077_v31  ;;  %v4025_v15 = vpop.eup %3018  ;;  %v1167_v12 = vadd.f32 %v4015_v56, %v4010_v27 }
 0x334   : > { %v4003_v34 = vpop.xlane.xlu1 %901  ;;  %v1083_v54 = vmul.f32 1.442695, %v979_v11  ;;  %v1085_v48 = vmul.f32 1.442695, %v980_v50 }
 0x335   : > { %v911_v21 = vpop.xlane.xlu0 %910  ;;  %v4029_v13 = vpop.eup %3020 }
 0x336   : > { %v983_v14 = vsub.f32 %v3717_v0, %v911_v21  ;;  %v984_v63 = vsub.f32 %v3721_v9, %v911_v21  ;;  %3030 = vpow2.f32 %v1083_v54  ;;  %v4901_v9 = vld [vmem:[#allocation8_spill] sm:$0xff] }
 0x337   : > { %1159 = vadd.xlane.f32.xlu0 %v1158_v5  ;;  %3032 = vpow2.f32 %v1085_v48  ;;  %v4039_v50 = vpop.eup %3022  ;;  %v4902_v48 = vld [vmem:[#allocation9_spill] sm:$0xff] }
 0x338   : > { %v4017_v57 = vpop.xlane.xlu1 %907  ;;  %v1091_v11 = vmul.f32 1.442695, %v983_v14  ;;  %v1093_v21 = vmul.f32 1.442695, %v984_v63  ;;  %v4900_v63 = vld [vmem:[#allocation7_spill] sm:$0xff] }
 0x339   : > { %v917_v39 = vpop.xlane.xlu0 %916 }
 0x33a   : > { %v987_v5 = vsub.f32 %v3729_v52, %v917_v39  ;;  %v988_v31 = vsub.f32 %v4877_v46, %v917_v39  ;;  %v4043_v52 = vpop.eup %3024  ;;  %3034 = vpow2.f32 %v1091_v11 }
 0x33b   : > { %1162 = vadd.xlane.f32.xlu0 %v1161_v37  ;;  %v1173_v37 = vadd.f32 %v4029_v13, %v4025_v15  ;;  %3036 = vpow2.f32 %v1093_v21  ;;  %v4906_v21 = vld [vmem:[#allocation13_spill] sm:$0xff] }
 0x33c   : > { %v4031_v19 = vpop.xlane.xlu1 %913  ;;  %v1099_v54 = vmul.f32 1.442695, %v987_v5  ;;  %v4052_v39 = vpop.eup %3026  ;;  %v1179_v5 = vadd.f32 %v4043_v52, %v4039_v50 }
 0x33d   : > { %v923_v47 = vpop.xlane.xlu0 %922  ;;  %v4057_v11 = vpop.eup %3028 }
 0x33e   : > { %v991_v46 = vsub.f32 %v4900_v63, %v923_v47  ;;  %v992_v8 = vsub.f32 %v4901_v9, %v923_v47  ;;  %3038 = vpow2.f32 %v1099_v54  ;;  %v4905_v9 = vld [vmem:[#allocation12_spill] sm:$0xff]  ;;  %v1185_v54 = vadd.f32 %v4057_v11, %v4052_v39 }
 0x33f   : > { %1168 = vadd.xlane.f32.xlu0 %v1167_v12  ;;  %v1101_v12 = vmul.f32 1.442695, %v988_v31  ;;  %v4904_v31 = vld [vmem:[#allocation11_spill] sm:$0xff] }
 0x340   : > { %v4045_v14 = vpop.xlane.xlu1 %919  ;;  %v1107_v2 = vmul.f32 1.442695, %v991_v46  ;;  %v1109_v47 = vmul.f32 1.442695, %v992_v8  ;;  %v4067_v45 = vpop.eup %3030 }
 0x341   : > { %v929_v29 = vpop.xlane.xlu0 %928  ;;  %3040 = vpow2.f32 %v1101_v12  ;;  %v4071_v33 = vpop.eup %3032  ;;  %v4907_v12 = vld [vmem:[#allocation14_spill] sm:$0xff] }
 0x342   : > { %v995_v61 = vsub.f32 %v4904_v31, %v929_v29  ;;  %3042 = vpow2.f32 %v1107_v2  ;;  %v4908_v2 = vld [vmem:[#allocation15_spill] sm:$0xff] }
 0x343   : > { %1174 = vadd.xlane.f32.xlu0 %v1173_v37  ;;  %v996_v37 = vsub.f32 %v4905_v9, %v929_v29  ;;  %3044 = vpow2.f32 %v1109_v47 }
 0x344   : > { %v4059_v0 = vpop.xlane.xlu1 %925  ;;  %v1115_v63 = vmul.f32 1.442695, %v995_v61  ;;  %v4079_v31 = vpop.eup %3034 }
 0x345   : > { %v1117_v29 = vmul.f32 1.442695, %v996_v37  ;;  %v4083_v9 = vpop.eup %3036 }
 0x346   : > { %3046 = vpow2.f32 %v1115_v63 }
 0x347   : > { %1180 = vadd.xlane.f32.xlu0 %v1179_v5  ;;  %v1191_v5 = vadd.f32 %v4071_v33, %v4067_v45  ;;  %3048 = vpow2.f32 %v1117_v29 }
 0x348   : > { %v4073_v46 = vpop.xlane.xlu1 %931  ;;  %v4087_v24 = vpop.eup %3038 }
 0x349   : > { %4910 = vst [vmem:[#allocation3_spill] sm:$0xff] %v4087_v24 }
 0x34b   : > { %1186 = vadd.xlane.f32.xlu0 %v1185_v54  ;;  %v1197_v54 = vadd.f32 %v4083_v9, %v4079_v31  ;;  %v4091_v8 = vpop.eup %3040 }
 0x34c   : > { %v935_v1 = vpop.xlane.xlu1 %934  ;;  %v4093_v10 = vpop.eup %3042  ;;  %v1203_v63 = vadd.f32 %v4091_v8, %v4087_v24 }
 0x34d   : > { %v999_v61 = vsub.f32 %v4908_v2, %v935_v1  ;;  %v1000_v20 = vsub.f32 %v4909_v40, %v935_v1  ;;  %4911 = vst [vmem:[#allocation5_spill] sm:$0xff] %v4093_v10  ;;  %v4097_v40 = vpop.eup %3044 }
 0x34e   : > { %4912 = vst [vmem:[#allocation6_spill] sm:$0xff] %v4097_v40 }
 0x34f   : > { %1192 = vadd.xlane.f32.xlu0 %v1191_v5  ;;  %v1123_v47 = vmul.f32 1.442695, %v999_v61  ;;  %v1125_v37 = vmul.f32 1.442695, %v1000_v20  ;;  %v1209_v20 = vadd.f32 %v4097_v40, %v4093_v10 }
 0x350   : > { %v4099_v1 = vpop.eup %3046 }
 0x351   : > { %3050 = vpow2.f32 %v1123_v47  ;;  %4913 = vst [vmem:[#allocation17_spill] sm:$0xff] %v4099_v1  ;;  %v4103_v29 = vpop.eup %3048 }
 0x352   : > { %3052 = vpow2.f32 %v1125_v37  ;;  %4914 = vst [vmem:[#allocation19_spill] sm:$0xff] %v4103_v29  ;;  %v1215_v2 = vadd.f32 %v4103_v29, %v4099_v1  ;;  %v3163_v37 = vmov 0  }
 0x353   : > { %1198 = vadd.xlane.f32.xlu0 %v1197_v54  ;;  %2954 = vset.pattern.permute.xlu1 %v3163_v37 }
 0x354   : > { %2955 = vset.pattern.permute.xlu0 %v3163_v37 }
 0x357   : > { %1204 = vadd.xlane.f32.xlu0 %v1203_v63 }
 0x35b   : > { %v4105_v5 = vpop.eup %3050  ;;  %1210 = vadd.xlane.f32.xlu0 %v1209_v20 }
 0x35c   : > { %4915 = vst [vmem:[#allocation18_spill] sm:$0xff] %v4105_v5  ;;  %v4109_v61 = vpop.eup %3052 }
 0x35d   : > { %v1221_v47 = vadd.f32 %v4109_v61, %v4105_v5 }
 0x35f   : > { %1216 = vadd.xlane.f32.xlu0 %v1215_v2 }
 0x363   : > { %1222 = vadd.xlane.f32.xlu0 %v1221_v47 }
 0x3bc   : > { %v1154_v54 = vpop.xlane.xlu0 %1153 }
 0x3bd   : > { %3054 = vrcp.f32 %v1154_v54 }
 0x3c0   : > { %v1157_v63 = vpop.xlane.xlu0 %1156 }
 0x3c1   : > { %3056 = vrcp.f32 %v1157_v63 }
 0x3c4   : > { %v1160_v10 = vpop.xlane.xlu0 %1159 }
 0x3c5   : > { %3058 = vrcp.f32 %v1160_v10 }
 0x3c6   : > { %v4113_v20 = vpop.f32.mrb[64].mxu0 }
 0x3c7   : > { %4916 = vst [vmem:[#allocation21_spill] sm:$0xff] %v4113_v20  ;;  %v3055_v40 = vpop.eup %3054  ;;  %v1487_v1 = vpop.f32.mrb[65].mxu0 }
 0x3c8   : > { %v1163_v29 = vpop.xlane.xlu0 %1162  ;;  %v1274_v2 = vmul.f32 %v3055_v40, %v3971_v35  ;;  %v1273_v24 = vmul.f32 %v3055_v40, %v3969_v41 }
 0x3c9   : > { %3060 = vrcp.f32 %v1163_v29 }
 0x3ca   : > { %1518 = vmatprep.mubr.f32.mxu1 %v1274_v2  ;;  %v4117_v47 = vpop.f32.mrb[66].mxu0 }
 0x3cb   : > { %v3057_v37 = vpop.eup %3056  ;;  %1519 = vmatmul.mubr.f32.vlgmr.msra.gmra.mrb[0].mxu1 %v1273_v24  ;;  %v1492_v54 = vpop.f32.mrb[67].mxu0 }
 0x3cc   : > { %v1276_v63 = vmul.f32 %v3057_v37, %v3966_v60  ;;  %v1275_v10 = vmul.f32 %v3057_v37, %v3960_v30 }
 0x3ce   : > { %1523 = vmatprep.mubr.f32.mxu1 %v1276_v63  ;;  %v4121_v20 = vpop.f32.mrb[68].mxu0  ;;  %v4918_v63 = vsub.f32 %v3655_v26, %v3949_v28  ;;  %v4922_v26 = vsub.f32 %v3679_v44, %v3973_v4 }
 0x3cf   : > { %v3059_v1 = vpop.eup %3058  ;;  %1524 = vmatmul.mubr.f32.gmra.mrb[2].mxu1 %v1275_v10  ;;  %v1497_v5 = vpop.f32.mrb[69].mxu0 }
 0x3d0   : > { %v1278_v35 = vmul.f32 %v3059_v1, %v3987_v18  ;;  %v1277_v41 = vmul.f32 %v3059_v1, %v3983_v38  ;;  %v4917_v38 = vsub.f32 %v3653_v25, %v3949_v28  ;;  %v1049_v10 = vmul.f32 1.442695, %v4918_v63 }
 0x3d1   : > { %v4920_v1 = vsub.f32 %v3667_v36, %v3957_v6  ;;  %v1065_v28 = vmul.f32 1.442695, %v4922_v26  ;;  %v4924_v36 = vsub.f32 %v3691_v3, %v3989_v55  ;;  %v4926_v3 = vsub.f32 %v3703_v23, %v4003_v34 }
 0x3d2   : > { %1528 = vmatprep.mubr.f32.mxu1 %v1278_v35  ;;  %v4125_v40 = vpop.f32.mrb[70].mxu0  ;;  %v1047_v54 = vmul.f32 1.442695, %v4917_v38 }
 0x3d3   : > { %v3061_v29 = vpop.eup %3060  ;;  %1529 = vmatmul.mubr.f32.gmra.mrb[4].mxu1 %v1277_v41  ;;  %v1502_v24 = vpop.f32.mrb[71].mxu0  ;;  %v1057_v35 = vmul.f32 1.442695, %v4920_v1  ;;  %v4921_v41 = vsub.f32 %v3675_v42, %v3973_v4  ;;  %v1073_v42 = vmul.f32 1.442695, %v4924_v36  ;;  %v4933_v36 = vsub.f32 %v4902_v48, %v4059_v0 }
 0x3d4   : > { %v1280_v60 = vmul.f32 %v3061_v29, %v4001_v7  ;;  %v1279_v30 = vmul.f32 %v3061_v29, %v3997_v59  ;;  %3062 = vpow2.f32 %v1047_v54  ;;  %v4919_v59 = vsub.f32 %v3663_v32, %v3957_v6 }
 0x3d5   : > { %3064 = vpow2.f32 %v1049_v10  ;;  %v1063_v25 = vmul.f32 1.442695, %v4921_v41  ;;  %v4923_v32 = vsub.f32 %v3687_v62, %v3989_v55  ;;  %v4925_v62 = vsub.f32 %v3699_v16, %v4003_v34 }
 0x3d6   : > { %1533 = vmatprep.mubr.f32.mxu1 %v1280_v60  ;;  %v4129_v2 = vpop.f32.mrb[72].mxu0  ;;  %v1055_v7 = vmul.f32 1.442695, %v4919_v59  ;;  %v1081_v55 = vmul.f32 1.442695, %v4926_v3  ;;  %v4927_v10 = vsub.f32 %v3711_v51, %v4017_v57  ;;  %v4928_v16 = vsub.f32 %v3715_v58, %v4017_v57  ;;  %v4936_v3 = vld [vmem:[#allocation4_spill] sm:$0xff] }
 0x3d7   : > { %1534 = vmatmul.mubr.f32.gmra.mrb[6].mxu1 %v1279_v30  ;;  %v1507_v37 = vpop.f32.mrb[73].mxu0  ;;  %v1071_v60 = vmul.f32 1.442695, %v4923_v32  ;;  %v4930_v51 = vsub.f32 %v4880_v53, %v4031_v19 }
 0x3d8   : > { %3066 = vpow2.f32 %v1055_v7  ;;  %v1087_v59 = vmul.f32 1.442695, %v4927_v10  ;;  %v1089_v7 = vmul.f32 1.442695, %v4928_v16 }
 0x3d9   : > { %3068 = vpow2.f32 %v1057_v35  ;;  %v4929_v35 = vsub.f32 %v4879_v17, %v4031_v19  ;;  %v4932_v17 = vsub.f32 %v4885_v43, %v4045_v14  ;;  %v938_v43 = vpop.xlane.xlu1 %937 }
 0x3da   : > { %v4131_v5 = vpop.f32.mrb[74].mxu0  ;;  %3070 = vpow2.f32 %v1063_v25  ;;  %v1097_v25 = vmul.f32 1.442695, %v4930_v51 }
 0x3db   : > { %v1512_v18 = vpop.f32.mrb[75].mxu0  ;;  %3072 = vpow2.f32 %v1065_v28  ;;  %v1095_v41 = vmul.f32 1.442695, %v4929_v35  ;;  %v4931_v28 = vsub.f32 %v4884_v49, %v4045_v14  ;;  %v1105_v32 = vmul.f32 1.442695, %v4932_v17 }
 0x3dc   : > { %3074 = vpow2.f32 %v1071_v60  ;;  %v1079_v18 = vmul.f32 1.442695, %v4925_v62  ;;  %v4934_v49 = vsub.f32 %v4903_v22, %v4059_v0  ;;  %v4937_v22 = vsub.f32 %v4907_v12, %v4073_v46 }
 0x3dd   : > { %3076 = vpow2.f32 %v1073_v42  ;;  %v1111_v42 = vmul.f32 1.442695, %v4933_v36 }
 0x3de   : > { %v4159_v6 = vpop.eup %3062  ;;  %3078 = vpow2.f32 %v1079_v18  ;;  %v4935_v18 = vsub.f32 %v4906_v21, %v4073_v46  ;;  %v1121_v0 = vmul.f32 1.442695, %v4937_v22 }
 0x3df   : > { %v4163_v44 = vpop.eup %3064  ;;  %3080 = vpow2.f32 %v1081_v55  ;;  %v1001_v55 = vsub.f32 %v4936_v3, %v938_v43 }
 0x3e0   : > { %v1164_v54 = vadd.f32 %v4163_v44, %v4159_v6  ;;  %3082 = vpow2.f32 %v1087_v59  ;;  %v1119_v48 = vmul.f32 1.442695, %v4935_v18 }
 0x3e1   : > { %3084 = vpow2.f32 %v1089_v7  ;;  %v1127_v21 = vmul.f32 1.442695, %v1001_v55 }
 0x3e2   : > { %v4173_v38 = vpop.eup %3066  ;;  %3086 = vpow2.f32 %v1095_v41 }
 0x3e3   : > { %v4177_v63 = vpop.eup %3068  ;;  %3088 = vpow2.f32 %v1097_v25 }
 0x3e4   : > { %v4185_v23 = vpop.eup %3070  ;;  %v1170_v34 = vadd.f32 %v4177_v63, %v4173_v38 }
 0x3e5   : > { %v4189_v1 = vpop.eup %3072 }
 0x3e6   : > { %v4197_v58 = vpop.eup %3074  ;;  %v1176_v57 = vadd.f32 %v4189_v1, %v4185_v23 }
 0x3e7   : > { %v4201_v26 = vpop.eup %3076 }
 0x3e8   : > { %v4209_v53 = vpop.eup %3078  ;;  %v1182_v19 = vadd.f32 %v4201_v26, %v4197_v58 }
 0x3e9   : > { %v4213_v60 = vpop.eup %3080 }
 0x3ea   : > { %v4221_v14 = vpop.eup %3082 }
 0x3eb   : > { %v4225_v62 = vpop.eup %3084 }
 0x3ec   : > { %v4235_v59 = vpop.eup %3086  ;;  %v1194_v16 = vadd.f32 %v4225_v62, %v4221_v14 }
 0x3ed   : > { %v4239_v7 = vpop.eup %3088 }
 0x3ee   : > { %v1200_v46 = vadd.f32 %v4239_v7, %v4235_v59 }
 0x3f6   : > { %v4151_v29 = vpop.f32.mrb[76].mxu0 }
 0x3f7   : > { %v1517_v24 = vpop.f32.mrb[77].mxu0 }
 0x3f8   : > { %v1103_v24 = vmul.f32 1.442695, %v4931_v28 }
 0x3fa   : > { %v4161_v30 = vpop.f32.mrb[78].mxu0  ;;  %3090 = vpow2.f32 %v1103_v24 }
 0x3fb   : > { %v1785_v4 = vpop.f32.mrb[79].mxu0  ;;  %v1788_v37 = vsel %vm1787_vm2, %v4161_v30, inf  ;;  %3092 = vpow2.f32 %v1105_v32 }
 0x3fc   : > { %1789 = vmin.xlane.f32.xlu1 %v1788_v37  ;;  %v1113_v4 = vmul.f32 1.442695, %v4934_v49  ;;  %v1188_v37 = vadd.f32 %v4213_v60, %v4209_v53  ;;  %3094 = vpow2.f32 %v1111_v42  ;;  %v2434_v42 = vld [vmem:[%s284_s7] ss:$0 sm:$0xff] }
 0x3fe   : > { %3096 = vpow2.f32 %v1113_v4  ;;  %v1169_v4 = vpop.xlane.xlu0 %1168 }
 0x3ff   : > { %3098 = vpow2.f32 %v1119_v48 }
 0x400   : > { %1165 = vadd.xlane.f32.xlu1 %v1164_v54  ;;  %v4938_v54 = vld [vmem:[#allocation2_spill] sm:$0xff]  ;;  %3100 = vpow2.f32 %v1121_v0 }
 0x401   : > { %v1002_v10 = vsub.f32 %v4938_v54, %v938_v43  ;;  %3102 = vpow2.f32 %v1127_v21 }
 0x402   : > { %v1175_v3 = vpop.xlane.xlu0 %1174 }
 0x404   : > { %1171 = vadd.xlane.f32.xlu1 %v1170_v34  ;;  %v1129_v34 = vmul.f32 1.442695, %v1002_v10  ;;  %v4241_v35 = vpop.eup %3090 }
 0x405   : > { %v4245_v12 = vpop.eup %3092 }
 0x406   : > { %3104 = vpow2.f32 %v1129_v34  ;;  %v4247_v41 = vpop.eup %3094  ;;  %v1206_v51 = vadd.f32 %v4245_v12, %v4241_v35  ;;  %v1181_v21 = vpop.xlane.xlu0 %1180 }
 0x407   : > { %3106 = vrcp.f32 %v1169_v4 }
 0x408   : > { %1177 = vadd.xlane.f32.xlu1 %v1176_v57  ;;  %v4251_v25 = vpop.eup %3096 }
 0x409   : > { %v4253_v57 = vpop.eup %3098  ;;  %v1212_v28 = vadd.f32 %v4251_v25, %v4247_v41 }
 0x40a   : > { %v4257_v24 = vpop.eup %3100  ;;  %v1187_v4 = vpop.xlane.xlu0 %1186 }
 0x40b   : > { %v4259_v17 = vpop.eup %3102  ;;  %v1218_v32 = vadd.f32 %v4257_v24, %v4253_v57 }
 0x40c   : > { %1183 = vadd.xlane.f32.xlu1 %v1182_v19 }
 0x410   : > { %1189 = vadd.xlane.f32.xlu1 %v1188_v37  ;;  %v4263_v19 = vpop.eup %3104 }
 0x411   : > { %v1224_v36 = vadd.f32 %v4263_v19, %v4259_v17  ;;  %v3107_v55 = vpop.eup %3106 }
 0x412   : > { %v1284_v34 = vmul.f32 %v3107_v55, %v4015_v56 }
 0x414   : > { %1195 = vadd.xlane.f32.xlu1 %v1194_v16 }
 0x418   : > { %1201 = vadd.xlane.f32.xlu1 %v1200_v46 }
 0x41c   : > { %1207 = vadd.xlane.f32.xlu1 %v1206_v51 }
 0x420   : > { %1213 = vadd.xlane.f32.xlu1 %v1212_v28 }
 0x424   : > { %1219 = vadd.xlane.f32.xlu1 %v1218_v32  ;;  %v1283_v32 = vmul.f32 %v3107_v55, %v4010_v27 }
 0x428   : > { %1225 = vadd.xlane.f32.xlu1 %v1224_v36 }
 0x439   : > { %1650 = vperm.xlu1 %2954, %v2434_v42  }
 0x489   : > { %v1790_v49 = vpop.xlane.xlu1 %1789 }
 0x48a   : > { %v1791_v43 = vsub.f32 %v1790_v49, %v4161_v30 }
 0x48c   : > { %v1792_v37 = vmul.f32 1.442695, %v1791_v43 }
 0x48d   : > { %v1166_v18 = vpop.xlane.xlu1 %1165 }
 0x48e   : > { %3108 = vpow2.f32 %v1792_v37 }
 0x48f   : > { %3110 = vrcp.f32 %v1166_v18 }
 0x491   : > { %v1172_v48 = vpop.xlane.xlu1 %1171 }
 0x492   : > { %3112 = vrcp.f32 %v1172_v48 }
 0x493   : > { %3114 = vrcp.f32 %v1175_v3 }
 0x495   : > { %v1178_v0 = vpop.xlane.xlu1 %1177 }
 0x496   : > { %3116 = vrcp.f32 %v1178_v0 }
 0x497   : > { %3118 = vrcp.f32 %v1181_v21 }
 0x498   : > { %v4272_v22 = vpop.eup %3108 }
 0x499   : > { %v3111_v54 = vpop.eup %3110  ;;  %v1794_v10 = vsel %vm1787_vm2, %v4272_v22, 0.0  ;;  %v1184_v36 = vpop.xlane.xlu1 %1183 }
 0x49a   : > { %1795 = vadd.xlane.f32.xlu0 %v1794_v10  ;;  %v1282_v30 = vmul.f32 %v3111_v54, %v4163_v44  ;;  %v1281_v16 = vmul.f32 %v3111_v54, %v4159_v6  ;;  %3120 = vrcp.f32 %v1184_v36  ;;  %v1193_v54 = vpop.xlane.xlu0 %1192 }
 0x49b   : > { %3122 = vrcp.f32 %v1187_v4 }
 0x49c   : > { %1538 = vmatprep.mubr.f32.mxu1 %v1282_v30  ;;  %v3113_v46 = vpop.eup %3112 }
 0x49d   : > { %1539 = vmatmul.mubr.f32.gmra.mrb[8].mxu1 %v1281_v16  ;;  %v1286_v42 = vmul.f32 %v3113_v46, %v4177_v63  ;;  %v3115_v44 = vpop.eup %3114  ;;  %v1285_v56 = vmul.f32 %v3113_v46, %v4173_v38  ;;  %v1190_v48 = vpop.xlane.xlu1 %1189 }
 0x49e   : > { %v4279_v51 = vpop.f32.mrb[0].mxu1  ;;  %1543 = vmatprep.mubr.f32.mxu1 %v1284_v34  ;;  %v1288_v43 = vmul.f32 %v3115_v44, %v4029_v13  ;;  %v1287_v63 = vmul.f32 %v3115_v44, %v4025_v15  ;;  %3124 = vrcp.f32 %v1190_v48  ;;  %v1199_v46 = vpop.xlane.xlu0 %1198 }
 0x49f   : > { %v1522_v28 = vpop.f32.mrb[1].mxu1  ;;  %3126 = vrcp.f32 %v1193_v54 }
 0x4a0   : > { %v3117_v37 = vpop.eup %3116 }
 0x4a1   : > { %1544 = vmatmul.mubr.f32.gmra.mrb[10].mxu1 %v1283_v32  ;;  %v1290_v3 = vmul.f32 %v3117_v37, %v4189_v1  ;;  %v3119_v55 = vpop.eup %3118  ;;  %v1289_v13 = vmul.f32 %v3117_v37, %v4185_v23  ;;  %v1196_v16 = vpop.xlane.xlu1 %1195 }
 0x4a2   : > { %v4283_v6 = vpop.f32.mrb[2].mxu1  ;;  %1548 = vmatprep.mubr.f32.mxu1 %v1286_v42  ;;  %v1292_v10 = vmul.f32 %v3119_v55, %v4043_v52  ;;  %v1291_v15 = vmul.f32 %v3119_v55, %v4039_v50  ;;  %3128 = vrcp.f32 %v1196_v16  ;;  %v1205_v42 = vpop.xlane.xlu0 %1204 }
 0x4a3   : > { %v1527_v49 = vpop.f32.mrb[3].mxu1  ;;  %3130 = vrcp.f32 %v1199_v46  ;;  %v4943_v46 = vld [vmem:[#allocation17_spill] sm:$0xff] }
 0x4a4   : > { %v3121_v30 = vpop.eup %3120 }
 0x4a5   : > { %1549 = vmatmul.mubr.f32.gmra.mrb[12].mxu1 %v1285_v56  ;;  %v1294_v1 = vmul.f32 %v3121_v30, %v4201_v26  ;;  %v3123_v21 = vpop.eup %3122  ;;  %v1293_v34 = vmul.f32 %v3121_v30, %v4197_v58  ;;  %v1202_v32 = vpop.xlane.xlu1 %1201 }
 0x4a6   : > { %v4287_v18 = vpop.f32.mrb[4].mxu1  ;;  %1553 = vmatprep.mubr.f32.mxu1 %v1288_v43  ;;  %v1296_v23 = vmul.f32 %v3123_v21, %v4057_v11  ;;  %v1295_v52 = vmul.f32 %v3123_v21, %v4052_v39  ;;  %3132 = vrcp.f32 %v1202_v32  ;;  %v1211_v4 = vpop.xlane.xlu0 %1210  ;;  %v4942_v21 = vld [vmem:[#allocation19_spill] sm:$0xff] }
 0x4a7   : > { %v1532_v27 = vpop.f32.mrb[5].mxu1  ;;  %3134 = vrcp.f32 %v1205_v42 }
 0x4a8   : > { %v3125_v28 = vpop.eup %3124 }
 0x4a9   : > { %1554 = vmatmul.mubr.f32.gmra.mrb[14].mxu1 %v1287_v63  ;;  %v1298_v50 = vmul.f32 %v3125_v28, %v4213_v60  ;;  %v3127_v36 = vpop.eup %3126  ;;  %v1297_v26 = vmul.f32 %v3125_v28, %v4209_v53  ;;  %v1208_v49 = vpop.xlane.xlu1 %1207 }
 0x4aa   : > { %v4291_v0 = vpop.f32.mrb[6].mxu1  ;;  %1558 = vmatprep.mubr.f32.mxu1 %v1290_v3  ;;  %v1300_v58 = vmul.f32 %v3127_v36, %v4071_v33  ;;  %v1299_v11 = vmul.f32 %v3127_v36, %v4067_v45  ;;  %3136 = vrcp.f32 %v1208_v49  ;;  %v1217_v63 = vpop.xlane.xlu0 %1216  ;;  %v4365_v49 = vld [vmem:[%s4329_s10 + $0x28] sm:$0xff] }
 0x4ab   : > { %v1537_v38 = vpop.f32.mrb[7].mxu1  ;;  %3138 = vrcp.f32 %v1211_v4  ;;  %v4385_v4 = vld [vmem:[%s4329_s10 + $0x48] sm:$0xff] }
 0x4ac   : > { %v3129_v44 = vpop.eup %3128 }
 0x4ad   : > { %1559 = vmatmul.mubr.f32.gmra.mrb[16].mxu1 %v1289_v13  ;;  %v1302_v39 = vmul.f32 %v3129_v44, %v4225_v62  ;;  %v3131_v56 = vpop.eup %3130  ;;  %v1301_v60 = vmul.f32 %v3129_v44, %v4221_v14  ;;  %v1214_v37 = vpop.xlane.xlu1 %1213  ;;  %v4350_v44 = vld [vmem:[%s4329_s10 + $0x10] sm:$0xff] }
 0x4ae   : > { %1563 = vmatprep.mubr.f32.mxu1 %v1292_v10  ;;  %v1304_v53 = vmul.f32 %v3131_v56, %v4083_v9  ;;  %v1303_v33 = vmul.f32 %v3131_v56, %v4079_v31  ;;  %3140 = vrcp.f32 %v1214_v37  ;;  %v4939_v9 = vld [vmem:[#allocation3_spill] sm:$0xff]  ;;  %v1223_v13 = vpop.xlane.xlu0 %1222  ;;  %v4375_v56 = vld [vmem:[%s4329_s10 + $0x38] sm:$0xff] }
 0x4af   : > { %3142 = vrcp.f32 %v1217_v63  ;;  %v4405_v37 = vld [vmem:[%s4329_s10 + $0x68] sm:$0xff] }
 0x4b0   : > { %v3133_v43 = vpop.eup %3132  ;;  %v4425_v63 = vld [vmem:[%s4329_s10 + $0x88] sm:$0xff] }
 0x4b1   : > { %1564 = vmatmul.mubr.f32.gmra.mrb[18].mxu1 %v1291_v15  ;;  %v1306_v45 = vmul.f32 %v3133_v43, %v4239_v7  ;;  %v3135_v27 = vpop.eup %3134  ;;  %v1305_v62 = vmul.f32 %v3133_v43, %v4235_v59  ;;  %v1220_v55 = vpop.xlane.xlu1 %1219  ;;  %v4940_v59 = vld [vmem:[#allocation6_spill] sm:$0xff]  ;;  %v4395_v43 = vld [vmem:[%s4329_s10 + $0x58] sm:$0xff] }
 0x4b2   : > { %1568 = vmatprep.mubr.f32.mxu1 %v1294_v1  ;;  %v1308_v14 = vmul.f32 %v3135_v27, %v4091_v8  ;;  %v1307_v3 = vmul.f32 %v3135_v27, %v4939_v9  ;;  %3144 = vrcp.f32 %v1220_v55  ;;  %v4941_v8 = vld [vmem:[#allocation5_spill] sm:$0xff]  ;;  %v4438_v9 = vld [vmem:[%s4329_s10 + $0xa0] sm:$0xff]  ;;  %v4448_v55 = vld [vmem:[%s4329_s10 + $0xb0] sm:$0xff] }
 0x4b3   : > { %3146 = vrcp.f32 %v1223_v13  ;;  %v4415_v27 = vld [vmem:[%s4329_s10 + $0x78] sm:$0xff]  ;;  %v4468_v13 = vld [vmem:[%s4329_s10 + $0xd0] sm:$0xff] }
 0x4b4   : > { %v3137_v48 = vpop.eup %3136  ;;  %4946 = vst [vmem:[#allocation7_spill] sm:$0xff] %v4468_v13 }
 0x4b5   : > { %1569 = vmatmul.mubr.f32.gmra.mrb[20].mxu1 %v1293_v34  ;;  %v1310_v31 = vmul.f32 %v3137_v48, %v4245_v12  ;;  %v3139_v38 = vpop.eup %3138  ;;  %v1309_v7 = vmul.f32 %v3137_v48, %v4241_v35  ;;  %v1226_v15 = vpop.xlane.xlu1 %1225  ;;  %v4435_v48 = vld [vmem:[%s4329_s10 + $0x98] sm:$0xff] }
 0x4b6   : > { %1573 = vmatprep.mubr.f32.mxu1 %v1296_v23  ;;  %v1312_v54 = vmul.f32 %v3139_v38, %v4940_v59  ;;  %v1311_v30 = vmul.f32 %v3139_v38, %v4941_v8  ;;  %3148 = vrcp.f32 %v1226_v15  ;;  %v4458_v38 = vld [vmem:[%s4329_s10 + $0xc0] sm:$0xff]  ;;  %v4475_v59 = vld [vmem:[%s4329_s10 + $0xd8] sm:$0xff]  ;;  %v4488_v8 = vld [vmem:[%s4329_s10 + $0xf0] sm:$0xff] }
 0x4b7   : > { %4945 = vst [vmem:[#allocation20_spill] sm:$0xff] %v4458_v38  ;;  %4947 = vst [vmem:[#allocation8_spill] sm:$0xff] %v4475_v59 }
 0x4b8   : > { %v3141_v10 = vpop.eup %3140  ;;  %4950 = vst [vmem:[#allocation11_spill] sm:$0xff] %v4488_v8 }
 0x4b9   : > { %1574 = vmatmul.mubr.f32.gmra.mrb[22].mxu1 %v1295_v52  ;;  %v1314_v16 = vmul.f32 %v3141_v10, %v4251_v25  ;;  %v3143_v1 = vpop.eup %3142  ;;  %v1313_v12 = vmul.f32 %v3141_v10, %v4247_v41  ;;  %v4944_v41 = vld [vmem:[#allocation18_spill] sm:$0xff]  ;;  %v4485_v10 = vld [vmem:[%s4329_s10 + $0xe8] sm:$0xff] }
 0x4ba   : > { %1578 = vmatprep.mubr.f32.mxu1 %v1298_v50  ;;  %v1316_v35 = vmul.f32 %v3143_v1, %v4942_v21  ;;  %v1315_v23 = vmul.f32 %v3143_v1, %v4943_v46  ;;  %4949 = vst [vmem:[#allocation10_spill] sm:$0xff] %v4485_v10 }
 0x4bc   : > { %v3145_v34 = vpop.eup %3144 }
 0x4bd   : > { %1579 = vmatmul.mubr.f32.gmra.mrb[24].mxu1 %v1297_v26  ;;  %v1318_v28 = vmul.f32 %v3145_v34, %v4257_v24  ;;  %v3147_v52 = vpop.eup %3146  ;;  %v1317_v25 = vmul.f32 %v3145_v34, %v4253_v57  ;;  %v2468_v24 = vld [vmem:[%s287_s13] ss:$0 sm:$0xff] }
 0x4be   : > { %1583 = vmatprep.mubr.f32.mxu1 %v1300_v58  ;;  %v1320_v32 = vmul.f32 %v3147_v52, %v4109_v61  ;;  %v1319_v36 = vmul.f32 %v3147_v52, %v4944_v41  ;;  %v4333_v61 = vld [vmem:[%s4329_s10] sm:$0xff]  ;;  %2129 = vperm.xlu0 %2955, %v2468_v24   ;;  %v4345_v58 = vld [vmem:[%s4329_s10 + $0x8] sm:$0xff] }
 0x4c0   : > { %v3149_v50 = vpop.eup %3148 }
 0x4c1   : > { %1584 = vmatmul.mubr.f32.gmra.mrb[26].mxu1 %v1299_v11  ;;  %v1322_v26 = vmul.f32 %v3149_v50, %v4263_v19  ;;  %v1321_v57 = vmul.f32 %v3149_v50, %v4259_v17  ;;  %v4355_v11 = vld [vmem:[%s4329_s10 + $0x18] sm:$0xff] }
 0x4c2   : > { %1588 = vmatprep.mubr.f32.mxu1 %v1302_v39  ;;  %v4370_v39 = vld [vmem:[%s4329_s10 + $0x30] sm:$0xff] }
 0x4c5   : > { %1589 = vmatmul.mubr.f32.gmra.mrb[28].mxu1 %v1301_v60  ;;  %v4380_v60 = vld [vmem:[%s4329_s10 + $0x40] sm:$0xff] }
 0x4c6   : > { %1593 = vmatprep.mubr.f32.mxu1 %v1304_v53  ;;  %v4390_v53 = vld [vmem:[%s4329_s10 + $0x50] sm:$0xff] }
 0x4c9   : > { %1594 = vmatmul.mubr.f32.gmra.mrb[30].mxu1 %v1303_v33  ;;  %v4398_v33 = vld [vmem:[%s4329_s10 + $0x60] sm:$0xff] }
 0x4ca   : > { %1598 = vmatprep.mubr.f32.mxu1 %v1306_v45  ;;  %v4408_v45 = vld [vmem:[%s4329_s10 + $0x70] sm:$0xff] }
 0x4cd   : > { %1599 = vmatmul.mubr.f32.gmra.mrb[32].mxu1 %v1305_v62  ;;  %v4418_v62 = vld [vmem:[%s4329_s10 + $0x80] sm:$0xff] }
 0x4ce   : > { %1603 = vmatprep.mubr.f32.mxu1 %v1308_v14  ;;  %v4428_v14 = vld [vmem:[%s4329_s10 + $0x90] sm:$0xff] }
 0x4d1   : > { %1604 = vmatmul.mubr.f32.gmra.mrb[34].mxu1 %v1307_v3  ;;  %v4445_v3 = vld [vmem:[%s4329_s10 + $0xa8] sm:$0xff] }
 0x4d2   : > { %1608 = vmatprep.mubr.f32.mxu1 %v1310_v31  ;;  %v4455_v31 = vld [vmem:[%s4329_s10 + $0xb8] sm:$0xff] }
 0x4d5   : > { %1609 = vmatmul.mubr.f32.gmra.mrb[36].mxu1 %v1309_v7  ;;  %v4465_v7 = vld [vmem:[%s4329_s10 + $0xc8] sm:$0xff] }
 0x4d6   : > { %1613 = vmatprep.mubr.f32.mxu1 %v1312_v54  ;;  %v4478_v54 = vld [vmem:[%s4329_s10 + $0xe0] sm:$0xff] }
 0x4d7   : > { %4948 = vst [vmem:[#allocation9_spill] sm:$0xff] %v4478_v54 }
 0x4d9   : > { %1614 = vmatmul.mubr.f32.gmra.mrb[38].mxu1 %v1311_v30 }
 0x4da   : > { %1618 = vmatprep.mubr.f32.mxu1 %v1314_v16  ;;  %v4497_v16 = vld [vmem:[%s4329_s10 + $0xf8] sm:$0xff] }
 0x4db   : > { %4951 = vst [vmem:[#allocation12_spill] sm:$0xff] %v4497_v16 }
 0x4dd   : > { %1619 = vmatmul.mubr.f32.gmra.mrb[40].mxu1 %v1313_v12 }
 0x4de   : > { %1623 = vmatprep.mubr.f32.mxu1 %v1316_v35 }
 0x4e1   : > { %1624 = vmatmul.mubr.f32.gmra.mrb[42].mxu1 %v1315_v23 }
 0x4e2   : > { %1628 = vmatprep.mubr.f32.mxu1 %v1318_v28 }
 0x4e5   : > { %1629 = vmatmul.mubr.f32.gmra.mrb[44].mxu1 %v1317_v25 }
 0x4e6   : > { %1633 = vmatprep.mubr.f32.mxu1 %v1320_v32 }
 0x4e9   : > { %1634 = vmatmul.mubr.f32.gmra.mrb[46].mxu1 %v1319_v36 }
 0x4ea   : > { %1638 = vmatprep.mubr.f32.mxu1 %v1322_v26 }
 0x4ed   : > { %1639 = vmatmul.mubr.f32.gmra.mrb[48].mxu1 %v1321_v57 }
 0x4ee   : > { %2606 = vmatprep.mubr.msk.f32.mxu1 %vm1787_vm2, %v4333_v61 }
 0x527   : > { %v1796_v19 = vpop.xlane.xlu0 %1795 }
 0x528   : > { %3150 = vrcp.f32 %v1796_v19 }
 0x532   : > { %v3151_v42 = vpop.eup %3150 }
 0x533   : > { %v1798_v17 = vmul.f32 %v3151_v42, %v4272_v22  ;;  %v4360_v22 = vld [vmem:[%s4329_s10 + $0x20] sm:$0xff] }
 0x535   : > { %2604 = vmatprep.subr.msk.mxu1 %vm1787_vm2, %v1798_v17 }
 0x536   : > { %2605 = vmatpush3.xpose.msk.msra.mxu1 %vm1787_vm2, %v1798_v17 }
 0x539   : > { %2607 = vmatmul.mubr.msk.f32.vlgmr.msra.gmra.mrb[50].mxu1 %vm1787_vm2, %v4345_v58 }
 0x53a   : > { %2609 = vmatprep.mubr.msk.f32.mxu1 %vm1787_vm2, %v4350_v44 }
 0x53d   : > { %2610 = vmatmul.mubr.msk.f32.gmra.mrb[52].mxu1 %vm1787_vm2, %v4355_v11 }
 0x53e   : > { %2612 = vmatprep.mubr.msk.f32.mxu1 %vm1787_vm2, %v4360_v22 }
 0x541   : > { %2613 = vmatmul.mubr.msk.f32.gmra.mrb[54].mxu1 %vm1787_vm2, %v4365_v49 }
 0x542   : > { %2615 = vmatprep.mubr.msk.f32.mxu1 %vm1787_vm2, %v4370_v39 }
 0x545   : > { %2616 = vmatmul.mubr.msk.f32.gmra.mrb[56].mxu1 %vm1787_vm2, %v4375_v56 }
 0x546   : > { %2618 = vmatprep.mubr.msk.f32.mxu1 %vm1787_vm2, %v4380_v60 }
 0x549   : > { %2619 = vmatmul.mubr.msk.f32.gmra.mrb[58].mxu1 %vm1787_vm2, %v4385_v4 }
 0x54a   : > { %2621 = vmatprep.mubr.msk.f32.mxu1 %vm1787_vm2, %v4390_v53 }
 0x54d   : > { %2622 = vmatmul.mubr.msk.f32.gmra.mrb[60].mxu1 %vm1787_vm2, %v4395_v43 }
 0x54e   : > { %2624 = vmatprep.mubr.msk.f32.mxu1 %vm1787_vm2, %v4398_v33 }
 0x551   : > { %2625 = vmatmul.mubr.msk.f32.gmra.mrb[62].mxu1 %vm1787_vm2, %v4405_v37 }
 0x552   : > { %2627 = vmatprep.mubr.msk.f32.mxu1 %vm1787_vm2, %v4408_v45 }
 0x555   : > { %2628 = vmatmul.mubr.msk.f32.gmra.mrb[64].mxu1 %vm1787_vm2, %v4415_v27 }
 0x556   : > { %2630 = vmatprep.mubr.msk.f32.mxu1 %vm1787_vm2, %v4418_v62 }
 0x559   : > { %2631 = vmatmul.mubr.msk.f32.gmra.mrb[66].mxu1 %vm1787_vm2, %v4425_v63 }
 0x55a   : > { %2633 = vmatprep.mubr.msk.f32.mxu1 %vm1787_vm2, %v4428_v14 }
 0x55d   : > { %2634 = vmatmul.mubr.msk.f32.gmra.mrb[68].mxu1 %vm1787_vm2, %v4435_v48 }
 0x55e   : > { %2636 = vmatprep.mubr.msk.f32.mxu1 %vm1787_vm2, %v4438_v9 }
 0x561   : > { %2637 = vmatmul.mubr.msk.f32.gmra.mrb[70].mxu1 %vm1787_vm2, %v4445_v3 }
 0x562   : > { %2639 = vmatprep.mubr.msk.f32.mxu1 %vm1787_vm2, %v4448_v55 }
 0x565   : > { %2640 = vmatmul.mubr.msk.f32.gmra.mrb[72].mxu1 %vm1787_vm2, %v4455_v31 }
 0x566   : > { %2642 = vmatprep.mubr.msk.f32.mxu1 %vm1787_vm2, %v4458_v38 }
 0x569   : > { %2643 = vmatmul.mubr.msk.f32.gmra.mrb[74].mxu1 %vm1787_vm2, %v4465_v7 }
 0x56a   : > { %2645 = vmatprep.mubr.msk.f32.mxu1 %vm1787_vm2, %v4468_v13 }
 0x56d   : > { %2646 = vmatmul.mubr.msk.f32.gmra.mrb[76].mxu1 %vm1787_vm2, %v4475_v59 }
 0x56e   : > { %2648 = vmatprep.mubr.msk.f32.mxu1 %vm1787_vm2, %v4478_v54 }
 0x570   : > { %v4490_v30 = vpop.f32.mrb[8].mxu1 }
 0x571   : > { %v1542_v15 = vpop.f32.mrb[9].mxu1  ;;  %2649 = vmatmul.mubr.msk.f32.gmra.mrb[78].mxu1 %vm1787_vm2, %v4485_v10 }
 0x572   : > { %2651 = vmatprep.mubr.msk.f32.mxu1 %vm1787_vm2, %v4488_v8 }
 0x574   : > { %v4499_v1 = vpop.f32.mrb[10].mxu1 }
 0x575   : > { %v1547_v12 = vpop.f32.mrb[11].mxu1  ;;  %2652 = vmatmul.mubr.msk.f32.gmra.mrb[80].mxu1 %vm1787_vm2, %v4497_v16 }
 0x578   : > { %v4503_v21 = vpop.f32.mrb[12].mxu1 }
 0x579   : > { %v1552_v35 = vpop.f32.mrb[13].mxu1 }
 0x57c   : > { %v4505_v34 = vpop.f32.mrb[14].mxu1 }
 0x57d   : > { %v1557_v46 = vpop.f32.mrb[15].mxu1 }
 0x580   : > { %v4507_v23 = vpop.f32.mrb[16].mxu1 }
 0x581   : > { %v1562_v28 = vpop.f32.mrb[17].mxu1 }
 0x584   : > { %v4509_v52 = vpop.f32.mrb[18].mxu1 }
 0x585   : > { %v1567_v25 = vpop.f32.mrb[19].mxu1 }
 0x588   : > { %v4511_v32 = vpop.f32.mrb[20].mxu1 }
 0x589   : > { %v1572_v50 = vpop.f32.mrb[21].mxu1 }
 0x58c   : > { %v4513_v41 = vpop.f32.mrb[22].mxu1 }
 0x58d   : > { %v1577_v36 = vpop.f32.mrb[23].mxu1 }
 0x590   : > { %v4515_v26 = vpop.f32.mrb[24].mxu1 }
 0x591   : > { %v1582_v57 = vpop.f32.mrb[25].mxu1 }
 0x594   : > { %v4517_v24 = vpop.f32.mrb[26].mxu1 }
 0x595   : > { %v1587_v19 = vpop.f32.mrb[27].mxu1 }
 0x598   : > { %v4519_v42 = vpop.f32.mrb[28].mxu1 }
 0x599   : > { %v1592_v17 = vpop.f32.mrb[29].mxu1 }
 0x59c   : > { %v4521_v15 = vpop.f32.mrb[30].mxu1 }
 0x59d   : > { %v1597_v12 = vpop.f32.mrb[31].mxu1 }
 0x5a0   : > { %v4523_v35 = vpop.f32.mrb[32].mxu1 }
 0x5a1   : > { %v1602_v46 = vpop.f32.mrb[33].mxu1 }
 0x5a4   : > { %v4525_v28 = vpop.f32.mrb[34].mxu1 }
 0x5a5   : > { %v1607_v25 = vpop.f32.mrb[35].mxu1 }
 0x5a8   : > { %v4527_v50 = vpop.f32.mrb[36].mxu1 }
 0x5a9   : > { %v1612_v36 = vpop.f32.mrb[37].mxu1 }
 0x5aa   : > { %v4541_v36 = vpop.permute.xlu1 %1650 }
 0x5ac   : > { %v4529_v8 = vpop.f32.mrb[38].mxu1 }
 0x5ad   : > { %4952 = vst [vmem:[#allocation13_spill] sm:$0xff] %v4529_v8  ;;  %v1617_v57 = vpop.f32.mrb[39].mxu1  ;;  %v4543_v8 = vpop.permute.xlu0 %2129 }
 0x5ae   : > { %v1654_v57 = vmul.f32 %v4541_v36, %v4117_v47  ;;  %v1655_v47 = vmul.f32 %v4541_v36, %v4121_v20  ;;  %v1658_v20 = vmul.f32 %v4541_v36, %v4131_v5 }
 0x5b0   : > { %v4531_v16 = vpop.f32.mrb[40].mxu1 }
 0x5b1   : > { %4953 = vst [vmem:[#allocation14_spill] sm:$0xff] %v4531_v16  ;;  %v1622_v19 = vpop.f32.mrb[41].mxu1 }
 0x5b2   : > { %v4958_v19 = vld [vmem:[#allocation21_spill] sm:$0xff] }
 0x5b4   : > { %v4533_v54 = vpop.f32.mrb[42].mxu1 }
 0x5b5   : > { %4954 = vst [vmem:[#allocation15_spill] sm:$0xff] %v4533_v54  ;;  %v1627_v17 = vpop.f32.mrb[43].mxu1 }
 0x5b6   : > { %v1653_v17 = vmul.f32 %v4541_v36, %v4958_v19 }
 0x5b8   : > { %v4535_v10 = vpop.f32.mrb[44].mxu1  ;;  %v1685_v38 = vadd.f32 %v1653_v17, %v4333_v61 }
 0x5b9   : > { %4955 = vst [vmem:[#allocation16_spill] sm:$0xff] %v4535_v10  ;;  %v1632_v12 = vpop.f32.mrb[45].mxu1 }
 0x5bc   : > { %v4537_v13 = vpop.f32.mrb[46].mxu1 }
 0x5bd   : > { %4956 = vst [vmem:[#allocation4_spill] sm:$0xff] %v4537_v13  ;;  %v1637_v46 = vpop.f32.mrb[47].mxu1  ;;  %v1656_v13 = vmul.f32 %v4541_v36, %v4125_v40 }
 0x5c0   : > { %v4539_v25 = vpop.f32.mrb[48].mxu1 }
 0x5c1   : > { %4957 = vst [vmem:[#allocation2_spill] sm:$0xff] %v4539_v25  ;;  %v1642_v59 = vpop.f32.mrb[49].mxu1 }
 0x5c2   : > { %v1686_v59 = vadd.f32 %v1654_v57, %v4345_v58 }
 0x60c   : > { %v2608_v54 = vpop.f32.mrb[50].mxu1 }
 0x60d   : > { %v2133_v12 = vmul.f32 %v2608_v54, %v4543_v8  ;;  %v1964_v10 = vpop.f32.mrb[51].mxu1 }
 0x60e   : > { %v2132_v46 = vmul.f32 %v4543_v8, %v1964_v10 }
 0x60f   : > { %v2165_v25 = vadd.f32 %v2133_v12, %v4345_v58  ;;  %v1688_v12 = vadd.f32 %v1656_v13, %v4355_v11 }
 0x610   : > { %v2164_v54 = vadd.f32 %v2132_v46, %v4333_v61  ;;  %v2611_v10 = vpop.f32.mrb[52].mxu1  ;;  %v1687_v61 = vadd.f32 %v1655_v47, %v4350_v44  ;;  %v1660_v47 = vmul.f32 %v4541_v36, %v4279_v51 }
 0x611   : > { %v2197_v40 = vadd.f32 %v2165_v25, %v1686_v59  ;;  %v2135_v57 = vmul.f32 %v2611_v10, %v4543_v8  ;;  %v1974_v19 = vpop.f32.mrb[53].mxu1  ;;  %v1657_v25 = vmul.f32 %v4541_v36, %v4129_v2 }
 0x612   : > { %v2196_v58 = vadd.f32 %v2164_v54, %v1685_v38  ;;  %v2134_v17 = vmul.f32 %v4543_v8, %v1974_v19 }
 0x613   : > { %2229 = vst.msk [vmem:[%s4562_s16 + $0x8] sm:$0xff] %vm1787_vm2, %v2197_v40  ;;  %v2167_v16 = vadd.f32 %v2135_v57, %v4355_v11  ;;  %v1690_v11 = vadd.f32 %v1658_v20, %v4365_v49  ;;  %v1662_v20 = vmul.f32 %v4541_v36, %v4287_v18 }
 0x614   : > { %2228 = vst.msk [vmem:[%s4562_s16] sm:$0xff] %vm1787_vm2, %v2196_v58  ;;  %v2166_v38 = vadd.f32 %v2134_v17, %v4350_v44  ;;  %v2614_v46 = vpop.f32.mrb[54].mxu1  ;;  %v1689_v44 = vadd.f32 %v1657_v25, %v4360_v22 }
 0x615   : > { %v2199_v13 = vadd.f32 %v2167_v16, %v1688_v12  ;;  %v2137_v59 = vmul.f32 %v2614_v46, %v4543_v8  ;;  %v1984_v54 = vpop.f32.mrb[55].mxu1  ;;  %v1659_v16 = vmul.f32 %v4541_v36, %v4151_v29 }
 0x616   : > { %v2198_v5 = vadd.f32 %v2166_v38, %v1687_v61  ;;  %v2136_v10 = vmul.f32 %v4543_v8, %v1984_v54  ;;  %v1661_v61 = vmul.f32 %v4541_v36, %v4283_v6 }
 0x617   : > { %2231 = vst.msk [vmem:[%s4562_s16 + $0x18] sm:$0xff] %vm1787_vm2, %v2199_v13  ;;  %v2169_v2 = vadd.f32 %v2137_v59, %v4365_v49  ;;  %v1692_v49 = vadd.f32 %v1660_v47, %v4375_v56 }
 0x618   : > { %2230 = vst.msk [vmem:[%s4562_s16 + $0x10] sm:$0xff] %vm1787_vm2, %v2198_v5  ;;  %v2168_v40 = vadd.f32 %v2136_v10, %v4360_v22  ;;  %v2617_v57 = vpop.f32.mrb[56].mxu1  ;;  %v1691_v22 = vadd.f32 %v1659_v16, %v4370_v39  ;;  %v1664_v5 = vmul.f32 %v4541_v36, %v4490_v30  ;;  %v1663_v10 = vmul.f32 %v4541_v36, %v4291_v0 }
 0x619   : > { %v2201_v19 = vadd.f32 %v2169_v2, %v1690_v11  ;;  %v2139_v58 = vmul.f32 %v2617_v57, %v4543_v8  ;;  %v1994_v17 = vpop.f32.mrb[57].mxu1  ;;  %v1666_v57 = vmul.f32 %v4541_v36, %v4503_v21 }
 0x61a   : > { %v2200_v51 = vadd.f32 %v2168_v40, %v1689_v44  ;;  %v2138_v12 = vmul.f32 %v4543_v8, %v1994_v17 }
 0x61b   : > { %2233 = vst.msk [vmem:[%s4562_s16 + $0x28] sm:$0xff] %vm1787_vm2, %v2201_v19  ;;  %v2171_v29 = vadd.f32 %v2139_v58, %v4375_v56  ;;  %v1694_v56 = vadd.f32 %v1662_v20, %v4385_v4  ;;  %v1665_v19 = vmul.f32 %v4541_v36, %v4499_v1 }
 0x61c   : > { %2232 = vst.msk [vmem:[%s4562_s16 + $0x20] sm:$0xff] %vm1787_vm2, %v2200_v51  ;;  %v2170_v25 = vadd.f32 %v2138_v12, %v4370_v39  ;;  %v2620_v38 = vpop.f32.mrb[58].mxu1  ;;  %v1693_v39 = vadd.f32 %v1661_v61, %v4380_v60 }
 0x61d   : > { %v2203_v46 = vadd.f32 %v2171_v29, %v1692_v49  ;;  %v2141_v13 = vmul.f32 %v2620_v38, %v4543_v8  ;;  %v2004_v59 = vpop.f32.mrb[59].mxu1  ;;  %v1668_v29 = vmul.f32 %v4541_v36, %v4507_v23 }
 0x61e   : > { %v2202_v18 = vadd.f32 %v2170_v25, %v1691_v22  ;;  %v2140_v54 = vmul.f32 %v4543_v8, %v2004_v59  ;;  %v1667_v22 = vmul.f32 %v4541_v36, %v4505_v34 }
 0x61f   : > { %2235 = vst.msk [vmem:[%s4562_s16 + $0x38] sm:$0xff] %vm1787_vm2, %v2203_v46  ;;  %v2173_v6 = vadd.f32 %v2141_v13, %v4385_v4  ;;  %v1696_v4 = vadd.f32 %v1664_v5, %v4395_v43 }
 0x620   : > { %2234 = vst.msk [vmem:[%s4562_s16 + $0x30] sm:$0xff] %vm1787_vm2, %v2202_v18  ;;  %v2172_v11 = vadd.f32 %v2140_v54, %v4380_v60  ;;  %v2623_v47 = vpop.f32.mrb[60].mxu1  ;;  %v1695_v60 = vadd.f32 %v1663_v10, %v4390_v53  ;;  %v1670_v18 = vmul.f32 %v4541_v36, %v4511_v32  ;;  %v1669_v54 = vmul.f32 %v4541_v36, %v4509_v52 }
 0x621   : > { %v2205_v2 = vadd.f32 %v2173_v6, %v1694_v56  ;;  %v2143_v44 = vmul.f32 %v2623_v47, %v4543_v8  ;;  %v2014_v16 = vpop.f32.mrb[61].mxu1  ;;  %v1672_v47 = vmul.f32 %v4541_v36, %v4515_v26 }
 0x622   : > { %v2204_v30 = vadd.f32 %v2172_v11, %v1693_v39  ;;  %v2142_v40 = vmul.f32 %v4543_v8, %v2014_v16 }
 0x623   : > { %2237 = vst.msk [vmem:[%s4562_s16 + $0x48] sm:$0xff] %vm1787_vm2, %v2205_v2  ;;  %v2175_v0 = vadd.f32 %v2143_v44, %v4395_v43  ;;  %v1698_v43 = vadd.f32 %v1666_v57, %v4405_v37  ;;  %v1671_v2 = vmul.f32 %v4541_v36, %v4513_v41 }
 0x624   : > { %2236 = vst.msk [vmem:[%s4562_s16 + $0x40] sm:$0xff] %vm1787_vm2, %v2204_v30  ;;  %v2174_v58 = vadd.f32 %v2142_v40, %v4390_v53  ;;  %v2626_v17 = vpop.f32.mrb[62].mxu1  ;;  %v1697_v53 = vadd.f32 %v1665_v19, %v4398_v33 }
 0x625   : > { %v2207_v51 = vadd.f32 %v2175_v0, %v1696_v4  ;;  %v2145_v12 = vmul.f32 %v2626_v17, %v4543_v8  ;;  %v2024_v49 = vpop.f32.mrb[63].mxu1  ;;  %v1674_v0 = vmul.f32 %v4541_v36, %v4519_v42 }
 0x626   : > { %v2206_v21 = vadd.f32 %v2174_v58, %v1695_v60  ;;  %v2144_v20 = vmul.f32 %v4543_v8, %v2024_v49  ;;  %v1673_v60 = vmul.f32 %v4541_v36, %v4517_v24 }
 0x627   : > { %2239 = vst.msk [vmem:[%s4562_s16 + $0x58] sm:$0xff] %vm1787_vm2, %v2207_v51  ;;  %v2177_v1 = vadd.f32 %v2145_v12, %v4405_v37  ;;  %v1700_v37 = vadd.f32 %v1668_v29, %v4415_v27 }
 0x628   : > { %2238 = vst.msk [vmem:[%s4562_s16 + $0x50] sm:$0xff] %vm1787_vm2, %v2206_v21  ;;  %v2176_v61 = vadd.f32 %v2144_v20, %v4398_v33  ;;  %v2629_v25 = vpop.f32.mrb[64].mxu1  ;;  %v1699_v33 = vadd.f32 %v1667_v22, %v4408_v45  ;;  %v1676_v21 = vmul.f32 %v4541_v36, %v4523_v35  ;;  %v1675_v20 = vmul.f32 %v4541_v36, %v4521_v15 }
 0x629   : > { %v2209_v38 = vadd.f32 %v2177_v1, %v1698_v43  ;;  %v2147_v46 = vmul.f32 %v2629_v25, %v4543_v8  ;;  %v2034_v13 = vpop.f32.mrb[65].mxu1  ;;  %v1678_v25 = vmul.f32 %v4541_v36, %v4527_v50 }
 0x62a   : > { %v2208_v23 = vadd.f32 %v2176_v61, %v1697_v53  ;;  %v2146_v59 = vmul.f32 %v4543_v8, %v2034_v13 }
 0x62b   : > { %2241 = vst.msk [vmem:[%s4562_s16 + $0x68] sm:$0xff] %vm1787_vm2, %v2209_v38  ;;  %v2179_v34 = vadd.f32 %v2147_v46, %v4415_v27  ;;  %v1702_v27 = vadd.f32 %v1670_v18, %v4425_v63  ;;  %v1677_v38 = vmul.f32 %v4541_v36, %v4525_v28 }
 0x62c   : > { %2240 = vst.msk [vmem:[%s4562_s16 + $0x60] sm:$0xff] %vm1787_vm2, %v2208_v23  ;;  %v2178_v56 = vadd.f32 %v2146_v59, %v4408_v45  ;;  %v2632_v5 = vpop.f32.mrb[66].mxu1  ;;  %v1701_v45 = vadd.f32 %v1669_v54, %v4418_v62  ;;  %v4960_v54 = vld [vmem:[#allocation20_spill] sm:$0xff] }
 0x62d   : > { %v2211_v6 = vadd.f32 %v2179_v34, %v1700_v37  ;;  %v2149_v39 = vmul.f32 %v2632_v5, %v4543_v8  ;;  %v2044_v10 = vpop.f32.mrb[67].mxu1  ;;  %v4959_v34 = vld [vmem:[#allocation14_spill] sm:$0xff] }
 0x62e   : > { %v2210_v32 = vadd.f32 %v2178_v56, %v1699_v33  ;;  %v2148_v11 = vmul.f32 %v4543_v8, %v2044_v10  ;;  %v1680_v33 = vmul.f32 %v4541_v36, %v4959_v34  ;;  %v4961_v56 = vld [vmem:[#allocation13_spill] sm:$0xff] }
 0x62f   : > { %2243 = vst.msk [vmem:[%s4562_s16 + $0x78] sm:$0xff] %vm1787_vm2, %v2211_v6  ;;  %v2181_v52 = vadd.f32 %v2149_v39, %v4425_v63  ;;  %v1704_v63 = vadd.f32 %v1672_v47, %v4435_v48  ;;  %v1679_v5 = vmul.f32 %v4541_v36, %v4961_v56 }
 0x630   : > { %2242 = vst.msk [vmem:[%s4562_s16 + $0x70] sm:$0xff] %vm1787_vm2, %v2210_v32  ;;  %v2180_v44 = vadd.f32 %v2148_v11, %v4418_v62  ;;  %v2635_v16 = vpop.f32.mrb[68].mxu1  ;;  %v1703_v62 = vadd.f32 %v1671_v2, %v4428_v14 }
 0x631   : > { %v2213_v30 = vadd.f32 %v2181_v52, %v1702_v27  ;;  %v2151_v40 = vmul.f32 %v2635_v16, %v4543_v8  ;;  %v2054_v4 = vpop.f32.mrb[69].mxu1  ;;  %v4962_v52 = vld [vmem:[#allocation8_spill] sm:$0xff]  ;;  %v4964_v16 = vld [vmem:[#allocation7_spill] sm:$0xff] }
 0x632   : > { %v2212_v26 = vadd.f32 %v2180_v44, %v1701_v45  ;;  %v2150_v57 = vmul.f32 %v4543_v8, %v2054_v4  ;;  %v4963_v45 = vld [vmem:[#allocation16_spill] sm:$0xff] }
 0x633   : > { %2245 = vst.msk [vmem:[%s4562_s16 + $0x88] sm:$0xff] %vm1787_vm2, %v2213_v30  ;;  %v2183_v41 = vadd.f32 %v2151_v40, %v4435_v48  ;;  %v1706_v48 = vadd.f32 %v1674_v0, %v4445_v3  ;;  %v1682_v2 = vmul.f32 %v4541_v36, %v4963_v45  ;;  %v1711_v30 = vadd.f32 %v1679_v5, %v4964_v16  ;;  %v4965_v40 = vld [vmem:[#allocation15_spill] sm:$0xff] }
 0x634   : > { %2244 = vst.msk [vmem:[%s4562_s16 + $0x80] sm:$0xff] %vm1787_vm2, %v2212_v26  ;;  %v2182_v19 = vadd.f32 %v2150_v57, %v4428_v14  ;;  %v2638_v58 = vpop.f32.mrb[70].mxu1  ;;  %v1705_v14 = vadd.f32 %v1673_v60, %v4438_v9  ;;  %v1681_v4 = vmul.f32 %v4541_v36, %v4965_v40 }
 0x635   : > { %v2215_v17 = vadd.f32 %v2183_v41, %v1704_v63  ;;  %v2153_v51 = vmul.f32 %v2638_v58, %v4543_v8  ;;  %v2064_v12 = vpop.f32.mrb[71].mxu1 }
 0x636   : > { %v2214_v42 = vadd.f32 %v2182_v19, %v1703_v62  ;;  %v2152_v49 = vmul.f32 %v4543_v8, %v2064_v12  ;;  %v4966_v19 = vld [vmem:[#allocation10_spill] sm:$0xff] }
 0x637   : > { %2247 = vst.msk [vmem:[%s4562_s16 + $0x98] sm:$0xff] %vm1787_vm2, %v2215_v17  ;;  %v2185_v24 = vadd.f32 %v2153_v51, %v4445_v3  ;;  %v1708_v3 = vadd.f32 %v1676_v21, %v4455_v31  ;;  %v1714_v58 = vadd.f32 %v1682_v2, %v4966_v19  ;;  %v4967_v17 = vld [vmem:[#allocation2_spill] sm:$0xff] }
 0x638   : > { %2246 = vst.msk [vmem:[%s4562_s16 + $0x90] sm:$0xff] %vm1787_vm2, %v2214_v42  ;;  %v2184_v43 = vadd.f32 %v2152_v49, %v4438_v9  ;;  %v2641_v29 = vpop.f32.mrb[72].mxu1  ;;  %v1707_v9 = vadd.f32 %v1675_v20, %v4448_v55  ;;  %v1684_v51 = vmul.f32 %v4541_v36, %v4967_v17  ;;  %v4968_v42 = vld [vmem:[#allocation9_spill] sm:$0xff] }
 0x639   : > { %v2217_v1 = vadd.f32 %v2185_v24, %v1706_v48  ;;  %v2155_v53 = vmul.f32 %v2641_v29, %v4543_v8  ;;  %v2074_v22 = vpop.f32.mrb[73].mxu1  ;;  %v1713_v49 = vadd.f32 %v1681_v4, %v4968_v42  ;;  %v4969_v48 = vld [vmem:[#allocation4_spill] sm:$0xff] }
 0x63a   : > { %v2216_v35 = vadd.f32 %v2184_v43, %v1705_v14  ;;  %v2154_v61 = vmul.f32 %v4543_v8, %v2074_v22  ;;  %v1683_v21 = vmul.f32 %v4541_v36, %v4969_v48  ;;  %v4970_v22 = vld [vmem:[#allocation12_spill] sm:$0xff] }
 0x63b   : > { %2249 = vst.msk [vmem:[%s4562_s16 + $0xa8] sm:$0xff] %vm1787_vm2, %v2217_v1  ;;  %v2187_v15 = vadd.f32 %v2155_v53, %v4455_v31  ;;  %v1710_v31 = vadd.f32 %v1678_v25, %v4465_v7 }
 0x63c   : > { %2248 = vst.msk [vmem:[%s4562_s16 + $0xa0] sm:$0xff] %vm1787_vm2, %v2216_v35  ;;  %v2186_v46 = vadd.f32 %v2154_v61, %v4448_v55  ;;  %v2644_v13 = vpop.f32.mrb[74].mxu1  ;;  %v1709_v55 = vadd.f32 %v1677_v38, %v4960_v54  ;;  %v1716_v35 = vadd.f32 %v1684_v51, %v4970_v22  ;;  %v4971_v61 = vld [vmem:[#allocation11_spill] sm:$0xff] }
 0x63d   : > { %v2219_v23 = vadd.f32 %v2187_v15, %v1708_v3  ;;  %v2157_v59 = vmul.f32 %v2644_v13, %v4543_v8  ;;  %v2084_v37 = vpop.f32.mrb[75].mxu1  ;;  %v1715_v3 = vadd.f32 %v1683_v21, %v4971_v61 }
 0x63e   : > { %v2218_v50 = vadd.f32 %v2186_v46, %v1707_v9  ;;  %v2156_v18 = vmul.f32 %v4543_v8, %v2084_v37 }
 0x63f   : > { %2251 = vst.msk [vmem:[%s4562_s16 + $0xb8] sm:$0xff] %vm1787_vm2, %v2219_v23  ;;  %v2189_v28 = vadd.f32 %v2157_v59, %v4465_v7  ;;  %v1712_v7 = vadd.f32 %v1680_v33, %v4962_v52 }
 0x640   : > { %2250 = vst.msk [vmem:[%s4562_s16 + $0xb0] sm:$0xff] %vm1787_vm2, %v2218_v50  ;;  %v2188_v6 = vadd.f32 %v2156_v18, %v4960_v54  ;;  %v2647_v39 = vpop.f32.mrb[76].mxu1 }
 0x641   : > { %v2221_v10 = vadd.f32 %v2189_v28, %v1710_v31  ;;  %v2159_v32 = vmul.f32 %v2647_v39, %v4543_v8  ;;  %v2094_v11 = vpop.f32.mrb[77].mxu1 }
 0x642   : > { %v2220_v27 = vadd.f32 %v2188_v6, %v1709_v55  ;;  %v2158_v47 = vmul.f32 %v4543_v8, %v2094_v11 }
 0x643   : > { %2253 = vst.msk [vmem:[%s4562_s16 + $0xc8] sm:$0xff] %vm1787_vm2, %v2221_v10  ;;  %v2191_v44 = vadd.f32 %v2159_v32, %v4962_v52 }
 0x644   : > { %2252 = vst.msk [vmem:[%s4562_s16 + $0xc0] sm:$0xff] %vm1787_vm2, %v2220_v27  ;;  %v2190_v26 = vadd.f32 %v2158_v47, %v4964_v16  ;;  %v2650_v57 = vpop.f32.mrb[78].mxu1 }
 0x645   : > { %v2223_v63 = vadd.f32 %v2191_v44, %v1712_v7  ;;  %v2161_v0 = vmul.f32 %v2650_v57, %v4543_v8  ;;  %v2104_v41 = vpop.f32.mrb[79].mxu1 }
 0x646   : > { %v2222_v62 = vadd.f32 %v2190_v26, %v1711_v30  ;;  %v2160_v60 = vmul.f32 %v4543_v8, %v2104_v41 }
 0x647   : > { %2255 = vst.msk [vmem:[%s4562_s16 + $0xd8] sm:$0xff] %vm1787_vm2, %v2223_v63  ;;  %v2193_v12 = vadd.f32 %v2161_v0, %v4966_v19 }
 0x648   : > { %2254 = vst.msk [vmem:[%s4562_s16 + $0xd0] sm:$0xff] %vm1787_vm2, %v2222_v62  ;;  %v2192_v24 = vadd.f32 %v2160_v60, %v4968_v42  ;;  %v2653_v14 = vpop.f32.mrb[80].mxu1 }
 0x649   : > { %v2225_v20 = vadd.f32 %v2193_v12, %v1714_v58  ;;  %v2163_v43 = vmul.f32 %v2653_v14, %v4543_v8  ;;  %v2114_v29 = vpop.f32.mrb[81].mxu1 }
 0x64a   : > { %v2224_v1 = vadd.f32 %v2192_v24, %v1713_v49  ;;  %v2162_v53 = vmul.f32 %v4543_v8, %v2114_v29 }
 0x64b   : > { %2257 = vst.msk [vmem:[%s4562_s16 + $0xe8] sm:$0xff] %vm1787_vm2, %v2225_v20  ;;  %v2195_v36 = vadd.f32 %v2163_v43, %v4970_v22 }
 0x64c   : > { %2256 = vst.msk [vmem:[%s4562_s16 + $0xe0] sm:$0xff] %vm1787_vm2, %v2224_v1  ;;  %v2194_v25 = vadd.f32 %v2162_v53, %v4971_v61 }
 0x64d   : > { %v2227_v15 = vadd.f32 %v2195_v36, %v1716_v35 }
 0x64e   : > { %v2226_v9 = vadd.f32 %v2194_v25, %v1715_v3 }
 0x64f   : > { %2259 = vst.msk [vmem:[%s4562_s16 + $0xf8] sm:$0xff] %vm1787_vm2, %v2227_v15 }
 0x650   : > { %2258 = vst.msk [vmem:[%s4562_s16 + $0xf0] sm:$0xff] %vm1787_vm2, %v2226_v9 }
 0x651 PF: > { %s15_s18 = sadd.s32 1, %s3158_s18  }
 0x652   : > { %p12_p4 = scmp.ge.s32.totalorder %s15_s18, 10  }
 0x654   :  { %14 = sbr.rel (!%p12_p4) target bundleno = 1 (0x1), region = 82 }

</bundles_post_ra>
